<compile_context>
chip_gen: v5e
topology: v5e:2x2
jax: 0.10.0
libtpu: 0.0.40
codegen_flags: <defaults>
</compile_context>

<pallas_src>
import jax
import jax.numpy as jnp
import numpy as np
from jax.experimental import pallas as pl
from jax.experimental.pallas import tpu as pltpu

EPS = 1e-5
CPACK = 16  # bf16 sublane pack -> minimum channel padding


def _round_up(c, m=CPACK):
    return ((c + m - 1) // m) * m


# ----------------------------- Pallas kernels ------------------------------

def _conv_core(y_hwc, w_ref, o_ref, sum_ref, ssq_ref, xpad_ref):
    """Shared conv body.

    y_hwc   : (H, W, Ci)  f32 value (already BN+ReLU'd if needed)
    w_ref   : (9, Ci, Co) bf16 weights, tap-major (kh*3 + kw)
    o_ref   : (1, H, W, Co) f32 output block
    sum_ref : (1, 1, Co)  f32 per-image channel sum
    ssq_ref : (1, 1, Co)  f32 per-image channel sum of squares
    xpad_ref: (H+2, W+2, Ci) bf16 VMEM halo scratch
    """
    H, W, Ci = y_hwc.shape
    Co = o_ref.shape[-1]
    Hp, Wp = H + 2, W + 2

    # Zero only the 1-pixel halo border; the interior is fully overwritten.
    zrow = jnp.zeros((1, Wp, Ci), jnp.bfloat16)
    xpad_ref[0:1, :, :] = zrow
    xpad_ref[Hp - 1:Hp, :, :] = zrow
    zcol = jnp.zeros((H, 1, Ci), jnp.bfloat16)
    xpad_ref[1:H + 1, 0:1, :] = zcol
    xpad_ref[1:H + 1, Wp - 1:Wp, :] = zcol

    # Single f32 -> bf16 cast, at the interior write.
    xpad_ref[1:H + 1, 1:W + 1, :] = y_hwc.astype(jnp.bfloat16)

    # 9 shifted-window matmuls accumulated in f32 (no patch matrix, no concat).
    acc = jnp.zeros((H * W, Co), jnp.float32)
    for k in range(9):
        kh, kw = k // 3, k % 3
        xs = xpad_ref[kh:kh + H, kw:kw + W, :].reshape(H * W, Ci)
        acc = acc + jnp.dot(xs, w_ref[k], preferred_element_type=jnp.float32)

    o_ref[0] = acc.reshape(H, W, Co)

    # BN-stats epilogue (f32): per-image channel sum and sum of squares.
    sum_ref[0] = jnp.sum(acc, axis=0, keepdims=True)            # (1, Co)
    ssq_ref[0] = jnp.sum(acc * acc, axis=0, keepdims=True)      # (1, Co)


def _conv_stats_kernel(x_ref, w_ref, o_ref, sum_ref, ssq_ref, xpad_ref):
    # conv1: raw (padded) input -> conv -> stats
    _conv_core(x_ref[0], w_ref, o_ref, sum_ref, ssq_ref, xpad_ref)


def _bnrelu_conv_stats_kernel(x_ref, w_ref, scale_ref, shift_ref,
                              o_ref, sum_ref, ssq_ref, xpad_ref):
    # conv2: BN1 (scale/shift) + ReLU fused into the conv prologue.
    y = jnp.maximum(x_ref[0] * scale_ref[0] + shift_ref[0], 0.0)
    _conv_core(y, w_ref, o_ref, sum_ref, ssq_ref, xpad_ref)


def _bn_relu_out_kernel(x_ref, scale_ref, shift_ref, o_ref):
    # Final BN2 + ReLU; drop the channel padding before the HBM write.
    cout = o_ref.shape[-1]
    y = jnp.maximum(x_ref[0] * scale_ref[0] + shift_ref[0], 0.0)
    o_ref[0] = y[:, :, :cout]


# ------------------------------ wrappers ------------------------------------

def _prep_weight(w_oihw, ci, co):
    """(Cout, Cin, 3, 3) -> zero-padded (9, ci, co) bf16, tap order (kh, kw)."""
    cout, cin, kh, kw = w_oihw.shape
    w = jnp.transpose(w_oihw, (2, 3, 1, 0))                      # (3, 3, Cin, Cout)
    w = jnp.pad(w, ((0, 0), (0, 0), (0, ci - cin), (0, co - cout)))
    return w.reshape(kh * kw, ci, co).astype(jnp.bfloat16)


def _conv_block(x_nhwc, w_taps, scale_p=None, shift_p=None):
    """One fused pallas_call: [optional BN+ReLU] -> conv3x3 -> partial BN stats."""
    N, H, W, Ci = x_nhwc.shape
    _, _, Co = w_taps.shape

    x_spec = pl.BlockSpec((1, H, W, Ci), lambda n: (n, 0, 0, 0))
    w_spec = pl.BlockSpec(w_taps.shape, lambda n: (0, 0, 0))

    out_shape = (jax.ShapeDtypeStruct((N, H, W, Co), jnp.float32),
                 jax.ShapeDtypeStruct((N, 1, Co), jnp.float32),
                 jax.ShapeDtypeStruct((N, 1, Co), jnp.float32))
    out_specs = (pl.BlockSpec((1, H, W, Co), lambda n: (n, 0, 0, 0)),
                 pl.BlockSpec((1, 1, Co), lambda n: (n, 0, 0)),
                 pl.BlockSpec((1, 1, Co), lambda n: (n, 0, 0)))

    if scale_p is None:
        kernel = _conv_stats_kernel
        in_specs = [x_spec, w_spec]
        args = (x_nhwc, w_taps)
    else:
        kernel = _bnrelu_conv_stats_kernel
        vec_spec = pl.BlockSpec(scale_p.shape, lambda n: (0, 0))
        in_specs = [x_spec, w_spec, vec_spec, vec_spec]
        args = (x_nhwc, w_taps, scale_p, shift_p)

    return pl.pallas_call(
        kernel,
        out_shape=out_shape,
        grid=(N,),
        in_specs=in_specs,
        out_specs=out_specs,
        scratch_shapes=[pltpu.VMEM((H + 2, W + 2, Ci), jnp.bfloat16)],
        compiler_params=pltpu.CompilerParams(dimension_semantics=("parallel",)),
    )(*args)


def _bn_relu_out(x_nhwc, scale_p, shift_p, cout):
    N, H, W, Ci = x_nhwc.shape
    return pl.pallas_call(
        _bn_relu_out_kernel,
        out_shape=jax.ShapeDtypeStruct((N, H, W, cout), jnp.float32),
        grid=(N,),
        in_specs=[pl.BlockSpec((1, H, W, Ci), lambda n: (n, 0, 0, 0)),
                  pl.BlockSpec(scale_p.shape, lambda n: (0, 0)),
                  pl.BlockSpec(shift_p.shape, lambda n: (0, 0))],
        out_specs=pl.BlockSpec((1, H, W, cout), lambda n: (n, 0, 0, 0)),
        compiler_params=pltpu.CompilerParams(dimension_semantics=("parallel",)),
    )(x_nhwc, scale_p, shift_p)


def _bn_scale_shift(psum, pssq, gamma, beta, count, cout, cpad):
    """Finalize per-image partial stats -> padded (1, cpad) scale / shift."""
    s = jnp.sum(psum[:, 0, :cout], axis=0)
    ss = jnp.sum(pssq[:, 0, :cout], axis=0)
    mean = s / count
    # Biased (training-mode) variance; single-pass sum/sum^2 is fine at these
    # magnitudes / counts (see TODO at top for large N*H*W).
    var = jnp.maximum(ss / count - mean * mean, 0.0)
    scale = gamma / jnp.sqrt(var + EPS)
    shift = beta - mean * scale
    scale_p = jnp.zeros((1, cpad), jnp.float32).at[0, :cout].set(scale)
    shift_p = jnp.zeros((1, cpad), jnp.float32).at[0, :cout].set(shift)
    return scale_p, shift_p


@jax.jit
def double_conv(x_nchw, w1_oihw, g1, b1, w2_oihw, g2, b2):
    N, Cin, H, W = x_nchw.shape
    Cout = w1_oihw.shape[0]
    ci = _round_up(Cin)    # conv1 contraction pad (bf16 sublane pack)
    co = _round_up(Cout)   # activation channel pad between / after the convs

    # NCHW -> NHWC, small channel pad (4x, not 32x) for the conv1 contraction.
    x = jnp.transpose(x_nchw, (0, 2, 3, 1)).astype(jnp.float32)
    x = jnp.pad(x, ((0, 0), (0, 0), (0, 0), (0, ci - Cin)))

    w1 = _prep_weight(w1_oihw, ci, co)
    w2 = _prep_weight(w2_oihw, co, co)
    cnt = float(N * H * W)

    # conv1 + BN1 partial stats
    c1, ps1, pq1 = _conv_block(x, w1)
    s1, t1 = _bn_scale_shift(ps1, pq1, g1, b1, cnt, Cout, co)

    # BN1 + ReLU fused into conv2 prologue, + BN2 partial stats
    c2, ps2, pq2 = _conv_block(c1, w2, s1, t1)
    s2, t2 = _bn_scale_shift(ps2, pq2, g2, b2, cnt, Cout, co)

    # BN2 + ReLU + channel un-pad (Cout-wide HBM write)
    y = _bn_relu_out(c2, s2, t2, Cout)

    # NHWC -> NCHW (tiny un-padded tensor; see TODO about in-kernel fusion).
    return jnp.transpose(y, (0, 3, 1, 2))


# --------------------------- pure-JAX reference ------------------------------

def reference(x_nchw, w1_oihw, g1, b1, w2_oihw, g2, b2):
    def conv(x, w):
        return jax.lax.conv_general_dilated(
            x, w, window_strides=(1, 1), padding=((1, 1), (1, 1)),
            dimension_numbers=("NCHW", "OIHW", "NCHW"))

    def bnrelu(x, g, b):
        m = jnp.mean(x, axis=(0, 2, 3), keepdims=True)
        v = jnp.mean((x - m) ** 2, axis=(0, 2, 3), keepdims=True)
        y = (x - m) / jnp.sqrt(v + EPS) * g.reshape(1, -1, 1, 1) + b.reshape(1, -1, 1, 1)
        return jnp.maximum(y, 0.0)

    h = bnrelu(conv(x_nchw, w1_oihw), g1, b1)
    return bnrelu(conv(h, w2_oihw), g2, b2)


# --------------------------------- main --------------------------------------

if __name__ == "__main__":
    in_channels, out_channels = 4, 8
    N, H, W = 2, 16, 16

    key = jax.random.PRNGKey(0)
    kx, kw1, kw2, kg1, kb1, kg2, kb2 = jax.random.split(key, 7)

    x = jax.random.normal(kx, (N, in_channels, H, W), dtype=jnp.float32)

    # PyTorch weight layout OIHW, no conv bias.
    w1_oihw = jax.random.normal(kw1, (out_channels, in_channels, 3, 3), jnp.float32) * 0.1
    w2_oihw = jax.random.normal(kw2, (out_channels, out_channels, 3, 3), jnp.float32) * 0.1
    g1 = 1.0 + 0.1 * jax.random.normal(kg1, (out_channels,), jnp.float32)
    b1 = 0.1 * jax.random.normal(kb1, (out_channels,), jnp.float32)
    g2 = 1.0 + 0.1 * jax.random.normal(kg2, (out_channels,), jnp.float32)
    b2 = 0.1 * jax.random.normal(kb2, (out_channels,), jnp.float32)

    out = jax.block_until_ready(double_conv(x, w1_oihw, g1, b1, w2_oihw, g2, b2))
    ref = jax.block_until_ready(reference(x, w1_oihw, g1, b1, w2_oihw, g2, b2))

    # Tolerance loosened vs. pure-f32 (bf16 MXU operands, f32 accumulation);
    # real bugs produce O(0.1..1) errors, well above this threshold.
    np.testing.assert_allclose(np.asarray(out), np.asarray(ref),
                               rtol=3e-2, atol=3e-2)
    print("KERNEL_OK")
</pallas_src>

<mosaic_0001>
module attributes {stable_mosaic.version = 11 : i64} {
  func.func @_conv_stats_kernel(%arg0: i32, %arg1: memref<1x16x16x16xf32, #tpu.memory_space<vmem>>, %arg2: memref<9x16x16xbf16, #tpu.memory_space<vmem>>, %arg3: memref<1x16x16x16xf32, #tpu.memory_space<vmem>>, %arg4: memref<1x1x16xf32, #tpu.memory_space<vmem>>, %arg5: memref<1x1x16xf32, #tpu.memory_space<vmem>>, %arg6: memref<18x18x16xbf16, #tpu.memory_space<vmem>>) attributes {dimension_semantics = [#tpu.dimension_semantics<parallel>], iteration_bounds = array<i64: 2>, scalar_prefetch = 0 : i64, scratch_operands = 1 : i64, tpu.core_type = #tpu.core_type<tc>, window_params = [{transform_indices = @transform_0, window_bounds = array<i64: 1, 16, 16, 16>}, {pipeline_mode = #tpu.pipeline_mode<synchronous>, transform_indices = @transform_1, window_bounds = array<i64: 9, 16, 16>}, {transform_indices = @transform_2, window_bounds = array<i64: 1, 16, 16, 16>}, {transform_indices = @transform_3, window_bounds = array<i64: 1, 1, 16>}, {transform_indices = @transform_4, window_bounds = array<i64: 1, 1, 16>}]} {
    %c0 = arith.constant 0 : index
    %c0_0 = arith.constant 0 : index
    %c0_1 = arith.constant 0 : index
    %c0_2 = arith.constant 0 : index
    %0 = vector.load %arg1[%c0, %c0_0, %c0_1, %c0_2] : memref<1x16x16x16xf32, #tpu.memory_space<vmem>>, vector<1x16x16x16xf32>
    %1 = vector.shape_cast %0 : vector<1x16x16x16xf32> to vector<16x16x16xf32>
    %cst = arith.constant 0.000000e+00 : bf16
    %2 = vector.broadcast %cst : bf16 to vector<1x18x16xbf16>
    %c0_3 = arith.constant 0 : index
    %c0_4 = arith.constant 0 : index
    %c0_5 = arith.constant 0 : index
    %3 = vector.load %arg6[%c0_3, %c0_4, %c0_5] : memref<18x18x16xbf16, #tpu.memory_space<vmem>>, vector<1x18x16xbf16>
    tpu.vector_store %arg6[%c0_3, %c0_4, %c0_5], %2 {strides = array<i32>} : memref<18x18x16xbf16, #tpu.memory_space<vmem>>, vector<1x18x16xbf16>,
    %c17 = arith.constant 17 : index
    %c0_6 = arith.constant 0 : index
    %c0_7 = arith.constant 0 : index
    %4 = vector.load %arg6[%c17, %c0_6, %c0_7] : memref<18x18x16xbf16, #tpu.memory_space<vmem>>, vector<1x18x16xbf16>
    tpu.vector_store %arg6[%c17, %c0_6, %c0_7], %2 {strides = array<i32>} : memref<18x18x16xbf16, #tpu.memory_space<vmem>>, vector<1x18x16xbf16>,
    %cst_8 = arith.constant 0.000000e+00 : bf16
    %5 = vector.broadcast %cst_8 : bf16 to vector<16x1x16xbf16>
    %c1 = arith.constant 1 : index
    %c0_9 = arith.constant 0 : index
    %c0_10 = arith.constant 0 : index
    %6 = vector.load %arg6[%c1, %c0_9, %c0_10] : memref<18x18x16xbf16, #tpu.memory_space<vmem>>, vector<16x1x16xbf16>
    tpu.vector_store %arg6[%c1, %c0_9, %c0_10], %5 {strides = array<i32>} : memref<18x18x16xbf16, #tpu.memory_space<vmem>>, vector<16x1x16xbf16>,
    %c1_11 = arith.constant 1 : index
    %c17_12 = arith.constant 17 : index
    %c0_13 = arith.constant 0 : index
    %7 = vector.load %arg6[%c1_11, %c17_12, %c0_13] : memref<18x18x16xbf16, #tpu.memory_space<vmem>>, vector<16x1x16xbf16>
    tpu.vector_store %arg6[%c1_11, %c17_12, %c0_13], %5 {strides = array<i32>} : memref<18x18x16xbf16, #tpu.memory_space<vmem>>, vector<16x1x16xbf16>,
    %8 = arith.truncf %1 : vector<16x16x16xf32> to vector<16x16x16xbf16>
    %c1_14 = arith.constant 1 : index
    %c1_15 = arith.constant 1 : index
    %c0_16 = arith.constant 0 : index
    %9 = vector.load %arg6[%c1_14, %c1_15, %c0_16] : memref<18x18x16xbf16, #tpu.memory_space<vmem>>, vector<16x16x16xbf16>
    tpu.vector_store %arg6[%c1_14, %c1_15, %c0_16], %8 {strides = array<i32>} : memref<18x18x16xbf16, #tpu.memory_space<vmem>>, vector<16x16x16xbf16>,
    %cst_17 = arith.constant 0.000000e+00 : f32
    %10 = vector.broadcast %cst_17 : f32 to vector<256x16xf32>
    %c0_18 = arith.constant 0 : index
    %c0_19 = arith.constant 0 : index
    %c0_20 = arith.constant 0 : index
    %11 = vector.load %arg6[%c0_18, %c0_19, %c0_20] : memref<18x18x16xbf16, #tpu.memory_space<vmem>>, vector<16x16x16xbf16>
    %12 = vector.shape_cast %11 : vector<16x16x16xbf16> to vector<256x16xbf16>
    %c0_21 = arith.constant 0 : index
    %c0_22 = arith.constant 0 : index
    %c0_23 = arith.constant 0 : index
    %13 = vector.load %arg2[%c0_21, %c0_22, %c0_23] : memref<9x16x16xbf16, #tpu.memory_space<vmem>>, vector<1x16x16xbf16>
    %14 = vector.shape_cast %13 : vector<1x16x16xbf16> to vector<16x16xbf16>
    %cst_24 = arith.constant dense<0.000000e+00> : vector<256x16xf32>
    %15 = tpu.matmul %12, %14, %cst_24 {dimension_numbers = #tpu.dot_dimension_numbers<[1], [0], [0], [1], [0, 0, 1, 1], [], []>} : vector<256x16xbf16>, vector<16x16xbf16>, vector<256x16xf32> -> vector<256x16xf32>
    %16 = arith.addf %10, %15 : vector<256x16xf32>
    %c0_25 = arith.constant 0 : index
    %c1_26 = arith.constant 1 : index
    %c0_27 = arith.constant 0 : index
    %17 = vector.load %arg6[%c0_25, %c1_26, %c0_27] : memref<18x18x16xbf16, #tpu.memory_space<vmem>>, vector<16x16x16xbf16>
    %18 = vector.shape_cast %17 : vector<16x16x16xbf16> to vector<256x16xbf16>
    %c1_28 = arith.constant 1 : index
    %c0_29 = arith.constant 0 : index
    %c0_30 = arith.constant 0 : index
    %19 = vector.load %arg2[%c1_28, %c0_29, %c0_30] : memref<9x16x16xbf16, #tpu.memory_space<vmem>>, vector<1x16x16xbf16>
    %20 = vector.shape_cast %19 : vector<1x16x16xbf16> to vector<16x16xbf16>
    %cst_31 = arith.constant dense<0.000000e+00> : vector<256x16xf32>
    %21 = tpu.matmul %18, %20, %cst_31 {dimension_numbers = #tpu.dot_dimension_numbers<[1], [0], [0], [1], [0, 0, 1, 1], [], []>} : vector<256x16xbf16>, vector<16x16xbf16>, vector<256x16xf32> -> vector<256x16xf32>
    %22 = arith.addf %16, %21 : vector<256x16xf32>
    %c0_32 = arith.constant 0 : index
    %c2 = arith.constant 2 : index
    %c0_33 = arith.constant 0 : index
    %23 = vector.load %arg6[%c0_32, %c2, %c0_33] : memref<18x18x16xbf16, #tpu.memory_space<vmem>>, vector<16x16x16xbf16>
    %24 = vector.shape_cast %23 : vector<16x16x16xbf16> to vector<256x16xbf16>
    %c2_34 = arith.constant 2 : index
    %c0_35 = arith.constant 0 : index
    %c0_36 = arith.constant 0 : index
    %25 = vector.load %arg2[%c2_34, %c0_35, %c0_36] : memref<9x16x16xbf16, #tpu.memory_space<vmem>>, vector<1x16x16xbf16>
    %26 = vector.shape_cast %25 : vector<1x16x16xbf16> to vector<16x16xbf16>
    %cst_37 = arith.constant dense<0.000000e+00> : vector<256x16xf32>
    %27 = tpu.matmul %24, %26, %cst_37 {dimension_numbers = #tpu.dot_dimension_numbers<[1], [0], [0], [1], [0, 0, 1, 1], [], []>} : vector<256x16xbf16>, vector<16x16xbf16>, vector<256x16xf32> -> vector<256x16xf32>
    %28 = arith.addf %22, %27 : vector<256x16xf32>
    %c1_38 = arith.constant 1 : index
    %c0_39 = arith.constant 0 : index
    %c0_40 = arith.constant 0 : index
    %29 = vector.load %arg6[%c1_38, %c0_39, %c0_40] : memref<18x18x16xbf16, #tpu.memory_space<vmem>>, vector<16x16x16xbf16>
    %30 = vector.shape_cast %29 : vector<16x16x16xbf16> to vector<256x16xbf16>
    %c3 = arith.constant 3 : index
    %c0_41 = arith.constant 0 : index
    %c0_42 = arith.constant 0 : index
    %31 = vector.load %arg2[%c3, %c0_41, %c0_42] : memref<9x16x16xbf16, #tpu.memory_space<vmem>>, vector<1x16x16xbf16>
    %32 = vector.shape_cast %31 : vector<1x16x16xbf16> to vector<16x16xbf16>
    %cst_43 = arith.constant dense<0.000000e+00> : vector<256x16xf32>
    %33 = tpu.matmul %30, %32, %cst_43 {dimension_numbers = #tpu.dot_dimension_numbers<[1], [0], [0], [1], [0, 0, 1, 1], [], []>} : vector<256x16xbf16>, vector<16x16xbf16>, vector<256x16xf32> -> vector<256x16xf32>
    %34 = arith.addf %28, %33 : vector<256x16xf32>
    %c1_44 = arith.constant 1 : index
    %c1_45 = arith.constant 1 : index
    %c0_46 = arith.constant 0 : index
    %35 = vector.load %arg6[%c1_44, %c1_45, %c0_46] : memref<18x18x16xbf16, #tpu.memory_space<vmem>>, vector<16x16x16xbf16>
    %36 = vector.shape_cast %35 : vector<16x16x16xbf16> to vector<256x16xbf16>
    %c4 = arith.constant 4 : index
    %c0_47 = arith.constant 0 : index
    %c0_48 = arith.constant 0 : index
    %37 = vector.load %arg2[%c4, %c0_47, %c0_48] : memref<9x16x16xbf16, #tpu.memory_space<vmem>>, vector<1x16x16xbf16>
    %38 = vector.shape_cast %37 : vector<1x16x16xbf16> to vector<16x16xbf16>
    %cst_49 = arith.constant dense<0.000000e+00> : vector<256x16xf32>
    %39 = tpu.matmul %36, %38, %cst_49 {dimension_numbers = #tpu.dot_dimension_numbers<[1], [0], [0], [1], [0, 0, 1, 1], [], []>} : vector<256x16xbf16>, vector<16x16xbf16>, vector<256x16xf32> -> vector<256x16xf32>
    %40 = arith.addf %34, %39 : vector<256x16xf32>
    %c1_50 = arith.constant 1 : index
    %c2_51 = arith.constant 2 : index
    %c0_52 = arith.constant 0 : index
    %41 = vector.load %arg6[%c1_50, %c2_51, %c0_52] : memref<18x18x16xbf16, #tpu.memory_space<vmem>>, vector<16x16x16xbf16>
    %42 = vector.shape_cast %41 : vector<16x16x16xbf16> to vector<256x16xbf16>
    %c5 = arith.constant 5 : index
    %c0_53 = arith.constant 0 : index
    %c0_54 = arith.constant 0 : index
    %43 = vector.load %arg2[%c5, %c0_53, %c0_54] : memref<9x16x16xbf16, #tpu.memory_space<vmem>>, vector<1x16x16xbf16>
    %44 = vector.shape_cast %43 : vector<1x16x16xbf16> to vector<16x16xbf16>
    %cst_55 = arith.constant dense<0.000000e+00> : vector<256x16xf32>
    %45 = tpu.matmul %42, %44, %cst_55 {dimension_numbers = #tpu.dot_dimension_numbers<[1], [0], [0], [1], [0, 0, 1, 1], [], []>} : vector<256x16xbf16>, vector<16x16xbf16>, vector<256x16xf32> -> vector<256x16xf32>
    %46 = arith.addf %40, %45 : vector<256x16xf32>
    %c2_56 = arith.constant 2 : index
    %c0_57 = arith.constant 0 : index
    %c0_58 = arith.constant 0 : index
    %47 = vector.load %arg6[%c2_56, %c0_57, %c0_58] : memref<18x18x16xbf16, #tpu.memory_space<vmem>>, vector<16x16x16xbf16>
    %48 = vector.shape_cast %47 : vector<16x16x16xbf16> to vector<256x16xbf16>
    %c6 = arith.constant 6 : index
    %c0_59 = arith.constant 0 : index
    %c0_60 = arith.constant 0 : index
    %49 = vector.load %arg2[%c6, %c0_59, %c0_60] : memref<9x16x16xbf16, #tpu.memory_space<vmem>>, vector<1x16x16xbf16>
    %50 = vector.shape_cast %49 : vector<1x16x16xbf16> to vector<16x16xbf16>
    %cst_61 = arith.constant dense<0.000000e+00> : vector<256x16xf32>
    %51 = tpu.matmul %48, %50, %cst_61 {dimension_numbers = #tpu.dot_dimension_numbers<[1], [0], [0], [1], [0, 0, 1, 1], [], []>} : vector<256x16xbf16>, vector<16x16xbf16>, vector<256x16xf32> -> vector<256x16xf32>
    %52 = arith.addf %46, %51 : vector<256x16xf32>
    %c2_62 = arith.constant 2 : index
    %c1_63 = arith.constant 1 : index
    %c0_64 = arith.constant 0 : index
    %53 = vector.load %arg6[%c2_62, %c1_63, %c0_64] : memref<18x18x16xbf16, #tpu.memory_space<vmem>>, vector<16x16x16xbf16>
    %54 = vector.shape_cast %53 : vector<16x16x16xbf16> to vector<256x16xbf16>
    %c7 = arith.constant 7 : index
    %c0_65 = arith.constant 0 : index
    %c0_66 = arith.constant 0 : index
    %55 = vector.load %arg2[%c7, %c0_65, %c0_66] : memref<9x16x16xbf16, #tpu.memory_space<vmem>>, vector<1x16x16xbf16>
    %56 = vector.shape_cast %55 : vector<1x16x16xbf16> to vector<16x16xbf16>
    %cst_67 = arith.constant dense<0.000000e+00> : vector<256x16xf32>
    %57 = tpu.matmul %54, %56, %cst_67 {dimension_numbers = #tpu.dot_dimension_numbers<[1], [0], [0], [1], [0, 0, 1, 1], [], []>} : vector<256x16xbf16>, vector<16x16xbf16>, vector<256x16xf32> -> vector<256x16xf32>
    %58 = arith.addf %52, %57 : vector<256x16xf32>
    %c2_68 = arith.constant 2 : index
    %c2_69 = arith.constant 2 : index
    %c0_70 = arith.constant 0 : index
    %59 = vector.load %arg6[%c2_68, %c2_69, %c0_70] : memref<18x18x16xbf16, #tpu.memory_space<vmem>>, vector<16x16x16xbf16>
    %60 = vector.shape_cast %59 : vector<16x16x16xbf16> to vector<256x16xbf16>
    %c8 = arith.constant 8 : index
    %c0_71 = arith.constant 0 : index
    %c0_72 = arith.constant 0 : index
    %61 = vector.load %arg2[%c8, %c0_71, %c0_72] : memref<9x16x16xbf16, #tpu.memory_space<vmem>>, vector<1x16x16xbf16>
    %62 = vector.shape_cast %61 : vector<1x16x16xbf16> to vector<16x16xbf16>
    %cst_73 = arith.constant dense<0.000000e+00> : vector<256x16xf32>
    %63 = tpu.matmul %60, %62, %cst_73 {dimension_numbers = #tpu.dot_dimension_numbers<[1], [0], [0], [1], [0, 0, 1, 1], [], []>} : vector<256x16xbf16>, vector<16x16xbf16>, vector<256x16xf32> -> vector<256x16xf32>
    %64 = arith.addf %58, %63 : vector<256x16xf32>
    %65 = vector.shape_cast %64 : vector<256x16xf32> to vector<16x16x16xf32>
    %c0_74 = arith.constant 0 : index
    %c0_75 = arith.constant 0 : index
    %c0_76 = arith.constant 0 : index
    %c0_77 = arith.constant 0 : index
    %66 = vector.load %arg3[%c0_74, %c0_75, %c0_76, %c0_77] : memref<1x16x16x16xf32, #tpu.memory_space<vmem>>, vector<1x16x16x16xf32>
    %67 = vector.shape_cast %66 : vector<1x16x16x16xf32> to vector<16x16x16xf32>
    %68 = vector.shape_cast %65 : vector<16x16x16xf32> to vector<1x16x16x16xf32>
    tpu.vector_store %arg3[%c0_74, %c0_75, %c0_76, %c0_77], %68 {strides = array<i32>} : memref<1x16x16x16xf32, #tpu.memory_space<vmem>>, vector<1x16x16x16xf32>,
    %cst_78 = arith.constant dense<0.000000e+00> : vector<16xf32>
    %69 = vector.multi_reduction <add>, %64, %cst_78 [0] : vector<256x16xf32> to vector<16xf32>
    %70 = vector.shape_cast %69 : vector<16xf32> to vector<1x16xf32>
    %c0_79 = arith.constant 0 : index
    %c0_80 = arith.constant 0 : index
    %c0_81 = arith.constant 0 : index
    %71 = vector.load %arg4[%c0_79, %c0_80, %c0_81] : memref<1x1x16xf32, #tpu.memory_space<vmem>>, vector<1x1x16xf32>
    %72 = vector.shape_cast %71 : vector<1x1x16xf32> to vector<1x16xf32>
    %73 = vector.shape_cast %70 : vector<1x16xf32> to vector<1x1x16xf32>
    tpu.vector_store %arg4[%c0_79, %c0_80, %c0_81], %73 {strides = array<i32>} : memref<1x1x16xf32, #tpu.memory_space<vmem>>, vector<1x1x16xf32>,
    %74 = arith.mulf %64, %64 : vector<256x16xf32>
    %cst_82 = arith.constant dense<0.000000e+00> : vector<16xf32>
    %75 = vector.multi_reduction <add>, %74, %cst_82 [0] : vector<256x16xf32> to vector<16xf32>
    %76 = vector.shape_cast %75 : vector<16xf32> to vector<1x16xf32>
    %c0_83 = arith.constant 0 : index
    %c0_84 = arith.constant 0 : index
    %c0_85 = arith.constant 0 : index
    %77 = vector.load %arg5[%c0_83, %c0_84, %c0_85] : memref<1x1x16xf32, #tpu.memory_space<vmem>>, vector<1x1x16xf32>
    %78 = vector.shape_cast %77 : vector<1x1x16xf32> to vector<1x16xf32>
    %79 = vector.shape_cast %76 : vector<1x16xf32> to vector<1x1x16xf32>
    tpu.vector_store %arg5[%c0_83, %c0_84, %c0_85], %79 {strides = array<i32>} : memref<1x1x16xf32, #tpu.memory_space<vmem>>, vector<1x1x16xf32>,
    return
  }
  func.func @transform_0(%arg0: i32) -> (i32, i32, i32, i32) {
    %c0_i32 = arith.constant 0 : i32
    %c0_i32_0 = arith.constant 0 : i32
    %c0_i32_1 = arith.constant 0 : i32
    %c0_i32_2 = arith.constant 0 : i32
    return %arg0, %c0_i32, %c0_i32_0, %c0_i32_1 : i32, i32, i32, i32
  }
  func.func @transform_1(%arg0: i32) -> (i32, i32, i32) {
    %c0_i32 = arith.constant 0 : i32
    %c0_i32_0 = arith.constant 0 : i32
    %c0_i32_1 = arith.constant 0 : i32
    %c0_i32_2 = arith.constant 0 : i32
    return %c0_i32, %c0_i32_0, %c0_i32_1 : i32, i32, i32
  }
  func.func @transform_2(%arg0: i32) -> (i32, i32, i32, i32) {
    %c0_i32 = arith.constant 0 : i32
    %c0_i32_0 = arith.constant 0 : i32
    %c0_i32_1 = arith.constant 0 : i32
    %c0_i32_2 = arith.constant 0 : i32
    return %arg0, %c0_i32, %c0_i32_0, %c0_i32_1 : i32, i32, i32, i32
  }
  func.func @transform_3(%arg0: i32) -> (i32, i32, i32) {
    %c0_i32 = arith.constant 0 : i32
    %c0_i32_0 = arith.constant 0 : i32
    %c0_i32_1 = arith.constant 0 : i32
    return %arg0, %c0_i32, %c0_i32_0 : i32, i32, i32
  }
  func.func @transform_4(%arg0: i32) -> (i32, i32, i32) {
    %c0_i32 = arith.constant 0 : i32
    %c0_i32_0 = arith.constant 0 : i32
    %c0_i32_1 = arith.constant 0 : i32
    return %arg0, %c0_i32, %c0_i32_0 : i32, i32, i32
  }
}

module attributes {stable_mosaic.version = 11 : i64} {
  func.func @_bn_relu_out_kernel(%arg0: i32, %arg1: memref<1x16x16x16xf32, #tpu.memory_space<vmem>>, %arg2: memref<1x16xf32, #tpu.memory_space<vmem>>, %arg3: memref<1x16xf32, #tpu.memory_space<vmem>>, %arg4: memref<1x16x16x8xf32, #tpu.memory_space<vmem>>) attributes {dimension_semantics = [#tpu.dimension_semantics<parallel>], iteration_bounds = array<i64: 2>, scalar_prefetch = 0 : i64, scratch_operands = 0 : i64, tpu.core_type = #tpu.core_type<tc>, window_params = [{transform_indices = @transform_0, window_bounds = array<i64: 1, 16, 16, 16>}, {pipeline_mode = #tpu.pipeline_mode<synchronous>, transform_indices = @transform_1, window_bounds = array<i64: 1, 16>}, {pipeline_mode = #tpu.pipeline_mode<synchronous>, transform_indices = @transform_2, window_bounds = array<i64: 1, 16>}, {transform_indices = @transform_3, window_bounds = array<i64: 1, 16, 16, 8>}]} {
    %c0 = arith.constant 0 : index
    %c0_0 = arith.constant 0 : index
    %c0_1 = arith.constant 0 : index
    %c0_2 = arith.constant 0 : index
    %0 = vector.load %arg1[%c0, %c0_0, %c0_1, %c0_2] : memref<1x16x16x16xf32, #tpu.memory_space<vmem>>, vector<1x16x16x16xf32>
    %1 = vector.shape_cast %0 : vector<1x16x16x16xf32> to vector<16x16x16xf32>
    %c0_3 = arith.constant 0 : index
    %c0_4 = arith.constant 0 : index
    %2 = vector.load %arg2[%c0_3, %c0_4] : memref<1x16xf32, #tpu.memory_space<vmem>>, vector<1x16xf32>
    %3 = vector.shape_cast %2 : vector<1x16xf32> to vector<16xf32>
    %4 = vector.shape_cast %3 : vector<16xf32> to vector<1x1x16xf32>
    %5 = vector.broadcast %4 : vector<1x1x16xf32> to vector<16x16x16xf32>
    %6 = arith.mulf %1, %5 : vector<16x16x16xf32>
    %c0_5 = arith.constant 0 : index
    %c0_6 = arith.constant 0 : index
    %7 = vector.load %arg3[%c0_5, %c0_6] : memref<1x16xf32, #tpu.memory_space<vmem>>, vector<1x16xf32>
    %8 = vector.shape_cast %7 : vector<1x16xf32> to vector<16xf32>
    %9 = vector.shape_cast %8 : vector<16xf32> to vector<1x1x16xf32>
    %10 = vector.broadcast %9 : vector<1x1x16xf32> to vector<16x16x16xf32>
    %11 = arith.addf %6, %10 : vector<16x16x16xf32>
    %cst = arith.constant 0.000000e+00 : f32
    %12 = vector.broadcast %cst : f32 to vector<16x16x16xf32>
    %13 = arith.maximumf %11, %12 : vector<16x16x16xf32>
    %14 = vector.extract_strided_slice %13 {offsets = [0, 0, 0], sizes = [16, 16, 8], strides = [1, 1, 1]} : vector<16x16x16xf32> to vector<16x16x8xf32>
    %c0_7 = arith.constant 0 : index
    %c0_8 = arith.constant 0 : index
    %c0_9 = arith.constant 0 : index
    %c0_10 = arith.constant 0 : index
    %15 = vector.load %arg4[%c0_7, %c0_8, %c0_9, %c0_10] : memref<1x16x16x8xf32, #tpu.memory_space<vmem>>, vector<1x16x16x8xf32>
    %16 = vector.shape_cast %15 : vector<1x16x16x8xf32> to vector<16x16x8xf32>
    %17 = vector.shape_cast %14 : vector<16x16x8xf32> to vector<1x16x16x8xf32>
    tpu.vector_store %arg4[%c0_7, %c0_8, %c0_9, %c0_10], %17 {strides = array<i32>} : memref<1x16x16x8xf32, #tpu.memory_space<vmem>>, vector<1x16x16x8xf32>,
    return
  }
  func.func @transform_0(%arg0: i32) -> (i32, i32, i32, i32) {
    %c0_i32 = arith.constant 0 : i32
    %c0_i32_0 = arith.constant 0 : i32
    %c0_i32_1 = arith.constant 0 : i32
    %c0_i32_2 = arith.constant 0 : i32
    return %arg0, %c0_i32, %c0_i32_0, %c0_i32_1 : i32, i32, i32, i32
  }
  func.func @transform_1(%arg0: i32) -> (i32, i32) {
    %c0_i32 = arith.constant 0 : i32
    %c0_i32_0 = arith.constant 0 : i32
    %c0_i32_1 = arith.constant 0 : i32
    return %c0_i32, %c0_i32_0 : i32, i32
  }
  func.func @transform_2(%arg0: i32) -> (i32, i32) {
    %c0_i32 = arith.constant 0 : i32
    %c0_i32_0 = arith.constant 0 : i32
    %c0_i32_1 = arith.constant 0 : i32
    return %c0_i32, %c0_i32_0 : i32, i32
  }
  func.func @transform_3(%arg0: i32) -> (i32, i32, i32, i32) {
    %c0_i32 = arith.constant 0 : i32
    %c0_i32_0 = arith.constant 0 : i32
    %c0_i32_1 = arith.constant 0 : i32
    %c0_i32_2 = arith.constant 0 : i32
    return %arg0, %c0_i32, %c0_i32_0, %c0_i32_1 : i32, i32, i32, i32
  }
}

module attributes {stable_mosaic.version = 11 : i64} {
  func.func @_bnrelu_conv_stats_kernel(%arg0: i32, %arg1: memref<1x16x16x16xf32, #tpu.memory_space<vmem>>, %arg2: memref<9x16x16xbf16, #tpu.memory_space<vmem>>, %arg3: memref<1x16xf32, #tpu.memory_space<vmem>>, %arg4: memref<1x16xf32, #tpu.memory_space<vmem>>, %arg5: memref<1x16x16x16xf32, #tpu.memory_space<vmem>>, %arg6: memref<1x1x16xf32, #tpu.memory_space<vmem>>, %arg7: memref<1x1x16xf32, #tpu.memory_space<vmem>>, %arg8: memref<18x18x16xbf16, #tpu.memory_space<vmem>>) attributes {dimension_semantics = [#tpu.dimension_semantics<parallel>], iteration_bounds = array<i64: 2>, scalar_prefetch = 0 : i64, scratch_operands = 1 : i64, tpu.core_type = #tpu.core_type<tc>, window_params = [{transform_indices = @transform_0, window_bounds = array<i64: 1, 16, 16, 16>}, {pipeline_mode = #tpu.pipeline_mode<synchronous>, transform_indices = @transform_1, window_bounds = array<i64: 9, 16, 16>}, {pipeline_mode = #tpu.pipeline_mode<synchronous>, transform_indices = @transform_2, window_bounds = array<i64: 1, 16>}, {pipeline_mode = #tpu.pipeline_mode<synchronous>, transform_indices = @transform_3, window_bounds = array<i64: 1, 16>}, {transform_indices = @transform_4, window_bounds = array<i64: 1, 16, 16, 16>}, {transform_indices = @transform_5, window_bounds = array<i64: 1, 1, 16>}, {transform_indices = @transform_6, window_bounds = array<i64: 1, 1, 16>}]} {
    %c0 = arith.constant 0 : index
    %c0_0 = arith.constant 0 : index
    %c0_1 = arith.constant 0 : index
    %c0_2 = arith.constant 0 : index
    %0 = vector.load %arg1[%c0, %c0_0, %c0_1, %c0_2] : memref<1x16x16x16xf32, #tpu.memory_space<vmem>>, vector<1x16x16x16xf32>
    %1 = vector.shape_cast %0 : vector<1x16x16x16xf32> to vector<16x16x16xf32>
    %c0_3 = arith.constant 0 : index
    %c0_4 = arith.constant 0 : index
    %2 = vector.load %arg3[%c0_3, %c0_4] : memref<1x16xf32, #tpu.memory_space<vmem>>, vector<1x16xf32>
    %3 = vector.shape_cast %2 : vector<1x16xf32> to vector<16xf32>
    %4 = vector.shape_cast %3 : vector<16xf32> to vector<1x1x16xf32>
    %5 = vector.broadcast %4 : vector<1x1x16xf32> to vector<16x16x16xf32>
    %6 = arith.mulf %1, %5 : vector<16x16x16xf32>
    %c0_5 = arith.constant 0 : index
    %c0_6 = arith.constant 0 : index
    %7 = vector.load %arg4[%c0_5, %c0_6] : memref<1x16xf32, #tpu.memory_space<vmem>>, vector<1x16xf32>
    %8 = vector.shape_cast %7 : vector<1x16xf32> to vector<16xf32>
    %9 = vector.shape_cast %8 : vector<16xf32> to vector<1x1x16xf32>
    %10 = vector.broadcast %9 : vector<1x1x16xf32> to vector<16x16x16xf32>
    %11 = arith.addf %6, %10 : vector<16x16x16xf32>
    %cst = arith.constant 0.000000e+00 : f32
    %12 = vector.broadcast %cst : f32 to vector<16x16x16xf32>
    %13 = arith.maximumf %11, %12 : vector<16x16x16xf32>
    %cst_7 = arith.constant 0.000000e+00 : bf16
    %14 = vector.broadcast %cst_7 : bf16 to vector<1x18x16xbf16>
    %c0_8 = arith.constant 0 : index
    %c0_9 = arith.constant 0 : index
    %c0_10 = arith.constant 0 : index
    %15 = vector.load %arg8[%c0_8, %c0_9, %c0_10] : memref<18x18x16xbf16, #tpu.memory_space<vmem>>, vector<1x18x16xbf16>
    tpu.vector_store %arg8[%c0_8, %c0_9, %c0_10], %14 {strides = array<i32>} : memref<18x18x16xbf16, #tpu.memory_space<vmem>>, vector<1x18x16xbf16>,
    %c17 = arith.constant 17 : index
    %c0_11 = arith.constant 0 : index
    %c0_12 = arith.constant 0 : index
    %16 = vector.load %arg8[%c17, %c0_11, %c0_12] : memref<18x18x16xbf16, #tpu.memory_space<vmem>>, vector<1x18x16xbf16>
    tpu.vector_store %arg8[%c17, %c0_11, %c0_12], %14 {strides = array<i32>} : memref<18x18x16xbf16, #tpu.memory_space<vmem>>, vector<1x18x16xbf16>,
    %cst_13 = arith.constant 0.000000e+00 : bf16
    %17 = vector.broadcast %cst_13 : bf16 to vector<16x1x16xbf16>
    %c1 = arith.constant 1 : index
    %c0_14 = arith.constant 0 : index
    %c0_15 = arith.constant 0 : index
    %18 = vector.load %arg8[%c1, %c0_14, %c0_15] : memref<18x18x16xbf16, #tpu.memory_space<vmem>>, vector<16x1x16xbf16>
    tpu.vector_store %arg8[%c1, %c0_14, %c0_15], %17 {strides = array<i32>} : memref<18x18x16xbf16, #tpu.memory_space<vmem>>, vector<16x1x16xbf16>,
    %c1_16 = arith.constant 1 : index
    %c17_17 = arith.constant 17 : index
    %c0_18 = arith.constant 0 : index
    %19 = vector.load %arg8[%c1_16, %c17_17, %c0_18] : memref<18x18x16xbf16, #tpu.memory_space<vmem>>, vector<16x1x16xbf16>
    tpu.vector_store %arg8[%c1_16, %c17_17, %c0_18], %17 {strides = array<i32>} : memref<18x18x16xbf16, #tpu.memory_space<vmem>>, vector<16x1x16xbf16>,
    %20 = arith.truncf %13 : vector<16x16x16xf32> to vector<16x16x16xbf16>
    %c1_19 = arith.constant 1 : index
    %c1_20 = arith.constant 1 : index
    %c0_21 = arith.constant 0 : index
    %21 = vector.load %arg8[%c1_19, %c1_20, %c0_21] : memref<18x18x16xbf16, #tpu.memory_space<vmem>>, vector<16x16x16xbf16>
    tpu.vector_store %arg8[%c1_19, %c1_20, %c0_21], %20 {strides = array<i32>} : memref<18x18x16xbf16, #tpu.memory_space<vmem>>, vector<16x16x16xbf16>,
    %cst_22 = arith.constant 0.000000e+00 : f32
    %22 = vector.broadcast %cst_22 : f32 to vector<256x16xf32>
    %c0_23 = arith.constant 0 : index
    %c0_24 = arith.constant 0 : index
    %c0_25 = arith.constant 0 : index
    %23 = vector.load %arg8[%c0_23, %c0_24, %c0_25] : memref<18x18x16xbf16, #tpu.memory_space<vmem>>, vector<16x16x16xbf16>
    %24 = vector.shape_cast %23 : vector<16x16x16xbf16> to vector<256x16xbf16>
    %c0_26 = arith.constant 0 : index
    %c0_27 = arith.constant 0 : index
    %c0_28 = arith.constant 0 : index
    %25 = vector.load %arg2[%c0_26, %c0_27, %c0_28] : memref<9x16x16xbf16, #tpu.memory_space<vmem>>, vector<1x16x16xbf16>
    %26 = vector.shape_cast %25 : vector<1x16x16xbf16> to vector<16x16xbf16>
    %cst_29 = arith.constant dense<0.000000e+00> : vector<256x16xf32>
    %27 = tpu.matmul %24, %26, %cst_29 {dimension_numbers = #tpu.dot_dimension_numbers<[1], [0], [0], [1], [0, 0, 1, 1], [], []>} : vector<256x16xbf16>, vector<16x16xbf16>, vector<256x16xf32> -> vector<256x16xf32>
    %28 = arith.addf %22, %27 : vector<256x16xf32>
    %c0_30 = arith.constant 0 : index
    %c1_31 = arith.constant 1 : index
    %c0_32 = arith.constant 0 : index
    %29 = vector.load %arg8[%c0_30, %c1_31, %c0_32] : memref<18x18x16xbf16, #tpu.memory_space<vmem>>, vector<16x16x16xbf16>
    %30 = vector.shape_cast %29 : vector<16x16x16xbf16> to vector<256x16xbf16>
    %c1_33 = arith.constant 1 : index
    %c0_34 = arith.constant 0 : index
    %c0_35 = arith.constant 0 : index
    %31 = vector.load %arg2[%c1_33, %c0_34, %c0_35] : memref<9x16x16xbf16, #tpu.memory_space<vmem>>, vector<1x16x16xbf16>
    %32 = vector.shape_cast %31 : vector<1x16x16xbf16> to vector<16x16xbf16>
    %cst_36 = arith.constant dense<0.000000e+00> : vector<256x16xf32>
    %33 = tpu.matmul %30, %32, %cst_36 {dimension_numbers = #tpu.dot_dimension_numbers<[1], [0], [0], [1], [0, 0, 1, 1], [], []>} : vector<256x16xbf16>, vector<16x16xbf16>, vector<256x16xf32> -> vector<256x16xf32>
    %34 = arith.addf %28, %33 : vector<256x16xf32>
    %c0_37 = arith.constant 0 : index
    %c2 = arith.constant 2 : index
    %c0_38 = arith.constant 0 : index
    %35 = vector.load %arg8[%c0_37, %c2, %c0_38] : memref<18x18x16xbf16, #tpu.memory_space<vmem>>, vector<16x16x16xbf16>
    %36 = vector.shape_cast %35 : vector<16x16x16xbf16> to vector<256x16xbf16>
    %c2_39 = arith.constant 2 : index
    %c0_40 = arith.constant 0 : index
    %c0_41 = arith.constant 0 : index
    %37 = vector.load %arg2[%c2_39, %c0_40, %c0_41] : memref<9x16x16xbf16, #tpu.memory_space<vmem>>, vector<1x16x16xbf16>
    %38 = vector.shape_cast %37 : vector<1x16x16xbf16> to vector<16x16xbf16>
    %cst_42 = arith.constant dense<0.000000e+00> : vector<256x16xf32>
    %39 = tpu.matmul %36, %38, %cst_42 {dimension_numbers = #tpu.dot_dimension_numbers<[1], [0], [0], [1], [0, 0, 1, 1], [], []>} : vector<256x16xbf16>, vector<16x16xbf16>, vector<256x16xf32> -> vector<256x16xf32>
    %40 = arith.addf %34, %39 : vector<256x16xf32>
    %c1_43 = arith.constant 1 : index
    %c0_44 = arith.constant 0 : index
    %c0_45 = arith.constant 0 : index
    %41 = vector.load %arg8[%c1_43, %c0_44, %c0_45] : memref<18x18x16xbf16, #tpu.memory_space<vmem>>, vector<16x16x16xbf16>
    %42 = vector.shape_cast %41 : vector<16x16x16xbf16> to vector<256x16xbf16>
    %c3 = arith.constant 3 : index
    %c0_46 = arith.constant 0 : index
    %c0_47 = arith.constant 0 : index
    %43 = vector.load %arg2[%c3, %c0_46, %c0_47] : memref<9x16x16xbf16, #tpu.memory_space<vmem>>, vector<1x16x16xbf16>
    %44 = vector.shape_cast %43 : vector<1x16x16xbf16> to vector<16x16xbf16>
    %cst_48 = arith.constant dense<0.000000e+00> : vector<256x16xf32>
    %45 = tpu.matmul %42, %44, %cst_48 {dimension_numbers = #tpu.dot_dimension_numbers<[1], [0], [0], [1], [0, 0, 1, 1], [], []>} : vector<256x16xbf16>, vector<16x16xbf16>, vector<256x16xf32> -> vector<256x16xf32>
    %46 = arith.addf %40, %45 : vector<256x16xf32>
    %c1_49 = arith.constant 1 : index
    %c1_50 = arith.constant 1 : index
    %c0_51 = arith.constant 0 : index
    %47 = vector.load %arg8[%c1_49, %c1_50, %c0_51] : memref<18x18x16xbf16, #tpu.memory_space<vmem>>, vector<16x16x16xbf16>
    %48 = vector.shape_cast %47 : vector<16x16x16xbf16> to vector<256x16xbf16>
    %c4 = arith.constant 4 : index
    %c0_52 = arith.constant 0 : index
    %c0_53 = arith.constant 0 : index
    %49 = vector.load %arg2[%c4, %c0_52, %c0_53] : memref<9x16x16xbf16, #tpu.memory_space<vmem>>, vector<1x16x16xbf16>
    %50 = vector.shape_cast %49 : vector<1x16x16xbf16> to vector<16x16xbf16>
    %cst_54 = arith.constant dense<0.000000e+00> : vector<256x16xf32>
    %51 = tpu.matmul %48, %50, %cst_54 {dimension_numbers = #tpu.dot_dimension_numbers<[1], [0], [0], [1], [0, 0, 1, 1], [], []>} : vector<256x16xbf16>, vector<16x16xbf16>, vector<256x16xf32> -> vector<256x16xf32>
    %52 = arith.addf %46, %51 : vector<256x16xf32>
    %c1_55 = arith.constant 1 : index
    %c2_56 = arith.constant 2 : index
    %c0_57 = arith.constant 0 : index
    %53 = vector.load %arg8[%c1_55, %c2_56, %c0_57] : memref<18x18x16xbf16, #tpu.memory_space<vmem>>, vector<16x16x16xbf16>
    %54 = vector.shape_cast %53 : vector<16x16x16xbf16> to vector<256x16xbf16>
    %c5 = arith.constant 5 : index
    %c0_58 = arith.constant 0 : index
    %c0_59 = arith.constant 0 : index
    %55 = vector.load %arg2[%c5, %c0_58, %c0_59] : memref<9x16x16xbf16, #tpu.memory_space<vmem>>, vector<1x16x16xbf16>
    %56 = vector.shape_cast %55 : vector<1x16x16xbf16> to vector<16x16xbf16>
    %cst_60 = arith.constant dense<0.000000e+00> : vector<256x16xf32>
    %57 = tpu.matmul %54, %56, %cst_60 {dimension_numbers = #tpu.dot_dimension_numbers<[1], [0], [0], [1], [0, 0, 1, 1], [], []>} : vector<256x16xbf16>, vector<16x16xbf16>, vector<256x16xf32> -> vector<256x16xf32>
    %58 = arith.addf %52, %57 : vector<256x16xf32>
    %c2_61 = arith.constant 2 : index
    %c0_62 = arith.constant 0 : index
    %c0_63 = arith.constant 0 : index
    %59 = vector.load %arg8[%c2_61, %c0_62, %c0_63] : memref<18x18x16xbf16, #tpu.memory_space<vmem>>, vector<16x16x16xbf16>
    %60 = vector.shape_cast %59 : vector<16x16x16xbf16> to vector<256x16xbf16>
    %c6 = arith.constant 6 : index
    %c0_64 = arith.constant 0 : index
    %c0_65 = arith.constant 0 : index
    %61 = vector.load %arg2[%c6, %c0_64, %c0_65] : memref<9x16x16xbf16, #tpu.memory_space<vmem>>, vector<1x16x16xbf16>
    %62 = vector.shape_cast %61 : vector<1x16x16xbf16> to vector<16x16xbf16>
    %cst_66 = arith.constant dense<0.000000e+00> : vector<256x16xf32>
    %63 = tpu.matmul %60, %62, %cst_66 {dimension_numbers = #tpu.dot_dimension_numbers<[1], [0], [0], [1], [0, 0, 1, 1], [], []>} : vector<256x16xbf16>, vector<16x16xbf16>, vector<256x16xf32> -> vector<256x16xf32>
    %64 = arith.addf %58, %63 : vector<256x16xf32>
    %c2_67 = arith.constant 2 : index
    %c1_68 = arith.constant 1 : index
    %c0_69 = arith.constant 0 : index
    %65 = vector.load %arg8[%c2_67, %c1_68, %c0_69] : memref<18x18x16xbf16, #tpu.memory_space<vmem>>, vector<16x16x16xbf16>
    %66 = vector.shape_cast %65 : vector<16x16x16xbf16> to vector<256x16xbf16>
    %c7 = arith.constant 7 : index
    %c0_70 = arith.constant 0 : index
    %c0_71 = arith.constant 0 : index
    %67 = vector.load %arg2[%c7, %c0_70, %c0_71] : memref<9x16x16xbf16, #tpu.memory_space<vmem>>, vector<1x16x16xbf16>
    %68 = vector.shape_cast %67 : vector<1x16x16xbf16> to vector<16x16xbf16>
    %cst_72 = arith.constant dense<0.000000e+00> : vector<256x16xf32>
    %69 = tpu.matmul %66, %68, %cst_72 {dimension_numbers = #tpu.dot_dimension_numbers<[1], [0], [0], [1], [0, 0, 1, 1], [], []>} : vector<256x16xbf16>, vector<16x16xbf16>, vector<256x16xf32> -> vector<256x16xf32>
    %70 = arith.addf %64, %69 : vector<256x16xf32>
    %c2_73 = arith.constant 2 : index
    %c2_74 = arith.constant 2 : index
    %c0_75 = arith.constant 0 : index
    %71 = vector.load %arg8[%c2_73, %c2_74, %c0_75] : memref<18x18x16xbf16, #tpu.memory_space<vmem>>, vector<16x16x16xbf16>
    %72 = vector.shape_cast %71 : vector<16x16x16xbf16> to vector<256x16xbf16>
    %c8 = arith.constant 8 : index
    %c0_76 = arith.constant 0 : index
    %c0_77 = arith.constant 0 : index
    %73 = vector.load %arg2[%c8, %c0_76, %c0_77] : memref<9x16x16xbf16, #tpu.memory_space<vmem>>, vector<1x16x16xbf16>
    %74 = vector.shape_cast %73 : vector<1x16x16xbf16> to vector<16x16xbf16>
    %cst_78 = arith.constant dense<0.000000e+00> : vector<256x16xf32>
    %75 = tpu.matmul %72, %74, %cst_78 {dimension_numbers = #tpu.dot_dimension_numbers<[1], [0], [0], [1], [0, 0, 1, 1], [], []>} : vector<256x16xbf16>, vector<16x16xbf16>, vector<256x16xf32> -> vector<256x16xf32>
    %76 = arith.addf %70, %75 : vector<256x16xf32>
    %77 = vector.shape_cast %76 : vector<256x16xf32> to vector<16x16x16xf32>
    %c0_79 = arith.constant 0 : index
    %c0_80 = arith.constant 0 : index
    %c0_81 = arith.constant 0 : index
    %c0_82 = arith.constant 0 : index
    %78 = vector.load %arg5[%c0_79, %c0_80, %c0_81, %c0_82] : memref<1x16x16x16xf32, #tpu.memory_space<vmem>>, vector<1x16x16x16xf32>
    %79 = vector.shape_cast %78 : vector<1x16x16x16xf32> to vector<16x16x16xf32>
    %80 = vector.shape_cast %77 : vector<16x16x16xf32> to vector<1x16x16x16xf32>
    tpu.vector_store %arg5[%c0_79, %c0_80, %c0_81, %c0_82], %80 {strides = array<i32>} : memref<1x16x16x16xf32, #tpu.memory_space<vmem>>, vector<1x16x16x16xf32>,
    %cst_83 = arith.constant dense<0.000000e+00> : vector<16xf32>
    %81 = vector.multi_reduction <add>, %76, %cst_83 [0] : vector<256x16xf32> to vector<16xf32>
    %82 = vector.shape_cast %81 : vector<16xf32> to vector<1x16xf32>
    %c0_84 = arith.constant 0 : index
    %c0_85 = arith.constant 0 : index
    %c0_86 = arith.constant 0 : index
    %83 = vector.load %arg6[%c0_84, %c0_85, %c0_86] : memref<1x1x16xf32, #tpu.memory_space<vmem>>, vector<1x1x16xf32>
    %84 = vector.shape_cast %83 : vector<1x1x16xf32> to vector<1x16xf32>
    %85 = vector.shape_cast %82 : vector<1x16xf32> to vector<1x1x16xf32>
    tpu.vector_store %arg6[%c0_84, %c0_85, %c0_86], %85 {strides = array<i32>} : memref<1x1x16xf32, #tpu.memory_space<vmem>>, vector<1x1x16xf32>,
    %86 = arith.mulf %76, %76 : vector<256x16xf32>
    %cst_87 = arith.constant dense<0.000000e+00> : vector<16xf32>
    %87 = vector.multi_reduction <add>, %86, %cst_87 [0] : vector<256x16xf32> to vector<16xf32>
    %88 = vector.shape_cast %87 : vector<16xf32> to vector<1x16xf32>
    %c0_88 = arith.constant 0 : index
    %c0_89 = arith.constant 0 : index
    %c0_90 = arith.constant 0 : index
    %89 = vector.load %arg7[%c0_88, %c0_89, %c0_90] : memref<1x1x16xf32, #tpu.memory_space<vmem>>, vector<1x1x16xf32>
    %90 = vector.shape_cast %89 : vector<1x1x16xf32> to vector<1x16xf32>
    %91 = vector.shape_cast %88 : vector<1x16xf32> to vector<1x1x16xf32>
    tpu.vector_store %arg7[%c0_88, %c0_89, %c0_90], %91 {strides = array<i32>} : memref<1x1x16xf32, #tpu.memory_space<vmem>>, vector<1x1x16xf32>,
    return
  }
  func.func @transform_0(%arg0: i32) -> (i32, i32, i32, i32) {
    %c0_i32 = arith.constant 0 : i32
    %c0_i32_0 = arith.constant 0 : i32
    %c0_i32_1 = arith.constant 0 : i32
    %c0_i32_2 = arith.constant 0 : i32
    return %arg0, %c0_i32, %c0_i32_0, %c0_i32_1 : i32, i32, i32, i32
  }
  func.func @transform_1(%arg0: i32) -> (i32, i32, i32) {
    %c0_i32 = arith.constant 0 : i32
    %c0_i32_0 = arith.constant 0 : i32
    %c0_i32_1 = arith.constant 0 : i32
    %c0_i32_2 = arith.constant 0 : i32
    return %c0_i32, %c0_i32_0, %c0_i32_1 : i32, i32, i32
  }
  func.func @transform_2(%arg0: i32) -> (i32, i32) {
    %c0_i32 = arith.constant 0 : i32
    %c0_i32_0 = arith.constant 0 : i32
    %c0_i32_1 = arith.constant 0 : i32
    return %c0_i32, %c0_i32_0 : i32, i32
  }
  func.func @transform_3(%arg0: i32) -> (i32, i32) {
    %c0_i32 = arith.constant 0 : i32
    %c0_i32_0 = arith.constant 0 : i32
    %c0_i32_1 = arith.constant 0 : i32
    return %c0_i32, %c0_i32_0 : i32, i32
  }
  func.func @transform_4(%arg0: i32) -> (i32, i32, i32, i32) {
    %c0_i32 = arith.constant 0 : i32
    %c0_i32_0 = arith.constant 0 : i32
    %c0_i32_1 = arith.constant 0 : i32
    %c0_i32_2 = arith.constant 0 : i32
    return %arg0, %c0_i32, %c0_i32_0, %c0_i32_1 : i32, i32, i32, i32
  }
  func.func @transform_5(%arg0: i32) -> (i32, i32, i32) {
    %c0_i32 = arith.constant 0 : i32
    %c0_i32_0 = arith.constant 0 : i32
    %c0_i32_1 = arith.constant 0 : i32
    return %arg0, %c0_i32, %c0_i32_0 : i32, i32, i32
  }
  func.func @transform_6(%arg0: i32) -> (i32, i32, i32) {
    %c0_i32 = arith.constant 0 : i32
    %c0_i32_0 = arith.constant 0 : i32
    %c0_i32_1 = arith.constant 0 : i32
    return %arg0, %c0_i32, %c0_i32_0 : i32, i32, i32
  }
}

</mosaic_0001>

<bundles_post_ra>
// kernel: double_conv.5
= control target key start
LH: loop header
LB: loop body
LE: loop exit
PB: predicated region body
PF: predicated region fallthrough
CT: control target
= control target key end

     0   :  { %s446_s12 = smov 0   ;;  %s637_s0 = inlined_call_operand.vmem [shape: f32[2,16,16,16], index: 0, kind: input, shape index: {}]   ;;  %s638_s1 = inlined_call_operand.vmem [shape: f32[1,16], index: 1, kind: input, shape index: {}]   ;;  %s639_s2 = inlined_call_operand.vmem [shape: f32[1,16], index: 2, kind: input, shape index: {}]   ;;  %s640_s3 = inlined_call_operand.vmem [shape: f32[2,16,16,8], index: 3, kind: output, shape index: {}]  }
   0x1 LB: > { %s395_s13 = sadd.s32 4294967295, %s424_s12   ;;  %p399_p0 = scmp.ge.s32.totalorder %s424_s12, 1  ;;  %s424_s12 = sphi %s446_s12, %s13_s12  }
   0x2   : > { %p137_p1 = scmp.lt.s32.totalorder %s424_s12, 3 }
   0x4   : > { %p138_p2 = pnand %p399_p0, %p137_p1 }
   0x5   : > { %p161_p3 = scmp.lt.s32.totalorder (!%p138_p2), %s395_s13, 1 }
   0x6   : > { %141 = sbr.rel (%p138_p2) target bundleno = 53 (0x35), region = 32 }
   0xb   : > { %s642_s13 = smov (!%p161_p3, %s395_s13), 1  ;;  %v457_v0 = vld [vmem:[%s638_s1] ss:$0 sm:$0xff]  ;;  %vm307_vm0 = vcmask 64512  }
   0xc   : > { %s406_s16 = sshll.u32 %s642_s13, 8  ;;  %v467_v1 = vld [vmem:[%s639_s2] ss:$0 sm:$0xff] }
   0xd   : > { %s462_s19 = scalar_lea.vmem %s637_s0, %s406_s16  ;;  %s490_s24 = scalar_lea.vmem %s640_s3, %s406_s16 }
   0xe   : > { %v171_v2 = vld [vmem:[%s462_s19] sm:$0xff]  ;;  %v172_v3 = vld [vmem:[%s462_s19 + $0x8] sm:$0xff]  ;;  %v173_v4 = vld [vmem:[%s462_s19 + $0x10] sm:$0xff] }
   0xf   : > { %v207_v5 = vmul.f32 %v457_v0, %v171_v2  ;;  %v208_v6 = vmul.f32 %v457_v0, %v172_v3  ;;  %v209_v7 = vmul.f32 %v457_v0, %v173_v4  ;;  %v174_v8 = vld [vmem:[%s462_s19 + $0x18] sm:$0xff]  ;;  %v175_v9 = vld [vmem:[%s462_s19 + $0x20] sm:$0xff]  ;;  %v176_v10 = vld [vmem:[%s462_s19 + $0x28] sm:$0xff] }
  0x10   : > { %v210_v11 = vmul.f32 %v457_v0, %v174_v8  ;;  %v211_v12 = vmul.f32 %v457_v0, %v175_v9  ;;  %v212_v13 = vmul.f32 %v457_v0, %v176_v10  ;;  %v177_v14 = vld [vmem:[%s462_s19 + $0x30] sm:$0xff]  ;;  %v178_v15 = vld [vmem:[%s462_s19 + $0x38] sm:$0xff]  ;;  %v179_v24 = vld [vmem:[%s462_s19 + $0x40] sm:$0xff] }
  0x11   : > { %v243_v16 = vadd.f32 %v467_v1, %v207_v5  ;;  %v244_v17 = vadd.f32 %v467_v1, %v208_v6  ;;  %v245_v18 = vadd.f32 %v467_v1, %v209_v7  ;;  %v213_v19 = vmul.f32 %v457_v0, %v177_v14  ;;  %v180_v25 = vld [vmem:[%s462_s19 + $0x48] sm:$0xff]  ;;  %v181_v26 = vld [vmem:[%s462_s19 + $0x50] sm:$0xff]  ;;  %v182_v31 = vld [vmem:[%s462_s19 + $0x58] sm:$0xff] }
  0x12   : > { %v246_v20 = vadd.f32 %v467_v1, %v210_v11  ;;  %v247_v21 = vadd.f32 %v467_v1, %v211_v12  ;;  %v248_v22 = vadd.f32 %v467_v1, %v212_v13  ;;  %v214_v23 = vmul.f32 %v457_v0, %v178_v15  ;;  %v183_v32 = vld [vmem:[%s462_s19 + $0x60] sm:$0xff]  ;;  %v184_v33 = vld [vmem:[%s462_s19 + $0x68] sm:$0xff]  ;;  %v185_v37 = vld [vmem:[%s462_s19 + $0x70] sm:$0xff] }
  0x13   : > { %v275_v27 = vmax.f32 %v243_v16, 0.0  ;;  %v276_v28 = vmax.f32 %v244_v17, 0.0  ;;  %v277_v29 = vmax.f32 %v245_v18, 0.0  ;;  %v249_v30 = vadd.f32 %v467_v1, %v213_v19  ;;  %v186_v42 = vld [vmem:[%s462_s19 + $0x78] sm:$0xff]  ;;  %v187_v54 = vld [vmem:[%s462_s19 + $0x80] sm:$0xff]  ;;  %v188_v55 = vld [vmem:[%s462_s19 + $0x88] sm:$0xff] }
  0x14   : > { %v278_v34 = vmax.f32 %v246_v20, 0.0  ;;  %v279_v35 = vmax.f32 %v247_v21, 0.0  ;;  %v250_v36 = vadd.f32 %v467_v1, %v214_v23  ;;  %v280_v38 = vmax.f32 %v248_v22, 0.0  ;;  %v189_v56 = vld [vmem:[%s462_s19 + $0x90] sm:$0xff]  ;;  %v190_v59 = vld [vmem:[%s462_s19 + $0x98] sm:$0xff]  ;;  %v191_v63 = vld [vmem:[%s462_s19 + $0xa0] sm:$0xff] }
  0x15   : > { %308 = vst.msk [vmem:[%s490_s24] sm:$0xff] %vm307_vm0, %v275_v27  ;;  %v215_v39 = vmul.f32 %v457_v0, %v179_v24  ;;  %v216_v40 = vmul.f32 %v457_v0, %v180_v25  ;;  %v217_v41 = vmul.f32 %v457_v0, %v181_v26  ;;  %v281_v43 = vmax.f32 %v249_v30, 0.0  ;;  %v192_v6 = vld [vmem:[%s462_s19 + $0xa8] sm:$0xff]  ;;  %v193_v10 = vld [vmem:[%s462_s19 + $0xb0] sm:$0xff]  ;;  %v194_v14 = vld [vmem:[%s462_s19 + $0xb8] sm:$0xff] }
  0x16   : > { %309 = vst.msk [vmem:[%s490_s24 + $0x8] sm:$0xff] %vm307_vm0, %v276_v28  ;;  %v218_v44 = vmul.f32 %v457_v0, %v182_v31  ;;  %v219_v45 = vmul.f32 %v457_v0, %v183_v32  ;;  %v220_v46 = vmul.f32 %v457_v0, %v184_v33  ;;  %v221_v50 = vmul.f32 %v457_v0, %v185_v37  ;;  %v195_v18 = vld [vmem:[%s462_s19 + $0xc0] sm:$0xff]  ;;  %v196_v22 = vld [vmem:[%s462_s19 + $0xc8] sm:$0xff]  ;;  %v197_v26 = vld [vmem:[%s462_s19 + $0xd0] sm:$0xff] }
  0x17   : > { %310 = vst.msk [vmem:[%s490_s24 + $0x10] sm:$0xff] %vm307_vm0, %v277_v29  ;;  %v251_v47 = vadd.f32 %v467_v1, %v215_v39  ;;  %v252_v48 = vadd.f32 %v467_v1, %v216_v40  ;;  %v253_v49 = vadd.f32 %v467_v1, %v217_v41  ;;  %v282_v51 = vmax.f32 %v250_v36, 0.0  ;;  %v198_v30 = vld [vmem:[%s462_s19 + $0xd8] sm:$0xff] }
  0x18   : > { %311 = vst.msk [vmem:[%s490_s24 + $0x18] sm:$0xff] %vm307_vm0, %v278_v34  ;;  %v254_v52 = vadd.f32 %v467_v1, %v218_v44  ;;  %v222_v53 = vmul.f32 %v457_v0, %v186_v42  ;;  %v255_v58 = vadd.f32 %v467_v1, %v219_v45  ;;  %v256_v62 = vadd.f32 %v467_v1, %v220_v46  ;;  %v199_v34 = vld [vmem:[%s462_s19 + $0xe0] sm:$0xff]  ;;  %v201_v42 = vld [vmem:[%s462_s19 + $0xf0] sm:$0xff]  ;;  %v202_v46 = vld [vmem:[%s462_s19 + $0xf8] sm:$0xff] }
  0x19   : > { %312 = vst.msk [vmem:[%s490_s24 + $0x20] sm:$0xff] %vm307_vm0, %v279_v35  ;;  %v283_v57 = vmax.f32 %v251_v47, 0.0  ;;  %v284_v60 = vmax.f32 %v252_v48, 0.0  ;;  %v285_v61 = vmax.f32 %v253_v49, 0.0  ;;  %v257_v2 = vadd.f32 %v467_v1, %v221_v50 }
  0x1a   : > { %313 = vst.msk [vmem:[%s490_s24 + $0x28] sm:$0xff] %vm307_vm0, %v280_v38  ;;  %v223_v3 = vmul.f32 %v457_v0, %v187_v54  ;;  %v224_v4 = vmul.f32 %v457_v0, %v188_v55  ;;  %v225_v5 = vmul.f32 %v457_v0, %v189_v56  ;;  %v286_v7 = vmax.f32 %v254_v52, 0.0  ;;  %v200_v38 = vld [vmem:[%s462_s19 + $0xe8] sm:$0xff] }
  0x1b   : > { %314 = vst.msk [vmem:[%s490_s24 + $0x30] sm:$0xff] %vm307_vm0, %v281_v43  ;;  %v258_v8 = vadd.f32 %v467_v1, %v222_v53  ;;  %v226_v9 = vmul.f32 %v457_v0, %v190_v59  ;;  %v287_v11 = vmax.f32 %v255_v58, 0.0  ;;  %v227_v13 = vmul.f32 %v457_v0, %v191_v63 }
  0x1c   : > { %315 = vst.msk [vmem:[%s490_s24 + $0x38] sm:$0xff] %vm307_vm0, %v282_v51  ;;  %v259_v12 = vadd.f32 %v467_v1, %v223_v3  ;;  %v288_v15 = vmax.f32 %v256_v62, 0.0  ;;  %v260_v16 = vadd.f32 %v467_v1, %v224_v4  ;;  %v228_v17 = vmul.f32 %v457_v0, %v192_v6 }
  0x1d   : > { %316 = vst.msk [vmem:[%s490_s24 + $0x40] sm:$0xff] %vm307_vm0, %v283_v57  ;;  %v289_v19 = vmax.f32 %v257_v2, 0.0  ;;  %v261_v20 = vadd.f32 %v467_v1, %v225_v5  ;;  %v229_v21 = vmul.f32 %v457_v0, %v193_v10  ;;  %v290_v23 = vmax.f32 %v258_v8, 0.0 }
  0x1e   : > { %317 = vst.msk [vmem:[%s490_s24 + $0x48] sm:$0xff] %vm307_vm0, %v284_v60  ;;  %v262_v24 = vadd.f32 %v467_v1, %v226_v9  ;;  %v230_v25 = vmul.f32 %v457_v0, %v194_v14  ;;  %v291_v27 = vmax.f32 %v259_v12, 0.0  ;;  %v263_v28 = vadd.f32 %v467_v1, %v227_v13 }
  0x1f   : > { %318 = vst.msk [vmem:[%s490_s24 + $0x50] sm:$0xff] %vm307_vm0, %v285_v61  ;;  %v231_v29 = vmul.f32 %v457_v0, %v195_v18  ;;  %v292_v31 = vmax.f32 %v260_v16, 0.0  ;;  %v264_v32 = vadd.f32 %v467_v1, %v228_v17  ;;  %v232_v33 = vmul.f32 %v457_v0, %v196_v22 }
  0x20   : > { %319 = vst.msk [vmem:[%s490_s24 + $0x58] sm:$0xff] %vm307_vm0, %v286_v7  ;;  %v293_v35 = vmax.f32 %v261_v20, 0.0  ;;  %v265_v36 = vadd.f32 %v467_v1, %v229_v21  ;;  %v233_v37 = vmul.f32 %v457_v0, %v197_v26  ;;  %v294_v39 = vmax.f32 %v262_v24, 0.0 }
  0x21   : > { %320 = vst.msk [vmem:[%s490_s24 + $0x60] sm:$0xff] %vm307_vm0, %v287_v11  ;;  %v266_v40 = vadd.f32 %v467_v1, %v230_v25  ;;  %v234_v41 = vmul.f32 %v457_v0, %v198_v30  ;;  %v295_v43 = vmax.f32 %v263_v28, 0.0  ;;  %v267_v44 = vadd.f32 %v467_v1, %v231_v29 }
  0x22   : > { %321 = vst.msk [vmem:[%s490_s24 + $0x68] sm:$0xff] %vm307_vm0, %v288_v15  ;;  %v235_v45 = vmul.f32 %v457_v0, %v199_v34  ;;  %v296_v47 = vmax.f32 %v264_v32, 0.0  ;;  %v268_v48 = vadd.f32 %v467_v1, %v232_v33  ;;  %v236_v49 = vmul.f32 %v457_v0, %v200_v38 }
  0x23   : > { %322 = vst.msk [vmem:[%s490_s24 + $0x70] sm:$0xff] %vm307_vm0, %v289_v19  ;;  %v297_v50 = vmax.f32 %v265_v36, 0.0  ;;  %v269_v51 = vadd.f32 %v467_v1, %v233_v37  ;;  %v237_v52 = vmul.f32 %v457_v0, %v201_v42  ;;  %v298_v53 = vmax.f32 %v266_v40, 0.0 }
  0x24   : > { %323 = vst.msk [vmem:[%s490_s24 + $0x78] sm:$0xff] %vm307_vm0, %v290_v23  ;;  %v270_v54 = vadd.f32 %v467_v1, %v234_v41  ;;  %v238_v55 = vmul.f32 %v457_v0, %v202_v46  ;;  %v299_v56 = vmax.f32 %v267_v44, 0.0  ;;  %v271_v57 = vadd.f32 %v467_v1, %v235_v45 }
  0x25   : > { %324 = vst.msk [vmem:[%s490_s24 + $0x80] sm:$0xff] %vm307_vm0, %v291_v27  ;;  %v300_v58 = vmax.f32 %v268_v48, 0.0  ;;  %v272_v59 = vadd.f32 %v467_v1, %v236_v49  ;;  %v301_v60 = vmax.f32 %v269_v51, 0.0  ;;  %v273_v0 = vadd.f32 %v467_v1, %v237_v52 }
  0x26   : > { %325 = vst.msk [vmem:[%s490_s24 + $0x88] sm:$0xff] %vm307_vm0, %v292_v31  ;;  %v302_v61 = vmax.f32 %v270_v54, 0.0  ;;  %v274_v62 = vadd.f32 %v467_v1, %v238_v55  ;;  %v303_v63 = vmax.f32 %v271_v57, 0.0 }
  0x27   : > { %326 = vst.msk [vmem:[%s490_s24 + $0x90] sm:$0xff] %vm307_vm0, %v293_v35  ;;  %v304_v2 = vmax.f32 %v272_v59, 0.0  ;;  %v305_v3 = vmax.f32 %v273_v0, 0.0 }
  0x28   : > { %327 = vst.msk [vmem:[%s490_s24 + $0x98] sm:$0xff] %vm307_vm0, %v294_v39  ;;  %v306_v4 = vmax.f32 %v274_v62, 0.0 }
  0x29   : > { %328 = vst.msk [vmem:[%s490_s24 + $0xa0] sm:$0xff] %vm307_vm0, %v295_v43 }
  0x2a   : > { %329 = vst.msk [vmem:[%s490_s24 + $0xa8] sm:$0xff] %vm307_vm0, %v296_v47 }
  0x2b   : > { %330 = vst.msk [vmem:[%s490_s24 + $0xb0] sm:$0xff] %vm307_vm0, %v297_v50 }
  0x2c   : > { %331 = vst.msk [vmem:[%s490_s24 + $0xb8] sm:$0xff] %vm307_vm0, %v298_v53 }
  0x2d   : > { %332 = vst.msk [vmem:[%s490_s24 + $0xc0] sm:$0xff] %vm307_vm0, %v299_v56 }
  0x2e   : > { %333 = vst.msk [vmem:[%s490_s24 + $0xc8] sm:$0xff] %vm307_vm0, %v300_v58 }
  0x2f   : > { %334 = vst.msk [vmem:[%s490_s24 + $0xd0] sm:$0xff] %vm307_vm0, %v301_v60 }
  0x30   : > { %335 = vst.msk [vmem:[%s490_s24 + $0xd8] sm:$0xff] %vm307_vm0, %v302_v61 }
  0x31   : > { %336 = vst.msk [vmem:[%s490_s24 + $0xe0] sm:$0xff] %vm307_vm0, %v303_v63 }
  0x32   : > { %337 = vst.msk [vmem:[%s490_s24 + $0xe8] sm:$0xff] %vm307_vm0, %v304_v2 }
  0x33   : > { %338 = vst.msk [vmem:[%s490_s24 + $0xf0] sm:$0xff] %vm307_vm0, %v305_v3 }
  0x34   : > { %339 = vst.msk [vmem:[%s490_s24 + $0xf8] sm:$0xff] %vm307_vm0, %v306_v4 }
  0x35 PF: > { %s13_s12 = sadd.s32 1, %s424_s12  }
  0x36   : > { %p10_p4 = scmp.ge.s32.totalorder %s13_s12, 4  }
  0x38   :  { %12 = sbr.rel (!%p10_p4) target bundleno = 1 (0x1), region = 62 }

// kernel: double_conv.4
= control target key start
LH: loop header
LB: loop body
LE: loop exit
PB: predicated region body
PF: predicated region fallthrough
CT: control target
= control target key end

     0   :  { %s5863_s21 = smov 0   ;;  %s7419_s0 = inlined_call_operand.vmem [shape: f32[2,16,16,16], index: 0, kind: input, shape index: {}]   ;;  %s7420_s1 = inlined_call_operand.vmem [shape: bf16[9,16,16], index: 1, kind: input, shape index: {}]   ;;  %s7421_s2 = inlined_call_operand.vmem [shape: f32[1,16], index: 2, kind: input, shape index: {}]   ;;  %s7422_s3 = inlined_call_operand.vmem [shape: f32[1,16], index: 3, kind: input, shape index: {}]   ;;  %s7423_s4 = inlined_call_operand.vmem [shape: f32[2,16,16,16], index: 4, kind: output, shape index: {0}]   ;;  %s7424_s5 = inlined_call_operand.vmem [shape: f32[2,1,16], index: 5, kind: output, shape index: {1}]   ;;  %s7425_s6 = inlined_call_operand.vmem [shape: f32[2,1,16], index: 6, kind: output, shape index: {2}]  }
   0x1 LB: > { %s5239_s22 = sadd.s32 4294967295, %s5825_s21   ;;  %p5243_p0 = scmp.ge.s32.totalorder %s5825_s21, 1  ;;  %s5825_s21 = sphi %s5863_s21, %s17_s21  }
   0x2   : > { %p217_p1 = scmp.lt.s32.totalorder %s5825_s21, 3 }
   0x4   : > { %p218_p2 = pnand %p5243_p0, %p217_p1 }
   0x6   : > { %221 = sbr.rel (%p218_p2) target bundleno = 861 (0x35d), region = 36 }
   0xb   : > { %v5705_v0 = vld [vmem:[%s7420_s1 + $0x8] sm:$0xff]  ;;  %p253_p3 = scmp.lt.s32.totalorder %s5239_s22, 1  ;;  %vm409_vm0 = vcmask 122880   ;;  %vm417_vm1 = vsmask.f32 256  ;;  %vm406_vm5 = vcmask 125952  }
   0xc   : > { %5745 = vmatpush.bf16.msra.mxu1 %v5705_v0  ;;  %5746 = vmatpush.bf16.msra.mxu2 %v5705_v0  ;;  %v428_v1 = vld [vmem:[#allocation2 + $0x30] sm:$0x1]  ;;  %v5879_v2 = vld [vmem:[%s7421_s2] ss:$0 sm:$0xff]  ;;  %vm5883_vm2 = vmand %vm409_vm0, %vm417_vm1  ;;  %vm467_vm3 = vsmask.f32 7938 }
   0xd   : > { %s7459_s22 = smov (!%p253_p3, %s5239_s22), 1  ;;  %5747 = vmatpush.bf16.msra.mxu3 %v5705_v0  ;;  %1535 = vmatpush.bf16.msra.mxu0 %v5705_v0  ;;  %v478_v4 = vld [vmem:[#allocation2 + $0x38] sm:$0x1]  ;;  %v5891_v5 = vld [vmem:[%s7422_s3] ss:$0 sm:$0xff]  ;;  %v429_v6 = vsel %vm5883_vm2, 0, %v428_v1  ;;  %vm5897_vm4 = vmand %vm409_vm0, %vm467_vm3 }
   0xe   : > { %s5686_s27 = sshll.u32 %s7459_s22, 8  ;;  %430 = vst [vmem:[#allocation2 + $0x30] sm:$0x1] %v429_v6  ;;  %v479_v8 = vsel %vm5897_vm4, 0, %v478_v4  ;;  %v440_v9 = vld [vmem:[#allocation2 + $0x60] sm:$0x1]  ;;  %vm5960_vm8 = vmand %vm406_vm5, %vm467_vm3  ;;  %s265_s16 = scalar_lea.vmem %s7424_s5, %s7459_s22 }
   0xf   : > { %s5906_s8 = scalar_lea.vmem %s7419_s0, %s5686_s27  ;;  %480 = vst [vmem:[#allocation2 + $0x38] sm:$0x1] %v479_v8  ;;  %v441_v12 = vsel %vm5883_vm2, 0, %v440_v9  ;;  %v490_v19 = vld [vmem:[#allocation2 + $0x68] sm:$0x1]  ;;  %v5827_v22 = vmov 0   ;;  %s7040_s14 = scalar_lea.vmem %s7423_s4, %s5686_s27 }
  0x10   : > { %v276_v10 = vld [vmem:[%s5906_s8 + $0x30] sm:$0xff]  ;;  %v277_v11 = vld [vmem:[%s5906_s8 + $0x38] sm:$0xff]  ;;  %442 = vst [vmem:[#allocation2 + $0x60] sm:$0x1] %v441_v12  ;;  %v491_v25 = vsel %vm5897_vm4, 0, %v490_v19  ;;  %v278_v36 = vld [vmem:[%s5906_s8 + $0x40] sm:$0xff]  ;;  %s268_s19 = scalar_lea.vmem %s7425_s6, %s7459_s22 }
  0x11   : > { %v312_v13 = vmul.f32 %v5879_v2, %v276_v10  ;;  %v313_v14 = vmul.f32 %v5879_v2, %v277_v11  ;;  %v284_v15 = vld [vmem:[%s5906_s8 + $0x70] sm:$0xff]  ;;  %v285_v16 = vld [vmem:[%s5906_s8 + $0x78] sm:$0xff]  ;;  %407 = vst.msk [vmem:[#allocation2] sm:$0xf] %vm406_vm5, %v5827_v22  ;;  %vm549_vm6 = vsmask.f32 4368  ;;  %v5944_v47 = vmul.f32 %v5879_v2, %v278_v36 }
  0x12   : > { %v320_v17 = vmul.f32 %v5879_v2, %v284_v15  ;;  %v321_v18 = vmul.f32 %v5879_v2, %v285_v16  ;;  %v292_v20 = vld [vmem:[%s5906_s8 + $0xb0] sm:$0xff]  ;;  %v293_v21 = vld [vmem:[%s5906_s8 + $0xb8] sm:$0xff]  ;;  %492 = vst [vmem:[#allocation2 + $0x68] sm:$0x1] %v491_v25  ;;  %vm5950_vm7 = vmor %vm417_vm1, %vm549_vm6  ;;  %vm1035_vm9 = vsmask.f32 3328 }
  0x13   : > { %v348_v23 = vadd.f32 %v5891_v5, %v312_v13  ;;  %v349_v24 = vadd.f32 %v5891_v5, %v313_v14  ;;  %v328_v26 = vmul.f32 %v5879_v2, %v292_v20  ;;  %v452_v27 = vld [vmem:[#allocation2 + $0x90] sm:$0x1]  ;;  %v329_v30 = vmul.f32 %v5879_v2, %v293_v21  ;;  %v502_v31 = vld [vmem:[#allocation2 + $0x98] sm:$0x1]  ;;  %408 = vst.msk [vmem:[#allocation2 + $0x4] sm:$0xf] %vm406_vm5, %v5827_v22 }
  0x14   : > { %v356_v28 = vadd.f32 %v5891_v5, %v320_v17  ;;  %v357_v29 = vadd.f32 %v5891_v5, %v321_v18  ;;  %v453_v35 = vsel %vm5883_vm2, 0, %v452_v27  ;;  %v503_v43 = vsel %vm5897_vm4, 0, %v502_v31  ;;  %410 = vst.msk [vmem:[#allocation2 + $0x8] sm:$0x1] %vm409_vm0, %v5827_v22  ;;  %v5706_v31 = vld [vmem:[%s7420_s1 + $0x10] sm:$0xff] }
  0x15   : > { %v380_v32 = vmax.f32 %v348_v23, 0.0  ;;  %v381_v33 = vmax.f32 %v349_v24, 0.0  ;;  %v364_v34 = vadd.f32 %v5891_v5, %v328_v26  ;;  %v365_v39 = vadd.f32 %v5891_v5, %v329_v30  ;;  %454 = vst [vmem:[#allocation2 + $0x90] sm:$0x1] %v453_v35  ;;  %v894_v53 = vld [vmem:[#allocation2 + $0x30] sm:$0xf]  ;;  %2115 = vmatpush.bf16.msrb.mxu2 %v5706_v31 }
  0x16   : > { %v388_v37 = vmax.f32 %v356_v28, 0.0  ;;  %v389_v38 = vmax.f32 %v357_v29, 0.0  ;;  %504 = vst [vmem:[#allocation2 + $0x98] sm:$0x1] %v503_v43  ;;  %v898_v61 = vld [vmem:[#allocation2 + $0x38] sm:$0x1] }
  0x17   : > { %v523_v40 = vpack.c.bf16 %v380_v32, %v380_v32  ;;  %v524_v41 = vpack.c.bf16 %v381_v33, %v381_v33  ;;  %v396_v42 = vmax.f32 %v364_v34, 0.0  ;;  %v397_v46 = vmax.f32 %v365_v39, 0.0  ;;  %412 = vst.msk [vmem:[#allocation2 + $0xcc] sm:$0xf] %vm406_vm5, %v5827_v22  ;;  %v922_v6 = vld [vmem:[#allocation2 + $0x60] sm:$0xf] }
  0x18   : > { %v531_v44 = vpack.c.bf16 %v388_v37, %v388_v37  ;;  %v532_v45 = vpack.c.bf16 %v389_v38, %v389_v38  ;;  %v985_v52 = vld [vmem:[#allocation2] sm:$0xf]  ;;  %413 = vst.msk [vmem:[#allocation2 + $0xd0] sm:$0xf] %vm406_vm5, %v5827_v22  ;;  %vm1036_vm10 = vsmask.f32 7440 }
  0x19   : > { %v603_v48 = vshrl.u32 %v523_v40, 16  ;;  %v606_v49 = vshll.u32 %v523_v40, 16  ;;  %v611_v50 = vshrl.u32 %v524_v41, 16  ;;  %v614_v51 = vshll.u32 %v524_v41, 16  ;;  %v926_v14 = vld [vmem:[#allocation2 + $0x68] sm:$0x1]  ;;  %vm6009_vm11 = vmor %vm1035_vm9, %vm1036_vm10 }
  0x1a   : > { %v671_v54 = vshrl.u32 %v531_v44, 16  ;;  %v674_v55 = vshll.u32 %v531_v44, 16  ;;  %v679_v56 = vshrl.u32 %v532_v45, 16  ;;  %v682_v57 = vshll.u32 %v532_v45, 16  ;;  %414 = vst.msk [vmem:[#allocation2 + $0xd4] sm:$0x1] %vm409_vm0, %v5827_v22 }
  0x1b   : > { %v605_v59 = vrot.slane %v603_v48, 7  ;;  %v613_v60 = vrot.slane %v611_v50, 7  ;;  %v539_v62 = vpack.c.bf16 %v396_v42, %v396_v42  ;;  %v5954_v63 = vpack.c.bf16 %v397_v46, %v397_v46  ;;  %v986_v24 = vld [vmem:[#allocation2 + $0x4] sm:$0xf]  ;;  %v1019_v25 = vld [vmem:[#allocation2 + $0x8] sm:$0x1] }
  0x1c   : > { %v673_v1 = vrot.slane %v671_v54, 7  ;;  %v681_v4 = vrot.slane %v679_v56, 7  ;;  %v1039_v8 = vshrl.u32 %v985_v52, 16  ;;  %v1042_v9 = vshll.u32 %v985_v52, 16  ;;  %v279_v26 = vld [vmem:[%s5906_s8 + $0x48] sm:$0xff]  ;;  %v5723_v32 = vld [vmem:[%s7420_s1 + $0x18] sm:$0xff] }
  0x1d   : > { %v608_v10 = vor.u32 %v606_v49, %v605_v59  ;;  %v609_v11 = vrot.slane %v605_v59, 4  ;;  %v616_v12 = vor.u32 %v614_v51, %v613_v60  ;;  %v618_v13 = vrot.slane %v613_v60, 4  ;;  %v950_v30 = vld [vmem:[#allocation2 + $0x90] sm:$0xf]  ;;  %v5704_v33 = vld [vmem:[%s7420_s1] sm:$0xff]  ;;  %2405 = vmatpush.bf16.msrb.mxu3 %v5723_v32 }
  0x1e   : > { %v676_v15 = vor.u32 %v674_v55, %v673_v1  ;;  %v677_v16 = vrot.slane %v673_v1, 4  ;;  %v684_v17 = vor.u32 %v682_v57, %v681_v4  ;;  %v686_v18 = vrot.slane %v681_v4, 4  ;;  %v431_v38 = vld [vmem:[#allocation2 + $0x3c] sm:$0x1]  ;;  %v954_v39 = vld [vmem:[#allocation2 + $0x98] sm:$0x1]  ;;  %1758 = vmatpush.bf16.msrb.mxu1 %v5704_v33 }
  0x1f   : > { %v617_v19 = vsel %vm5950_vm7, %v609_v11, %v616_v12  ;;  %v895_v20 = vsel %vm5960_vm8, %v608_v10, %v894_v53  ;;  %v899_v21 = vsel %vm5883_vm2, %v618_v13, %v898_v61  ;;  %v739_v23 = vshrl.u32 %v539_v62, 16  ;;  %v5724_v48 = vld [vmem:[%s7420_s1 + $0x20] sm:$0xff]  ;;  %v4543_v1 = vld [vmem:[#allocation2 + $0xcc] sm:$0xe] }
  0x20   : > { %896 = vst [vmem:[#allocation2 + $0x30] sm:$0xf] %v895_v20  ;;  %v685_v22 = vsel %vm5950_vm7, %v677_v16, %v684_v17  ;;  %v923_v27 = vsel %vm5960_vm8, %v676_v15, %v922_v6  ;;  %v927_v28 = vsel %vm5883_vm2, %v686_v18, %v926_v14  ;;  %v742_v29 = vshll.u32 %v539_v62, 16  ;;  %v481_v53 = vld [vmem:[#allocation2 + $0x44] sm:$0x1]  ;;  %3063 = vmatpush.bf16.msrb.mxu0 %v5724_v48 }
  0x21   : > { %897 = vst.msk [vmem:[#allocation2 + $0x34] sm:$0xf] %vm406_vm5, %v617_v19  ;;  %v741_v34 = vrot.slane %v739_v23, 7  ;;  %v747_v35 = vshrl.u32 %v5954_v63, 16  ;;  %v750_v36 = vshll.u32 %v5954_v63, 16  ;;  %v1041_v37 = vrot.slane %v1039_v8, 4 }
  0x22   : > { %900 = vst [vmem:[#allocation2 + $0x38] sm:$0x1] %v899_v21  ;;  %v1044_v40 = vrot.slane %v1042_v9, 5  ;;  %v1048_v41 = vshll.u32 %v986_v24, 16  ;;  %v1052_v42 = vshrl.u32 %v986_v24, 16  ;;  %v1058_v43 = vshll.u32 %v1019_v25, 16 }
  0x23   : > { %924 = vst [vmem:[#allocation2 + $0x60] sm:$0xf] %v923_v27  ;;  %v744_v44 = vor.u32 %v742_v29, %v741_v34  ;;  %v745_v45 = vrot.slane %v741_v34, 4  ;;  %v749_v46 = vrot.slane %v747_v35, 7  ;;  %v315_v52 = vmul.f32 %v5879_v2, %v279_v26  ;;  %v286_v62 = vld [vmem:[%s5906_s8 + $0x80] sm:$0xff] }
  0x24   : > { %925 = vst.msk [vmem:[#allocation2 + $0x64] sm:$0xf] %vm406_vm5, %v685_v22  ;;  %v1045_v49 = vor.u32 %v1044_v40, %v1041_v37  ;;  %v1050_v50 = vrot.slane %v1048_v41, 5  ;;  %v1054_v51 = vrot.slane %v1052_v42, 4  ;;  %v6000_v57 = vadd.f32 %v5891_v5, %v5944_v47 }
  0x25   : > { %928 = vst [vmem:[#allocation2 + $0x68] sm:$0x1] %v927_v28  ;;  %v752_v54 = vor.u32 %v750_v36, %v749_v46  ;;  %v754_v55 = vrot.slane %v749_v46, 4  ;;  %v951_v56 = vsel %vm5960_vm8, %v744_v44, %v950_v30  ;;  %v6002_v60 = vrot.slane %v1058_v43, 5 }
  0x26   : > { %952 = vst [vmem:[#allocation2 + $0x90] sm:$0xf] %v951_v56  ;;  %v1046_v59 = vrot.slane %v1045_v49, 4  ;;  %v432_v61 = vsel %vm5883_vm2, 0, %v431_v38  ;;  %v382_v6 = vmax.f32 %v6000_v57, 0.0  ;;  %v482_v8 = vsel %vm5897_vm4, 0, %v481_v53 }
  0x27   : > { %v993_v63 = vld [vmem:[#allocation2 + $0x30] sm:$0xf]  ;;  %v753_v4 = vsel %vm5950_vm7, %v745_v45, %v752_v54  ;;  %v955_v47 = vsel %vm5883_vm2, %v754_v55, %v954_v39  ;;  %433 = vst [vmem:[#allocation2 + $0x3c] sm:$0x1] %v432_v61  ;;  %v1055_v13 = vor.u32 %v1054_v51, %v1050_v50  ;;  %v6024_v17 = vadd.f32 %v5891_v5, %v315_v52 }
  0x28   : > { %v994_v9 = vld [vmem:[#allocation2 + $0x34] sm:$0xf]  ;;  %v1135_v10 = vshrl.u32 %v993_v63, 16  ;;  %v1138_v11 = vshll.u32 %v993_v63, 16  ;;  %953 = vst.msk [vmem:[#allocation2 + $0x94] sm:$0xf] %vm406_vm5, %v753_v4  ;;  %v1051_v12 = vsel %vm6009_vm11, %v1046_v59, %v1050_v50  ;;  %v6027_v18 = vmul.f32 %v5879_v2, %v286_v62 }
  0x29   : > { %v1023_v14 = vld [vmem:[#allocation2 + $0x38] sm:$0x1]  ;;  %v1144_v15 = vshll.u32 %v994_v9, 16  ;;  %v1148_v16 = vshrl.u32 %v994_v9, 16  ;;  %956 = vst [vmem:[#allocation2 + $0x98] sm:$0x1] %v955_v47  ;;  %v6029_v24 = vunpack.c.l.b16 %v1051_v12  ;;  %v525_v63 = vpack.c.bf16 %v382_v6, %v382_v6 }
  0x2a   : > { %v1137_v19 = vrot.slane %v1135_v10, 4  ;;  %v1140_v20 = vrot.slane %v1138_v11, 5  ;;  %v1154_v21 = vshll.u32 %v1023_v14, 16  ;;  %v1001_v23 = vld [vmem:[#allocation2 + $0x60] sm:$0xf]  ;;  %vm1479_vm12 = vcmask 130048  }
  0x2b   : > { %v1146_v25 = vrot.slane %v1144_v15, 5  ;;  %v1150_v26 = vrot.slane %v1148_v16, 4  ;;  %v1002_v22 = vld [vmem:[#allocation2 + $0x64] sm:$0xf]  ;;  %v1231_v27 = vshrl.u32 %v1001_v23, 16  ;;  %v1234_v28 = vshll.u32 %v1001_v23, 16 }
  0x2c   : > { %v1141_v29 = vor.u32 %v1140_v20, %v1137_v19  ;;  %v1156_v30 = vrot.slane %v1154_v21, 5  ;;  %v1027_v31 = vld [vmem:[#allocation2 + $0x68] sm:$0x1]  ;;  %v1240_v32 = vshll.u32 %v1002_v22, 16  ;;  %v1244_v33 = vshrl.u32 %v1002_v22, 16 }
  0x2d   : > { %v1151_v34 = vor.u32 %v1150_v26, %v1146_v25  ;;  %v1233_v35 = vrot.slane %v1231_v27, 4  ;;  %v1236_v36 = vrot.slane %v1234_v28, 5  ;;  %v1250_v37 = vshll.u32 %v1027_v31, 16  ;;  %v1009_v38 = vld [vmem:[#allocation2 + $0x90] sm:$0xf]  ;;  %v287_v14 = vld [vmem:[%s5906_s8 + $0x88] sm:$0xff] }
  0x2e   : > { %v1142_v39 = vrot.slane %v1141_v29, 4  ;;  %v1242_v40 = vrot.slane %v1240_v32, 5  ;;  %v1246_v41 = vrot.slane %v1244_v33, 4  ;;  %v1056_v42 = vrot.slane %v1055_v13, 4  ;;  %483 = vst [vmem:[#allocation2 + $0x44] sm:$0x1] %v482_v8 }
  0x2f   : > { %v1152_v43 = vrot.slane %v1151_v34, 4  ;;  %v1237_v44 = vor.u32 %v1236_v36, %v1233_v35  ;;  %v1252_v45 = vrot.slane %v1250_v37, 5  ;;  %v1010_v46 = vld [vmem:[#allocation2 + $0x94] sm:$0xf]  ;;  %v1327_v48 = vshrl.u32 %v1009_v38, 16 }
  0x30   : > { %v1147_v49 = vsel %vm6009_vm11, %v1142_v39, %v1146_v25  ;;  %v1247_v50 = vor.u32 %v1246_v41, %v1242_v40  ;;  %v1031_v51 = vld [vmem:[#allocation2 + $0x98] sm:$0x1]  ;;  %v1330_v52 = vshll.u32 %v1009_v38, 16  ;;  %v1336_v53 = vshll.u32 %v1010_v46, 16  ;;  %v443_v32 = vld [vmem:[#allocation2 + $0x6c] sm:$0x1] }
  0x31   : > { %v1157_v54 = vsel %vm6009_vm11, %v1152_v43, %v1156_v30  ;;  %v1433_v55 = vunpack.c.l.b16 %v1147_v49  ;;  %v1238_v56 = vrot.slane %v1237_v44, 4  ;;  %v1329_v57 = vrot.slane %v1327_v48, 4  ;;  %v901_v34 = vld [vmem:[#allocation2 + $0x3c] sm:$0xf]  ;;  %v493_v37 = vld [vmem:[#allocation2 + $0x74] sm:$0x1] }
  0x32   : > { %v1434_v59 = vunpack.c.l.b16 %v1157_v54  ;;  %v1248_v61 = vrot.slane %v1247_v50, 4  ;;  %v1332_v62 = vrot.slane %v1330_v52, 5  ;;  %v1338_v47 = vrot.slane %v1336_v53, 5  ;;  %v294_v41 = vld [vmem:[%s5906_s8 + $0xc0] sm:$0xff] }
  0x33   : > { %v1243_v4 = vsel %vm6009_vm11, %v1238_v56, %v1242_v40  ;;  %v1340_v8 = vshrl.u32 %v1010_v46, 16  ;;  %v1346_v9 = vshll.u32 %v1031_v51, 16  ;;  %v1061_v6 = vsel %vm6009_vm11, %v1056_v42, %v6002_v60  ;;  %v295_v42 = vld [vmem:[%s5906_s8 + $0xc8] sm:$0xff]  ;;  %v455_v46 = vld [vmem:[#allocation2 + $0x9c] sm:$0x1]  ;;  %v270_v52 = vld [vmem:[%s5906_s8] sm:$0xff] }
  0x34   : > { %v1461_v10 = vpack.c.b16 %v1434_v59, %v1433_v55  ;;  %v1253_v11 = vsel %vm6009_vm11, %v1248_v61, %v1252_v45  ;;  %v1441_v12 = vunpack.c.l.b16 %v1243_v4  ;;  %v1333_v13 = vor.u32 %v1332_v62, %v1329_v57  ;;  %v505_v59 = vld [vmem:[#allocation2 + $0xa4] sm:$0x1] }
  0x35   : > { %v1442_v15 = vunpack.c.l.b16 %v1253_v11  ;;  %v1342_v16 = vrot.slane %v1340_v8, 4  ;;  %v1348_v19 = vrot.slane %v1346_v9, 5  ;;  %v1426_v21 = vunpack.c.l.b16 %v1061_v6  ;;  %v905_v53 = vld [vmem:[#allocation2 + $0x44] sm:$0x1] }
  0x36   : > { %5258 = vmatmul.msk.bf16.vlgmr.msra.gmra.mxu1 %vm1479_vm12, %v1461_v10  ;;  %v1334_v20 = vrot.slane %v1333_v13, 4  ;;  %v383_v23 = vmax.f32 %v6024_v17, 0.0  ;;  %v620_v25 = vshrl.u32 %v525_v63, 16  ;;  %v623_v27 = vshll.u32 %v525_v63, 16 }
  0x37   : > { %v1465_v26 = vpack.c.b16 %v1442_v15, %v1441_v12  ;;  %v1343_v22 = vor.u32 %v1342_v16, %v1338_v47  ;;  %v323_v28 = vmul.f32 %v5879_v2, %v287_v14  ;;  %v1457_v30 = vpack.c.b16 %v1426_v21, %v6029_v24 }
  0x38   : > { %v1339_v29 = vsel %vm6009_vm11, %v1334_v20, %v1338_v47  ;;  %v526_v31 = vpack.c.bf16 %v383_v23, %v383_v23  ;;  %v622_v60 = vrot.slane %v620_v25, 7  ;;  %v358_v35 = vadd.f32 %v5891_v5, %v6027_v18  ;;  %v419_v47 = vld [vmem:[#allocation2 + $0xc] sm:$0x1] }
  0x39   : > { %5262 = vmatmul.msk.bf16.vlgmr.msra.gmra.mxu2 %vm1479_vm12, %v1465_v26  ;;  %v1344_v33 = vrot.slane %v1343_v22, 4  ;;  %v1449_v17 = vunpack.c.l.b16 %v1339_v29  ;;  %v359_v36 = vadd.f32 %v5891_v5, %v323_v28  ;;  %5254 = vmatmul.msk.bf16.vlgmr.msra.gmra.mxu0 %vm1479_vm12, %v1457_v30  ;;  %v444_v18 = vsel %vm5883_vm2, 0, %v443_v32  ;;  %v271_v20 = vld [vmem:[%s5906_s8 + $0x8] sm:$0xff] }
  0x3a   : > { %v625_v38 = vor.u32 %v623_v27, %v622_v60  ;;  %v626_v24 = vrot.slane %v622_v60, 4  ;;  %v628_v39 = vshrl.u32 %v526_v31, 16  ;;  %v631_v40 = vshll.u32 %v526_v31, 16  ;;  %445 = vst [vmem:[#allocation2 + $0x6c] sm:$0x1] %v444_v18 }
  0x3b   : > { %v1349_v43 = vsel %vm6009_vm11, %v1344_v33, %v1348_v19  ;;  %v390_v44 = vmax.f32 %v358_v35, 0.0  ;;  %v391_v45 = vmax.f32 %v359_v36, 0.0  ;;  %v494_v51 = vsel %vm5897_vm4, 0, %v493_v37 }
  0x3c   : > { %v1450_v48 = vunpack.c.l.b16 %v1349_v43  ;;  %v630_v49 = vrot.slane %v628_v39, 7  ;;  %v902_v50 = vsel %vm5960_vm8, %v625_v38, %v901_v34  ;;  %v330_v56 = vmul.f32 %v5879_v2, %v294_v41  ;;  %495 = vst [vmem:[#allocation2 + $0x74] sm:$0x1] %v494_v51 }
  0x3d   : > { %903 = vst [vmem:[#allocation2 + $0x3c] sm:$0xf] %v902_v50  ;;  %v533_v54 = vpack.c.bf16 %v390_v44, %v390_v44  ;;  %v534_v55 = vpack.c.bf16 %v391_v45, %v391_v45  ;;  %v331_v57 = vmul.f32 %v5879_v2, %v295_v42  ;;  %v456_v4 = vsel %vm5883_vm2, 0, %v455_v46 }
  0x3e   : > { %v1469_v61 = vpack.c.b16 %v1450_v48, %v1449_v17  ;;  %v633_v62 = vor.u32 %v631_v40, %v630_v49  ;;  %v635_v63 = vrot.slane %v630_v49, 4  ;;  %457 = vst [vmem:[#allocation2 + $0x9c] sm:$0x1] %v456_v4  ;;  %v366_v14 = vadd.f32 %v5891_v5, %v330_v56 }
  0x3f   : > { %v688_v8 = vshrl.u32 %v533_v54, 16  ;;  %v691_v9 = vshll.u32 %v533_v54, 16  ;;  %v696_v10 = vshrl.u32 %v534_v55, 16  ;;  %v699_v11 = vshll.u32 %v534_v55, 16 }
  0x40   : > { %5266 = vmatmul.msk.bf16.vlgmr.msra.gmra.mxu3 %vm1479_vm12, %v1469_v61  ;;  %v634_v12 = vsel %vm5950_vm7, %v626_v24, %v633_v62  ;;  %v906_v13 = vsel %vm5883_vm2, %v635_v63, %v905_v53  ;;  %v367_v15 = vadd.f32 %v5891_v5, %v331_v57  ;;  %v506_v6 = vsel %vm5897_vm4, 0, %v505_v59  ;;  %v280_v24 = vld [vmem:[%s5906_s8 + $0x50] sm:$0xff] }
  0x41   : > { %904 = vst.msk [vmem:[#allocation2 + $0x40] sm:$0xf] %vm406_vm5, %v634_v12  ;;  %v690_v16 = vrot.slane %v688_v8, 7  ;;  %v698_v19 = vrot.slane %v696_v10, 7  ;;  %v306_v21 = vmul.f32 %v5879_v2, %v270_v52  ;;  %v398_v23 = vmax.f32 %v366_v14, 0.0  ;;  %v281_v12 = vld [vmem:[%s5906_s8 + $0x58] sm:$0xff] }
  0x42   : > { %907 = vst [vmem:[#allocation2 + $0x44] sm:$0x1] %v906_v13  ;;  %v399_v25 = vmax.f32 %v367_v15, 0.0  ;;  %v420_v26 = vsel %vm5883_vm2, 0, %v419_v47  ;;  %v929_v30 = vld [vmem:[#allocation2 + $0x6c] sm:$0xf]  ;;  %v307_v33 = vmul.f32 %v5879_v2, %v271_v20  ;;  %v316_v51 = vmul.f32 %v5879_v2, %v280_v24 }
  0x43   : > { %v693_v22 = vor.u32 %v691_v9, %v690_v16  ;;  %v694_v27 = vrot.slane %v690_v16, 4  ;;  %v701_v28 = vor.u32 %v699_v11, %v698_v19  ;;  %v703_v29 = vrot.slane %v698_v19, 4  ;;  %507 = vst [vmem:[#allocation2 + $0xa4] sm:$0x1] %v506_v6  ;;  %v933_v38 = vld [vmem:[#allocation2 + $0x74] sm:$0x1] }
  0x44   : > { %v995_v31 = vld [vmem:[#allocation2 + $0x3c] sm:$0xf]  ;;  %v541_v60 = vpack.c.bf16 %v398_v23, %v398_v23  ;;  %v542_v32 = vpack.c.bf16 %v399_v25, %v399_v25  ;;  %v342_v17 = vadd.f32 %v5891_v5, %v306_v21  ;;  %421 = vst [vmem:[#allocation2 + $0xc] sm:$0x1] %v420_v26  ;;  %v343_v50 = vadd.f32 %v5891_v5, %v307_v33  ;;  %v469_v47 = vld [vmem:[#allocation2 + $0x14] sm:$0x1] }
  0x45   : > { %v1159_v34 = vshrl.u32 %v995_v31, 16  ;;  %v1162_v35 = vshll.u32 %v995_v31, 16  ;;  %v702_v36 = vsel %vm5950_vm7, %v694_v27, %v701_v28  ;;  %v930_v37 = vsel %vm5960_vm8, %v693_v22, %v929_v30  ;;  %v957_v56 = vld [vmem:[#allocation2 + $0x9c] sm:$0xf] }
  0x46   : > { %931 = vst [vmem:[#allocation2 + $0x6c] sm:$0xf] %v930_v37  ;;  %v934_v39 = vsel %vm5883_vm2, %v703_v29, %v933_v38  ;;  %v756_v40 = vshrl.u32 %v541_v60, 16  ;;  %v759_v41 = vshll.u32 %v541_v60, 16  ;;  %v764_v42 = vshrl.u32 %v542_v32, 16 }
  0x47   : > { %v1161_v43 = vrot.slane %v1159_v34, 4  ;;  %v1164_v44 = vrot.slane %v1162_v35, 5  ;;  %932 = vst.msk [vmem:[#allocation2 + $0x70] sm:$0xf] %vm406_vm5, %v702_v36  ;;  %v767_v45 = vshll.u32 %v542_v32, 16  ;;  %v374_v18 = vmax.f32 %v342_v17, 0.0 }
  0x48   : > { %v996_v46 = vld [vmem:[#allocation2 + $0x40] sm:$0xf]  ;;  %935 = vst [vmem:[#allocation2 + $0x74] sm:$0x1] %v934_v39  ;;  %v758_v48 = vrot.slane %v756_v40, 7  ;;  %v766_v49 = vrot.slane %v764_v42, 7  ;;  %v317_v28 = vmul.f32 %v5879_v2, %v281_v12 }
  0x49   : > { %v1024_v52 = vld [vmem:[#allocation2 + $0x44] sm:$0x1]  ;;  %v1165_v53 = vor.u32 %v1164_v44, %v1161_v43  ;;  %v1168_v54 = vshll.u32 %v996_v46, 16  ;;  %v1172_v55 = vshrl.u32 %v996_v46, 16  ;;  %v517_v57 = vpack.c.bf16 %v374_v18, %v374_v18 }
  0x4a   : > { %v1178_v59 = vshll.u32 %v1024_v52, 16  ;;  %v761_v61 = vor.u32 %v759_v41, %v758_v48  ;;  %v762_v62 = vrot.slane %v758_v48, 4  ;;  %v769_v63 = vor.u32 %v767_v45, %v766_v49  ;;  %v961_v4 = vld [vmem:[#allocation2 + $0xa4] sm:$0x1] }
  0x4b   : > { %v1166_v8 = vrot.slane %v1165_v53, 4  ;;  %v1170_v9 = vrot.slane %v1168_v54, 5  ;;  %v1174_v10 = vrot.slane %v1172_v55, 4  ;;  %v771_v11 = vrot.slane %v766_v49, 4  ;;  %v873_v46 = vld [vmem:[#allocation2 + $0xc] sm:$0xf] }
  0x4c   : > { %v1180_v13 = vrot.slane %v1178_v59, 5  ;;  %v770_v14 = vsel %vm5950_vm7, %v762_v62, %v769_v63  ;;  %v958_v15 = vsel %vm5960_vm8, %v761_v61, %v957_v56  ;;  %v375_v16 = vmax.f32 %v343_v50, 0.0 }
  0x4d   : > { %v1171_v19 = vsel %vm6009_vm11, %v1166_v8, %v1170_v9  ;;  %v1175_v6 = vor.u32 %v1174_v10, %v1170_v9  ;;  %v1003_v20 = vld [vmem:[#allocation2 + $0x6c] sm:$0xf]  ;;  %959 = vst [vmem:[#allocation2 + $0x9c] sm:$0xf] %v958_v15  ;;  %v962_v21 = vsel %vm5883_vm2, %v771_v11, %v961_v4  ;;  %v470_v23 = vsel %vm5897_vm4, 0, %v469_v47 }
  0x4e   : > { %v1004_v25 = vld [vmem:[#allocation2 + $0x70] sm:$0xf]  ;;  %v1255_v26 = vshrl.u32 %v1003_v20, 16  ;;  %v1258_v22 = vshll.u32 %v1003_v20, 16  ;;  %960 = vst.msk [vmem:[#allocation2 + $0xa0] sm:$0xf] %vm406_vm5, %v770_v14  ;;  %v518_v27 = vpack.c.bf16 %v375_v16, %v375_v16  ;;  %v1435_v33 = vunpack.c.l.b16 %v1171_v19 }
  0x4f   : > { %v1176_v29 = vrot.slane %v1175_v6, 4  ;;  %v1028_v30 = vld [vmem:[#allocation2 + $0x74] sm:$0x1]  ;;  %v1264_v31 = vshll.u32 %v1004_v25, 16  ;;  %v1268_v60 = vshrl.u32 %v1004_v25, 16  ;;  %v552_v32 = vshrl.u32 %v517_v57, 16 }
  0x50   : > { %v1257_v17 = vrot.slane %v1255_v26, 4  ;;  %v1260_v34 = vrot.slane %v1258_v22, 5  ;;  %v1274_v35 = vshll.u32 %v1028_v30, 16  ;;  %963 = vst [vmem:[#allocation2 + $0xa4] sm:$0x1] %v962_v21  ;;  %v555_v42 = vshll.u32 %v517_v57, 16 }
  0x51   : > { %v1181_v36 = vsel %vm6009_vm11, %v1176_v29, %v1180_v13  ;;  %v1266_v37 = vrot.slane %v1264_v31, 5  ;;  %v1270_v38 = vrot.slane %v1268_v60, 4  ;;  %471 = vst [vmem:[#allocation2 + $0x14] sm:$0x1] %v470_v23  ;;  %v554_v24 = vrot.slane %v552_v32, 7  ;;  %v289_v29 = vld [vmem:[%s5906_s8 + $0x98] sm:$0xff] }
  0x52   : > { %v1436_v39 = vunpack.c.l.b16 %v1181_v36  ;;  %v1261_v40 = vor.u32 %v1260_v34, %v1257_v17  ;;  %v1276_v41 = vrot.slane %v1274_v35, 5  ;;  %v560_v45 = vshrl.u32 %v518_v27, 16  ;;  %v434_v20 = vld [vmem:[#allocation2 + $0x48] sm:$0x1]  ;;  %v484_v21 = vld [vmem:[#allocation2 + $0x50] sm:$0x1] }
  0x53   : > { %v1271_v43 = vor.u32 %v1270_v38, %v1266_v37  ;;  %v558_v44 = vrot.slane %v554_v24, 4  ;;  %v563_v18 = vshll.u32 %v518_v27, 16  ;;  %v557_v52 = vor.u32 %v555_v42, %v554_v24  ;;  %v288_v27 = vld [vmem:[%s5906_s8 + $0x90] sm:$0xff] }
  0x54   : > { %v1462_v48 = vpack.c.b16 %v1436_v39, %v1435_v33  ;;  %v1262_v49 = vrot.slane %v1261_v40, 4  ;;  %v1011_v50 = vld [vmem:[#allocation2 + $0x9c] sm:$0xf]  ;;  %v352_v53 = vadd.f32 %v5891_v5, %v316_v51  ;;  %v562_v61 = vrot.slane %v560_v45, 7  ;;  %v446_v33 = vld [vmem:[#allocation2 + $0x78] sm:$0x1] }
  0x55   : > { %v1272_v54 = vrot.slane %v1271_v43, 4  ;;  %v1012_v55 = vld [vmem:[#allocation2 + $0xa0] sm:$0xf]  ;;  %v1351_v56 = vshrl.u32 %v1011_v50, 16  ;;  %v1354_v59 = vshll.u32 %v1011_v50, 16  ;;  %v874_v4 = vsel %vm5960_vm8, %v557_v52, %v873_v46 }
  0x56   : > { %5259 = vmatmul.msk.bf16.gmra.mxu1 %vm1479_vm12, %v1462_v48  ;;  %v1267_v57 = vsel %vm6009_vm11, %v1262_v49, %v1266_v37  ;;  %v1360_v62 = vshll.u32 %v1012_v55, 16  ;;  %v1364_v63 = vshrl.u32 %v1012_v55, 16  ;;  %875 = vst [vmem:[#allocation2 + $0xc] sm:$0xf] %v874_v4  ;;  %v565_v19 = vor.u32 %v563_v18, %v562_v61  ;;  %v496_v39 = vld [vmem:[#allocation2 + $0x80] sm:$0x1] }
  0x57   : > { %v1277_v47 = vsel %vm6009_vm11, %v1272_v54, %v1276_v41  ;;  %v1443_v8 = vunpack.c.l.b16 %v1267_v57  ;;  %v1032_v51 = vld [vmem:[#allocation2 + $0xa4] sm:$0x1]  ;;  %v1353_v9 = vrot.slane %v1351_v56, 4  ;;  %v1356_v10 = vrot.slane %v1354_v59, 5  ;;  %v296_v54 = vld [vmem:[%s5906_s8 + $0xd0] sm:$0xff] }
  0x58   : > { %v1444_v11 = vunpack.c.l.b16 %v1277_v47  ;;  %v1362_v12 = vrot.slane %v1360_v62, 5  ;;  %v1366_v13 = vrot.slane %v1364_v63, 4  ;;  %v1370_v14 = vshll.u32 %v1032_v51, 16  ;;  %v877_v15 = vld [vmem:[#allocation2 + $0x14] sm:$0x1] }
  0x59   : > { %v1357_v16 = vor.u32 %v1356_v10, %v1353_v9  ;;  %v567_v6 = vrot.slane %v562_v61, 4  ;;  %v353_v22 = vadd.f32 %v5891_v5, %v317_v28  ;;  %v566_v31 = vsel %vm5950_vm7, %v558_v44, %v565_v19 }
  0x5a   : > { %v1466_v23 = vpack.c.b16 %v1444_v11, %v1443_v8  ;;  %v1367_v25 = vor.u32 %v1366_v13, %v1362_v12  ;;  %v1372_v26 = vrot.slane %v1370_v14, 5  ;;  %v384_v32 = vmax.f32 %v352_v53, 0.0  ;;  %876 = vst.msk [vmem:[#allocation2 + $0x10] sm:$0xf] %vm406_vm5, %v566_v31 }
  0x5b   : > { %v1358_v30 = vrot.slane %v1357_v16, 4  ;;  %v878_v60 = vsel %vm5883_vm2, %v567_v6, %v877_v15  ;;  %v385_v34 = vmax.f32 %v353_v22, 0.0  ;;  %v435_v28 = vsel %vm5883_vm2, 0, %v434_v20 }
  0x5c   : > { %5263 = vmatmul.msk.bf16.gmra.mxu2 %vm1479_vm12, %v1466_v23  ;;  %v1368_v17 = vrot.slane %v1367_v25, 4  ;;  %v485_v35 = vsel %vm5897_vm4, 0, %v484_v21  ;;  %879 = vst [vmem:[#allocation2 + $0x14] sm:$0x1] %v878_v60  ;;  %v527_v37 = vpack.c.bf16 %v384_v32, %v384_v32  ;;  %v324_v38 = vmul.f32 %v5879_v2, %v288_v27  ;;  %v297_v23 = vld [vmem:[%s5906_s8 + $0xd8] sm:$0xff] }
  0x5d   : > { %v1363_v36 = vsel %vm6009_vm11, %v1358_v30, %v1362_v12  ;;  %v325_v24 = vmul.f32 %v5879_v2, %v289_v29  ;;  %v987_v42 = vld [vmem:[#allocation2 + $0xc] sm:$0xf]  ;;  %436 = vst [vmem:[#allocation2 + $0x48] sm:$0x1] %v435_v28  ;;  %v528_v43 = vpack.c.bf16 %v385_v34, %v385_v34  ;;  %v447_v44 = vsel %vm5883_vm2, 0, %v446_v33 }
  0x5e   : > { %v1373_v40 = vsel %vm6009_vm11, %v1368_v17, %v1372_v26  ;;  %v1451_v41 = vunpack.c.l.b16 %v1363_v36  ;;  %v1063_v18 = vshrl.u32 %v987_v42, 16  ;;  %v1066_v46 = vshll.u32 %v987_v42, 16  ;;  %486 = vst [vmem:[#allocation2 + $0x50] sm:$0x1] %v485_v35  ;;  %v458_v33 = vld [vmem:[#allocation2 + $0xa8] sm:$0x1] }
  0x5f   : > { %v1452_v45 = vunpack.c.l.b16 %v1373_v40  ;;  %v637_v48 = vshrl.u32 %v527_v37, 16  ;;  %v640_v49 = vshll.u32 %v527_v37, 16  ;;  %v645_v50 = vshrl.u32 %v528_v43, 16  ;;  %448 = vst [vmem:[#allocation2 + $0x78] sm:$0x1] %v447_v44  ;;  %v272_v40 = vld [vmem:[%s5906_s8 + $0x10] sm:$0xff] }
  0x60   : > { %v648_v52 = vshll.u32 %v528_v43, 16  ;;  %v360_v53 = vadd.f32 %v5891_v5, %v324_v38  ;;  %v1065_v56 = vrot.slane %v1063_v18, 4  ;;  %v1068_v59 = vrot.slane %v1066_v46, 5  ;;  %v508_v36 = vld [vmem:[#allocation2 + $0xb0] sm:$0x1] }
  0x61   : > { %v1470_v55 = vpack.c.b16 %v1452_v45, %v1451_v41  ;;  %v639_v61 = vrot.slane %v637_v48, 7  ;;  %v647_v57 = vrot.slane %v645_v50, 7  ;;  %v361_v62 = vadd.f32 %v5891_v5, %v325_v24  ;;  %v6145_v47 = vld [vmem:[#allocation2 + $0x10] sm:$0xf] }
  0x62   : > { %v392_v63 = vmax.f32 %v360_v53, 0.0  ;;  %v497_v4 = vsel %vm5897_vm4, 0, %v496_v39  ;;  %v1069_v8 = vor.u32 %v1068_v59, %v1065_v56  ;;  %v332_v10 = vmul.f32 %v5879_v2, %v296_v54 }
  0x63   : > { %5267 = vmatmul.msk.bf16.gmra.mxu3 %vm1479_vm12, %v1470_v55  ;;  %v642_v51 = vor.u32 %v640_v49, %v639_v61  ;;  %v643_v9 = vrot.slane %v639_v61, 4  ;;  %498 = vst [vmem:[#allocation2 + $0x80] sm:$0x1] %v497_v4  ;;  %v6148_v11 = vld [vmem:[#allocation2 + $0x14] sm:$0x1]  ;;  %v1072_v12 = vshll.u32 %v6145_v47, 16  ;;  %v650_v14 = vor.u32 %v648_v52, %v647_v57 }
  0x64   : > { %v1076_v13 = vshrl.u32 %v6145_v47, 16  ;;  %v652_v15 = vrot.slane %v647_v57, 4  ;;  %v1070_v16 = vrot.slane %v1069_v8, 4  ;;  %v1082_v19 = vshll.u32 %v6148_v11, 16  ;;  %v908_v6 = vld [vmem:[#allocation2 + $0x48] sm:$0xf] }
  0x65   : > { %v393_v20 = vmax.f32 %v361_v62, 0.0  ;;  %v535_v21 = vpack.c.bf16 %v392_v63, %v392_v63  ;;  %v1074_v25 = vrot.slane %v1072_v12, 5  ;;  %v651_v22 = vsel %vm5950_vm7, %v643_v9, %v650_v14  ;;  %v912_v29 = vld [vmem:[#allocation2 + $0x50] sm:$0x1]  ;;  %v273_v49 = vld [vmem:[%s5906_s8 + $0x18] sm:$0xff] }
  0x66   : > { %v1078_v26 = vrot.slane %v1076_v13, 4  ;;  %v909_v27 = vsel %vm5960_vm8, %v642_v51, %v908_v6  ;;  %v1084_v30 = vrot.slane %v1082_v19, 5  ;;  %v913_v31 = vsel %vm5883_vm2, %v652_v15, %v912_v29  ;;  %911 = vst.msk [vmem:[#allocation2 + $0x4c] sm:$0xf] %vm406_vm5, %v651_v22  ;;  %v936_v42 = vld [vmem:[#allocation2 + $0x78] sm:$0xf] }
  0x67   : > { %910 = vst [vmem:[#allocation2 + $0x48] sm:$0xf] %v909_v27  ;;  %v536_v60 = vpack.c.bf16 %v393_v20, %v393_v20  ;;  %v705_v32 = vshrl.u32 %v535_v21, 16  ;;  %v1075_v17 = vsel %vm6009_vm11, %v1070_v16, %v1074_v25  ;;  %v708_v28 = vshll.u32 %v535_v21, 16  ;;  %v6186_v51 = vld [vmem:[%s7422_s3] ss:$0 sm:$0xff] }
  0x68   : > { %v1079_v34 = vor.u32 %v1078_v26, %v1074_v25  ;;  %v333_v35 = vmul.f32 %v5879_v2, %v297_v23  ;;  %v1427_v37 = vunpack.c.l.b16 %v1075_v17  ;;  %914 = vst [vmem:[#allocation2 + $0x50] sm:$0x1] %v913_v31  ;;  %v368_v43 = vadd.f32 %v5891_v5, %v332_v10 }
  0x69   : > { %v707_v38 = vrot.slane %v705_v32, 7  ;;  %v713_v24 = vshrl.u32 %v536_v60, 16  ;;  %v716_v39 = vshll.u32 %v536_v60, 16  ;;  %v459_v45 = vsel %vm5883_vm2, 0, %v458_v33  ;;  %v422_v60 = vld [vmem:[#allocation2 + $0x18] sm:$0x1] }
  0x6a   : > { %v1080_v41 = vrot.slane %v1079_v34, 4  ;;  %v369_v44 = vadd.f32 %v5891_v5, %v333_v35  ;;  %460 = vst [vmem:[#allocation2 + $0xa8] sm:$0x1] %v459_v45  ;;  %v509_v48 = vsel %vm5897_vm4, 0, %v508_v36  ;;  %v400_v52 = vmax.f32 %v368_v43, 0.0 }
  0x6b   : > { %v710_v18 = vor.u32 %v708_v28, %v707_v38  ;;  %v711_v46 = vrot.slane %v707_v38, 4  ;;  %v715_v2 = vrot.slane %v713_v24, 7  ;;  %510 = vst [vmem:[#allocation2 + $0xb0] sm:$0x1] %v509_v48  ;;  %v6177_v5 = vld [vmem:[%s7421_s2] ss:$0 sm:$0xff] }
  0x6c   : > { %v1085_v50 = vsel %vm6009_vm11, %v1080_v41, %v1084_v30  ;;  %v401_v53 = vmax.f32 %v369_v44, 0.0  ;;  %v308_v54 = vmul.f32 %v6177_v5, %v272_v40  ;;  %v940_v57 = vld [vmem:[#allocation2 + $0x80] sm:$0x1]  ;;  %v543_v63 = vpack.c.bf16 %v400_v52, %v400_v52 }
  0x6d   : > { %v1428_v55 = vunpack.c.l.b16 %v1085_v50  ;;  %v718_v56 = vor.u32 %v716_v39, %v715_v2  ;;  %v720_v59 = vrot.slane %v715_v2, 4  ;;  %v937_v61 = vsel %vm5960_vm8, %v710_v18, %v936_v42  ;;  %v998_v12 = vld [vmem:[#allocation2 + $0x4c] sm:$0xf]  ;;  %v472_v28 = vld [vmem:[#allocation2 + $0x20] sm:$0x1] }
  0x6e   : > { %v997_v62 = vld [vmem:[#allocation2 + $0x48] sm:$0xf]  ;;  %938 = vst [vmem:[#allocation2 + $0x78] sm:$0xf] %v937_v61  ;;  %v544_v4 = vpack.c.bf16 %v401_v53, %v401_v53  ;;  %v309_v8 = vmul.f32 %v6177_v5, %v273_v49  ;;  %v6189_v9 = vadd.f32 %v6186_v51, %v308_v54  ;;  %v1192_v19 = vshll.u32 %v998_v12, 16 }
  0x6f   : > { %v1458_v10 = vpack.c.b16 %v1428_v55, %v1427_v37  ;;  %v1183_v13 = vshrl.u32 %v997_v62, 16  ;;  %v1186_v14 = vshll.u32 %v997_v62, 16  ;;  %v719_v15 = vsel %vm5950_vm7, %v711_v46, %v718_v56  ;;  %v1025_v16 = vld [vmem:[#allocation2 + $0x50] sm:$0x1] }
  0x70   : > { %v1196_v6 = vshrl.u32 %v998_v12, 16  ;;  %939 = vst.msk [vmem:[#allocation2 + $0x7c] sm:$0xf] %vm406_vm5, %v719_v15  ;;  %v941_v20 = vsel %vm5883_vm2, %v720_v59, %v940_v57  ;;  %v6197_v21 = vadd.f32 %v6186_v51, %v309_v8  ;;  %v1202_v26 = vshll.u32 %v1025_v16, 16  ;;  %v282_v8 = vld [vmem:[%s5906_s8 + $0x60] sm:$0xff] }
  0x71   : > { %5255 = vmatmul.msk.bf16.gmra.mxu0 %vm1479_vm12, %v1458_v10  ;;  %v1185_v23 = vrot.slane %v1183_v13, 4  ;;  %v1188_v25 = vrot.slane %v1186_v14, 5  ;;  %942 = vst [vmem:[#allocation2 + $0x80] sm:$0x1] %v941_v20  ;;  %v773_v22 = vshrl.u32 %v543_v63, 16  ;;  %v1194_v27 = vrot.slane %v1192_v19, 5 }
  0x72   : > { %v1198_v29 = vrot.slane %v1196_v6, 4  ;;  %v776_v30 = vshll.u32 %v543_v63, 16  ;;  %v781_v31 = vshrl.u32 %v544_v4, 16  ;;  %v1204_v33 = vrot.slane %v1202_v26, 5  ;;  %v964_v37 = vld [vmem:[#allocation2 + $0xa8] sm:$0xf] }
  0x73   : > { %v1189_v32 = vor.u32 %v1188_v25, %v1185_v23  ;;  %v775_v17 = vrot.slane %v773_v22, 7  ;;  %v784_v34 = vshll.u32 %v544_v4, 16  ;;  %v376_v38 = vmax.f32 %v6189_v9, 0.0  ;;  %v968_v52 = vld [vmem:[#allocation2 + $0xb0] sm:$0x1]  ;;  %v283_v13 = vld [vmem:[%s5906_s8 + $0x68] sm:$0xff] }
  0x74   : > { %v1199_v35 = vor.u32 %v1198_v29, %v1194_v27  ;;  %v783_v36 = vrot.slane %v781_v31, 7  ;;  %v377_v24 = vmax.f32 %v6197_v21, 0.0  ;;  %v423_v43 = vsel %vm5883_vm2, 0, %v422_v60  ;;  %v437_v14 = vld [vmem:[#allocation2 + $0x54] sm:$0x1] }
  0x75   : > { %v1190_v39 = vrot.slane %v1189_v32, 4  ;;  %v1005_v40 = vld [vmem:[#allocation2 + $0x78] sm:$0xf]  ;;  %v778_v41 = vor.u32 %v776_v30, %v775_v17  ;;  %v779_v42 = vrot.slane %v775_v17, 4  ;;  %424 = vst [vmem:[#allocation2 + $0x18] sm:$0x1] %v423_v43  ;;  %v519_v23 = vpack.c.bf16 %v376_v38, %v376_v38 }
  0x76   : > { %v1200_v44 = vrot.slane %v1199_v35, 4  ;;  %v1279_v45 = vshrl.u32 %v1005_v40, 16  ;;  %v1282_v18 = vshll.u32 %v1005_v40, 16  ;;  %v786_v46 = vor.u32 %v784_v34, %v783_v36  ;;  %v487_v15 = vld [vmem:[#allocation2 + $0x5c] sm:$0x1]  ;;  %v290_v43 = vld [vmem:[%s5906_s8 + $0xa0] sm:$0xff] }
  0x77   : > { %v1195_v2 = vsel %vm6009_vm11, %v1190_v39, %v1194_v27  ;;  %v1006_v48 = vld [vmem:[#allocation2 + $0x7c] sm:$0xf]  ;;  %v788_v49 = vrot.slane %v783_v36, 4  ;;  %v965_v50 = vsel %vm5960_vm8, %v778_v41, %v964_v37  ;;  %v473_v53 = vsel %vm5897_vm4, 0, %v472_v28 }
  0x78   : > { %v1205_v54 = vsel %vm6009_vm11, %v1200_v44, %v1204_v33  ;;  %v1437_v55 = vunpack.c.l.b16 %v1195_v2  ;;  %v1029_v56 = vld [vmem:[#allocation2 + $0x80] sm:$0x1]  ;;  %v1281_v59 = vrot.slane %v1279_v45, 4  ;;  %v1284_v61 = vrot.slane %v1282_v18, 5  ;;  %966 = vst [vmem:[#allocation2 + $0xa8] sm:$0xf] %v965_v50 }
  0x79   : > { %v1438_v57 = vunpack.c.l.b16 %v1205_v54  ;;  %v1288_v62 = vshll.u32 %v1006_v48, 16  ;;  %v1292_v63 = vshrl.u32 %v1006_v48, 16  ;;  %v1298_v4 = vshll.u32 %v1029_v56, 16  ;;  %474 = vst [vmem:[#allocation2 + $0x20] sm:$0x1] %v473_v53 }
  0x7a   : > { %v1285_v9 = vor.u32 %v1284_v61, %v1281_v59  ;;  %v787_v10 = vsel %vm5950_vm7, %v779_v42, %v786_v46  ;;  %v969_v12 = vsel %vm5883_vm2, %v788_v49, %v968_v52  ;;  %v520_v25 = vpack.c.bf16 %v377_v24, %v377_v24 }
  0x7b   : > { %v1463_v16 = vpack.c.b16 %v1438_v57, %v1437_v55  ;;  %v1290_v19 = vrot.slane %v1288_v62, 5  ;;  %v1294_v6 = vrot.slane %v1292_v63, 4  ;;  %v1300_v20 = vrot.slane %v1298_v4, 5  ;;  %967 = vst.msk [vmem:[#allocation2 + $0xac] sm:$0xf] %vm406_vm5, %v787_v10  ;;  %v291_v57 = vld [vmem:[%s5906_s8 + $0xa8] sm:$0xff] }
  0x7c   : > { %v1286_v21 = vrot.slane %v1285_v9, 4  ;;  %970 = vst [vmem:[#allocation2 + $0xb0] sm:$0x1] %v969_v12  ;;  %v318_v26 = vmul.f32 %v6177_v5, %v282_v8  ;;  %v319_v27 = vmul.f32 %v6177_v5, %v283_v13  ;;  %v438_v29 = vsel %vm5883_vm2, 0, %v437_v14  ;;  %v880_v48 = vld [vmem:[#allocation2 + $0x18] sm:$0xf] }
  0x7d   : > { %5260 = vmatmul.msk.bf16.gmra.mxu1 %vm1479_vm12, %v1463_v16  ;;  %v1295_v22 = vor.u32 %v1294_v6, %v1290_v19  ;;  %v488_v30 = vsel %vm5897_vm4, 0, %v487_v15  ;;  %v569_v60 = vshrl.u32 %v519_v23, 16  ;;  %v572_v32 = vshll.u32 %v519_v23, 16  ;;  %439 = vst [vmem:[#allocation2 + $0x54] sm:$0x1] %v438_v29 }
  0x7e   : > { %v1291_v31 = vsel %vm6009_vm11, %v1286_v21, %v1290_v19  ;;  %v577_v33 = vshrl.u32 %v520_v25, 16  ;;  %v580_v35 = vshll.u32 %v520_v25, 16  ;;  %v354_v36 = vadd.f32 %v6186_v51, %v318_v26  ;;  %489 = vst [vmem:[#allocation2 + $0x5c] sm:$0x1] %v488_v30  ;;  %v449_v10 = vld [vmem:[#allocation2 + $0x84] sm:$0x1] }
  0x7f   : > { %v1296_v17 = vrot.slane %v1295_v22, 4  ;;  %v1445_v34 = vunpack.c.l.b16 %v1291_v31  ;;  %v1013_v28 = vld [vmem:[#allocation2 + $0xa8] sm:$0xf]  ;;  %v571_v24 = vrot.slane %v569_v60, 7  ;;  %v355_v41 = vadd.f32 %v6186_v51, %v319_v27  ;;  %v499_v22 = vld [vmem:[#allocation2 + $0x8c] sm:$0x1] }
  0x80   : > { %v1375_v37 = vshrl.u32 %v1013_v28, 16  ;;  %v1378_v38 = vshll.u32 %v1013_v28, 16  ;;  %v579_v39 = vrot.slane %v577_v33, 7  ;;  %v386_v42 = vmax.f32 %v354_v36, 0.0  ;;  %v884_v61 = vld [vmem:[#allocation2 + $0x20] sm:$0x1] }
  0x81   : > { %v1301_v40 = vsel %vm6009_vm11, %v1296_v17, %v1300_v20  ;;  %v574_v2 = vor.u32 %v572_v32, %v571_v24  ;;  %v575_v53 = vrot.slane %v571_v24, 4  ;;  %v326_v62 = vmul.f32 %v6177_v5, %v290_v43  ;;  %v298_v27 = vld [vmem:[%s5906_s8 + $0xe0] sm:$0xff]  ;;  %v299_v28 = vld [vmem:[%s5906_s8 + $0xe8] sm:$0xff] }
  0x82   : > { %v1446_v44 = vunpack.c.l.b16 %v1301_v40  ;;  %v1014_v45 = vld [vmem:[#allocation2 + $0xac] sm:$0xf]  ;;  %v1377_v18 = vrot.slane %v1375_v37, 4  ;;  %v1380_v46 = vrot.slane %v1378_v38, 5  ;;  %v582_v54 = vor.u32 %v580_v35, %v579_v39 }
  0x83   : > { %v1033_v49 = vld [vmem:[#allocation2 + $0xb0] sm:$0x1]  ;;  %v1384_v50 = vshll.u32 %v1014_v45, 16  ;;  %v1388_v52 = vshrl.u32 %v1014_v45, 16  ;;  %v584_v9 = vrot.slane %v579_v39, 4  ;;  %v881_v14 = vsel %vm5960_vm8, %v574_v2, %v880_v48 }
  0x84   : > { %v1467_v55 = vpack.c.b16 %v1446_v44, %v1445_v34  ;;  %v1381_v56 = vor.u32 %v1380_v46, %v1377_v18  ;;  %v1394_v59 = vshll.u32 %v1033_v49, 16  ;;  %v583_v8 = vsel %vm5950_vm7, %v575_v53, %v582_v54  ;;  %882 = vst [vmem:[#allocation2 + $0x18] sm:$0xf] %v881_v14  ;;  %v915_v40 = vld [vmem:[#allocation2 + $0x54] sm:$0xf] }
  0x85   : > { %v1386_v63 = vrot.slane %v1384_v50, 5  ;;  %v1390_v4 = vrot.slane %v1388_v52, 4  ;;  %883 = vst.msk [vmem:[#allocation2 + $0x1c] sm:$0xf] %vm406_vm5, %v583_v8  ;;  %v387_v15 = vmax.f32 %v355_v41, 0.0  ;;  %v885_v19 = vsel %vm5883_vm2, %v584_v9, %v884_v61 }
  0x86   : > { %5264 = vmatmul.msk.bf16.gmra.mxu2 %vm1479_vm12, %v1467_v55  ;;  %v1382_v12 = vrot.slane %v1381_v56, 4  ;;  %v1396_v13 = vrot.slane %v1394_v59, 5  ;;  %v529_v6 = vpack.c.bf16 %v386_v42, %v386_v42  ;;  %v327_v20 = vmul.f32 %v6177_v5, %v291_v57  ;;  %886 = vst [vmem:[#allocation2 + $0x20] sm:$0x1] %v885_v19  ;;  %v919_v53 = vld [vmem:[#allocation2 + $0x5c] sm:$0x1] }
  0x87   : > { %v1391_v16 = vor.u32 %v1390_v4, %v1386_v63  ;;  %v530_v23 = vpack.c.bf16 %v387_v15, %v387_v15  ;;  %v362_v25 = vadd.f32 %v6186_v51, %v326_v62  ;;  %v450_v26 = vsel %vm5883_vm2, 0, %v449_v10  ;;  %v461_v57 = vld [vmem:[#allocation2 + $0xb4] sm:$0x1]  ;;  %v511_v14 = vld [vmem:[#allocation2 + $0xbc] sm:$0x1] }
  0x88   : > { %v1387_v21 = vsel %vm6009_vm11, %v1382_v12, %v1386_v63  ;;  %v654_v31 = vshrl.u32 %v529_v6, 16  ;;  %v657_v60 = vshll.u32 %v529_v6, 16  ;;  %451 = vst [vmem:[#allocation2 + $0x84] sm:$0x1] %v450_v26  ;;  %v363_v17 = vadd.f32 %v6186_v51, %v327_v20 }
  0x89   : > { %v1392_v29 = vrot.slane %v1391_v16, 4  ;;  %v1453_v30 = vunpack.c.l.b16 %v1387_v21  ;;  %v662_v32 = vshrl.u32 %v530_v23, 16  ;;  %v665_v33 = vshll.u32 %v530_v23, 16 }
  0x8a   : > { %v394_v34 = vmax.f32 %v362_v25, 0.0  ;;  %v656_v36 = vrot.slane %v654_v31, 7  ;;  %v500_v37 = vsel %vm5897_vm4, 0, %v499_v22  ;;  %v334_v38 = vmul.f32 %v6177_v5, %v298_v27 }
  0x8b   : > { %v1397_v35 = vsel %vm6009_vm11, %v1392_v29, %v1396_v13  ;;  %v664_v39 = vrot.slane %v662_v32, 7  ;;  %v395_v41 = vmax.f32 %v363_v17, 0.0  ;;  %501 = vst [vmem:[#allocation2 + $0x8c] sm:$0x1] %v500_v37  ;;  %v335_v18 = vmul.f32 %v6177_v5, %v299_v28  ;;  %v989_v48 = vld [vmem:[#allocation2 + $0x18] sm:$0xf] }
  0x8c   : > { %v1454_v24 = vunpack.c.l.b16 %v1397_v35  ;;  %v537_v42 = vpack.c.bf16 %v394_v34, %v394_v34  ;;  %v6257_v43 = vld [vmem:[#allocation2 + $0x1c] sm:$0xf]  ;;  %v659_v44 = vor.u32 %v657_v60, %v656_v36  ;;  %v660_v45 = vrot.slane %v656_v36, 4 }
  0x8d   : > { %v370_v46 = vadd.f32 %v6186_v51, %v334_v38  ;;  %v1096_v49 = vshll.u32 %v6257_v43, 16  ;;  %v1100_v50 = vshrl.u32 %v6257_v43, 16  ;;  %v667_v52 = vor.u32 %v665_v33, %v664_v39  ;;  %v6263_v54 = vld [vmem:[#allocation2 + $0x20] sm:$0x1] }
  0x8e   : > { %v1471_v2 = vpack.c.b16 %v1454_v24, %v1453_v30  ;;  %v1087_v55 = vshrl.u32 %v989_v48, 16  ;;  %v1090_v56 = vshll.u32 %v989_v48, 16  ;;  %v669_v59 = vrot.slane %v664_v39, 4 }
  0x8f   : > { %v916_v61 = vsel %vm5960_vm8, %v659_v44, %v915_v40  ;;  %v1098_v62 = vrot.slane %v1096_v49, 5  ;;  %v1102_v63 = vrot.slane %v1100_v50, 4  ;;  %v1106_v4 = vshll.u32 %v6263_v54, 16  ;;  %v943_v27 = vld [vmem:[#allocation2 + $0x84] sm:$0xf] }
  0x90   : > { %5268 = vmatmul.msk.bf16.gmra.mxu3 %vm1479_vm12, %v1471_v2  ;;  %v668_v8 = vsel %vm5950_vm7, %v660_v45, %v667_v52  ;;  %917 = vst [vmem:[#allocation2 + $0x54] sm:$0xf] %v916_v61  ;;  %v1089_v9 = vrot.slane %v1087_v55, 4  ;;  %v1092_v10 = vrot.slane %v1090_v56, 5  ;;  %v920_v12 = vsel %vm5883_vm2, %v669_v59, %v919_v53  ;;  %v425_v53 = vld [vmem:[#allocation2 + $0x24] sm:$0x1] }
  0x91   : > { %918 = vst.msk [vmem:[#allocation2 + $0x58] sm:$0xf] %vm406_vm5, %v668_v8  ;;  %v538_v13 = vpack.c.bf16 %v395_v41, %v395_v41  ;;  %v1103_v15 = vor.u32 %v1102_v63, %v1098_v62  ;;  %v1108_v16 = vrot.slane %v1106_v4, 5  ;;  %v722_v19 = vshrl.u32 %v537_v42, 16  ;;  %v275_v8 = vld [vmem:[%s5906_s8 + $0x28] sm:$0xff] }
  0x92   : > { %921 = vst [vmem:[#allocation2 + $0x5c] sm:$0x1] %v920_v12  ;;  %v725_v6 = vshll.u32 %v537_v42, 16  ;;  %v1093_v20 = vor.u32 %v1092_v10, %v1089_v9  ;;  %v371_v25 = vadd.f32 %v6186_v51, %v335_v18  ;;  %v402_v29 = vmax.f32 %v370_v46, 0.0  ;;  %v947_v35 = vld [vmem:[#allocation2 + $0x8c] sm:$0x1] }
  0x93   : > { %v730_v21 = vshrl.u32 %v538_v13, 16  ;;  %v733_v23 = vshll.u32 %v538_v13, 16  ;;  %v1104_v26 = vrot.slane %v1103_v15, 4  ;;  %v724_v22 = vrot.slane %v722_v19, 7  ;;  %v274_v46 = vld [vmem:[%s5906_s8 + $0x20] sm:$0xff] }
  0x94   : > { %v462_v30 = vsel %vm5883_vm2, 0, %v461_v57  ;;  %v1094_v31 = vrot.slane %v1093_v20, 4  ;;  %v403_v32 = vmax.f32 %v371_v25, 0.0  ;;  %v512_v33 = vsel %vm5897_vm4, 0, %v511_v14 }
  0x95   : > { %v732_v60 = vrot.slane %v730_v21, 7  ;;  %463 = vst [vmem:[#allocation2 + $0xb4] sm:$0x1] %v462_v30  ;;  %v1109_v17 = vsel %vm6009_vm11, %v1104_v26, %v1108_v16  ;;  %v727_v34 = vor.u32 %v725_v6, %v724_v22  ;;  %v728_v28 = vrot.slane %v724_v22, 4  ;;  %v475_v6 = vld [vmem:[#allocation2 + $0x2c] sm:$0x1] }
  0x96   : > { %513 = vst [vmem:[#allocation2 + $0xbc] sm:$0x1] %v512_v33  ;;  %v545_v36 = vpack.c.bf16 %v402_v29, %v402_v29  ;;  %v1099_v37 = vsel %vm6009_vm11, %v1094_v31, %v1098_v62  ;;  %v1430_v38 = vunpack.c.l.b16 %v1109_v17  ;;  %v546_v63 = vpack.c.bf16 %v403_v32, %v403_v32 }
  0x97   : > { %v999_v24 = vld [vmem:[#allocation2 + $0x54] sm:$0xf]  ;;  %v735_v39 = vor.u32 %v733_v23, %v732_v60  ;;  %v737_v40 = vrot.slane %v732_v60, 4  ;;  %v1429_v41 = vunpack.c.l.b16 %v1099_v37  ;;  %v944_v18 = vsel %vm5960_vm8, %v727_v34, %v943_v27 }
  0x98   : > { %v6283_v42 = vld [vmem:[#allocation2 + $0x58] sm:$0xf]  ;;  %v1207_v44 = vshrl.u32 %v999_v24, 16  ;;  %v1210_v45 = vshll.u32 %v999_v24, 16  ;;  %945 = vst [vmem:[#allocation2 + $0x84] sm:$0xf] %v944_v18  ;;  %v310_v13 = vmul.f32 %v6177_v5, %v274_v46  ;;  %v311_v21 = vmul.f32 %v6177_v5, %v275_v8 }
  0x99   : > { %v6288_v2 = vld [vmem:[#allocation2 + $0x5c] sm:$0x1]  ;;  %v1216_v48 = vshll.u32 %v6283_v42, 16  ;;  %v1220_v49 = vshrl.u32 %v6283_v42, 16  ;;  %v736_v50 = vsel %vm5950_vm7, %v728_v28, %v735_v39  ;;  %v948_v52 = vsel %vm5883_vm2, %v737_v40, %v947_v35 }
  0x9a   : > { %v1459_v55 = vpack.c.b16 %v1430_v38, %v1429_v41  ;;  %v1209_v56 = vrot.slane %v1207_v44, 4  ;;  %v1212_v59 = vrot.slane %v1210_v45, 5  ;;  %v1226_v61 = vshll.u32 %v6288_v2, 16  ;;  %946 = vst.msk [vmem:[#allocation2 + $0x88] sm:$0xf] %vm406_vm5, %v736_v50 }
  0x9b   : > { %v1218_v57 = vrot.slane %v1216_v48, 5  ;;  %v1222_v62 = vrot.slane %v1220_v49, 4  ;;  %949 = vst [vmem:[#allocation2 + $0x8c] sm:$0x1] %v948_v52  ;;  %v790_v4 = vshrl.u32 %v545_v36, 16  ;;  %v793_v12 = vshll.u32 %v545_v36, 16 }
  0x9c   : > { %5256 = vmatmul.msk.bf16.gmra.mxu0 %vm1479_vm12, %v1459_v55  ;;  %v1213_v9 = vor.u32 %v1212_v59, %v1209_v56  ;;  %v1228_v10 = vrot.slane %v1226_v61, 5  ;;  %v798_v16 = vshrl.u32 %v546_v63, 16  ;;  %v801_v19 = vshll.u32 %v546_v63, 16  ;;  %v971_v40 = vld [vmem:[#allocation2 + $0xb4] sm:$0xf] }
  0x9d   : > { %v1223_v14 = vor.u32 %v1222_v62, %v1218_v57  ;;  %v792_v15 = vrot.slane %v790_v4, 7  ;;  %v346_v23 = vadd.f32 %v6186_v51, %v310_v13  ;;  %v426_v25 = vsel %vm5883_vm2, 0, %v425_v53  ;;  %v975_v49 = vld [vmem:[#allocation2 + $0xbc] sm:$0x1] }
  0x9e   : > { %v1214_v20 = vrot.slane %v1213_v9, 4  ;;  %v800_v29 = vrot.slane %v798_v16, 7  ;;  %427 = vst [vmem:[#allocation2 + $0x24] sm:$0x1] %v426_v25  ;;  %v347_v60 = vadd.f32 %v6186_v51, %v311_v21  ;;  %v476_v5 = vsel %vm5897_vm4, 0, %v475_v6  ;;  %v5742_v25 = vld [vmem:[%s7420_s1 + $0x30] sm:$0xff] }
  0x9f   : > { %v1224_v26 = vrot.slane %v1223_v14, 4  ;;  %v795_v22 = vor.u32 %v793_v12, %v792_v15  ;;  %v796_v27 = vrot.slane %v792_v15, 4  ;;  %v1007_v31 = vld [vmem:[#allocation2 + $0x84] sm:$0xf]  ;;  %v378_v32 = vmax.f32 %v346_v23, 0.0  ;;  %3756 = vmatpush.bf16.msra.mxu2 %v5742_v25 }
  0xa0   : > { %v1219_v30 = vsel %vm6009_vm11, %v1214_v20, %v1218_v57  ;;  %v1303_v28 = vshrl.u32 %v1007_v31, 16  ;;  %v1306_v35 = vshll.u32 %v1007_v31, 16  ;;  %477 = vst [vmem:[#allocation2 + $0x2c] sm:$0x1] %v476_v5  ;;  %v803_v39 = vor.u32 %v801_v19, %v800_v29  ;;  %v5761_v19 = vld [vmem:[#allocation2 + $0x8] sm:$0x1] }
  0xa1   : > { %v1229_v33 = vsel %vm6009_vm11, %v1224_v26, %v1228_v10  ;;  %v1439_v17 = vunpack.c.l.b16 %v1219_v30  ;;  %v1008_v34 = vld [vmem:[#allocation2 + $0x88] sm:$0xf]  ;;  %v805_v52 = vrot.slane %v800_v29, 4  ;;  %v972_v53 = vsel %vm5960_vm8, %v795_v22, %v971_v40  ;;  %v1840_v23 = vld [vmem:[#allocation2] sm:$0xe] }
  0xa2   : > { %v1440_v36 = vunpack.c.l.b16 %v1229_v33  ;;  %v1030_v37 = vld [vmem:[#allocation2 + $0x8c] sm:$0x1]  ;;  %v1312_v38 = vshll.u32 %v1008_v34, 16  ;;  %v1316_v24 = vshrl.u32 %v1008_v34, 16  ;;  %v1305_v41 = vrot.slane %v1303_v28, 4 }
  0xa3   : > { %v1308_v51 = vrot.slane %v1306_v35, 5  ;;  %v1322_v44 = vshll.u32 %v1030_v37, 16  ;;  %v804_v48 = vsel %vm5950_vm7, %v796_v27, %v803_v39  ;;  %973 = vst [vmem:[#allocation2 + $0xb4] sm:$0xf] %v972_v53  ;;  %v379_v59 = vmax.f32 %v347_v60, 0.0  ;;  %v5688_v53 = vld [vmem:[#allocation2] sm:$0xff] }
  0xa4   : > { %v1464_v45 = vpack.c.b16 %v1440_v36, %v1439_v17  ;;  %v1314_v18 = vrot.slane %v1312_v38, 5  ;;  %v1318_v46 = vrot.slane %v1316_v24, 4  ;;  %974 = vst.msk [vmem:[#allocation2 + $0xb8] sm:$0xf] %vm406_vm5, %v804_v48  ;;  %v521_v61 = vpack.c.bf16 %v378_v32, %v378_v32  ;;  %v5762_v29 = vld [vmem:[#allocation2 + $0x4] sm:$0xf] }
  0xa5   : > { %v1309_v50 = vor.u32 %v1308_v51, %v1305_v41  ;;  %v1324_v56 = vrot.slane %v1322_v44, 5  ;;  %v976_v62 = vsel %vm5883_vm2, %v805_v52, %v975_v49  ;;  %v522_v4 = vpack.c.bf16 %v379_v59, %v379_v59  ;;  %v887_v16 = vld [vmem:[#allocation2 + $0x24] sm:$0xf] }
  0xa6   : > { %5261 = vmatmul.msk.bf16.gmra.mxu1 %vm1479_vm12, %v1464_v45  ;;  %v1319_v55 = vor.u32 %v1318_v46, %v1314_v18  ;;  %977 = vst [vmem:[#allocation2 + $0xbc] sm:$0x1] %v976_v62  ;;  %v586_v8 = vshrl.u32 %v521_v61, 16  ;;  %v589_v9 = vshll.u32 %v521_v61, 16  ;;  %v1896_v6 = vrot.slane %v5761_v19, 5 }
  0xa7   : > { %v1310_v57 = vrot.slane %v1309_v50, 4  ;;  %v594_v15 = vshrl.u32 %v522_v4, 16  ;;  %v597_v21 = vshll.u32 %v522_v4, 16  ;;  %vm1888_vm13 = vcmask 1042432   ;;  %v891_v36 = vld [vmem:[#allocation2 + $0x2c] sm:$0x1] }
  0xa8   : > { %v1320_v63 = vrot.slane %v1319_v55, 4  ;;  %v588_v14 = vrot.slane %v586_v8, 7  ;;  %vm1889_vm14 = vcmask 1046532   ;;  %v1893_v30 = vrot.slane %v5762_v29, 5  ;;  %v2519_v62 = vld [vmem:[#allocation2 + $0xc] sm:$0xf] }
  0xa9   : > { %v1315_v10 = vsel %vm6009_vm11, %v1310_v57, %v1314_v18  ;;  %v596_v27 = vrot.slane %v594_v15, 7  ;;  %v5354_v40 = vrot.slane %v1840_v23, 9  ;;  %vm6336_vm15 = vmor %vm1888_vm13, %vm1889_vm14  ;;  %v2520_v8 = vld [vmem:[#allocation2 + $0x10] sm:$0xf]  ;;  %v5725_v15 = vld [vmem:[%s7420_s1 + $0x28] sm:$0xff]  ;;  %v2571_v25 = vshll.u32 %v2519_v62, 16 }
  0xaa   : > { %v1325_v12 = vsel %vm6009_vm11, %v1320_v63, %v1324_v56  ;;  %v1447_v13 = vunpack.c.l.b16 %v1315_v10  ;;  %v591_v22 = vor.u32 %v589_v9, %v588_v14  ;;  %v1015_v60 = vld [vmem:[#allocation2 + $0xb4] sm:$0xf]  ;;  %v592_v33 = vrot.slane %v588_v14, 4  ;;  %v5743_v14 = vld [vmem:[%s7420_s1 + $0x38] sm:$0xff]  ;;  %3465 = vmatpush.bf16.msra.mxu1 %v5725_v15 }
  0xab   : > { %v1448_v20 = vunpack.c.l.b16 %v1325_v12  ;;  %v1016_v26 = vld [vmem:[#allocation2 + $0xb8] sm:$0xf]  ;;  %v1399_v17 = vshrl.u32 %v1015_v60, 16  ;;  %v1402_v34 = vshll.u32 %v1015_v60, 16  ;;  %v599_v28 = vor.u32 %v597_v21, %v596_v27  ;;  %4414 = vmatpush.bf16.msra.mxu3 %v5743_v14 }
  0xac   : > { %v1408_v32 = vshll.u32 %v1016_v26, 16  ;;  %v1412_v5 = vshrl.u32 %v1016_v26, 16  ;;  %v601_v35 = vrot.slane %v596_v27, 4  ;;  %v888_v39 = vsel %vm5960_vm8, %v591_v22, %v887_v16  ;;  %v2522_v15 = vld [vmem:[#allocation2 + $0x18] sm:$0xf] }
  0xad   : > { %v1468_v31 = vpack.c.b16 %v1448_v20, %v1447_v13  ;;  %v1034_v37 = vld [vmem:[#allocation2 + $0xbc] sm:$0x1]  ;;  %v1401_v41 = vrot.slane %v1399_v17, 4  ;;  %v1404_v51 = vrot.slane %v1402_v34, 5  ;;  %889 = vst [vmem:[#allocation2 + $0x24] sm:$0xf] %v888_v39  ;;  %v600_v46 = vsel %vm5950_vm7, %v592_v33, %v599_v28 }
  0xae   : > { %v1410_v38 = vrot.slane %v1408_v32, 5  ;;  %v1414_v24 = vrot.slane %v1412_v5, 4  ;;  %v1418_v44 = vshll.u32 %v1034_v37, 16  ;;  %v1895_v45 = vrot.slane %v1893_v30, 4  ;;  %890 = vst.msk [vmem:[#allocation2 + $0x28] sm:$0xf] %vm406_vm5, %v600_v46 }
  0xaf   : > { %5265 = vmatmul.msk.bf16.gmra.mxu2 %vm1479_vm12, %v1468_v31  ;;  %v892_v48 = vsel %vm5883_vm2, %v601_v35, %v891_v36  ;;  %v1405_v50 = vor.u32 %v1404_v51, %v1401_v41  ;;  %v1894_v59 = vsel %vm6336_vm15, %v5354_v40, %v1893_v30  ;;  %v5744_v20 = vld [vmem:[%s7420_s1 + $0x40] sm:$0xff]  ;;  %v2577_v26 = vshll.u32 %v2520_v8, 16  ;;  %v1841_v28 = vld [vmem:[#allocation2 + $0xc] sm:$0xe]  ;;  %v2521_v51 = vld [vmem:[#allocation2 + $0x14] sm:$0x1] }
  0xb0   : > { %v1415_v18 = vor.u32 %v1414_v24, %v1410_v38  ;;  %v1420_v52 = vrot.slane %v1418_v44, 5  ;;  %893 = vst [vmem:[#allocation2 + $0x2c] sm:$0x1] %v892_v48  ;;  %v1897_v61 = vsel %vm6336_vm15, %v1895_v45, %v1896_v6  ;;  %v2006_v12 = vunpack.c.l.b16 %v1894_v59  ;;  %4816 = vmatpush.bf16.msra.mxu0 %v5744_v20  ;;  %v2563_v3 = vld [vmem:[#allocation2 + $0xbc] sm:$0x1] }
  0xb1   : > { %v1406_v56 = vrot.slane %v1405_v50, 4  ;;  %v2007_v13 = vunpack.c.l.b16 %v1897_v61  ;;  %v2568_v6 = vshrl.u32 %v2519_v62, 16  ;;  %v2581_v22 = vshrl.u32 %v2520_v8, 16 }
  0xb2   : > { %v1416_v55 = vrot.slane %v1415_v18, 4  ;;  %v1900_v35 = vrot.slane %v6145_v47, 5  ;;  %v2573_v37 = vrot.slane %v2571_v25, 5  ;;  %v5355_v44 = vrot.slane %v1841_v28, 9 }
  0xb3   : > { %v1411_v63 = vsel %vm6009_vm11, %v1406_v56, %v1410_v38  ;;  %v2038_v5 = vpack.c.b16 %v2007_v13, %v2006_v12  ;;  %v2570_v36 = vrot.slane %v2568_v6, 4  ;;  %v2579_v38 = vrot.slane %v2577_v26, 5  ;;  %v5689_v56 = vld [vmem:[#allocation2 + $0xc] sm:$0xff]  ;;  %v1842_v12 = vld [vmem:[#allocation2 + $0x18] sm:$0xe] }
  0xb4   : > { %v1421_v57 = vsel %vm6009_vm11, %v1416_v55, %v1420_v52  ;;  %v1455_v9 = vunpack.c.l.b16 %v1411_v63  ;;  %v991_v10 = vld [vmem:[#allocation2 + $0x24] sm:$0xf]  ;;  %v2583_v41 = vrot.slane %v2581_v22, 4  ;;  %v1902_v46 = vrot.slane %v1900_v35, 4 }
  0xb5   : > { %v1456_v4 = vunpack.c.l.b16 %v1421_v57  ;;  %v1111_v16 = vshrl.u32 %v991_v10, 16  ;;  %v1114_v19 = vshll.u32 %v991_v10, 16  ;;  %v6359_v23 = vld [vmem:[#allocation2 + $0x28] sm:$0xf]  ;;  %v1903_v48 = vrot.slane %v6148_v11, 5  ;;  %v5707_v11 = vld [vmem:[#allocation2 + $0xc] sm:$0xff] }
  0xb6   : > { %5338 = vmatmul.msk.bf16.vlgmr.msrb.gmra.mxu1 %vm1479_vm12, %v5688_v53  ;;  %v1120_v31 = vshll.u32 %v6359_v23, 16  ;;  %v1124_v60 = vshrl.u32 %v6359_v23, 16  ;;  %v2574_v52 = vor.u32 %v2573_v37, %v2570_v36  ;;  %v2584_v53 = vor.u32 %v2583_v41, %v2579_v38  ;;  %v2524_v36 = vld [vmem:[#allocation2 + $0x20] sm:$0x1]  ;;  %v5690_v37 = vld [vmem:[#allocation2 + $0x18] sm:$0xff] }
  0xb7   : > { %v1472_v21 = vpack.c.b16 %v1456_v4, %v1455_v9  ;;  %v6361_v27 = vld [vmem:[#allocation2 + $0x2c] sm:$0x1]  ;;  %v1113_v29 = vrot.slane %v1111_v16, 4  ;;  %v1116_v30 = vrot.slane %v1114_v19, 5  ;;  %v2587_v55 = vshll.u32 %v2521_v51, 16  ;;  %v5708_v41 = vld [vmem:[#allocation2 + $0x18] sm:$0xff] }
  0xb8   : > { %v1130_v32 = vshll.u32 %v6361_v27, 16  ;;  %v1122_v17 = vrot.slane %v1120_v31, 5  ;;  %v1126_v34 = vrot.slane %v1124_v60, 4  ;;  %v1901_v61 = vsel %vm6336_vm15, %v5355_v44, %v1900_v35  ;;  %v2523_v19 = vld [vmem:[#allocation2 + $0x1c] sm:$0xf] }
  0xb9   : > { %5269 = vmatmul.msk.bf16.gmra.mxu3 %vm1479_vm12, %v1472_v21  ;;  %v1117_v33 = vor.u32 %v1116_v30, %v1113_v29  ;;  %v1904_v57 = vsel %vm6336_vm15, %v1902_v46, %v1903_v48  ;;  %v2575_v63 = vrot.slane %v2574_v52, 4  ;;  %v2585_v4 = vrot.slane %v2584_v53, 4  ;;  %v2525_v51 = vld [vmem:[#allocation2 + $0x24] sm:$0xf]  ;;  %v2526_v46 = vld [vmem:[#allocation2 + $0x28] sm:$0xf] }
  0xba   : > { %v1127_v39 = vor.u32 %v1126_v34, %v1122_v17  ;;  %v1132_v40 = vrot.slane %v1130_v32, 5  ;;  %v2589_v8 = vrot.slane %v2587_v55, 5  ;;  %v2008_v9 = vunpack.c.l.b16 %v1901_v61 }
  0xbb   : > { %v1118_v24 = vrot.slane %v1117_v33, 4  ;;  %v2009_v10 = vunpack.c.l.b16 %v1904_v57  ;;  %v1907_v13 = vrot.slane %v6257_v43, 5  ;;  %v1910_v14 = vrot.slane %v6263_v54, 5 }
  0xbc   : > { %v1128_v18 = vrot.slane %v1127_v39, 4  ;;  %v5356_v16 = vrot.slane %v1842_v12, 9  ;;  %v2580_v20 = vsel %vm6009_vm11, %v2575_v63, %v2579_v38  ;;  %v2590_v21 = vsel %vm6009_vm11, %v2585_v4, %v2589_v8  ;;  %v2527_v12 = vld [vmem:[#allocation2 + $0x2c] sm:$0x1] }
  0xbd   : > { %v1123_v45 = vsel %vm6009_vm11, %v1118_v24, %v1122_v17  ;;  %v1909_v6 = vrot.slane %v1907_v13, 4  ;;  %v2039_v26 = vpack.c.b16 %v2009_v10, %v2008_v9  ;;  %v2592_v22 = vshrl.u32 %v2522_v15, 16 }
  0xbe   : > { %v1431_v50 = vunpack.c.l.b16 %v1123_v45  ;;  %v1133_v47 = vsel %vm6009_vm11, %v1128_v18, %v1132_v40  ;;  %v1908_v25 = vsel %vm6336_vm15, %v5356_v16, %v1907_v13  ;;  %v2595_v29 = vshll.u32 %v2522_v15, 16 }
  0xbf   : > { %5376 = vmatmul.msk.bf16.vlgmr.msrb.gmra.mxu2 %vm1479_vm12, %v2038_v5  ;;  %v1432_v59 = vunpack.c.l.b16 %v1133_v47  ;;  %v1911_v43 = vsel %vm6336_vm15, %v1909_v6, %v1910_v14  ;;  %v2010_v54 = vunpack.c.l.b16 %v1908_v25  ;;  %v2601_v30 = vshll.u32 %v2523_v19, 16  ;;  %v5691_v14 = vld [vmem:[#allocation2 + $0x24] sm:$0xff] }
  0xc0   : > { %v2605_v31 = vshrl.u32 %v2523_v19, 16  ;;  %v2011_v60 = vunpack.c.l.b16 %v1911_v43  ;;  %v2954_v5 = vunpack.c.l.b16 %v2580_v20  ;;  %v2955_v33 = vunpack.c.l.b16 %v2590_v21  ;;  %v5709_v21 = vld [vmem:[#allocation2 + $0x24] sm:$0xff]  ;;  %v2528_v43 = vld [vmem:[#allocation2 + $0x30] sm:$0xf] }
  0xc1   : > { %v1460_v62 = vpack.c.b16 %v1432_v59, %v1431_v50  ;;  %v2594_v17 = vrot.slane %v2592_v22, 4  ;;  %v2597_v34 = vrot.slane %v2595_v29, 5  ;;  %v2603_v28 = vrot.slane %v2601_v30, 5  ;;  %v1843_v59 = vld [vmem:[#allocation2 + $0x24] sm:$0xe] }
  0xc2   : > { %v2040_v32 = vpack.c.b16 %v2011_v60, %v2010_v54  ;;  %v2607_v35 = vrot.slane %v2605_v31, 4  ;;  %v2986_v38 = vpack.c.b16 %v2955_v33, %v2954_v5  ;;  %v2611_v40 = vshll.u32 %v2524_v36, 16  ;;  %v2529_v54 = vld [vmem:[#allocation2 + $0x34] sm:$0xf]  ;;  %v6413_v36 = vpop.f32.mrf.mxu1 }
  0xc3   : > { %5257 = vmatmul.msk.bf16.gmra.mxu0 %vm1479_vm12, %v1460_v62  ;;  %v2598_v24 = vor.u32 %v2597_v34, %v2594_v17  ;;  %v2616_v48 = vshrl.u32 %v2525_v51, 16  ;;  %v2619_v50 = vshll.u32 %v2525_v51, 16  ;;  %v2625_v47 = vshll.u32 %v2526_v46, 16  ;;  %v5763_v17 = vld [vmem:[#allocation2 + $0x34] sm:$0xf] }
  0xc4   : > { %v2608_v39 = vor.u32 %v2607_v35, %v2603_v28  ;;  %v2613_v18 = vrot.slane %v2611_v40, 5  ;;  %v2629_v55 = vshrl.u32 %v2526_v46, 16  ;;  %v1917_v10 = vrot.slane %v6361_v27, 5  ;;  %v2530_v40 = vld [vmem:[#allocation2 + $0x38] sm:$0x1]  ;;  %v5692_v46 = vld [vmem:[#allocation2 + $0x30] sm:$0xff] }
  0xc5   : > { %v2599_v44 = vrot.slane %v2598_v24, 4  ;;  %v2618_v61 = vrot.slane %v2616_v48, 4  ;;  %v2621_v57 = vrot.slane %v2619_v50, 5  ;;  %v2627_v4 = vrot.slane %v2625_v47, 5 }
  0xc6   : > { %5339 = vmatmul.msk.bf16.gmra.mxu1 %vm1479_vm12, %v5689_v56  ;;  %v2609_v45 = vrot.slane %v2608_v39, 4  ;;  %v1914_v56 = vrot.slane %v6359_v23, 5  ;;  %v2631_v8 = vrot.slane %v2629_v55, 4  ;;  %v2635_v19 = vshll.u32 %v2527_v12, 16 }
  0xc7   : > { %v2604_v52 = vsel %vm6009_vm11, %v2599_v44, %v2603_v28  ;;  %v2622_v13 = vor.u32 %v2621_v57, %v2618_v61  ;;  %v2640_v31 = vshrl.u32 %v2528_v43, 16  ;;  %v2643_v60 = vshll.u32 %v2528_v43, 16  ;;  %v1844_v28 = vld [vmem:[#allocation2 + $0x30] sm:$0xe]  ;;  %v2531_v57 = vld [vmem:[#allocation2 + $0x3c] sm:$0xf] }
  0xc8   : > { %v2614_v53 = vsel %vm6009_vm11, %v2609_v45, %v2613_v18  ;;  %v2956_v62 = vunpack.c.l.b16 %v2604_v52  ;;  %v1916_v9 = vrot.slane %v1914_v56, 4  ;;  %v2632_v16 = vor.u32 %v2631_v8, %v2627_v4  ;;  %v5764_v45 = vld [vmem:[#allocation2 + $0x38] sm:$0x1] }
  0xc9   : > { %5462 = vmatmul.msk.bf16.vlgmr.msrb.gmra.mxu3 %vm1479_vm12, %v5707_v11  ;;  %v2957_v63 = vunpack.c.l.b16 %v2614_v53  ;;  %v5357_v11 = vrot.slane %v1843_v59, 9  ;;  %v2623_v20 = vrot.slane %v2622_v13, 4  ;;  %v2637_v22 = vrot.slane %v2635_v19, 5 }
  0xca   : > { %v1918_v6 = vsel %vm6336_vm15, %v1916_v9, %v1917_v10  ;;  %v2653_v33 = vshrl.u32 %v2529_v54, 16  ;;  %v1921_v34 = vrot.slane %v5763_v17, 5  ;;  %v2645_v24 = vrot.slane %v2643_v60, 5  ;;  %v6424_v9 = vpop.f32.mrf.mxu1  ;;  %v5766_v60 = vld [vmem:[#allocation2 + $0x44] sm:$0x1]  ;;  %v6436_v17 = vpop.f32.mrf.mxu3 }
  0xcb   : > { %v2987_v15 = vpack.c.b16 %v2957_v63, %v2956_v62  ;;  %v1915_v23 = vsel %vm6336_vm15, %v5357_v11, %v1914_v56  ;;  %v2013_v27 = vunpack.c.l.b16 %v1918_v6  ;;  %v2628_v29 = vsel %vm6009_vm11, %v2623_v20, %v2627_v4  ;;  %v5710_v56 = vld [vmem:[#allocation2 + $0x30] sm:$0xff]  ;;  %v6422_v62 = vpop.f32.mrf.mxu2  ;;  %v2532_v11 = vld [vmem:[#allocation2 + $0x40] sm:$0xf]  ;;  %v1845_v20 = vld [vmem:[#allocation2 + $0x3c] sm:$0xe] }
  0xcc   : > { %v2012_v25 = vunpack.c.l.b16 %v1915_v23  ;;  %v2958_v35 = vunpack.c.l.b16 %v2628_v29  ;;  %v5358_v51 = vrot.slane %v1844_v28, 9  ;;  %v1923_v44 = vrot.slane %v1921_v34, 4  ;;  %v5765_v23 = vld [vmem:[#allocation2 + $0x40] sm:$0xf] }
  0xcd   : > { %v1924_v18 = vrot.slane %v5764_v45, 5  ;;  %v2659_v50 = vshll.u32 %v2530_v40, 16  ;;  %v2664_v10 = vshrl.u32 %v2531_v57, 16  ;;  %v2667_v12 = vshll.u32 %v2531_v57, 16  ;;  %v5711_v40 = vld [vmem:[#allocation2 + $0x3c] sm:$0xff] }
  0xce   : > { %v2041_v30 = vpack.c.b16 %v2013_v27, %v2012_v25  ;;  %v1922_v53 = vsel %vm6336_vm15, %v5358_v51, %v1921_v34  ;;  %v2677_v19 = vshrl.u32 %v2532_v11, 16  ;;  %v1928_v6 = vrot.slane %v5765_v23, 5  ;;  %v5693_v34 = vld [vmem:[#allocation2 + $0x3c] sm:$0xff] }
  0xcf   : > { %5377 = vmatmul.msk.bf16.gmra.mxu2 %vm1479_vm12, %v2039_v26  ;;  %v2633_v26 = vrot.slane %v2632_v16, 4  ;;  %v1925_v55 = vsel %vm6336_vm15, %v1923_v44, %v1924_v18  ;;  %v2014_v59 = vunpack.c.l.b16 %v1922_v53  ;;  %v2661_v8 = vrot.slane %v2659_v50, 5  ;;  %v6444_v44 = vpop.f32.mrf.mxu0 }
  0xd0   : > { %v2015_v61 = vunpack.c.l.b16 %v1925_v55  ;;  %v2669_v25 = vrot.slane %v2667_v12, 5  ;;  %v2679_v43 = vrot.slane %v2677_v19, 4 }
  0xd1   : > { %v2638_v5 = vsel %vm6009_vm11, %v2633_v26, %v2637_v22 }
  0xd2   : > { %v2042_v13 = vpack.c.b16 %v2015_v61, %v2014_v59  ;;  %v6455_v57 = vpop.f32.mrf.mxu3 }
  0xd3   : > { %5484 = vmatmul.msk.bf16.vlgmr.msrb.gmra.mxu0 %vm1479_vm12, %v2986_v38  ;;  %v2642_v38 = vrot.slane %v2640_v31, 4  ;;  %v6434_v29 = vpop.f32.mrf.mxu1  ;;  %v1930_v31 = vrot.slane %v1928_v6, 4 }
  0xd5   : > { %v2646_v47 = vor.u32 %v2645_v24, %v2642_v38 }
  0xd6   : > { %5340 = vmatmul.msk.bf16.gmra.mxu1 %vm1479_vm12, %v5690_v37  ;;  %v2959_v37 = vunpack.c.l.b16 %v2638_v5  ;;  %v2533_v5 = vld [vmem:[#allocation2 + $0x44] sm:$0x1] }
  0xd7   : > { %v2647_v63 = vrot.slane %v2646_v47, 4 }
  0xd8   : > { %v2988_v48 = vpack.c.b16 %v2959_v37, %v2958_v35  ;;  %v2683_v37 = vshll.u32 %v2533_v5, 16 }
  0xd9   : > { %5463 = vmatmul.msk.bf16.gmra.mxu3 %vm1479_vm12, %v5708_v41  ;;  %v2655_v41 = vrot.slane %v2653_v33, 4 }
  0xda   : > { %v2685_v18 = vrot.slane %v2683_v37, 5  ;;  %v2537_v37 = vld [vmem:[#allocation2 + $0x54] sm:$0xf] }
  0xdb   : > { %v6446_v50 = vpop.f32.mrf.mxu1 }
  0xdf   : > { %5378 = vmatmul.msk.bf16.gmra.mxu2 %vm1479_vm12, %v2040_v32  ;;  %v2649_v32 = vshll.u32 %v2529_v54, 16  ;;  %v6432_v54 = vpop.f32.mrf.mxu2 }
  0xe1   : > { %v2651_v39 = vrot.slane %v2649_v32, 5  ;;  %v1931_v32 = vrot.slane %v5766_v60, 5 }
  0xe3   : > { %5485 = vmatmul.msk.bf16.gmra.mxu0 %vm1479_vm12, %v2987_v15  ;;  %v2656_v52 = vor.u32 %v2655_v41, %v2651_v39  ;;  %v2652_v15 = vsel %vm6009_vm11, %v2647_v63, %v2651_v39  ;;  %v1932_v24 = vsel %vm6336_vm15, %v1930_v31, %v1931_v32 }
  0xe4   : > { %v2960_v27 = vunpack.c.l.b16 %v2652_v15  ;;  %v2017_v51 = vunpack.c.l.b16 %v1932_v24 }
  0xe5   : > { %v2657_v4 = vrot.slane %v2656_v52, 4 }
  0xe6   : > { %5341 = vmatmul.msk.bf16.gmra.mxu1 %vm1479_vm12, %v5691_v14  ;;  %v2673_v14 = vshll.u32 %v2532_v11, 16  ;;  %v1846_v11 = vld [vmem:[#allocation2 + $0x48] sm:$0xe] }
  0xe7   : > { %v2662_v16 = vsel %vm6009_vm11, %v2657_v4, %v2661_v8  ;;  %v6450_v52 = vpop.f32.mrf.mxu2  ;;  %v5767_v4 = vld [vmem:[#allocation2 + $0x4c] sm:$0xf] }
  0xe8   : > { %v2961_v26 = vunpack.c.l.b16 %v2662_v16  ;;  %v2675_v22 = vrot.slane %v2673_v14, 5  ;;  %v1935_v8 = vrot.slane %v5767_v4, 5  ;;  %v2536_v16 = vld [vmem:[#allocation2 + $0x50] sm:$0x1] }
  0xe9   : > { %5464 = vmatmul.msk.bf16.gmra.mxu3 %vm1479_vm12, %v5709_v21  ;;  %v2666_v21 = vrot.slane %v2664_v10, 4 }
  0xea   : > { %v2989_v28 = vpack.c.b16 %v2961_v26, %v2960_v27  ;;  %v2680_v35 = vor.u32 %v2679_v43, %v2675_v22  ;;  %v6460_v27 = vpop.f32.mrf.mxu0  ;;  %v5694_v26 = vld [vmem:[#allocation2 + $0x48] sm:$0xff]  ;;  %v2707_v43 = vshll.u32 %v2536_v16, 16 }
  0xeb   : > { %v2670_v33 = vor.u32 %v2669_v25, %v2666_v21  ;;  %v5768_v21 = vld [vmem:[#allocation2 + $0x50] sm:$0x1] }
  0xec   : > { %v2681_v45 = vrot.slane %v2680_v35, 4  ;;  %v1938_v25 = vrot.slane %v5768_v21, 5 }
  0xed   : > { %v2671_v39 = vrot.slane %v2670_v33, 4  ;;  %v6468_v33 = vpop.f32.mrf.mxu3 }
  0xee   : > { %v2686_v61 = vsel %vm6009_vm11, %v2681_v45, %v2685_v18  ;;  %v2715_v45 = vshll.u32 %v2537_v37, 16 }
  0xef   : > { %5379 = vmatmul.msk.bf16.gmra.mxu2 %vm1479_vm12, %v2041_v30  ;;  %v5359_v30 = vrot.slane %v1845_v20, 9  ;;  %v2676_v47 = vsel %vm6009_vm11, %v2671_v39, %v2675_v22  ;;  %v2963_v12 = vunpack.c.l.b16 %v2686_v61  ;;  %v1937_v20 = vrot.slane %v1935_v8, 4  ;;  %v6462_v60 = vpop.f32.mrf.mxu2 }
  0xf0   : > { %v2962_v10 = vunpack.c.l.b16 %v2676_v47 }
  0xf1   : > { %v1929_v38 = vsel %vm6336_vm15, %v5359_v30, %v1928_v6  ;;  %v5360_v6 = vrot.slane %v1846_v11, 9  ;;  %v1939_v5 = vsel %vm6336_vm15, %v1937_v20, %v1938_v25 }
  0xf2   : > { %v2016_v41 = vunpack.c.l.b16 %v1929_v38  ;;  %v2990_v22 = vpack.c.b16 %v2963_v12, %v2962_v10  ;;  %v2019_v35 = vunpack.c.l.b16 %v1939_v5  ;;  %v2538_v38 = vld [vmem:[#allocation2 + $0x58] sm:$0xf]  ;;  %v6475_v47 = vpop.f32.mrf.mxu0 }
  0xf3   : > { %5486 = vmatmul.msk.bf16.gmra.mxu0 %vm1479_vm12, %v2988_v48  ;;  %v2535_v48 = vld [vmem:[#allocation2 + $0x4c] sm:$0xf]  ;;  %v1936_v32 = vsel %vm6336_vm15, %v5360_v6, %v1935_v8  ;;  %v2721_v18 = vshll.u32 %v2538_v38, 16 }
  0xf4   : > { %v2043_v53 = vpack.c.b16 %v2017_v51, %v2016_v41  ;;  %v2697_v59 = vshll.u32 %v2535_v48, 16  ;;  %v2701_v63 = vshrl.u32 %v2535_v48, 16  ;;  %v2712_v51 = vshrl.u32 %v2537_v37, 16 }
  0xf5   : > { %v2723_v4 = vrot.slane %v2721_v18, 5 }
  0xf6   : > { %5342 = vmatmul.msk.bf16.gmra.mxu1 %vm1479_vm12, %v5692_v46  ;;  %v2534_v46 = vld [vmem:[#allocation2 + $0x48] sm:$0xf]  ;;  %v2699_v15 = vrot.slane %v2697_v59, 5  ;;  %v2703_v19 = vrot.slane %v2701_v63, 4  ;;  %v1847_v59 = vld [vmem:[#allocation2 + $0x54] sm:$0xe] }
  0xf7   : > { %v2688_v55 = vshrl.u32 %v2534_v46, 16  ;;  %v2714_v61 = vrot.slane %v2712_v51, 4  ;;  %v2717_v63 = vrot.slane %v2715_v45, 5 }
  0xf8   : > { %v2704_v31 = vor.u32 %v2703_v19, %v2699_v15  ;;  %v1945_v19 = vrot.slane %v6288_v2, 5  ;;  %v5713_v2 = vld [vmem:[#allocation2 + $0x54] sm:$0xff] }
  0xf9   : > { %5465 = vmatmul.msk.bf16.gmra.mxu3 %vm1479_vm12, %v5710_v56  ;;  %v2691_v56 = vshll.u32 %v2534_v46, 16  ;;  %v2725_v46 = vshrl.u32 %v2538_v38, 16  ;;  %v2718_v6 = vor.u32 %v2717_v63, %v2714_v61  ;;  %v2541_v38 = vld [vmem:[#allocation2 + $0x64] sm:$0xf] }
  0xfa   : > { %v6458_v23 = vpop.f32.mrf.mxu1  ;;  %v2705_v39 = vrot.slane %v2704_v31, 4 }
  0xfb   : > { %v2693_v14 = vrot.slane %v2691_v56, 5  ;;  %v1942_v56 = vrot.slane %v6283_v42, 5  ;;  %v2727_v8 = vrot.slane %v2725_v46, 4  ;;  %v2719_v31 = vrot.slane %v2718_v6, 4 }
  0xfc   : > { %v2745_v46 = vshll.u32 %v2541_v38, 16 }
  0xfd   : > { %v1944_v16 = vrot.slane %v1942_v56, 4  ;;  %v2728_v42 = vor.u32 %v2727_v8, %v2723_v4 }
  0xff   : > { %5380 = vmatmul.msk.bf16.gmra.mxu2 %vm1479_vm12, %v2042_v13  ;;  %v2690_v13 = vrot.slane %v2688_v55, 4 }
 0x101   : > { %v2694_v30 = vor.u32 %v2693_v14, %v2690_v13  ;;  %v2539_v13 = vld [vmem:[#allocation2 + $0x5c] sm:$0x1]  ;;  %v6485_v14 = vpop.f32.mrf.mxu3 }
 0x102   : > { %v6472_v41 = vpop.f32.mrf.mxu1  ;;  %v2731_v20 = vshll.u32 %v2539_v13, 16  ;;  %v5770_v13 = vld [vmem:[#allocation2 + $0x68] sm:$0x1] }
 0x103   : > { %5487 = vmatmul.msk.bf16.gmra.mxu0 %vm1479_vm12, %v2989_v28  ;;  %v2018_v28 = vunpack.c.l.b16 %v1936_v32  ;;  %v2695_v24 = vrot.slane %v2694_v30, 4  ;;  %v6494_v30 = vpop.f32.mrf.mxu0  ;;  %v2729_v32 = vrot.slane %v2728_v42, 4  ;;  %v2542_v42 = vld [vmem:[#allocation2 + $0x68] sm:$0x1] }
 0x104   : > { %v2733_v5 = vrot.slane %v2731_v20, 5 }
 0x105   : > { %v2044_v48 = vpack.c.b16 %v2019_v35, %v2018_v28  ;;  %v2540_v35 = vld [vmem:[#allocation2 + $0x60] sm:$0xf] }
 0x106   : > { %5343 = vmatmul.msk.bf16.gmra.mxu1 %vm1479_vm12, %v5693_v34  ;;  %v5712_v34 = vld [vmem:[#allocation2 + $0x48] sm:$0xff]  ;;  %v2736_v51 = vshrl.u32 %v2540_v35, 16  ;;  %v2739_v18 = vshll.u32 %v2540_v35, 16  ;;  %v5714_v35 = vld [vmem:[#allocation2 + $0x60] sm:$0xff] }
 0x108   : > { %v2741_v8 = vrot.slane %v2739_v18, 5  ;;  %v2543_v18 = vld [vmem:[#allocation2 + $0x6c] sm:$0xf] }
 0x109   : > { %5466 = vmatmul.msk.bf16.gmra.mxu3 %vm1479_vm12, %v5711_v40  ;;  %v2709_v40 = vrot.slane %v2707_v43, 5  ;;  %v6482_v11 = vpop.f32.mrf.mxu2  ;;  %v1946_v43 = vsel %vm6336_vm15, %v1944_v16, %v1945_v19 }
 0x10a   : > { %v2021_v28 = vunpack.c.l.b16 %v1946_v43 }
 0x10b   : > { %v2710_v55 = vsel %vm6009_vm11, %v2705_v39, %v2709_v40  ;;  %v2734_v39 = vsel %vm6009_vm11, %v2729_v32, %v2733_v5  ;;  %v2755_v5 = vshll.u32 %v2542_v42, 16 }
 0x10c   : > { %v2965_v12 = vunpack.c.l.b16 %v2710_v55  ;;  %v5769_v55 = vld [vmem:[#allocation2 + $0x64] sm:$0xf]  ;;  %v2967_v63 = vunpack.c.l.b16 %v2734_v39 }
 0x10f   : > { %5381 = vmatmul.msk.bf16.gmra.mxu2 %vm1479_vm12, %v2043_v53  ;;  %v2700_v53 = vsel %vm6009_vm11, %v2695_v24, %v2699_v15  ;;  %v5361_v15 = vrot.slane %v1847_v59, 9  ;;  %v2724_v24 = vsel %vm6009_vm11, %v2719_v31, %v2723_v4  ;;  %v1848_v59 = vld [vmem:[#allocation2 + $0x60] sm:$0xe]  ;;  %v2738_v4 = vrot.slane %v2736_v51, 4 }
 0x110   : > { %v2964_v10 = vunpack.c.l.b16 %v2700_v53  ;;  %v2966_v61 = vunpack.c.l.b16 %v2724_v24  ;;  %v5362_v19 = vrot.slane %v1848_v59, 9  ;;  %v5696_v31 = vld [vmem:[#allocation2 + $0x60] sm:$0xff]  ;;  %v2760_v59 = vshrl.u32 %v2543_v18, 16 }
 0x111   : > { %v6498_v37 = vpop.f32.mrf.mxu2 }
 0x112   : > { %v2991_v21 = vpack.c.b16 %v2965_v12, %v2964_v10  ;;  %v2747_v10 = vrot.slane %v2745_v46, 5  ;;  %v2544_v46 = vld [vmem:[#allocation2 + $0x70] sm:$0xf] }
 0x113   : > { %5488 = vmatmul.msk.bf16.gmra.mxu0 %vm1479_vm12, %v2990_v22  ;;  %v1943_v22 = vsel %vm6336_vm15, %v5361_v15, %v1942_v56  ;;  %v6504_v40 = vpop.f32.mrf.mxu3  ;;  %v1949_v56 = vrot.slane %v5769_v55, 5  ;;  %v1952_v15 = vrot.slane %v5770_v13, 5  ;;  %v5771_v13 = vld [vmem:[#allocation2 + $0x70] sm:$0xf] }
 0x115   : > { %v1951_v6 = vrot.slane %v1949_v56, 4 }
 0x116   : > { %5344 = vmatmul.msk.bf16.gmra.mxu1 %vm1479_vm12, %v5694_v26  ;;  %v5695_v26 = vld [vmem:[#allocation2 + $0x54] sm:$0xff] }
 0x119   : > { %5467 = vmatmul.msk.bf16.gmra.mxu3 %vm1479_vm12, %v5712_v34  ;;  %v2020_v34 = vunpack.c.l.b16 %v1943_v22  ;;  %v6510_v16 = vpop.f32.mrf.mxu0 }
 0x11b   : > { %v2045_v45 = vpack.c.b16 %v2021_v28, %v2020_v34  ;;  %v6514_v32 = vpop.f32.mrf.mxu3  ;;  %v1950_v34 = vsel %vm6336_vm15, %v5362_v19, %v1949_v56  ;;  %v1953_v28 = vsel %vm6336_vm15, %v1951_v6, %v1952_v15  ;;  %v1956_v15 = vrot.slane %v5771_v13, 5  ;;  %v1849_v19 = vld [vmem:[#allocation2 + $0x6c] sm:$0xe]  ;;  %v5772_v6 = vld [vmem:[#allocation2 + $0x74] sm:$0x1] }
 0x11c   : > { %7438 = vst [vmem:[#allocation3_spill] sm:$0xff] %v6514_v32  ;;  %v2022_v24 = vunpack.c.l.b16 %v1950_v34  ;;  %v2023_v39 = vunpack.c.l.b16 %v1953_v28  ;;  %v1959_v42 = vrot.slane %v5772_v6, 5  ;;  %v5363_v28 = vrot.slane %v1849_v19, 9  ;;  %v2546_v19 = vld [vmem:[#allocation2 + $0x78] sm:$0xf] }
 0x11d   : > { %v2547_v6 = vld [vmem:[#allocation2 + $0x7c] sm:$0xf] }
 0x11e   : > { %v2046_v56 = vpack.c.b16 %v2023_v39, %v2022_v24 }
 0x11f   : > { %5382 = vmatmul.msk.bf16.gmra.mxu2 %vm1479_vm12, %v2044_v48  ;;  %v2749_v48 = vshrl.u32 %v2541_v38, 16 }
 0x121   : > { %v2751_v12 = vrot.slane %v2749_v48, 4  ;;  %v6523_v48 = vpop.f32.mrf.mxu0 }
 0x123   : > { %v6488_v25 = vpop.f32.mrf.mxu1  ;;  %5489 = vmatmul.msk.bf16.gmra.mxu0 %vm1479_vm12, %v2991_v21  ;;  %v2992_v21 = vpack.c.b16 %v2967_v63, %v2966_v61  ;;  %v2752_v22 = vor.u32 %v2751_v12, %v2747_v10  ;;  %v2763_v61 = vshll.u32 %v2543_v18, 16  ;;  %v2773_v12 = vshrl.u32 %v2544_v46, 16 }
 0x125   : > { %v2753_v51 = vrot.slane %v2752_v22, 4  ;;  %v2775_v34 = vrot.slane %v2773_v12, 4 }
 0x126   : > { %5345 = vmatmul.msk.bf16.gmra.mxu1 %vm1479_vm12, %v5695_v26  ;;  %v2742_v26 = vor.u32 %v2741_v8, %v2738_v4  ;;  %v2769_v8 = vshll.u32 %v2544_v46, 16  ;;  %v5697_v46 = vld [vmem:[#allocation2 + $0x6c] sm:$0xff] }
 0x128   : > { %v2743_v38 = vrot.slane %v2742_v26, 4 }
 0x129   : > { %5468 = vmatmul.msk.bf16.gmra.mxu3 %vm1479_vm12, %v5713_v2 }
 0x12a   : > { %v2748_v55 = vsel %vm6009_vm11, %v2743_v38, %v2747_v10  ;;  %v2762_v10 = vrot.slane %v2760_v59, 4 }
 0x12b   : > { %v6507_v53 = vpop.f32.mrf.mxu1  ;;  %v2968_v26 = vunpack.c.l.b16 %v2748_v55 }
 0x12f   : > { %5383 = vmatmul.msk.bf16.gmra.mxu2 %vm1479_vm12, %v2045_v45  ;;  %v2757_v45 = vrot.slane %v2755_v5, 5  ;;  %v2771_v5 = vrot.slane %v2769_v8, 5 }
 0x131   : > { %v2758_v4 = vsel %vm6009_vm11, %v2753_v51, %v2757_v45  ;;  %v2776_v55 = vor.u32 %v2775_v34, %v2771_v5  ;;  %v2797_v34 = vshrl.u32 %v2547_v6, 16 }
 0x132   : > { %v6512_v20 = vpop.f32.mrf.mxu2  ;;  %v2969_v22 = vunpack.c.l.b16 %v2758_v4 }
 0x133   : > { %v1760_v43 = vpop.f32.mrf.mxu1  ;;  %5490 = vmatmul.msk.bf16.gmra.mxu0 %vm1479_vm12, %v2992_v21 }
 0x134   : > { %v1761_v2 = vadd.f32 %v1760_v43, %v6444_v44  ;;  %v2765_v43 = vrot.slane %v2763_v61, 5  ;;  %v2993_v24 = vpack.c.b16 %v2969_v22, %v2968_v26  ;;  %v2777_v22 = vrot.slane %v2776_v55, 4 }
 0x136   : > { %5346 = vmatmul.msk.bf16.gmra.mxu1 %vm1479_vm12, %v5696_v31  ;;  %v2545_v31 = vld [vmem:[#allocation2 + $0x74] sm:$0x1]  ;;  %v2766_v39 = vor.u32 %v2765_v43, %v2762_v10  ;;  %v2784_v43 = vshrl.u32 %v2546_v19, 16 }
 0x137   : > { %v2779_v51 = vshll.u32 %v2545_v31, 16  ;;  %v2787_v31 = vshll.u32 %v2546_v19, 16  ;;  %v2799_v19 = vrot.slane %v2797_v34, 4 }
 0x138   : > { %v2767_v26 = vrot.slane %v2766_v39, 4  ;;  %v2786_v55 = vrot.slane %v2784_v43, 4 }
 0x139   : > { %5469 = vmatmul.msk.bf16.gmra.mxu3 %vm1479_vm12, %v5714_v35  ;;  %v1958_v35 = vrot.slane %v1956_v15, 4 }
 0x13a   : > { %v6525_v44 = vpop.f32.mrf.mxu2 }
 0x13b   : > { %v1762_v63 = vpop.f32.mrf.mxu1  ;;  %v1960_v59 = vsel %vm6336_vm15, %v1958_v35, %v1959_v42  ;;  %v2793_v42 = vshll.u32 %v2547_v6, 16 }
 0x13c   : > { %v6532_v21 = vpop.f32.mrf.mxu3  ;;  %v2025_v12 = vunpack.c.l.b16 %v1960_v59  ;;  %v1763_v10 = vadd.f32 %v1762_v63, %v6460_v27  ;;  %v1850_v63 = vld [vmem:[#allocation2 + $0x78] sm:$0xe] }
 0x13d   : > { %7439 = vst [vmem:[#allocation4_spill] sm:$0xff] %v6532_v21  ;;  %v2795_v59 = vrot.slane %v2793_v42, 5 }
 0x13f   : > { %5384 = vmatmul.msk.bf16.gmra.mxu2 %vm1479_vm12, %v2046_v56  ;;  %v1957_v56 = vsel %vm6336_vm15, %v5363_v28, %v1956_v15 }
 0x140   : > { %v6535_v13 = vpop.f32.mrf.mxu0  ;;  %v2024_v8 = vunpack.c.l.b16 %v1957_v56  ;;  %v2789_v56 = vrot.slane %v2787_v31, 5  ;;  %v5698_v31 = vld [vmem:[#allocation2 + $0x78] sm:$0xff] }
 0x142   : > { %v2117_v38 = vpop.f32.mrf.mxu2  ;;  %v2047_v35 = vpack.c.b16 %v2025_v12, %v2024_v8  ;;  %v2548_v12 = vld [vmem:[#allocation2 + $0x80] sm:$0x1] }
 0x143   : > { %v2197_v45 = vadd.f32 %v2117_v38, %v1761_v2  ;;  %v1765_v18 = vpop.f32.mrf.mxu1  ;;  %5491 = vmatmul.msk.bf16.gmra.mxu0 %vm1479_vm12, %v2993_v24  ;;  %v5715_v2 = vld [vmem:[#allocation2 + $0x6c] sm:$0xff] }
 0x144   : > { %v1766_v4 = vadd.f32 %v1765_v18, %v6475_v47  ;;  %v6542_v61 = vpop.f32.mrf.mxu3  ;;  %v2781_v47 = vrot.slane %v2779_v51, 5  ;;  %v2772_v18 = vsel %vm6009_vm11, %v2767_v26, %v2771_v5  ;;  %v5773_v51 = vld [vmem:[#allocation2 + $0x7c] sm:$0xf]  ;;  %v5364_v5 = vrot.slane %v1850_v63, 9 }
 0x145   : > { %7440 = vst [vmem:[#allocation5_spill] sm:$0xff] %v6542_v61  ;;  %v1963_v27 = vrot.slane %v5773_v51, 5  ;;  %v2790_v61 = vor.u32 %v2789_v56, %v2786_v55  ;;  %v5716_v56 = vld [vmem:[#allocation2 + $0x78] sm:$0xff] }
 0x146   : > { %5347 = vmatmul.msk.bf16.gmra.mxu1 %vm1479_vm12, %v5697_v46  ;;  %v2782_v39 = vsel %vm6009_vm11, %v2777_v22, %v2781_v47  ;;  %v2800_v22 = vor.u32 %v2799_v19, %v2795_v59  ;;  %v2803_v47 = vshll.u32 %v2548_v12, 16 }
 0x147   : > { %v2971_v6 = vunpack.c.l.b16 %v2782_v39  ;;  %v1965_v26 = vrot.slane %v1963_v27, 4  ;;  %v2791_v63 = vrot.slane %v2790_v61, 4 }
 0x148   : > { %v6548_v24 = vpop.f32.mrf.mxu0  ;;  %v2805_v55 = vrot.slane %v2803_v47, 5 }
 0x149   : > { %5470 = vmatmul.msk.bf16.gmra.mxu3 %vm1479_vm12, %v5715_v2  ;;  %v2970_v2 = vunpack.c.l.b16 %v2772_v18 }
 0x14a   : > { %v2119_v15 = vpop.f32.mrf.mxu2 }
 0x14b   : > { %v2198_v28 = vadd.f32 %v2119_v15, %v1763_v10  ;;  %v1767_v38 = vpop.f32.mrf.mxu1  ;;  %v5774_v10 = vld [vmem:[#allocation2 + $0x80] sm:$0x1]  ;;  %v2994_v21 = vpack.c.b16 %v2971_v6, %v2970_v2  ;;  %v2549_v2 = vld [vmem:[#allocation2 + $0x84] sm:$0xf]  ;;  %v2550_v6 = vld [vmem:[#allocation2 + $0x88] sm:$0xf] }
 0x14c   : > { %v2407_v46 = vpop.f32.mrf.mxu3  ;;  %v1966_v15 = vrot.slane %v5774_v10, 5  ;;  %v2821_v47 = vshrl.u32 %v2550_v6, 16 }
 0x14d   : > { %v2487_v8 = vadd.f32 %v2407_v46, %v2197_v45  ;;  %v1964_v45 = vsel %vm6336_vm15, %v5364_v5, %v1963_v27  ;;  %v2801_v46 = vrot.slane %v2800_v22, 4  ;;  %v1768_v27 = vadd.f32 %v1767_v38, %v6494_v30  ;;  %v5775_v38 = vld [vmem:[#allocation2 + $0x88] sm:$0xf] }
 0x14e   : > { %v2026_v19 = vunpack.c.l.b16 %v1964_v45  ;;  %v2817_v22 = vshll.u32 %v2550_v6, 16 }
 0x14f   : > { %5385 = vmatmul.msk.bf16.gmra.mxu2 %vm1479_vm12, %v2047_v35  ;;  %v1967_v35 = vsel %vm6336_vm15, %v1965_v26, %v1966_v15  ;;  %v2806_v61 = vsel %vm6009_vm11, %v2801_v46, %v2805_v55 }
 0x150   : > { %v3065_v42 = vpop.f32.mrf.mxu0 }
 0x151   : > { %v6560_v18 = vadd.f32 %v3065_v42, %v2487_v8  ;;  %v2796_v8 = vsel %vm6009_vm11, %v2791_v63, %v2795_v59 }
 0x152   : > { %v2122_v51 = vpop.f32.mrf.mxu2  ;;  %v2972_v45 = vunpack.c.l.b16 %v2796_v8 }
 0x153   : > { %v2199_v32 = vadd.f32 %v2122_v51, %v1766_v4  ;;  %v1770_v43 = vpop.f32.mrf.mxu1  ;;  %5492 = vmatmul.msk.bf16.gmra.mxu0 %vm1479_vm12, %v2994_v21  ;;  %v2808_v21 = vshrl.u32 %v2549_v2, 16  ;;  %v1970_v51 = vrot.slane %v5775_v38, 5  ;;  %v5699_v38 = vld [vmem:[#allocation2 + $0x84] sm:$0xff] }
 0x154   : > { %v1771_v34 = vadd.f32 %v1770_v43, %v6510_v16  ;;  %v2409_v39 = vpop.f32.mrf.mxu3  ;;  %v2027_v16 = vunpack.c.l.b16 %v1967_v35  ;;  %v1851_v43 = vld [vmem:[#allocation2 + $0x84] sm:$0xe] }
 0x155   : > { %v2488_v4 = vadd.f32 %v2409_v39, %v2198_v28  ;;  %v2811_v28 = vshll.u32 %v2549_v2, 16  ;;  %v2973_v39 = vunpack.c.l.b16 %v2806_v61  ;;  %v2810_v46 = vrot.slane %v2808_v21, 4 }
 0x156   : > { %5348 = vmatmul.msk.bf16.gmra.mxu1 %vm1479_vm12, %v5698_v31  ;;  %v2048_v15 = vpack.c.b16 %v2027_v16, %v2026_v19  ;;  %v5776_v31 = vld [vmem:[#allocation2 + $0x8c] sm:$0x1]  ;;  %v2819_v19 = vrot.slane %v2817_v22, 5  ;;  %v2823_v16 = vrot.slane %v2821_v47, 4  ;;  %v5365_v2 = vrot.slane %v1851_v43, 9  ;;  %v5717_v22 = vld [vmem:[#allocation2 + $0x84] sm:$0xff] }
 0x157   : > { %v1973_v42 = vrot.slane %v5776_v31, 5  ;;  %v2813_v55 = vrot.slane %v2811_v28, 5  ;;  %v2995_v6 = vpack.c.b16 %v2973_v39, %v2972_v45  ;;  %v2552_v45 = vld [vmem:[#allocation2 + $0x90] sm:$0xf] }
 0x158   : > { %v3067_v26 = vpop.f32.mrf.mxu0  ;;  %v2824_v31 = vor.u32 %v2823_v16, %v2819_v19  ;;  %v1971_v61 = vsel %vm6336_vm15, %v5365_v2, %v1970_v51 }
 0x159   : > { %5471 = vmatmul.msk.bf16.gmra.mxu3 %vm1479_vm12, %v5716_v56  ;;  %v6571_v59 = vadd.f32 %v3067_v26, %v2488_v4  ;;  %v2551_v56 = vld [vmem:[#allocation2 + $0x8c] sm:$0x1]  ;;  %v2028_v47 = vunpack.c.l.b16 %v1971_v61 }
 0x15a   : > { %v2124_v12 = vpop.f32.mrf.mxu2  ;;  %v2827_v4 = vshll.u32 %v2551_v56, 16  ;;  %v2825_v39 = vrot.slane %v2824_v31, 4  ;;  %v2835_v56 = vshll.u32 %v2552_v45, 16 }
 0x15b   : > { %v2200_v10 = vadd.f32 %v2124_v12, %v1768_v27  ;;  %v1772_v5 = vpop.f32.mrf.mxu1  ;;  %v2814_v12 = vor.u32 %v2813_v55, %v2810_v46  ;;  %v2832_v55 = vshrl.u32 %v2552_v45, 16  ;;  %v5778_v45 = vld [vmem:[#allocation2 + $0x98] sm:$0x1] }
 0x15c   : > { %v1773_v30 = vadd.f32 %v1772_v5, %v6523_v48  ;;  %v2412_v35 = vpop.f32.mrf.mxu3  ;;  %v1972_v48 = vrot.slane %v1970_v51, 4  ;;  %v2829_v46 = vrot.slane %v2827_v4, 5  ;;  %v5777_v4 = vld [vmem:[#allocation2 + $0x94] sm:$0xf] }
 0x15d   : > { %v2489_v63 = vadd.f32 %v2412_v35, %v2199_v32  ;;  %v2553_v35 = vld [vmem:[#allocation2 + $0x94] sm:$0xf]  ;;  %v2834_v61 = vrot.slane %v2832_v55, 4 }
 0x15f   : > { %5386 = vmatmul.msk.bf16.gmra.mxu2 %vm1479_vm12, %v2048_v15  ;;  %v1974_v15 = vsel %vm6336_vm15, %v1972_v48, %v1973_v42  ;;  %v2841_v42 = vshll.u32 %v2553_v35, 16 }
 0x160   : > { %v3070_v8 = vpop.f32.mrf.mxu0  ;;  %v2029_v43 = vunpack.c.l.b16 %v1974_v15  ;;  %v2837_v15 = vrot.slane %v2835_v56, 5  ;;  %v5700_v56 = vld [vmem:[#allocation2 + $0x90] sm:$0xff] }
 0x161   : > { %v6579_v21 = vadd.f32 %v3070_v8, %v2489_v63  ;;  %v2845_v63 = vshrl.u32 %v2553_v35, 16  ;;  %v1980_v35 = vrot.slane %v5778_v45, 5 }
 0x162   : > { %v2127_v27 = vpop.f32.mrf.mxu2  ;;  %v2049_v2 = vpack.c.b16 %v2029_v43, %v2028_v47 }
 0x163   : > { %v2201_v5 = vadd.f32 %v2127_v27, %v1771_v34  ;;  %v1775_v26 = vpop.f32.mrf.mxu1  ;;  %5493 = vmatmul.msk.bf16.gmra.mxu0 %vm1479_vm12, %v2995_v6  ;;  %v2830_v6 = vsel %vm6009_vm11, %v2825_v39, %v2829_v46  ;;  %v2838_v39 = vor.u32 %v2837_v15, %v2834_v61 }
 0x164   : > { %v1776_v32 = vadd.f32 %v1775_v26, %v6535_v13  ;;  %v2414_v28 = vpop.f32.mrf.mxu3  ;;  %v2815_v13 = vrot.slane %v2814_v12, 4  ;;  %v1977_v26 = vrot.slane %v5777_v4, 5  ;;  %v2975_v47 = vunpack.c.l.b16 %v2830_v6 }
 0x165   : > { %v2490_v34 = vadd.f32 %v2414_v28, %v2200_v10  ;;  %v2847_v28 = vrot.slane %v2845_v63, 4  ;;  %v2839_v6 = vrot.slane %v2838_v39, 4 }
 0x166   : > { %5349 = vmatmul.msk.bf16.gmra.mxu1 %vm1479_vm12, %v5699_v38  ;;  %v2820_v10 = vsel %vm6009_vm11, %v2815_v13, %v2819_v19  ;;  %v1852_v38 = vld [vmem:[#allocation2 + $0x90] sm:$0xe]  ;;  %v2554_v19 = vld [vmem:[#allocation2 + $0x98] sm:$0x1] }
 0x167   : > { %v5366_v13 = vrot.slane %v1852_v38, 9 }
 0x168   : > { %v3072_v27 = vpop.f32.mrf.mxu0 }
 0x169   : > { %5472 = vmatmul.msk.bf16.gmra.mxu3 %vm1479_vm12, %v5717_v22  ;;  %v6589_v8 = vadd.f32 %v3072_v27, %v2490_v34  ;;  %v2974_v22 = vunpack.c.l.b16 %v2820_v10  ;;  %v1978_v63 = vsel %vm6336_vm15, %v5366_v13, %v1977_v26 }
 0x16a   : > { %v2129_v51 = vpop.f32.mrf.mxu2  ;;  %v2030_v61 = vunpack.c.l.b16 %v1978_v63 }
 0x16b   : > { %v2202_v16 = vadd.f32 %v2129_v51, %v1773_v30  ;;  %v1777_v48 = vpop.f32.mrf.mxu1  ;;  %v2843_v30 = vrot.slane %v2841_v42, 5  ;;  %v2851_v51 = vshll.u32 %v2554_v19, 16 }
 0x16c   : > { %v1778_v12 = vadd.f32 %v1777_v48, %v6548_v24  ;;  %v2417_v31 = vpop.f32.mrf.mxu3  ;;  %v1979_v24 = vrot.slane %v1977_v26, 4  ;;  %v2996_v48 = vpack.c.b16 %v2975_v47, %v2974_v22  ;;  %v2556_v22 = vld [vmem:[#allocation2 + $0xa0] sm:$0xf] }
 0x16d   : > { %v2491_v43 = vadd.f32 %v2417_v31, %v2201_v5  ;;  %v2848_v46 = vor.u32 %v2847_v28, %v2843_v30  ;;  %v2853_v38 = vrot.slane %v2851_v51, 5  ;;  %v5718_v31 = vld [vmem:[#allocation2 + $0x90] sm:$0xff]  ;;  %v2555_v28 = vld [vmem:[#allocation2 + $0x9c] sm:$0xf]  ;;  %v2844_v26 = vsel %vm6009_vm11, %v2839_v6, %v2843_v30  ;;  %v5779_v51 = vld [vmem:[#allocation2 + $0xa0] sm:$0xf] }
 0x16e   : > { %v1981_v5 = vsel %vm6336_vm15, %v1979_v24, %v1980_v35  ;;  %v2856_v19 = vshrl.u32 %v2555_v28, 16  ;;  %v2859_v45 = vshll.u32 %v2555_v28, 16  ;;  %v2865_v24 = vshll.u32 %v2556_v22, 16 }
 0x16f   : > { %5387 = vmatmul.msk.bf16.gmra.mxu2 %vm1479_vm12, %v2049_v2  ;;  %v2849_v4 = vrot.slane %v2848_v46, 4  ;;  %v2031_v15 = vunpack.c.l.b16 %v1981_v5  ;;  %v2976_v30 = vunpack.c.l.b16 %v2844_v26 }
 0x170   : > { %v3075_v42 = vpop.f32.mrf.mxu0  ;;  %v2858_v5 = vrot.slane %v2856_v19, 4  ;;  %v6608_v6 = vrot.slane %v2865_v24, 5  ;;  %v5701_v24 = vld [vmem:[#allocation2 + $0x9c] sm:$0xff] }
 0x171   : > { %v6596_v2 = vadd.f32 %v3075_v42, %v2491_v43  ;;  %v2854_v47 = vsel %vm6009_vm11, %v2849_v4, %v2853_v38  ;;  %v2050_v13 = vpack.c.b16 %v2031_v15, %v2030_v61  ;;  %v5780_v38 = vld [vmem:[#allocation2 + $0xa4] sm:$0x1] }
 0x172   : > { %v2132_v34 = vpop.f32.mrf.mxu2  ;;  %v2977_v42 = vunpack.c.l.b16 %v2854_v47  ;;  %v2557_v61 = vld [vmem:[#allocation2 + $0xa4] sm:$0x1]  ;;  %v300_v47 = vld [vmem:[%s5906_s8 + $0xf0] sm:$0xff] }
 0x173   : > { %v2203_v27 = vadd.f32 %v2132_v34, %v1776_v32  ;;  %v1780_v55 = vpop.f32.mrf.mxu1  ;;  %5494 = vmatmul.msk.bf16.gmra.mxu0 %vm1479_vm12, %v2996_v48  ;;  %v1984_v34 = vrot.slane %v5779_v51, 5  ;;  %v1853_v48 = vld [vmem:[#allocation2 + $0x9c] sm:$0xe]  ;;  %v2875_v19 = vshll.u32 %v2557_v61, 16 }
 0x174   : > { %v2419_v10 = vpop.f32.mrf.mxu3  ;;  %v5367_v15 = vrot.slane %v1853_v48, 9 }
 0x175   : > { %v2492_v32 = vadd.f32 %v2419_v10, %v2202_v16  ;;  %v2869_v16 = vshrl.u32 %v2556_v22, 16  ;;  %v1986_v28 = vrot.slane %v1984_v34, 4  ;;  %v2997_v22 = vpack.c.b16 %v2977_v42, %v2976_v30 }
 0x176   : > { %5350 = vmatmul.msk.bf16.gmra.mxu1 %vm1479_vm12, %v5700_v56  ;;  %v1985_v51 = vsel %vm6336_vm15, %v5367_v15, %v1984_v34 }
 0x177   : > { %v2871_v4 = vrot.slane %v2869_v16, 4  ;;  %v2032_v61 = vunpack.c.l.b16 %v1985_v51 }
 0x178   : > { %v3077_v46 = vpop.f32.mrf.mxu0 }
 0x179   : > { %5473 = vmatmul.msk.bf16.gmra.mxu3 %vm1479_vm12, %v5718_v31  ;;  %v6605_v56 = vadd.f32 %v3077_v46, %v2492_v32  ;;  %v1987_v31 = vrot.slane %v5780_v38, 5  ;;  %v1781_v32 = vadd.f32 %v1780_v55, %v6413_v36  ;;  %v5781_v36 = vld [vmem:[%s7421_s2] ss:$0 sm:$0xff] }
 0x17a   : > { %v2134_v43 = vpop.f32.mrf.mxu2  ;;  %v336_v55 = vmul.f32 %v5781_v36, %v300_v47  ;;  %v5719_v38 = vld [vmem:[#allocation2 + $0x9c] sm:$0xff] }
 0x17b   : > { %v2204_v35 = vadd.f32 %v2134_v43, %v1778_v12  ;;  %v1782_v39 = vpop.f32.mrf.mxu1  ;;  %v2861_v12 = vrot.slane %v2859_v45, 5  ;;  %v301_v43 = vld [vmem:[%s5906_s8 + $0xf8] sm:$0xff]  ;;  %v1988_v48 = vsel %vm6336_vm15, %v1986_v28, %v1987_v31  ;;  %v2558_v28 = vld [vmem:[#allocation2 + $0xa8] sm:$0xf] }
 0x17c   : > { %v2422_v63 = vpop.f32.mrf.mxu3  ;;  %v337_v30 = vmul.f32 %v5781_v36, %v301_v43  ;;  %v2033_v15 = vunpack.c.l.b16 %v1988_v48 }
 0x17d   : > { %v2493_v10 = vadd.f32 %v2422_v63, %v2203_v27  ;;  %v2862_v46 = vor.u32 %v2861_v12, %v2858_v5  ;;  %v2872_v27 = vor.u32 %v2871_v4, %v6608_v6  ;;  %v5782_v5 = vld [vmem:[%s7422_s3] ss:$0 sm:$0xff] }
 0x17e   : > { %v372_v12 = vadd.f32 %v5782_v5, %v336_v55  ;;  %v373_v34 = vadd.f32 %v5782_v5, %v337_v30  ;;  %v2880_v55 = vshrl.u32 %v2558_v28, 16  ;;  %v5783_v5 = vld [vmem:[#allocation2 + $0xac] sm:$0xf] }
 0x17f   : > { %5388 = vmatmul.msk.bf16.gmra.mxu2 %vm1479_vm12, %v2050_v13  ;;  %v2863_v31 = vrot.slane %v2862_v46, 4 }
 0x180   : > { %v3080_v16 = vpop.f32.mrf.mxu0  ;;  %v404_v47 = vmax.f32 %v372_v12, 0.0  ;;  %v1991_v12 = vrot.slane %v5783_v5, 5 }
 0x181   : > { %v6623_v42 = vadd.f32 %v3080_v16, %v2493_v10  ;;  %v2873_v10 = vrot.slane %v2872_v27, 4  ;;  %v2559_v16 = vld [vmem:[#allocation2 + $0xac] sm:$0xf]  ;;  %v2868_v46 = vsel %vm6009_vm11, %v2863_v31, %v6608_v6  ;;  %v2882_v31 = vrot.slane %v2880_v55, 4 }
 0x182   : > { %v2137_v26 = vpop.f32.mrf.mxu2  ;;  %v547_v48 = vpack.c.bf16 %v404_v47, %v404_v47 }
 0x183   : > { %v2205_v13 = vadd.f32 %v2137_v26, %v1781_v32  ;;  %v6614_v45 = vpop.f32.mrf.mxu1  ;;  %7441 = vst [vmem:[#allocation6_spill] sm:$0xff] %v6623_v42  ;;  %5495 = vmatmul.msk.bf16.gmra.mxu0 %vm1479_vm12, %v2997_v22  ;;  %v464_v32 = vld [vmem:[#allocation2 + $0xc0] sm:$0x1]  ;;  %v2877_v26 = vrot.slane %v2875_v19, 5  ;;  %v2883_v22 = vshll.u32 %v2558_v28, 16  ;;  %v2051_v19 = vpack.c.b16 %v2033_v15, %v2032_v61 }
 0x184   : > { %v2424_v63 = vpop.f32.mrf.mxu3  ;;  %v465_v43 = vsel %vm5883_vm2, 0, %v464_v32  ;;  %v1993_v42 = vrot.slane %v1991_v12, 4 }
 0x185   : > { %v2494_v4 = vadd.f32 %v2424_v63, %v2204_v35  ;;  %466 = vst [vmem:[#allocation2 + $0xc0] sm:$0x1] %v465_v43  ;;  %v405_v35 = vmax.f32 %v373_v34, 0.0  ;;  %v2893_v63 = vshrl.u32 %v2559_v16, 16  ;;  %v5784_v34 = vld [vmem:[#allocation2 + $0xb0] sm:$0x1]  ;;  %v2978_v43 = vunpack.c.l.b16 %v2868_v46 }
 0x186   : > { %5351 = vmatmul.msk.bf16.gmra.mxu1 %vm1479_vm12, %v5701_v24  ;;  %v1783_v24 = vadd.f32 %v1782_v39, %v6424_v9  ;;  %v2878_v9 = vsel %vm6009_vm11, %v2873_v10, %v2877_v26  ;;  %v2889_v39 = vshll.u32 %v2559_v16, 16  ;;  %v1994_v28 = vrot.slane %v5784_v34, 5  ;;  %v514_v26 = vld [vmem:[#allocation2 + $0xc8] sm:$0x1]  ;;  %v2560_v46 = vld [vmem:[#allocation2 + $0xb0] sm:$0x1] }
 0x187   : > { %v2885_v61 = vrot.slane %v2883_v22, 5  ;;  %v548_v15 = vpack.c.bf16 %v405_v35, %v405_v35  ;;  %v807_v10 = vshrl.u32 %v547_v48, 16  ;;  %v2895_v5 = vrot.slane %v2893_v63, 4 }
 0x188   : > { %v3082_v30 = vpop.f32.mrf.mxu0  ;;  %v6644_v16 = vrot.slane %v2889_v39, 5  ;;  %v810_v34 = vshll.u32 %v547_v48, 16  ;;  %v5702_v39 = vld [vmem:[#allocation2 + $0xa8] sm:$0xff] }
 0x189   : > { %5474 = vmatmul.msk.bf16.gmra.mxu3 %vm1479_vm12, %v5719_v38  ;;  %v1854_v38 = vld [vmem:[#allocation2 + $0xa8] sm:$0xe]  ;;  %v6641_v32 = vadd.f32 %v3082_v30, %v2494_v4  ;;  %v1786_v4 = vadd.f32 %v6614_v45, %v6434_v29  ;;  %v809_v30 = vrot.slane %v807_v10, 7  ;;  %v2886_v55 = vor.u32 %v2885_v61, %v2882_v31 }
 0x18a   : > { %v2139_v36 = vpop.f32.mrf.mxu2  ;;  %v815_v35 = vshrl.u32 %v548_v15, 16  ;;  %v818_v48 = vshll.u32 %v548_v15, 16  ;;  %v2896_v45 = vor.u32 %v2895_v5, %v6644_v16  ;;  %v2899_v31 = vshll.u32 %v2560_v46, 16  ;;  %v2561_v15 = vld [vmem:[#allocation2 + $0xb4] sm:$0xf]  ;;  %v5720_v46 = vld [vmem:[#allocation2 + $0xa8] sm:$0xff] }
 0x18b   : > { %v2206_v27 = vadd.f32 %v2139_v36, %v1783_v24  ;;  %v6637_v51 = vpop.f32.mrf.mxu1  ;;  %v2979_v24 = vunpack.c.l.b16 %v2878_v9  ;;  %v5368_v36 = vrot.slane %v1854_v38, 9  ;;  %v1995_v61 = vsel %vm6336_vm15, %v1993_v42, %v1994_v28  ;;  %v2562_v42 = vld [vmem:[#allocation2 + $0xb8] sm:$0xf] }
 0x18c   : > { %v2427_v6 = vpop.f32.mrf.mxu3  ;;  %v812_v7 = vor.u32 %v810_v34, %v809_v30  ;;  %v813_v10 = vrot.slane %v809_v30, 4  ;;  %v2901_v30 = vrot.slane %v2899_v31, 5 }
 0x18d   : > { %v2495_v47 = vadd.f32 %v2427_v6, %v2205_v13  ;;  %v515_v13 = vsel %vm5897_vm4, 0, %v514_v26  ;;  %v1992_v63 = vsel %vm6336_vm15, %v5368_v36, %v1991_v12  ;;  %v978_v6 = vld [vmem:[#allocation2 + $0xc0] sm:$0xf] }
 0x18e   : > { %516 = vst [vmem:[#allocation2 + $0xc8] sm:$0x1] %v515_v13  ;;  %v2034_v12 = vunpack.c.l.b16 %v1992_v63  ;;  %v979_v36 = vsel %vm5960_vm8, %v812_v7, %v978_v6 }
 0x18f   : > { %5389 = vmatmul.msk.bf16.gmra.mxu2 %vm1479_vm12, %v2051_v19  ;;  %v2998_v19 = vpack.c.b16 %v2979_v24, %v2978_v43  ;;  %v817_v43 = vrot.slane %v815_v35, 7  ;;  %980 = vst [vmem:[#allocation2 + $0xc0] sm:$0xf] %v979_v36  ;;  %v2904_v35 = vshrl.u32 %v2561_v15, 16 }
 0x190   : > { %v3085_v29 = vpop.f32.mrf.mxu0 }
 0x191   : > { %v6657_v24 = vadd.f32 %v3085_v29, %v2495_v47  ;;  %v820_v28 = vor.u32 %v818_v48, %v817_v43  ;;  %v822_v34 = vrot.slane %v817_v43, 4  ;;  %v2897_v47 = vrot.slane %v2896_v45, 4 }
 0x192   : > { %v2142_v22 = vpop.f32.mrf.mxu2  ;;  %v2917_v29 = vshrl.u32 %v2562_v42, 16 }
 0x193   : > { %v2207_v9 = vadd.f32 %v2142_v22, %v1786_v4  ;;  %v6650_v38 = vpop.f32.mrf.mxu1  ;;  %v2887_v4 = vrot.slane %v2886_v55, 4  ;;  %5496 = vmatmul.msk.bf16.gmra.mxu0 %vm1479_vm12, %v2998_v19  ;;  %v2035_v22 = vunpack.c.l.b16 %v1995_v61  ;;  %v1788_v55 = vadd.f32 %v6637_v51, %v6446_v50  ;;  %v1855_v61 = vld [vmem:[#allocation2 + $0xb4] sm:$0xe] }
 0x194   : > { %v2429_v26 = vpop.f32.mrf.mxu3  ;;  %v821_v13 = vsel %vm5950_vm7, %v813_v10, %v820_v28  ;;  %v2907_v19 = vshll.u32 %v2561_v15, 16  ;;  %v2902_v45 = vsel %vm6009_vm11, %v2897_v47, %v2901_v30  ;;  %v5369_v28 = vrot.slane %v1855_v61, 9 }
 0x195   : > { %v2496_v5 = vadd.f32 %v2429_v26, %v2206_v27  ;;  %v2892_v0 = vsel %vm6009_vm11, %v2887_v4, %v6644_v16  ;;  %981 = vst.msk [vmem:[#allocation2 + $0xc4] sm:$0xf] %vm406_vm5, %v821_v13  ;;  %v982_v63 = vld [vmem:[#allocation2 + $0xc8] sm:$0x1]  ;;  %v2052_v6 = vpack.c.b16 %v2035_v22, %v2034_v12  ;;  %v5785_v16 = vld [vmem:[#allocation2 + $0xb8] sm:$0xf]  ;;  %v2981_v12 = vunpack.c.l.b16 %v2902_v45 }
 0x196   : > { %5352 = vmatmul.msk.bf16.gmra.mxu1 %vm1479_vm12, %v5702_v39  ;;  %v2913_v39 = vshll.u32 %v2562_v42, 16  ;;  %v983_v58 = vsel %vm5883_vm2, %v822_v34, %v982_v63  ;;  %v1998_v31 = vrot.slane %v5785_v16, 5  ;;  %v2980_v10 = vunpack.c.l.b16 %v2892_v0  ;;  %v5786_v22 = vld [vmem:[#allocation2 + $0xbc] sm:$0x1] }
 0x197   : > { %984 = vst [vmem:[#allocation2 + $0xc8] sm:$0x1] %v983_v58  ;;  %v2906_v26 = vrot.slane %v2904_v35, 4  ;;  %v2909_v4 = vrot.slane %v2907_v19, 5  ;;  %v2001_v42 = vrot.slane %v5786_v22, 5  ;;  %v1791_v47 = vadd.f32 %v6650_v38, %v6458_v23 }
 0x198   : > { %v3087_v51 = vpop.f32.mrf.mxu0  ;;  %v2915_v36 = vrot.slane %v2913_v39, 5  ;;  %v2000_v34 = vrot.slane %v1998_v31, 4  ;;  %v2923_v30 = vshll.u32 %v2563_v3, 16  ;;  %v2999_v13 = vpack.c.b16 %v2981_v12, %v2980_v10  ;;  %v2564_v19 = vld [vmem:[#allocation2 + $0xc0] sm:$0xf]  ;;  %v5721_v10 = vld [vmem:[#allocation2 + $0xb4] sm:$0xff] }
 0x199   : > { %5475 = vmatmul.msk.bf16.gmra.mxu3 %vm1479_vm12, %v5720_v46  ;;  %v6676_v7 = vadd.f32 %v3087_v51, %v2496_v5  ;;  %v2919_v46 = vrot.slane %v2917_v29, 4  ;;  %v2910_v5 = vor.u32 %v2909_v4, %v2906_v26  ;;  %v1999_v39 = vsel %vm6336_vm15, %v5369_v28, %v1998_v31  ;;  %v5787_v4 = vld [vmem:[#allocation2 + $0x10] sm:$0xf] }
 0x19a   : > { %v2144_v27 = vpop.f32.mrf.mxu2  ;;  %v2925_v51 = vrot.slane %v2923_v30, 5  ;;  %v2928_v45 = vshrl.u32 %v2564_v19, 16  ;;  %v2931_v16 = vshll.u32 %v2564_v19, 16  ;;  %v2036_v26 = vunpack.c.l.b16 %v1999_v39 }
 0x19b   : > { %v2208_v48 = vadd.f32 %v2144_v27, %v1788_v55  ;;  %v1792_v50 = vpop.f32.mrf.mxu1  ;;  %v2920_v35 = vor.u32 %v2919_v46, %v2915_v36  ;;  %v2911_v38 = vrot.slane %v2910_v5, 4  ;;  %v3243_v12 = vrot.slane %v5787_v4, 5 }
 0x19c   : > { %v2432_v43 = vpop.f32.mrf.mxu3  ;;  %v2565_v29 = vld [vmem:[#allocation2 + $0xc4] sm:$0xf]  ;;  %v2933_v28 = vrot.slane %v2931_v16, 5 }
 0x19d   : > { %v2497_v15 = vadd.f32 %v2432_v43, %v2207_v9  ;;  %v5703_v9 = vld [vmem:[#allocation2 + $0xb4] sm:$0xff]  ;;  %v2921_v43 = vrot.slane %v2920_v35, 4  ;;  %v2937_v3 = vshll.u32 %v2565_v29, 16  ;;  %v2941_v46 = vshrl.u32 %v2565_v29, 16 }
 0x19e   : > { %v5788_v35 = vld [vmem:[#allocation2 + $0x14] sm:$0x1]  ;;  %v2566_v39 = vld [vmem:[#allocation2 + $0xc8] sm:$0x1] }
 0x19f   : > { %5390 = vmatmul.msk.bf16.gmra.mxu2 %vm1479_vm12, %v2052_v6  ;;  %v2002_v6 = vsel %vm6336_vm15, %v2000_v34, %v2001_v42  ;;  %v2930_v42 = vrot.slane %v2928_v45, 4  ;;  %v3870_v34 = vld [vmem:[#allocation2 + $0x18] sm:$0xf] }
 0x1a0   : > { %v3090_v63 = vpop.f32.mrf.mxu0  ;;  %v2037_v31 = vunpack.c.l.b16 %v2002_v6  ;;  %v3177_v6 = vld [vmem:[#allocation2 + $0xc] sm:$0xe]  ;;  %v3919_v29 = vshrl.u32 %v3870_v34, 16 }
 0x1a1   : > { %v6685_v58 = vadd.f32 %v3090_v63, %v2497_v15  ;;  %v1793_v15 = vadd.f32 %v1792_v50, %v6472_v41  ;;  %v2939_v41 = vrot.slane %v2937_v3, 5  ;;  %v2943_v50 = vrot.slane %v2941_v46, 4  ;;  %v6695_v63 = vld [vmem:[#allocation2 + $0x1c] sm:$0xf] }
 0x1a2   : > { %v2147_v55 = vpop.f32.mrf.mxu2  ;;  %v2053_v30 = vpack.c.b16 %v2037_v31, %v2036_v26  ;;  %v2934_v16 = vor.u32 %v2933_v28, %v2930_v42  ;;  %v3928_v31 = vshll.u32 %v6695_v63, 16  ;;  %v3932_v4 = vshrl.u32 %v6695_v63, 16 }
 0x1a3   : > { %v2209_v0 = vadd.f32 %v2147_v55, %v1791_v47  ;;  %v1795_v27 = vpop.f32.mrf.mxu1  ;;  %5497 = vmatmul.msk.bf16.gmra.mxu0 %vm1479_vm12, %v2999_v13  ;;  %v2916_v47 = vsel %vm6009_vm11, %v2911_v38, %v2915_v36  ;;  %v3245_v13 = vrot.slane %v3243_v12, 4  ;;  %v2944_v3 = vor.u32 %v2943_v50, %v2939_v41 }
 0x1a4   : > { %v2434_v23 = vpop.f32.mrf.mxu3  ;;  %v2982_v36 = vunpack.c.l.b16 %v2916_v47  ;;  %v1796_v26 = vadd.f32 %v1795_v27, %v6488_v25  ;;  %v2947_v46 = vshll.u32 %v2566_v39, 16  ;;  %v3921_v28 = vrot.slane %v3919_v29, 4  ;;  %v6707_v39 = vld [vmem:[#allocation2 + $0x20] sm:$0x1] }
 0x1a5   : > { %v2498_v61 = vadd.f32 %v2434_v23, %v2208_v48  ;;  %v2926_v48 = vsel %vm6009_vm11, %v2921_v43, %v2925_v51  ;;  %v3922_v23 = vshll.u32 %v3870_v34, 16  ;;  %v2935_v50 = vrot.slane %v2934_v16, 4  ;;  %v5722_v29 = vld [vmem:[#allocation2 + $0xc0] sm:$0xff] }
 0x1a6   : > { %5353 = vmatmul.msk.bf16.gmra.mxu1 %vm1479_vm12, %v5703_v9  ;;  %v3246_v9 = vrot.slane %v5788_v35, 5  ;;  %v2983_v38 = vunpack.c.l.b16 %v2926_v48  ;;  %v3934_v35 = vrot.slane %v3932_v4, 4 }
 0x1a8   : > { %v3092_v19 = vpop.f32.mrf.mxu0  ;;  %v3000_v34 = vpack.c.b16 %v2983_v38, %v2982_v36  ;;  %v3938_v36 = vshll.u32 %v6707_v39, 16  ;;  %v2940_v38 = vsel %vm6009_vm11, %v2935_v50, %v2939_v41 }
 0x1a9   : > { %5476 = vmatmul.msk.bf16.gmra.mxu3 %vm1479_vm12, %v5721_v10  ;;  %v6697_v45 = vadd.f32 %v3092_v19, %v2498_v61  ;;  %v5500_v10 = vrot.slane %v3177_v6, 9  ;;  %v2945_v6 = vrot.slane %v2944_v3, 4  ;;  %v5726_v3 = vld [vmem:[#allocation2 + $0x18] sm:$0xff] }
 0x1aa   : > { %v2149_v22 = vpop.f32.mrf.mxu2 }
 0x1ab   : > { %v2210_v5 = vadd.f32 %v2149_v22, %v1793_v15  ;;  %v1797_v55 = vpop.f32.mrf.mxu1  ;;  %v3244_v61 = vsel %vm6336_vm15, %v5500_v10, %v3243_v12  ;;  %v3247_v15 = vsel %vm6336_vm15, %v3245_v13, %v3246_v9  ;;  %v2949_v12 = vrot.slane %v2947_v46, 5 }
 0x1ac   : > { %v2437_v51 = vpop.f32.mrf.mxu3  ;;  %v3356_v22 = vunpack.c.l.b16 %v3244_v61  ;;  %v3357_v42 = vunpack.c.l.b16 %v3247_v15  ;;  %v3873_v15 = vld [vmem:[#allocation2 + $0x24] sm:$0xf] }
 0x1ad   : > { %v2499_v43 = vadd.f32 %v2437_v51, %v2209_v0  ;;  %v3924_v0 = vrot.slane %v3922_v23, 5  ;;  %v2950_v16 = vsel %vm6009_vm11, %v2945_v6, %v2949_v12  ;;  %v3943_v12 = vshrl.u32 %v3873_v15, 16 }
 0x1ae   : > { %v3388_v48 = vpack.c.b16 %v3357_v42, %v3356_v22  ;;  %v5789_v22 = vld [vmem:[#allocation2 + $0x20] sm:$0x1]  ;;  %v2985_v41 = vunpack.c.l.b16 %v2950_v16 }
 0x1af   : > { %5391 = vmatmul.msk.bf16.gmra.mxu2 %vm1479_vm12, %v2053_v30  ;;  %v3930_v30 = vrot.slane %v3928_v31, 5  ;;  %v3925_v51 = vor.u32 %v3924_v0, %v3921_v28  ;;  %v3253_v42 = vrot.slane %v5789_v22, 5  ;;  %v2984_v0 = vunpack.c.l.b16 %v2940_v38  ;;  %v4528_v22 = vld [vmem:[#allocation2 + $0x18] sm:$0xe] }
 0x1b0   : > { %v3095_v19 = vpop.f32.mrf.mxu0 }
 0x1b1   : > { %v6709_v10 = vadd.f32 %v3095_v19, %v2499_v43  ;;  %v3935_v23 = vor.u32 %v3934_v35, %v3930_v30  ;;  %v3926_v43 = vrot.slane %v3925_v51, 4  ;;  %v3946_v51 = vshll.u32 %v3873_v15, 16 }
 0x1b2   : > { %v2152_v25 = vpop.f32.mrf.mxu2  ;;  %v3001_v38 = vpack.c.b16 %v2985_v41, %v2984_v0 }
 0x1b3   : > { %v2211_v27 = vadd.f32 %v2152_v25, %v1796_v26  ;;  %v1800_v47 = vpop.f32.mrf.mxu1  ;;  %5498 = vmatmul.msk.bf16.gmra.mxu0 %vm1479_vm12, %v3000_v34  ;;  %v1798_v26 = vadd.f32 %v1797_v55, %v6507_v53  ;;  %v3936_v46 = vrot.slane %v3935_v23, 4  ;;  %v5790_v34 = vld [vmem:[#allocation2 + $0x1c] sm:$0xf]  ;;  %v3931_v53 = vsel %vm6009_vm11, %v3926_v43, %v3930_v30  ;;  %v3178_v55 = vld [vmem:[#allocation2 + $0x18] sm:$0xe] }
 0x1b4   : > { %v2439_v13 = vpop.f32.mrf.mxu3  ;;  %v3250_v25 = vrot.slane %v5790_v34, 5  ;;  %v5501_v50 = vrot.slane %v3178_v55, 9  ;;  %v1801_v16 = vadd.f32 %v1800_v47, %v6422_v62  ;;  %v3948_v15 = vrot.slane %v3946_v51, 5 }
 0x1b5   : > { %v2500_v9 = vadd.f32 %v2439_v13, %v2210_v5  ;;  %v3940_v5 = vrot.slane %v3938_v36, 5 }
 0x1b6   : > { %5522 = vmatmul.msk.bf16.vlgmr.msra.gmra.mxu1 %vm1479_vm12, %v3388_v48  ;;  %v6720_v48 = vld [vmem:[#allocation2 + $0x28] sm:$0xf]  ;;  %v3252_v6 = vrot.slane %v3250_v25, 4  ;;  %v3251_v30 = vsel %vm6336_vm15, %v5501_v50, %v3250_v25 }
 0x1b7   : > { %v3952_v23 = vshll.u32 %v6720_v48, 16  ;;  %v3956_v36 = vshrl.u32 %v6720_v48, 16 }
 0x1b8   : > { %v3097_v28 = vpop.f32.mrf.mxu0 }
 0x1b9   : > { %5477 = vmatmul.msk.bf16.gmra.mxu3 %vm1479_vm12, %v5722_v29  ;;  %v6724_v35 = vadd.f32 %v3097_v28, %v2500_v9  ;;  %v3941_v29 = vsel %vm6009_vm11, %v3936_v46, %v3940_v5  ;;  %v3254_v9 = vsel %vm6336_vm15, %v3252_v6, %v3253_v42  ;;  %v3945_v5 = vrot.slane %v3943_v12, 4 }
 0x1ba   : > { %v2154_v31 = vpop.f32.mrf.mxu2  ;;  %v3359_v43 = vunpack.c.l.b16 %v3254_v9  ;;  %v3954_v34 = vrot.slane %v3952_v23, 5  ;;  %v3958_v25 = vrot.slane %v3956_v36, 4  ;;  %v3876_v9 = vld [vmem:[#allocation2 + $0x30] sm:$0xf] }
 0x1bb   : > { %v2212_v4 = vadd.f32 %v2154_v31, %v1798_v26  ;;  %v1802_v61 = vpop.f32.mrf.mxu1  ;;  %v3358_v26 = vunpack.c.l.b16 %v3251_v30  ;;  %v4305_v31 = vunpack.c.l.b16 %v3931_v53  ;;  %v4597_v53 = vrot.slane %v6707_v39, 5 }
 0x1bc   : > { %v2442_v19 = vpop.f32.mrf.mxu3  ;;  %v3949_v50 = vor.u32 %v3948_v15, %v3945_v5  ;;  %v3959_v51 = vor.u32 %v3958_v25, %v3954_v34  ;;  %v1803_v23 = vadd.f32 %v1802_v61, %v6432_v54  ;;  %v5792_v54 = vld [vmem:[#allocation2 + $0x28] sm:$0xf]  ;;  %v6751_v5 = vld [vmem:[#allocation2 + $0x34] sm:$0xf]  ;;  %v3179_v15 = vld [vmem:[#allocation2 + $0x24] sm:$0xe] }
 0x1bd   : > { %v2501_v13 = vadd.f32 %v2442_v19, %v2211_v27  ;;  %v4594_v27 = vrot.slane %v6695_v63, 5  ;;  %v3389_v41 = vpack.c.b16 %v3359_v43, %v3358_v26  ;;  %v6737_v19 = vld [vmem:[#allocation2 + $0x2c] sm:$0x1]  ;;  %v5646_v63 = vrot.slane %v4528_v22, 9 }
 0x1be   : > { %v3950_v30 = vrot.slane %v3949_v50, 4  ;;  %v3257_v61 = vrot.slane %v5792_v54, 5  ;;  %v3967_v22 = vshrl.u32 %v3876_v9, 16 }
 0x1bf   : > { %5608 = vmatmul.msk.bf16.vlgmr.msra.gmra.mxu2 %vm1479_vm12, %v5726_v3  ;;  %v4306_v3 = vunpack.c.l.b16 %v3941_v29  ;;  %v4596_v47 = vrot.slane %v4594_v27, 4  ;;  %v3962_v29 = vshll.u32 %v6737_v19, 16 }
 0x1c0   : > { %v3100_v55 = vpop.f32.mrf.mxu0 }
 0x1c1   : > { %v6739_v42 = vadd.f32 %v3100_v55, %v2501_v13  ;;  %v4337_v12 = vpack.c.b16 %v4306_v3, %v4305_v31  ;;  %v4595_v13 = vsel %vm6336_vm15, %v5646_v63, %v4594_v27  ;;  %v4598_v39 = vsel %vm6336_vm15, %v4596_v47, %v4597_v53  ;;  %v5791_v31 = vld [vmem:[#allocation2 + $0x2c] sm:$0x1] }
 0x1c2   : > { %v2157_v46 = vpop.f32.mrf.mxu2  ;;  %v3964_v26 = vrot.slane %v3962_v29, 5  ;;  %v3260_v3 = vrot.slane %v5791_v31, 5  ;;  %v4707_v27 = vunpack.c.l.b16 %v4595_v13  ;;  %v4708_v55 = vunpack.c.l.b16 %v4598_v39 }
 0x1c3   : > { %v2213_v28 = vadd.f32 %v2157_v46, %v1801_v16  ;;  %v1805_v0 = vpop.f32.mrf.mxu1  ;;  %5499 = vmatmul.msk.bf16.gmra.mxu0 %vm1479_vm12, %v3001_v38  ;;  %v5727_v38 = vld [vmem:[#allocation2 + $0x24] sm:$0xff]  ;;  %v3955_v63 = vsel %vm6009_vm11, %v3950_v30, %v3954_v34  ;;  %v5502_v47 = vrot.slane %v3179_v15, 9  ;;  %v3259_v53 = vrot.slane %v3257_v61, 4 }
 0x1c4   : > { %v2444_v62 = vpop.f32.mrf.mxu3  ;;  %v3980_v29 = vshrl.u32 %v6751_v5, 16 }
 0x1c5   : > { %v2502_v6 = vadd.f32 %v2444_v62, %v2212_v4  ;;  %v3960_v4 = vrot.slane %v3959_v51, 4  ;;  %v3976_v51 = vshll.u32 %v6751_v5, 16  ;;  %v3258_v13 = vsel %vm6336_vm15, %v5502_v47, %v3257_v61  ;;  %v6768_v61 = vld [vmem:[#allocation2 + $0x38] sm:$0x1] }
 0x1c6   : > { %5523 = vmatmul.msk.bf16.gmra.mxu1 %vm1479_vm12, %v3389_v41  ;;  %v3970_v41 = vshll.u32 %v3876_v9, 16  ;;  %v3261_v34 = vsel %vm6336_vm15, %v3259_v53, %v3260_v3  ;;  %v3969_v9 = vrot.slane %v3967_v22, 4  ;;  %v4604_v3 = vrot.slane %v6737_v19, 5 }
 0x1c7   : > { %v3361_v30 = vunpack.c.l.b16 %v3261_v34  ;;  %v5728_v34 = vld [vmem:[#allocation2 + $0x30] sm:$0xff] }
 0x1c8   : > { %v3102_v46 = vpop.f32.mrf.mxu0  ;;  %v3972_v39 = vrot.slane %v3970_v41, 5 }
 0x1c9   : > { %5630 = vmatmul.msk.bf16.vlgmr.msra.gmra.mxu3 %vm1479_vm12, %v4337_v12  ;;  %v6753_v25 = vadd.f32 %v3102_v46, %v2502_v6  ;;  %v3965_v12 = vsel %vm6009_vm11, %v3960_v4, %v3964_v26  ;;  %v1806_v6 = vadd.f32 %v1805_v0, %v6450_v52  ;;  %v4307_v4 = vunpack.c.l.b16 %v3955_v63 }
 0x1ca   : > { %v2159_v36 = vpop.f32.mrf.mxu2  ;;  %v4308_v26 = vunpack.c.l.b16 %v3965_v12  ;;  %v3978_v0 = vrot.slane %v3976_v51, 5  ;;  %v3973_v53 = vor.u32 %v3972_v39, %v3969_v9  ;;  %v3986_v63 = vshll.u32 %v6768_v61, 16  ;;  %v5793_v9 = vld [vmem:[#allocation2 + $0x38] sm:$0x1] }
 0x1cb   : > { %v2214_v16 = vadd.f32 %v2159_v36, %v1803_v23  ;;  %v1807_v43 = vpop.f32.mrf.mxu1  ;;  %v4601_v23 = vrot.slane %v6720_v48, 5  ;;  %v3360_v36 = vunpack.c.l.b16 %v3258_v13  ;;  %v3982_v48 = vrot.slane %v3980_v29, 4 }
 0x1cc   : > { %v2447_v62 = vpop.f32.mrf.mxu3  ;;  %v4338_v41 = vpack.c.b16 %v4308_v26, %v4307_v4  ;;  %v1808_v19 = vadd.f32 %v1807_v43, %v6462_v60  ;;  %v3267_v39 = vrot.slane %v5793_v9, 5  ;;  %v5794_v26 = vld [vmem:[#allocation2 + $0x34] sm:$0xf]  ;;  %v3180_v43 = vld [vmem:[#allocation2 + $0x30] sm:$0xe] }
 0x1cd   : > { %v2503_v50 = vadd.f32 %v2447_v62, %v2213_v28  ;;  %v4529_v28 = vld [vmem:[#allocation2 + $0x24] sm:$0xe]  ;;  %v3390_v52 = vpack.c.b16 %v3361_v30, %v3360_v36  ;;  %v4603_v47 = vrot.slane %v4601_v23, 4  ;;  %v3879_v30 = vld [vmem:[#allocation2 + $0x3c] sm:$0xf] }
 0x1ce   : > { %v5647_v62 = vrot.slane %v4529_v28, 9  ;;  %v4530_v9 = vld [vmem:[#allocation2 + $0x30] sm:$0xe] }
 0x1cf   : > { %5609 = vmatmul.msk.bf16.gmra.mxu2 %vm1479_vm12, %v5727_v38  ;;  %v4739_v38 = vpack.c.b16 %v4708_v55, %v4707_v27  ;;  %v3983_v55 = vor.u32 %v3982_v48, %v3978_v0  ;;  %v4605_v51 = vsel %vm6336_vm15, %v4603_v47, %v4604_v3  ;;  %v3991_v3 = vshrl.u32 %v3879_v30, 16 }
 0x1d0   : > { %v3105_v15 = vpop.f32.mrf.mxu0  ;;  %v4602_v12 = vsel %vm6336_vm15, %v5647_v62, %v4601_v23  ;;  %v4710_v23 = vunpack.c.l.b16 %v4605_v51  ;;  %v5503_v62 = vrot.slane %v3180_v43, 9 }
 0x1d1   : > { %v6771_v13 = vadd.f32 %v3105_v15, %v2503_v50  ;;  %v3974_v50 = vrot.slane %v3973_v53, 4  ;;  %v3984_v28 = vrot.slane %v3983_v55, 4  ;;  %v4709_v4 = vunpack.c.l.b16 %v4602_v12 }
 0x1d2   : > { %v2162_v31 = vpop.f32.mrf.mxu2  ;;  %v3994_v53 = vshll.u32 %v3879_v30, 16 }
 0x1d3   : > { %v2215_v46 = vadd.f32 %v2162_v31, %v1806_v6  ;;  %v1810_v54 = vpop.f32.mrf.mxu1  ;;  %5668 = vmatmul.msk.bf16.vlgmr.msra.gmra.mxu0 %vm1479_vm12, %v4739_v38  ;;  %v3264_v31 = vrot.slane %v5794_v26, 5  ;;  %v3979_v60 = vsel %vm6009_vm11, %v3974_v50, %v3978_v0  ;;  %v4740_v12 = vpack.c.b16 %v4710_v23, %v4709_v4 }
 0x1d4   : > { %v2449_v22 = vpop.f32.mrf.mxu3  ;;  %v1811_v51 = vadd.f32 %v1810_v54, %v6482_v11  ;;  %v3996_v30 = vrot.slane %v3994_v53, 5 }
 0x1d5   : > { %v2504_v27 = vadd.f32 %v2449_v22, %v2214_v16  ;;  %v3988_v16 = vrot.slane %v3986_v63, 5  ;;  %v3266_v47 = vrot.slane %v3264_v31, 4  ;;  %v3265_v0 = vsel %vm6336_vm15, %v5503_v62, %v3264_v31 }
 0x1d6   : > { %5524 = vmatmul.msk.bf16.gmra.mxu1 %vm1479_vm12, %v3390_v52  ;;  %v6782_v52 = vld [vmem:[#allocation2 + $0x40] sm:$0xf] }
 0x1d7   : > { %v4000_v55 = vshll.u32 %v6782_v52, 16  ;;  %v4004_v63 = vshrl.u32 %v6782_v52, 16 }
 0x1d8   : > { %v3107_v38 = vpop.f32.mrf.mxu0 }
 0x1d9   : > { %5631 = vmatmul.msk.bf16.gmra.mxu3 %vm1479_vm12, %v4338_v41  ;;  %v6786_v48 = vadd.f32 %v3107_v38, %v2504_v27  ;;  %v3989_v41 = vsel %vm6009_vm11, %v3984_v28, %v3988_v16  ;;  %v3268_v27 = vsel %vm6336_vm15, %v3266_v47, %v3267_v39  ;;  %v3993_v16 = vrot.slane %v3991_v3, 4 }
 0x1da   : > { %v2164_v29 = vpop.f32.mrf.mxu2  ;;  %v3363_v50 = vunpack.c.l.b16 %v3268_v27  ;;  %v4002_v26 = vrot.slane %v4000_v55, 5  ;;  %v4006_v31 = vrot.slane %v4004_v63, 4  ;;  %v3882_v27 = vld [vmem:[#allocation2 + $0x48] sm:$0xf] }
 0x1db   : > { %v2216_v6 = vadd.f32 %v2164_v29, %v1808_v19  ;;  %v1812_v36 = vpop.f32.mrf.mxu1  ;;  %v3362_v19 = vunpack.c.l.b16 %v3265_v0  ;;  %v4309_v29 = vunpack.c.l.b16 %v3979_v60  ;;  %v4611_v60 = vrot.slane %v6768_v61, 5 }
 0x1dc   : > { %v2452_v15 = vpop.f32.mrf.mxu3  ;;  %v3997_v62 = vor.u32 %v3996_v30, %v3993_v16  ;;  %v4007_v53 = vor.u32 %v4006_v31, %v4002_v26  ;;  %v1813_v55 = vadd.f32 %v1812_v36, %v6498_v37  ;;  %v5796_v37 = vld [vmem:[#allocation2 + $0x40] sm:$0xf]  ;;  %v6813_v16 = vld [vmem:[#allocation2 + $0x4c] sm:$0xf]  ;;  %v3181_v30 = vld [vmem:[#allocation2 + $0x3c] sm:$0xe] }
 0x1dd   : > { %v2505_v22 = vadd.f32 %v2452_v15, %v2215_v46  ;;  %v4608_v46 = vrot.slane %v6751_v5, 5  ;;  %v3391_v23 = vpack.c.b16 %v3363_v50, %v3362_v19  ;;  %v6799_v15 = vld [vmem:[#allocation2 + $0x44] sm:$0x1]  ;;  %v5648_v5 = vrot.slane %v4530_v9, 9 }
 0x1de   : > { %v3998_v0 = vrot.slane %v3997_v62, 4  ;;  %v3271_v36 = vrot.slane %v5796_v37, 5  ;;  %v4015_v9 = vshrl.u32 %v3882_v27, 16 }
 0x1df   : > { %5610 = vmatmul.msk.bf16.gmra.mxu2 %vm1479_vm12, %v5728_v34  ;;  %v4310_v34 = vunpack.c.l.b16 %v3989_v41  ;;  %v4610_v54 = vrot.slane %v4608_v46, 4  ;;  %v4010_v41 = vshll.u32 %v6799_v15, 16 }
 0x1e0   : > { %v3110_v43 = vpop.f32.mrf.mxu0 }
 0x1e1   : > { %v6801_v39 = vadd.f32 %v3110_v43, %v2505_v22  ;;  %v4339_v3 = vpack.c.b16 %v4310_v34, %v4309_v29  ;;  %v4609_v22 = vsel %vm6336_vm15, %v5648_v5, %v4608_v46  ;;  %v4612_v61 = vsel %vm6336_vm15, %v4610_v54, %v4611_v60  ;;  %v5795_v29 = vld [vmem:[#allocation2 + $0x44] sm:$0x1] }
 0x1e2   : > { %v2167_v28 = vpop.f32.mrf.mxu2  ;;  %v4012_v19 = vrot.slane %v4010_v41, 5  ;;  %v3274_v34 = vrot.slane %v5795_v29, 5  ;;  %v4711_v46 = vunpack.c.l.b16 %v4609_v22  ;;  %v4712_v43 = vunpack.c.l.b16 %v4612_v61 }
 0x1e3   : > { %v2217_v38 = vadd.f32 %v2167_v28, %v1811_v51  ;;  %v1815_v4 = vpop.f32.mrf.mxu1  ;;  %5669 = vmatmul.msk.bf16.gmra.mxu0 %vm1479_vm12, %v4740_v12  ;;  %v5729_v12 = vld [vmem:[#allocation2 + $0x3c] sm:$0xff]  ;;  %v4003_v5 = vsel %vm6009_vm11, %v3998_v0, %v4002_v26  ;;  %v5504_v54 = vrot.slane %v3181_v30, 9  ;;  %v3273_v60 = vrot.slane %v3271_v36, 4 }
 0x1e4   : > { %v2454_v11 = vpop.f32.mrf.mxu3  ;;  %v4028_v41 = vshrl.u32 %v6813_v16, 16 }
 0x1e5   : > { %v2506_v47 = vadd.f32 %v2454_v11, %v2216_v6  ;;  %v4008_v6 = vrot.slane %v4007_v53, 4  ;;  %v4024_v53 = vshll.u32 %v6813_v16, 16  ;;  %v3272_v22 = vsel %vm6336_vm15, %v5504_v54, %v3271_v36  ;;  %v6830_v36 = vld [vmem:[#allocation2 + $0x50] sm:$0x1] }
 0x1e6   : > { %5525 = vmatmul.msk.bf16.gmra.mxu1 %vm1479_vm12, %v3391_v23  ;;  %v4018_v23 = vshll.u32 %v3882_v27, 16  ;;  %v3275_v26 = vsel %vm6336_vm15, %v3273_v60, %v3274_v34  ;;  %v4017_v27 = vrot.slane %v4015_v9, 4  ;;  %v4618_v34 = vrot.slane %v6799_v15, 5 }
 0x1e7   : > { %v3365_v0 = vunpack.c.l.b16 %v3275_v26  ;;  %v5730_v26 = vld [vmem:[#allocation2 + $0x48] sm:$0xff] }
 0x1e8   : > { %v3112_v28 = vpop.f32.mrf.mxu0  ;;  %v4020_v61 = vrot.slane %v4018_v23, 5 }
 0x1e9   : > { %5632 = vmatmul.msk.bf16.gmra.mxu3 %vm1479_vm12, %v4339_v3  ;;  %v6815_v31 = vadd.f32 %v3112_v28, %v2506_v47  ;;  %v4013_v3 = vsel %vm6009_vm11, %v4008_v6, %v4012_v19  ;;  %v1816_v47 = vadd.f32 %v1815_v4, %v6512_v20  ;;  %v4311_v6 = vunpack.c.l.b16 %v4003_v5 }
 0x1ea   : > { %v2169_v63 = vpop.f32.mrf.mxu2  ;;  %v4312_v19 = vunpack.c.l.b16 %v4013_v3  ;;  %v4026_v4 = vrot.slane %v4024_v53, 5  ;;  %v4021_v60 = vor.u32 %v4020_v61, %v4017_v27  ;;  %v4034_v5 = vshll.u32 %v6830_v36, 16  ;;  %v5797_v27 = vld [vmem:[#allocation2 + $0x50] sm:$0x1] }
 0x1eb   : > { %v2218_v51 = vadd.f32 %v2169_v63, %v1813_v55  ;;  %v1817_v50 = vpop.f32.mrf.mxu1  ;;  %v4615_v55 = vrot.slane %v6782_v52, 5  ;;  %v3364_v63 = vunpack.c.l.b16 %v3272_v22  ;;  %v4030_v52 = vrot.slane %v4028_v41, 4 }
 0x1ec   : > { %v2457_v11 = vpop.f32.mrf.mxu3  ;;  %v4340_v23 = vpack.c.b16 %v4312_v19, %v4311_v6  ;;  %v1818_v15 = vadd.f32 %v1817_v50, %v6525_v44  ;;  %v3281_v61 = vrot.slane %v5797_v27, 5  ;;  %v5798_v19 = vld [vmem:[#allocation2 + $0x4c] sm:$0xf]  ;;  %v3182_v50 = vld [vmem:[#allocation2 + $0x48] sm:$0xe] }
 0x1ed   : > { %v2507_v62 = vadd.f32 %v2457_v11, %v2217_v38  ;;  %v4531_v38 = vld [vmem:[#allocation2 + $0x3c] sm:$0xe]  ;;  %v3392_v20 = vpack.c.b16 %v3365_v0, %v3364_v63  ;;  %v4617_v54 = vrot.slane %v4615_v55, 4  ;;  %v3885_v0 = vld [vmem:[#allocation2 + $0x54] sm:$0xf] }
 0x1ee   : > { %v5649_v11 = vrot.slane %v4531_v38, 9  ;;  %v4532_v27 = vld [vmem:[#allocation2 + $0x48] sm:$0xe] }
 0x1ef   : > { %5611 = vmatmul.msk.bf16.gmra.mxu2 %vm1479_vm12, %v5729_v12  ;;  %v4741_v12 = vpack.c.b16 %v4712_v43, %v4711_v46  ;;  %v4031_v43 = vor.u32 %v4030_v52, %v4026_v4  ;;  %v4619_v53 = vsel %vm6336_vm15, %v4617_v54, %v4618_v34  ;;  %v4039_v34 = vshrl.u32 %v3885_v0, 16 }
 0x1f0   : > { %v3115_v30 = vpop.f32.mrf.mxu0  ;;  %v4616_v3 = vsel %vm6336_vm15, %v5649_v11, %v4615_v55  ;;  %v4714_v55 = vunpack.c.l.b16 %v4619_v53  ;;  %v5505_v11 = vrot.slane %v3182_v50, 9 }
 0x1f1   : > { %v6833_v22 = vadd.f32 %v3115_v30, %v2507_v62  ;;  %v4022_v62 = vrot.slane %v4021_v60, 4  ;;  %v4032_v38 = vrot.slane %v4031_v43, 4  ;;  %v4713_v6 = vunpack.c.l.b16 %v4616_v3 }
 0x1f2   : > { %v2172_v29 = vpop.f32.mrf.mxu2  ;;  %v4042_v60 = vshll.u32 %v3885_v0, 16 }
 0x1f3   : > { %v2219_v28 = vadd.f32 %v2172_v29, %v1816_v47  ;;  %v1820_v37 = vpop.f32.mrf.mxu1  ;;  %5670 = vmatmul.msk.bf16.gmra.mxu0 %vm1479_vm12, %v4741_v12  ;;  %v3278_v29 = vrot.slane %v5798_v19, 5  ;;  %v4027_v44 = vsel %vm6009_vm11, %v4022_v62, %v4026_v4  ;;  %v4742_v3 = vpack.c.b16 %v4714_v55, %v4713_v6 }
 0x1f4   : > { %v2459_v9 = vpop.f32.mrf.mxu3  ;;  %v1821_v53 = vadd.f32 %v1820_v37, %v6436_v17  ;;  %v4044_v0 = vrot.slane %v4042_v60, 5 }
 0x1f5   : > { %v2508_v46 = vadd.f32 %v2459_v9, %v2218_v51  ;;  %v4036_v51 = vrot.slane %v4034_v5, 5  ;;  %v3280_v54 = vrot.slane %v3278_v29, 4  ;;  %v3279_v4 = vsel %vm6336_vm15, %v5505_v11, %v3278_v29 }
 0x1f6   : > { %5526 = vmatmul.msk.bf16.gmra.mxu1 %vm1479_vm12, %v3392_v20  ;;  %v6844_v20 = vld [vmem:[#allocation2 + $0x58] sm:$0xf] }
 0x1f7   : > { %v4048_v43 = vshll.u32 %v6844_v20, 16  ;;  %v4052_v5 = vshrl.u32 %v6844_v20, 16 }
 0x1f8   : > { %v3117_v12 = vpop.f32.mrf.mxu0 }
 0x1f9   : > { %5633 = vmatmul.msk.bf16.gmra.mxu3 %vm1479_vm12, %v4340_v23  ;;  %v6848_v52 = vadd.f32 %v3117_v12, %v2508_v46  ;;  %v4037_v23 = vsel %vm6009_vm11, %v4032_v38, %v4036_v51  ;;  %v3282_v46 = vsel %vm6336_vm15, %v3280_v54, %v3281_v61  ;;  %v4041_v51 = vrot.slane %v4039_v34, 4 }
 0x1fa   : > { %v2174_v41 = vpop.f32.mrf.mxu2  ;;  %v3367_v62 = vunpack.c.l.b16 %v3282_v46  ;;  %v4050_v19 = vrot.slane %v4048_v43, 5  ;;  %v4054_v29 = vrot.slane %v4052_v5, 4  ;;  %v3888_v46 = vld [vmem:[#allocation2 + $0x60] sm:$0xf] }
 0x1fb   : > { %v2220_v47 = vadd.f32 %v2174_v41, %v1818_v15  ;;  %v1822_v63 = vpop.f32.mrf.mxu1  ;;  %v3366_v15 = vunpack.c.l.b16 %v3279_v4  ;;  %v4313_v41 = vunpack.c.l.b16 %v4027_v44  ;;  %v4625_v44 = vrot.slane %v6830_v36, 5 }
 0x1fc   : > { %v2462_v30 = vpop.f32.mrf.mxu3  ;;  %v4045_v11 = vor.u32 %v4044_v0, %v4041_v51  ;;  %v4055_v60 = vor.u32 %v4054_v29, %v4050_v19  ;;  %v1823_v43 = vadd.f32 %v1822_v63, %v6455_v57  ;;  %v5800_v57 = vld [vmem:[#allocation2 + $0x58] sm:$0xf]  ;;  %v6875_v51 = vld [vmem:[#allocation2 + $0x64] sm:$0xf]  ;;  %v3183_v0 = vld [vmem:[#allocation2 + $0x54] sm:$0xe] }
 0x1fd   : > { %v2509_v9 = vadd.f32 %v2462_v30, %v2219_v28  ;;  %v4622_v28 = vrot.slane %v6813_v16, 5  ;;  %v3393_v55 = vpack.c.b16 %v3367_v62, %v3366_v15  ;;  %v6861_v30 = vld [vmem:[#allocation2 + $0x5c] sm:$0x1]  ;;  %v5650_v16 = vrot.slane %v4532_v27, 9 }
 0x1fe   : > { %v4046_v4 = vrot.slane %v4045_v11, 4  ;;  %v3285_v63 = vrot.slane %v5800_v57, 5  ;;  %v4063_v27 = vshrl.u32 %v3888_v46, 16 }
 0x1ff   : > { %5612 = vmatmul.msk.bf16.gmra.mxu2 %vm1479_vm12, %v5730_v26  ;;  %v4314_v26 = vunpack.c.l.b16 %v4037_v23  ;;  %v4624_v37 = vrot.slane %v4622_v28, 4  ;;  %v4058_v23 = vshll.u32 %v6861_v30, 16 }
 0x200   : > { %v3120_v50 = vpop.f32.mrf.mxu0 }
 0x201   : > { %v6863_v61 = vadd.f32 %v3120_v50, %v2509_v9  ;;  %v4341_v34 = vpack.c.b16 %v4314_v26, %v4313_v41  ;;  %v4623_v9 = vsel %vm6336_vm15, %v5650_v16, %v4622_v28  ;;  %v4626_v36 = vsel %vm6336_vm15, %v4624_v37, %v4625_v44  ;;  %v5799_v41 = vld [vmem:[#allocation2 + $0x5c] sm:$0x1] }
 0x202   : > { %v2177_v38 = vpop.f32.mrf.mxu2  ;;  %v4060_v15 = vrot.slane %v4058_v23, 5  ;;  %v3288_v26 = vrot.slane %v5799_v41, 5  ;;  %v4715_v28 = vunpack.c.l.b16 %v4623_v9  ;;  %v4716_v50 = vunpack.c.l.b16 %v4626_v36 }
 0x203   : > { %v2221_v12 = vadd.f32 %v2177_v38, %v1821_v53  ;;  %v1825_v6 = vpop.f32.mrf.mxu1  ;;  %5671 = vmatmul.msk.bf16.gmra.mxu0 %vm1479_vm12, %v4742_v3  ;;  %v5731_v3 = vld [vmem:[#allocation2 + $0x54] sm:$0xff]  ;;  %v4051_v16 = vsel %vm6009_vm11, %v4046_v4, %v4050_v19  ;;  %v5506_v37 = vrot.slane %v3183_v0, 9  ;;  %v3287_v44 = vrot.slane %v3285_v63, 4 }
 0x204   : > { %v2464_v17 = vpop.f32.mrf.mxu3  ;;  %v4076_v23 = vshrl.u32 %v6875_v51, 16 }
 0x205   : > { %v2510_v54 = vadd.f32 %v2464_v17, %v2220_v47  ;;  %v4056_v47 = vrot.slane %v4055_v60, 4  ;;  %v4072_v60 = vshll.u32 %v6875_v51, 16  ;;  %v3286_v9 = vsel %vm6336_vm15, %v5506_v37, %v3285_v63  ;;  %v6892_v63 = vld [vmem:[#allocation2 + $0x68] sm:$0x1] }
 0x206   : > { %5527 = vmatmul.msk.bf16.gmra.mxu1 %vm1479_vm12, %v3393_v55  ;;  %v4066_v55 = vshll.u32 %v3888_v46, 16  ;;  %v3289_v19 = vsel %vm6336_vm15, %v3287_v44, %v3288_v26  ;;  %v4065_v46 = vrot.slane %v4063_v27, 4  ;;  %v4632_v26 = vrot.slane %v6861_v30, 5 }
 0x207   : > { %v3369_v4 = vunpack.c.l.b16 %v3289_v19  ;;  %v5732_v19 = vld [vmem:[#allocation2 + $0x60] sm:$0xff] }
 0x208   : > { %v3122_v38 = vpop.f32.mrf.mxu0  ;;  %v4068_v36 = vrot.slane %v4066_v55, 5 }
 0x209   : > { %5634 = vmatmul.msk.bf16.gmra.mxu3 %vm1479_vm12, %v4341_v34  ;;  %v6877_v29 = vadd.f32 %v3122_v38, %v2510_v54  ;;  %v4061_v34 = vsel %vm6009_vm11, %v4056_v47, %v4060_v15  ;;  %v1826_v54 = vadd.f32 %v1825_v6, %v6468_v33  ;;  %v4315_v47 = vunpack.c.l.b16 %v4051_v16 }
 0x20a   : > { %v2179_v5 = vpop.f32.mrf.mxu2  ;;  %v4316_v15 = vunpack.c.l.b16 %v4061_v34  ;;  %v4074_v6 = vrot.slane %v4072_v60, 5  ;;  %v4069_v44 = vor.u32 %v4068_v36, %v4065_v46  ;;  %v4082_v16 = vshll.u32 %v6892_v63, 16  ;;  %v5801_v46 = vld [vmem:[#allocation2 + $0x68] sm:$0x1] }
 0x20b   : > { %v2222_v53 = vadd.f32 %v2179_v5, %v1823_v43  ;;  %v1827_v62 = vpop.f32.mrf.mxu1  ;;  %v4629_v43 = vrot.slane %v6844_v20, 5  ;;  %v3368_v5 = vunpack.c.l.b16 %v3286_v9  ;;  %v4078_v20 = vrot.slane %v4076_v23, 4 }
 0x20c   : > { %v2467_v17 = vpop.f32.mrf.mxu3  ;;  %v4342_v55 = vpack.c.b16 %v4316_v15, %v4315_v47  ;;  %v1828_v30 = vadd.f32 %v1827_v62, %v6485_v14  ;;  %v3295_v36 = vrot.slane %v5801_v46, 5  ;;  %v5802_v15 = vld [vmem:[#allocation2 + $0x64] sm:$0xf]  ;;  %v3184_v62 = vld [vmem:[#allocation2 + $0x60] sm:$0xe] }
 0x20d   : > { %v2511_v11 = vadd.f32 %v2467_v17, %v2221_v12  ;;  %v4533_v12 = vld [vmem:[#allocation2 + $0x54] sm:$0xe]  ;;  %v3394_v33 = vpack.c.b16 %v3369_v4, %v3368_v5  ;;  %v4631_v37 = vrot.slane %v4629_v43, 4  ;;  %v3891_v4 = vld [vmem:[#allocation2 + $0x6c] sm:$0xf] }
 0x20e   : > { %v5651_v17 = vrot.slane %v4533_v12, 9  ;;  %v4534_v46 = vld [vmem:[#allocation2 + $0x60] sm:$0xe] }
 0x20f   : > { %5613 = vmatmul.msk.bf16.gmra.mxu2 %vm1479_vm12, %v5731_v3  ;;  %v4743_v3 = vpack.c.b16 %v4716_v50, %v4715_v28  ;;  %v4079_v50 = vor.u32 %v4078_v20, %v4074_v6  ;;  %v4633_v60 = vsel %vm6336_vm15, %v4631_v37, %v4632_v26  ;;  %v4087_v26 = vshrl.u32 %v3891_v4, 16 }
 0x210   : > { %v3125_v0 = vpop.f32.mrf.mxu0  ;;  %v4630_v34 = vsel %vm6336_vm15, %v5651_v17, %v4629_v43  ;;  %v4718_v43 = vunpack.c.l.b16 %v4633_v60  ;;  %v5507_v17 = vrot.slane %v3184_v62, 9 }
 0x211   : > { %v6895_v9 = vadd.f32 %v3125_v0, %v2511_v11  ;;  %v4070_v11 = vrot.slane %v4069_v44, 4  ;;  %v4080_v12 = vrot.slane %v4079_v50, 4  ;;  %v4717_v47 = vunpack.c.l.b16 %v4630_v34 }
 0x212   : > { %v2182_v41 = vpop.f32.mrf.mxu2  ;;  %v4090_v44 = vshll.u32 %v3891_v4, 16 }
 0x213   : > { %v2223_v38 = vadd.f32 %v2182_v41, %v1826_v54  ;;  %v1830_v57 = vpop.f32.mrf.mxu1  ;;  %5672 = vmatmul.msk.bf16.gmra.mxu0 %vm1479_vm12, %v4743_v3  ;;  %v3292_v41 = vrot.slane %v5802_v15, 5  ;;  %v4075_v14 = vsel %vm6009_vm11, %v4070_v11, %v4074_v6  ;;  %v4744_v34 = vpack.c.b16 %v4718_v43, %v4717_v47 }
 0x214   : > { %v2469_v27 = vpop.f32.mrf.mxu3  ;;  %v1831_v60 = vadd.f32 %v1830_v57, %v6504_v40  ;;  %v4092_v4 = vrot.slane %v4090_v44, 5 }
 0x215   : > { %v2512_v28 = vadd.f32 %v2469_v27, %v2222_v53  ;;  %v4084_v53 = vrot.slane %v4082_v16, 5  ;;  %v3294_v37 = vrot.slane %v3292_v41, 4  ;;  %v3293_v6 = vsel %vm6336_vm15, %v5507_v17, %v3292_v41 }
 0x216   : > { %5528 = vmatmul.msk.bf16.gmra.mxu1 %vm1479_vm12, %v3394_v33  ;;  %v6906_v33 = vld [vmem:[#allocation2 + $0x70] sm:$0xf] }
 0x217   : > { %v4096_v50 = vshll.u32 %v6906_v33, 16  ;;  %v4100_v16 = vshrl.u32 %v6906_v33, 16 }
 0x218   : > { %v3127_v3 = vpop.f32.mrf.mxu0 }
 0x219   : > { %5635 = vmatmul.msk.bf16.gmra.mxu3 %vm1479_vm12, %v4342_v55  ;;  %v6910_v20 = vadd.f32 %v3127_v3, %v2512_v28  ;;  %v4085_v55 = vsel %vm6009_vm11, %v4080_v12, %v4084_v53  ;;  %v3296_v28 = vsel %vm6336_vm15, %v3294_v37, %v3295_v36  ;;  %v4089_v53 = vrot.slane %v4087_v26, 4 }
 0x21a   : > { %v2184_v23 = vpop.f32.mrf.mxu2  ;;  %v3371_v11 = vunpack.c.l.b16 %v3296_v28  ;;  %v4098_v15 = vrot.slane %v4096_v50, 5  ;;  %v4102_v41 = vrot.slane %v4100_v16, 4  ;;  %v7442_v50 = vld [vmem:[#allocation3_spill] sm:$0xff] }
 0x21b   : > { %v2224_v54 = vadd.f32 %v2184_v23, %v1828_v30  ;;  %v1832_v5 = vpop.f32.mrf.mxu1  ;;  %v3370_v30 = vunpack.c.l.b16 %v3293_v6  ;;  %v4317_v23 = vunpack.c.l.b16 %v4075_v14  ;;  %v4639_v14 = vrot.slane %v6892_v63, 5 }
 0x21c   : > { %v2472_v0 = vpop.f32.mrf.mxu3  ;;  %v4093_v17 = vor.u32 %v4092_v4, %v4089_v53  ;;  %v4103_v44 = vor.u32 %v4102_v41, %v4098_v15  ;;  %v1833_v16 = vadd.f32 %v1832_v5, %v7442_v50  ;;  %v3894_v53 = vld [vmem:[#allocation2 + $0x78] sm:$0xf] }
 0x21d   : > { %v2513_v27 = vadd.f32 %v2472_v0, %v2223_v38  ;;  %v4636_v38 = vrot.slane %v6875_v51, 5  ;;  %v3395_v43 = vpack.c.b16 %v3371_v11, %v3370_v30  ;;  %v6923_v0 = vld [vmem:[#allocation2 + $0x74] sm:$0x1]  ;;  %v5652_v51 = vrot.slane %v4534_v46, 9  ;;  %v5733_v30 = vld [vmem:[#allocation2 + $0x6c] sm:$0xff] }
 0x21e   : > { %v4094_v63 = vrot.slane %v4093_v17, 4  ;;  %v3185_v46 = vld [vmem:[#allocation2 + $0x6c] sm:$0xe] }
 0x21f   : > { %5614 = vmatmul.msk.bf16.gmra.mxu2 %vm1479_vm12, %v5732_v19  ;;  %v4318_v19 = vunpack.c.l.b16 %v4085_v55  ;;  %v4638_v57 = vrot.slane %v4636_v38, 4  ;;  %v4106_v55 = vshll.u32 %v6923_v0, 16 }
 0x220   : > { %v3130_v62 = vpop.f32.mrf.mxu0 }
 0x221   : > { %v6925_v36 = vadd.f32 %v3130_v62, %v2513_v27  ;;  %v4343_v26 = vpack.c.b16 %v4318_v19, %v4317_v23  ;;  %v4637_v27 = vsel %vm6336_vm15, %v5652_v51, %v4636_v38  ;;  %v4640_v6 = vsel %vm6336_vm15, %v4638_v57, %v4639_v14  ;;  %v5803_v19 = vld [vmem:[#allocation2 + $0x70] sm:$0xf]  ;;  %v6937_v38 = vld [vmem:[#allocation2 + $0x7c] sm:$0xf]  ;;  %v5804_v57 = vld [vmem:[#allocation2 + $0x74] sm:$0x1] }
 0x222   : > { %v2187_v12 = vpop.f32.mrf.mxu2  ;;  %v4719_v5 = vunpack.c.l.b16 %v4637_v27  ;;  %v4720_v4 = vunpack.c.l.b16 %v4640_v6  ;;  %v4099_v62 = vsel %vm6009_vm11, %v4094_v63, %v4098_v15  ;;  %v3302_v14 = vrot.slane %v5804_v57, 5  ;;  %v7444_v27 = vld [vmem:[#allocation4_spill] sm:$0xff] }
 0x223   : > { %v2225_v3 = vadd.f32 %v2187_v12, %v1831_v60  ;;  %v1835_v47 = vpop.f32.mrf.mxu1  ;;  %5673 = vmatmul.msk.bf16.gmra.mxu0 %vm1479_vm12, %v4744_v34  ;;  %v4104_v34 = vrot.slane %v4103_v44, 4  ;;  %v3299_v12 = vrot.slane %v5803_v19, 5  ;;  %v4111_v44 = vshrl.u32 %v3894_v53, 16  ;;  %v4535_v19 = vld [vmem:[#allocation2 + $0x6c] sm:$0xe] }
 0x224   : > { %v2474_v40 = vpop.f32.mrf.mxu3  ;;  %v4120_v15 = vshll.u32 %v6937_v38, 16  ;;  %v1836_v6 = vadd.f32 %v1835_v47, %v7444_v27  ;;  %v4745_v63 = vpack.c.b16 %v4720_v4, %v4719_v5  ;;  %v5653_v4 = vrot.slane %v4535_v19, 9  ;;  %v5805_v19 = vld [vmem:[#allocation2 + $0x7c] sm:$0xf] }
 0x225   : > { %v2514_v37 = vadd.f32 %v2474_v40, %v2224_v54  ;;  %v4108_v54 = vrot.slane %v4106_v55, 5  ;;  %v5508_v40 = vrot.slane %v3185_v46, 9  ;;  %v3301_v51 = vrot.slane %v3299_v12, 4 }
 0x226   : > { %5529 = vmatmul.msk.bf16.gmra.mxu1 %vm1479_vm12, %v3395_v43  ;;  %v4114_v55 = vshll.u32 %v3894_v53, 16  ;;  %v4122_v57 = vrot.slane %v4120_v15, 5  ;;  %v7446_v15 = vld [vmem:[#allocation5_spill] sm:$0xff] }
 0x227   : > { %v3303_v50 = vsel %vm6336_vm15, %v3301_v51, %v3302_v14 }
 0x228   : > { %v3132_v23 = vpop.f32.mrf.mxu0 }
 0x229   : > { %5636 = vmatmul.msk.bf16.gmra.mxu3 %vm1479_vm12, %v4343_v26  ;;  %v6939_v43 = vadd.f32 %v3132_v23, %v2514_v37  ;;  %v4109_v26 = vsel %vm6009_vm11, %v4104_v34, %v4108_v54  ;;  %v3300_v37 = vsel %vm6336_vm15, %v5508_v40, %v3299_v12  ;;  %v4643_v34 = vrot.slane %v6906_v33, 5 }
 0x22a   : > { %v2189_v28 = vpop.f32.mrf.mxu2  ;;  %v4320_v23 = vunpack.c.l.b16 %v4109_v26  ;;  %v4116_v40 = vrot.slane %v4114_v55, 5  ;;  %v4646_v33 = vrot.slane %v6923_v0, 5  ;;  %v3897_v0 = vld [vmem:[#allocation2 + $0x84] sm:$0xf] }
 0x22b   : > { %v2226_v60 = vadd.f32 %v2189_v28, %v1833_v16  ;;  %v1837_v11 = vpop.f32.mrf.mxu1  ;;  %7443 = vst [vmem:[#allocation3_spill] sm:$0xff] %v6939_v43  ;;  %v4124_v16 = vshrl.u32 %v6937_v38, 16  ;;  %v3373_v28 = vunpack.c.l.b16 %v3303_v50  ;;  %v6956_v43 = vld [vmem:[#allocation2 + $0x80] sm:$0x1] }
 0x22c   : > { %v2477_v41 = vpop.f32.mrf.mxu3  ;;  %v4130_v50 = vshll.u32 %v6956_v43, 16 }
 0x22d   : > { %v2515_v17 = vadd.f32 %v2477_v41, %v2225_v3  ;;  %v3372_v3 = vunpack.c.l.b16 %v3300_v37  ;;  %v4113_v41 = vrot.slane %v4111_v44, 4  ;;  %v4126_v14 = vrot.slane %v4124_v16, 4 }
 0x22e   : > { %v1838_v16 = vadd.f32 %v1837_v11, %v7446_v15  ;;  %v3306_v11 = vrot.slane %v5805_v19, 5 }
 0x22f   : > { %5615 = vmatmul.msk.bf16.gmra.mxu2 %vm1479_vm12, %v5733_v30  ;;  %v4319_v30 = vunpack.c.l.b16 %v4099_v62  ;;  %v3396_v46 = vpack.c.b16 %v3373_v28, %v3372_v3  ;;  %v4645_v62 = vrot.slane %v4643_v34, 4  ;;  %v4117_v44 = vor.u32 %v4116_v40, %v4113_v41  ;;  %v5734_v28 = vld [vmem:[#allocation2 + $0x78] sm:$0xff] }
 0x230   : > { %v3135_v51 = vpop.f32.mrf.mxu0  ;;  %v4127_v55 = vor.u32 %v4126_v14, %v4122_v57  ;;  %v3186_v40 = vld [vmem:[#allocation2 + $0x78] sm:$0xe] }
 0x231   : > { %v6958_v47 = vadd.f32 %v3135_v51, %v2515_v17  ;;  %v4344_v37 = vpack.c.b16 %v4320_v23, %v4319_v30  ;;  %v4644_v17 = vsel %vm6336_vm15, %v5653_v4, %v4643_v34  ;;  %v4647_v27 = vsel %vm6336_vm15, %v4645_v62, %v4646_v33  ;;  %v5806_v33 = vld [vmem:[#allocation2 + $0x80] sm:$0x1] }
 0x232   : > { %v2192_v54 = vpop.f32.mrf.mxu2  ;;  %v4128_v23 = vrot.slane %v4127_v55, 4  ;;  %v4721_v34 = vunpack.c.l.b16 %v4644_v17  ;;  %v4722_v41 = vunpack.c.l.b16 %v4647_v27  ;;  %v4135_v51 = vshrl.u32 %v3897_v0, 16 }
 0x233   : > { %v2227_v53 = vadd.f32 %v2192_v54, %v1836_v6  ;;  %v6954_v12 = vpop.f32.mrf.mxu1  ;;  %7445 = vst [vmem:[#allocation4_spill] sm:$0xff] %v6958_v47  ;;  %5674 = vmatmul.msk.bf16.gmra.mxu0 %vm1479_vm12, %v4745_v63  ;;  %v4132_v54 = vrot.slane %v4130_v50, 5  ;;  %v5509_v4 = vrot.slane %v3186_v40, 9  ;;  %v3308_v62 = vrot.slane %v3306_v11, 4 }
 0x234   : > { %v2479_v5 = vpop.f32.mrf.mxu3 }
 0x235   : > { %v2516_v26 = vadd.f32 %v2479_v5, %v2226_v60  ;;  %v4118_v60 = vrot.slane %v4117_v44, 4  ;;  %v4138_v44 = vshll.u32 %v3897_v0, 16  ;;  %v3307_v17 = vsel %vm6336_vm15, %v5509_v4, %v3306_v11 }
 0x236   : > { %5530 = vmatmul.msk.bf16.gmra.mxu1 %vm1479_vm12, %v3396_v46  ;;  %v6972_v46 = vld [vmem:[#allocation2 + $0x88] sm:$0xf] }
 0x237   : > { %v4123_v55 = vsel %vm6009_vm11, %v4118_v60, %v4122_v57  ;;  %v4144_v50 = vshll.u32 %v6972_v46, 16  ;;  %v4137_v60 = vrot.slane %v4135_v51, 4  ;;  %v4140_v19 = vrot.slane %v4138_v44, 5 }
 0x238   : > { %v3137_v30 = vpop.f32.mrf.mxu0 }
 0x239   : > { %5637 = vmatmul.msk.bf16.gmra.mxu3 %vm1479_vm12, %v4344_v37  ;;  %v6974_v14 = vadd.f32 %v3137_v30, %v2516_v26  ;;  %v3309_v37 = vrot.slane %v5806_v33, 5  ;;  %v4133_v26 = vsel %vm6009_vm11, %v4128_v23, %v4132_v54  ;;  %v4650_v30 = vrot.slane %v6937_v38, 5 }
 0x23a   : > { %v2194_v6 = vpop.f32.mrf.mxu2  ;;  %v4322_v40 = vunpack.c.l.b16 %v4133_v26  ;;  %v6990_v54 = vrot.slane %v4144_v50, 5  ;;  %v4653_v38 = vrot.slane %v6956_v43, 5  ;;  %v4141_v51 = vor.u32 %v4140_v19, %v4137_v60  ;;  %v3900_v26 = vld [vmem:[#allocation2 + $0x90] sm:$0xf] }
 0x23b   : > { %v2228_v3 = vadd.f32 %v2194_v6, %v1838_v16  ;;  %v6970_v63 = vpop.f32.mrf.mxu1  ;;  %7447 = vst [vmem:[#allocation5_spill] sm:$0xff] %v6974_v14  ;;  %v4148_v16 = vshrl.u32 %v6972_v46, 16  ;;  %v3310_v27 = vsel %vm6336_vm15, %v3308_v62, %v3309_v37  ;;  %v4746_v6 = vpack.c.b16 %v4722_v41, %v4721_v34  ;;  %v6992_v14 = vld [vmem:[#allocation2 + $0x8c] sm:$0x1] }
 0x23c   : > { %v2482_v5 = vpop.f32.mrf.mxu3  ;;  %v3375_v0 = vunpack.c.l.b16 %v3310_v27  ;;  %v4652_v37 = vrot.slane %v4650_v30, 4  ;;  %v4159_v19 = vshrl.u32 %v3900_v26, 16 }
 0x23d   : > { %v2517_v15 = vadd.f32 %v2482_v5, %v2227_v53  ;;  %v3374_v53 = vunpack.c.l.b16 %v3307_v17  ;;  %v4536_v5 = vld [vmem:[#allocation2 + $0x78] sm:$0xe]  ;;  %v4150_v11 = vrot.slane %v4148_v16, 4  ;;  %v4154_v16 = vshll.u32 %v6992_v14, 16  ;;  %v7001_v17 = vld [vmem:[#allocation2 + $0x94] sm:$0xf] }
 0x23e   : > { %v5654_v62 = vrot.slane %v4536_v5, 9  ;;  %v4654_v27 = vsel %vm6336_vm15, %v4652_v37, %v4653_v38 }
 0x23f   : > { %5616 = vmatmul.msk.bf16.gmra.mxu2 %vm1479_vm12, %v5734_v28  ;;  %v4321_v28 = vunpack.c.l.b16 %v4123_v55  ;;  %v3397_v23 = vpack.c.b16 %v3375_v0, %v3374_v53  ;;  %v4151_v50 = vor.u32 %v4150_v11, %v6990_v54 }
 0x240   : > { %v3140_v4 = vpop.f32.mrf.mxu0  ;;  %v4651_v43 = vsel %vm6336_vm15, %v5654_v62, %v4650_v30  ;;  %v4172_v30 = vshrl.u32 %v7001_v17, 16  ;;  %v3187_v62 = vld [vmem:[#allocation2 + $0x84] sm:$0xe] }
 0x241   : > { %v6994_v34 = vadd.f32 %v3140_v4, %v2517_v15  ;;  %v4345_v55 = vpack.c.b16 %v4322_v40, %v4321_v28  ;;  %v3547_v15 = vadd.f32 %v6954_v12, %v6560_v18  ;;  %v4152_v0 = vrot.slane %v4151_v50, 4 }
 0x242   : > { %v3758_v57 = vpop.f32.mrf.mxu2  ;;  %v4156_v28 = vrot.slane %v4154_v16, 5  ;;  %v4162_v40 = vshll.u32 %v3900_v26, 16  ;;  %v4168_v12 = vshll.u32 %v7001_v17, 16  ;;  %v4723_v11 = vunpack.c.l.b16 %v4651_v43  ;;  %v5808_v16 = vld [vmem:[#allocation2 + $0x8c] sm:$0x1] }
 0x243   : > { %v6988_v33 = vpop.f32.mrf.mxu1  ;;  %7448 = vst [vmem:[#allocation7_spill] sm:$0xff] %v6994_v34  ;;  %5675 = vmatmul.msk.bf16.gmra.mxu0 %vm1479_vm12, %v4746_v6  ;;  %v4142_v6 = vrot.slane %v4141_v51, 4  ;;  %v4724_v4 = vunpack.c.l.b16 %v4654_v27  ;;  %v4657_v51 = vrot.slane %v6972_v46, 5  ;;  %v3316_v26 = vrot.slane %v5808_v16, 5 }
 0x244   : > { %v2484_v41 = vpop.f32.mrf.mxu3  ;;  %v4157_v43 = vsel %vm6009_vm11, %v4152_v0, %v4156_v28  ;;  %v3548_v0 = vadd.f32 %v6970_v63, %v6571_v59 }
 0x245   : > { %v2518_v44 = vadd.f32 %v2484_v41, %v2228_v3  ;;  %v5735_v3 = vld [vmem:[#allocation2 + $0x84] sm:$0xff]  ;;  %v3838_v41 = vadd.f32 %v3758_v57, %v3547_v15  ;;  %v4161_v15 = vrot.slane %v4159_v19, 4 }
 0x246   : > { %5531 = vmatmul.msk.bf16.gmra.mxu1 %vm1479_vm12, %v3397_v23  ;;  %v5807_v23 = vld [vmem:[#allocation2 + $0x88] sm:$0xf]  ;;  %v4537_v57 = vld [vmem:[#allocation2 + $0x84] sm:$0xe] }
 0x247   : > { %v3313_v18 = vrot.slane %v5807_v23, 5  ;;  %v4147_v23 = vsel %vm6009_vm11, %v4142_v6, %v6990_v54  ;;  %v7029_v54 = vld [vmem:[#allocation2 + $0x98] sm:$0x1]  ;;  %v4747_v6 = vpack.c.b16 %v4724_v4, %v4723_v11  ;;  %v5655_v28 = vrot.slane %v4537_v57, 9 }
 0x248   : > { %v3142_v5 = vpop.f32.mrf.mxu0  ;;  %v4178_v63 = vshll.u32 %v7029_v54, 16 }
 0x249   : > { %5638 = vmatmul.msk.bf16.gmra.mxu3 %vm1479_vm12, %v4345_v55  ;;  %v7014_v37 = vadd.f32 %v3142_v5, %v2518_v44  ;;  %v5510_v55 = vrot.slane %v3187_v62, 9  ;;  %v3315_v50 = vrot.slane %v3313_v18, 4  ;;  %v4164_v44 = vrot.slane %v4162_v40, 5 }
 0x24a   : > { %v3760_v53 = vpop.f32.mrf.mxu2  ;;  %v7027_v5 = vrot.slane %v4168_v12, 5  ;;  %v4323_v40 = vunpack.c.l.b16 %v4147_v23  ;;  %v3903_v23 = vld [vmem:[#allocation2 + $0x9c] sm:$0xf] }
 0x24b   : > { %v7010_v60 = vpop.f32.mrf.mxu1  ;;  %7449 = vst [vmem:[#allocation8_spill] sm:$0xff] %v7014_v37  ;;  %v3314_v27 = vsel %vm6336_vm15, %v5510_v55, %v3313_v18  ;;  %v3317_v46 = vsel %vm6336_vm15, %v3315_v50, %v3316_v26  ;;  %v4324_v18 = vunpack.c.l.b16 %v4157_v43  ;;  %v4659_v55 = vrot.slane %v4657_v51, 4 }
 0x24c   : > { %v4416_v38 = vpop.f32.mrf.mxu3  ;;  %v3376_v16 = vunpack.c.l.b16 %v3314_v27  ;;  %v3377_v37 = vunpack.c.l.b16 %v3317_v46  ;;  %v4165_v11 = vor.u32 %v4164_v44, %v4161_v15  ;;  %v4658_v26 = vsel %vm6336_vm15, %v5655_v28, %v4657_v51  ;;  %v7053_v44 = vld [vmem:[#allocation2 + $0xa0] sm:$0xf] }
 0x24d   : > { %v4496_v62 = vadd.f32 %v4416_v38, %v3838_v41  ;;  %v3839_v41 = vadd.f32 %v3760_v53, %v3548_v0  ;;  %v4180_v15 = vrot.slane %v4178_v63, 5  ;;  %v3549_v46 = vadd.f32 %v6988_v33, %v6579_v21  ;;  %v5809_v33 = vld [vmem:[#allocation2 + $0x94] sm:$0xf] }
 0x24e   : > { %v3398_v12 = vpack.c.b16 %v3377_v37, %v3376_v16  ;;  %v4346_v37 = vpack.c.b16 %v4324_v18, %v4323_v40  ;;  %v4166_v43 = vrot.slane %v4165_v11, 4  ;;  %v4183_v16 = vshrl.u32 %v3903_v23, 16 }
 0x24f   : > { %5617 = vmatmul.msk.bf16.gmra.mxu2 %vm1479_vm12, %v5735_v3  ;;  %v4174_v3 = vrot.slane %v4172_v30, 4  ;;  %v4660_v30 = vrot.slane %v6992_v14, 5  ;;  %v4186_v40 = vshll.u32 %v3903_v23, 16  ;;  %v4192_v18 = vshll.u32 %v7053_v44, 16 }
 0x250   : > { %v4818_v50 = vpop.f32.mrf.mxu0 }
 0x251   : > { %v4175_v59 = vor.u32 %v4174_v3, %v7027_v5  ;;  %v4898_v4 = vadd.f32 %v4818_v50, %v4496_v62  ;;  %v4661_v14 = vsel %vm6336_vm15, %v4659_v55, %v4660_v30  ;;  %v4725_v3 = vunpack.c.l.b16 %v4658_v26 }
 0x252   : > { %v3763_v19 = vpop.f32.mrf.mxu2  ;;  %v4726_v51 = vunpack.c.l.b16 %v4661_v14  ;;  %v3320_v50 = vrot.slane %v5809_v33, 5  ;;  %v4196_v30 = vshrl.u32 %v7053_v44, 16  ;;  %v5810_v14 = vld [vmem:[#allocation2 + $0x98] sm:$0x1]  ;;  %v4188_v33 = vrot.slane %v4186_v40, 5 }
 0x253   : > { %v7033_v34 = vpop.f32.mrf.mxu1  ;;  %5676 = vmatmul.msk.bf16.gmra.mxu0 %vm1479_vm12, %v4747_v6  ;;  %4930 = vst.msk [vmem:[%s7040_s14] sm:$0xff] %vm1479_vm12, %v4898_v4  ;;  %v4176_v57 = vrot.slane %v4175_v59, 4  ;;  %v5032_v53 = vmul.f32 %v4898_v4, %v4898_v4  ;;  %v5736_v6 = vld [vmem:[#allocation2 + $0x90] sm:$0xff]  ;;  %v4962_v11 = vsel %vm1479_vm12, %v4898_v4, 0.0  ;;  %v7074_v4 = vrot.slane %v4192_v18, 5 }
 0x254   : > { %v4418_v38 = vpop.f32.mrf.mxu3  ;;  %v3322_v23 = vrot.slane %v3320_v50, 4  ;;  %v4748_v47 = vpack.c.b16 %v4726_v51, %v4725_v3  ;;  %v7081_v40 = vld [vmem:[#allocation2 + $0xa4] sm:$0x1]  ;;  %v3550_v18 = vadd.f32 %v7010_v60, %v6589_v8 }
 0x255   : > { %v4497_v27 = vadd.f32 %v4418_v38, %v3839_v41  ;;  %v4181_v21 = vsel %vm6009_vm11, %v4176_v57, %v4180_v15  ;;  %v5064_v59 = vsel %vm1479_vm12, %v5032_v53, 0.0  ;;  %v3840_v41 = vadd.f32 %v3763_v19, %v3549_v46  ;;  %v3188_v38 = vld [vmem:[#allocation2 + $0x90] sm:$0xe] }
 0x256   : > { %5532 = vmatmul.msk.bf16.gmra.mxu1 %vm1479_vm12, %v3398_v12  ;;  %v4171_v12 = vsel %vm6009_vm11, %v4166_v43, %v7027_v5  ;;  %v5511_v26 = vrot.slane %v3188_v38, 9  ;;  %v3323_v5 = vrot.slane %v5810_v14, 5  ;;  %v4185_v43 = vrot.slane %v4183_v16, 4  ;;  %v4538_v38 = vld [vmem:[#allocation2 + $0x90] sm:$0xe] }
 0x257   : > { %v4198_v46 = vrot.slane %v4196_v30, 4  ;;  %v4202_v8 = vshll.u32 %v7081_v40, 16 }
 0x258   : > { %v4820_v55 = vpop.f32.mrf.mxu0  ;;  %v3321_v19 = vsel %vm6336_vm15, %v5511_v26, %v3320_v50  ;;  %v4326_v50 = vunpack.c.l.b16 %v4181_v21  ;;  %v4189_v3 = vor.u32 %v4188_v33, %v4185_v43 }
 0x259   : > { %5639 = vmatmul.msk.bf16.gmra.mxu3 %vm1479_vm12, %v4346_v37  ;;  %v4899_v63 = vadd.f32 %v4820_v55, %v4497_v27  ;;  %v3324_v27 = vsel %vm6336_vm15, %v3322_v23, %v3323_v5  ;;  %v3378_v14 = vunpack.c.l.b16 %v3321_v19  ;;  %v5656_v5 = vrot.slane %v4538_v38, 9  ;;  %v3906_v19 = vld [vmem:[#allocation2 + $0xa8] sm:$0xf] }
 0x25a   : > { %v3765_v62 = vpop.f32.mrf.mxu2  ;;  %v3379_v0 = vunpack.c.l.b16 %v3324_v27  ;;  %v4190_v27 = vrot.slane %v4189_v3, 4  ;;  %v4204_v38 = vrot.slane %v4202_v8, 5  ;;  %v3189_v8 = vld [vmem:[#allocation2 + $0x9c] sm:$0xe] }
 0x25b   : > { %v7059_v28 = vpop.f32.mrf.mxu1  ;;  %4931 = vst.msk [vmem:[%s7040_s14 + $0x8] sm:$0xff] %vm1479_vm12, %v4899_v63  ;;  %v4963_v57 = vsel %vm1479_vm12, %v4899_v63, 0.0  ;;  %v5033_v15 = vmul.f32 %v4899_v63, %v4899_v63 }
 0x25c   : > { %v4421_v37 = vpop.f32.mrf.mxu3  ;;  %v4964_v53 = vadd.f32 %v4963_v57, %v4962_v11  ;;  %v4325_v11 = vunpack.c.l.b16 %v4171_v12  ;;  %v3399_v30 = vpack.c.b16 %v3379_v0, %v3378_v14  ;;  %v3841_v57 = vadd.f32 %v3765_v62, %v3550_v18 }
 0x25d   : > { %v5065_v16 = vsel %vm1479_vm12, %v5033_v15, 0.0  ;;  %v4498_v55 = vadd.f32 %v4421_v37, %v3840_v41  ;;  %v7450_v41 = vrot.slane %v7001_v17, 5  ;;  %v4199_v15 = vor.u32 %v4198_v46, %v7074_v4  ;;  %v7103_v46 = vld [vmem:[#allocation2 + $0xac] sm:$0xf] }
 0x25e   : > { %v5066_v63 = vadd.f32 %v5065_v16, %v5064_v59  ;;  %v4667_v59 = vrot.slane %v7029_v54, 5  ;;  %v4347_v21 = vpack.c.b16 %v4326_v50, %v4325_v11  ;;  %v4207_v11 = vshrl.u32 %v3906_v19, 16  ;;  %v5737_v50 = vld [vmem:[#allocation2 + $0x9c] sm:$0xff] }
 0x25f   : > { %5618 = vmatmul.msk.bf16.gmra.mxu2 %vm1479_vm12, %v5736_v6  ;;  %v4666_v37 = vrot.slane %v7450_v41, 4  ;;  %v7451_v43 = vmov %v7450_v41  ;;  %v3551_v17 = vadd.f32 %v7033_v34, %v6596_v2  ;;  %v4220_v2 = vshrl.u32 %v7103_v46, 16 }
 0x260   : > { %v4823_v23 = vpop.f32.mrf.mxu0  ;;  %v4665_v62 = vsel %vm6336_vm15, %v5656_v5, %v7451_v43  ;;  %v4216_v5 = vshll.u32 %v7103_v46, 16  ;;  %v4209_v43 = vrot.slane %v4207_v11, 4  ;;  %v4539_v11 = vld [vmem:[#allocation2 + $0x9c] sm:$0xe] }
 0x261   : > { %v4900_v51 = vadd.f32 %v4823_v23, %v4498_v55  ;;  %v4668_v33 = vsel %vm6336_vm15, %v4666_v37, %v4667_v59  ;;  %v4200_v55 = vrot.slane %v4199_v15, 4  ;;  %v4210_v23 = vshll.u32 %v3906_v19, 16  ;;  %v5811_v59 = vld [vmem:[#allocation2 + $0xa0] sm:$0xf] }
 0x262   : > { %v3768_v6 = vpop.f32.mrf.mxu2  ;;  %v4728_v37 = vunpack.c.l.b16 %v4668_v33  ;;  %v3327_v3 = vrot.slane %v5811_v59, 5  ;;  %v4671_v15 = vrot.slane %v7053_v44, 5  ;;  %v7123_v33 = vrot.slane %v4216_v5, 5 }
 0x263   : > { %v7085_v26 = vpop.f32.mrf.mxu1  ;;  %5677 = vmatmul.msk.bf16.gmra.mxu0 %vm1479_vm12, %v4748_v47  ;;  %4932 = vst.msk [vmem:[%s7040_s14 + $0x10] sm:$0xff] %vm1479_vm12, %v4900_v51  ;;  %v4965_v0 = vsel %vm1479_vm12, %v4900_v51, 0.0  ;;  %v5034_v12 = vmul.f32 %v4900_v51, %v4900_v51  ;;  %v3842_v51 = vadd.f32 %v3768_v6, %v3551_v17  ;;  %v4212_v6 = vrot.slane %v4210_v23, 5  ;;  %v7130_v23 = vld [vmem:[#allocation2 + $0xb0] sm:$0x1] }
 0x264   : > { %v4423_v60 = vpop.f32.mrf.mxu3  ;;  %v4966_v54 = vadd.f32 %v4965_v0, %v4964_v53  ;;  %v4727_v53 = vunpack.c.l.b16 %v4665_v62  ;;  %v5512_v0 = vrot.slane %v3189_v8, 9 }
 0x265   : > { %v5067_v47 = vsel %vm1479_vm12, %v5034_v12, 0.0  ;;  %v4499_v16 = vadd.f32 %v4423_v60, %v3841_v57  ;;  %v4205_v57 = vsel %vm6009_vm11, %v4200_v55, %v4204_v38  ;;  %v3329_v12 = vrot.slane %v3327_v3, 4 }
 0x266   : > { %5533 = vmatmul.msk.bf16.gmra.mxu1 %vm1479_vm12, %v3399_v30  ;;  %v5068_v14 = vadd.f32 %v5067_v47, %v5066_v63  ;;  %v4195_v63 = vsel %vm6009_vm11, %v4190_v27, %v7074_v4  ;;  %v3328_v44 = vsel %vm6336_vm15, %v5512_v0, %v3327_v3  ;;  %v4328_v3 = vunpack.c.l.b16 %v4205_v57  ;;  %v3909_v57 = vld [vmem:[#allocation2 + $0xb4] sm:$0xf] }
 0x267   : > { %v3380_v17 = vunpack.c.l.b16 %v3328_v44  ;;  %v4327_v5 = vunpack.c.l.b16 %v4195_v63 }
 0x268   : > { %v4825_v41 = vpop.f32.mrf.mxu0 }
 0x269   : > { %5640 = vmatmul.msk.bf16.gmra.mxu3 %vm1479_vm12, %v4347_v21  ;;  %v4901_v34 = vadd.f32 %v4825_v41, %v4499_v16  ;;  %v5812_v21 = vld [vmem:[#allocation2 + $0xa4] sm:$0x1]  ;;  %v4222_v16 = vrot.slane %v4220_v2, 4  ;;  %v4348_v63 = vpack.c.b16 %v4328_v3, %v4327_v5  ;;  %v4234_v5 = vshll.u32 %v3909_v57, 16 }
 0x26a   : > { %v3770_v18 = vpop.f32.mrf.mxu2  ;;  %v3330_v19 = vrot.slane %v5812_v21, 5  ;;  %v4213_v21 = vor.u32 %v4212_v6, %v4209_v43  ;;  %v7148_v6 = vld [vmem:[#allocation2 + $0xb8] sm:$0xf] }
 0x26b   : > { %v7109_v30 = vpop.f32.mrf.mxu1  ;;  %4933 = vst.msk [vmem:[%s7040_s14 + $0x18] sm:$0xff] %vm1479_vm12, %v4901_v34  ;;  %v4967_v4 = vsel %vm1479_vm12, %v4901_v34, 0.0  ;;  %v5035_v62 = vmul.f32 %v4901_v34, %v4901_v34  ;;  %v4749_v34 = vpack.c.b16 %v4728_v37, %v4727_v53  ;;  %v4223_v37 = vor.u32 %v4222_v16, %v7123_v33 }
 0x26c   : > { %v4426_v60 = vpop.f32.mrf.mxu3  ;;  %v4968_v27 = vadd.f32 %v4967_v4, %v4966_v54  ;;  %v3331_v47 = vsel %vm6336_vm15, %v3329_v12, %v3330_v19  ;;  %v3552_v54 = vadd.f32 %v7059_v28, %v6605_v56  ;;  %v5657_v12 = vrot.slane %v4539_v11, 9 }
 0x26d   : > { %v5069_v55 = vsel %vm1479_vm12, %v5035_v62, 0.0  ;;  %v4500_v38 = vadd.f32 %v4426_v60, %v3842_v51  ;;  %v3381_v41 = vunpack.c.l.b16 %v3331_v47  ;;  %v4673_v51 = vrot.slane %v4671_v15, 4 }
 0x26e   : > { %v5070_v59 = vadd.f32 %v5069_v55, %v5068_v14  ;;  %v4674_v60 = vrot.slane %v7081_v40, 5  ;;  %v3843_v53 = vadd.f32 %v3770_v18, %v3552_v54  ;;  %v4226_v19 = vshll.u32 %v7130_v23, 16 }
 0x26f   : > { %5619 = vmatmul.msk.bf16.gmra.mxu2 %vm1479_vm12, %v5737_v50  ;;  %v3400_v2 = vpack.c.b16 %v3381_v41, %v3380_v17  ;;  %v4672_v18 = vsel %vm6336_vm15, %v5657_v12, %v4671_v15  ;;  %v4214_v62 = vrot.slane %v4213_v21, 4  ;;  %v4224_v16 = vrot.slane %v4223_v37, 4  ;;  %v7452_v41 = vld [vmem:[#allocation6_spill] sm:$0xff]  ;;  %v5813_v12 = vld [vmem:[#allocation2 + $0xac] sm:$0xf] }
 0x270   : > { %v4828_v0 = vpop.f32.mrf.mxu0  ;;  %v4675_v43 = vsel %vm6336_vm15, %v4673_v51, %v4674_v60  ;;  %v4228_v55 = vrot.slane %v4226_v19, 5  ;;  %v4231_v17 = vshrl.u32 %v3909_v57, 16  ;;  %v4729_v15 = vunpack.c.l.b16 %v4672_v18  ;;  %v3190_v37 = vld [vmem:[#allocation2 + $0xa8] sm:$0xe] }
 0x271   : > { %v4902_v14 = vadd.f32 %v4828_v0, %v4500_v38  ;;  %v4240_v3 = vshll.u32 %v7148_v6, 16  ;;  %v4730_v0 = vunpack.c.l.b16 %v4675_v43  ;;  %v3334_v51 = vrot.slane %v5813_v12, 5 }
 0x272   : > { %v3773_v50 = vpop.f32.mrf.mxu2  ;;  %v4233_v57 = vrot.slane %v4231_v17, 4  ;;  %v4540_v17 = vld [vmem:[#allocation2 + $0xa8] sm:$0xe] }
 0x273   : > { %v7134_v8 = vpop.f32.mrf.mxu1  ;;  %5678 = vmatmul.msk.bf16.gmra.mxu0 %vm1479_vm12, %v4749_v34  ;;  %4934 = vst.msk [vmem:[%s7040_s14 + $0x20] sm:$0xff] %vm1479_vm12, %v4902_v14  ;;  %v4969_v56 = vsel %vm1479_vm12, %v4902_v14, 0.0  ;;  %v5036_v28 = vmul.f32 %v4902_v14, %v4902_v14  ;;  %v5738_v34 = vld [vmem:[#allocation2 + $0xa8] sm:$0xff]  ;;  %v4229_v14 = vsel %vm6009_vm11, %v4224_v16, %v4228_v55  ;;  %v7168_v43 = vrot.slane %v4240_v3, 5 }
 0x274   : > { %v4428_v4 = vpop.f32.mrf.mxu3  ;;  %v4970_v40 = vadd.f32 %v4969_v56, %v4968_v27  ;;  %v3553_v27 = vadd.f32 %v7085_v26, %v7452_v41  ;;  %v4244_v26 = vshrl.u32 %v7148_v6, 16  ;;  %v3336_v56 = vrot.slane %v3334_v51, 4 }
 0x275   : > { %v5071_v44 = vsel %vm1479_vm12, %v5036_v28, 0.0  ;;  %v4501_v47 = vadd.f32 %v4428_v4, %v3843_v53  ;;  %v4678_v53 = vrot.slane %v7103_v46, 5  ;;  %v5513_v4 = vrot.slane %v3190_v37, 9  ;;  %v5814_v28 = vld [vmem:[#allocation2 + $0xb0] sm:$0x1] }
 0x276   : > { %5534 = vmatmul.msk.bf16.gmra.mxu1 %vm1479_vm12, %v3400_v2  ;;  %v5072_v38 = vadd.f32 %v5071_v44, %v5070_v59  ;;  %v4219_v59 = vsel %vm6009_vm11, %v4214_v62, %v7123_v33  ;;  %v3844_v21 = vadd.f32 %v3773_v50, %v3553_v27  ;;  %v4236_v50 = vrot.slane %v4234_v5, 5  ;;  %v7175_v5 = vld [vmem:[#allocation2 + $0xbc] sm:$0x1] }
 0x277   : > { %v3335_v46 = vsel %vm6336_vm15, %v5513_v4, %v3334_v51  ;;  %v4750_v12 = vpack.c.b16 %v4730_v0, %v4729_v15  ;;  %v4329_v3 = vunpack.c.l.b16 %v4219_v59  ;;  %v4330_v51 = vunpack.c.l.b16 %v4229_v14  ;;  %v3912_v14 = vld [vmem:[#allocation2 + $0xc0] sm:$0xf] }
 0x278   : > { %v4830_v2 = vpop.f32.mrf.mxu0  ;;  %v3382_v41 = vunpack.c.l.b16 %v3335_v46  ;;  %v5658_v4 = vrot.slane %v4540_v17, 9  ;;  %v4255_v17 = vshrl.u32 %v3912_v14, 16 }
 0x279   : > { %5641 = vmatmul.msk.bf16.gmra.mxu3 %vm1479_vm12, %v4348_v63  ;;  %v4903_v60 = vadd.f32 %v4830_v2, %v4501_v47  ;;  %v3337_v63 = vrot.slane %v5814_v28, 5  ;;  %v4246_v47 = vrot.slane %v4244_v26, 4  ;;  %v4250_v28 = vshll.u32 %v7175_v5, 16 }
 0x27a   : > { %v3775_v11 = vpop.f32.mrf.mxu2  ;;  %v4349_v59 = vpack.c.b16 %v4330_v51, %v4329_v3 }
 0x27b   : > { %v7154_v54 = vpop.f32.mrf.mxu1  ;;  %4935 = vst.msk [vmem:[%s7040_s14 + $0x28] sm:$0xff] %vm1479_vm12, %v4903_v60  ;;  %v4971_v33 = vsel %vm1479_vm12, %v4903_v60, 0.0  ;;  %v5037_v18 = vmul.f32 %v4903_v60, %v4903_v60  ;;  %v3338_v44 = vsel %vm6336_vm15, %v3336_v56, %v3337_v63  ;;  %v4237_v56 = vor.u32 %v4236_v50, %v4233_v57 }
 0x27c   : > { %v4431_v19 = vpop.f32.mrf.mxu3  ;;  %v4972_v62 = vadd.f32 %v4971_v33, %v4970_v40  ;;  %v3383_v27 = vunpack.c.l.b16 %v3338_v44  ;;  %v3554_v40 = vadd.f32 %v7109_v30, %v6641_v32  ;;  %v4247_v0 = vor.u32 %v4246_v47, %v7168_v43 }
 0x27d   : > { %v5073_v16 = vsel %vm1479_vm12, %v5037_v18, 0.0  ;;  %v4502_v55 = vadd.f32 %v4431_v19, %v3844_v21  ;;  %v4680_v21 = vrot.slane %v4678_v53, 4  ;;  %v4681_v19 = vrot.slane %v7130_v23, 5  ;;  %v7193_v18 = vld [vmem:[#allocation2 + $0xc4] sm:$0xf] }
 0x27e   : > { %v5074_v2 = vadd.f32 %v5073_v16, %v5072_v38  ;;  %v3401_v26 = vpack.c.b16 %v3383_v27, %v3382_v41  ;;  %v3845_v15 = vadd.f32 %v3775_v11, %v3554_v40  ;;  %v4679_v11 = vsel %vm6336_vm15, %v5658_v4, %v4678_v53  ;;  %v5739_v41 = vld [vmem:[#allocation2 + $0xb4] sm:$0xff] }
 0x27f   : > { %5620 = vmatmul.msk.bf16.gmra.mxu2 %vm1479_vm12, %v5738_v34  ;;  %v4682_v57 = vsel %vm6336_vm15, %v4680_v21, %v4681_v19  ;;  %v4238_v33 = vrot.slane %v4237_v56, 4  ;;  %v4248_v44 = vrot.slane %v4247_v0, 4  ;;  %v4252_v47 = vrot.slane %v4250_v28, 5  ;;  %v3191_v56 = vld [vmem:[#allocation2 + $0xb4] sm:$0xe] }
 0x280   : > { %v4833_v37 = vpop.f32.mrf.mxu0  ;;  %v4731_v53 = vunpack.c.l.b16 %v4679_v11  ;;  %v4264_v40 = vshll.u32 %v7193_v18, 16  ;;  %v4732_v51 = vunpack.c.l.b16 %v4682_v57  ;;  %v4685_v19 = vrot.slane %v7148_v6, 5  ;;  %v5816_v28 = vld [vmem:[#allocation2 + $0xbc] sm:$0x1] }
 0x281   : > { %v4904_v38 = vadd.f32 %v4833_v37, %v4502_v55  ;;  %v4253_v21 = vsel %vm6009_vm11, %v4248_v44, %v4252_v47 }
 0x282   : > { %v3778_v34 = vpop.f32.mrf.mxu2 }
 0x283   : > { %v7179_v60 = vpop.f32.mrf.mxu1  ;;  %5679 = vmatmul.msk.bf16.gmra.mxu0 %vm1479_vm12, %v4750_v12  ;;  %4936 = vst.msk [vmem:[%s7040_s14 + $0x30] sm:$0xff] %vm1479_vm12, %v4904_v38  ;;  %v4973_v32 = vsel %vm1479_vm12, %v4904_v38, 0.0  ;;  %v5038_v30 = vmul.f32 %v4904_v38, %v4904_v38  ;;  %v4258_v12 = vshll.u32 %v3912_v14, 16 }
 0x284   : > { %v4433_v63 = vpop.f32.mrf.mxu3  ;;  %v4974_v23 = vadd.f32 %v4973_v32, %v4972_v62  ;;  %v3555_v62 = vadd.f32 %v7134_v8, %v6657_v24  ;;  %v4268_v24 = vshrl.u32 %v7193_v18, 16  ;;  %v4257_v32 = vrot.slane %v4255_v17, 4 }
 0x285   : > { %v5075_v50 = vsel %vm1479_vm12, %v5038_v30, 0.0  ;;  %v4503_v46 = vadd.f32 %v4433_v63, %v3845_v15  ;;  %v5514_v15 = vrot.slane %v3191_v56, 9  ;;  %v3344_v63 = vrot.slane %v5816_v28, 5 }
 0x286   : > { %5535 = vmatmul.msk.bf16.gmra.mxu1 %vm1479_vm12, %v3401_v26  ;;  %v5076_v16 = vadd.f32 %v5075_v50, %v5074_v2  ;;  %v4243_v2 = vsel %vm6009_vm11, %v4238_v33, %v7168_v43  ;;  %v5815_v26 = vld [vmem:[#allocation2 + $0xb8] sm:$0xf]  ;;  %v3846_v4 = vadd.f32 %v3778_v34, %v3555_v62  ;;  %v4260_v34 = vrot.slane %v4258_v12, 5  ;;  %v7220_v12 = vld [vmem:[#allocation2 + $0xc8] sm:$0x1] }
 0x287   : > { %v3341_v37 = vrot.slane %v5815_v26, 5  ;;  %v4270_v57 = vrot.slane %v4268_v24, 4  ;;  %v4751_v62 = vpack.c.b16 %v4732_v51, %v4731_v53  ;;  %v4688_v56 = vrot.slane %v7175_v5, 5 }
 0x288   : > { %v4835_v3 = vpop.f32.mrf.mxu0 }
 0x289   : > { %5642 = vmatmul.msk.bf16.gmra.mxu3 %vm1479_vm12, %v4349_v59  ;;  %v4905_v8 = vadd.f32 %v4835_v3, %v4503_v46  ;;  %v3343_v0 = vrot.slane %v3341_v37, 4  ;;  %v7213_v59 = vrot.slane %v4264_v40, 5  ;;  %v3342_v6 = vsel %vm6336_vm15, %v5514_v15, %v3341_v37  ;;  %v4541_v46 = vld [vmem:[#allocation2 + $0xb4] sm:$0xe] }
 0x28a   : > { %v3780_v55 = vpop.f32.mrf.mxu2  ;;  %v3384_v44 = vunpack.c.l.b16 %v3342_v6  ;;  %v4331_v40 = vunpack.c.l.b16 %v4243_v2  ;;  %v4332_v3 = vunpack.c.l.b16 %v4253_v21  ;;  %v4274_v15 = vshll.u32 %v7220_v12, 16 }
 0x28b   : > { %v7199_v27 = vpop.f32.mrf.mxu1  ;;  %4937 = vst.msk [vmem:[%s7040_s14 + $0x38] sm:$0xff] %vm1479_vm12, %v4905_v8  ;;  %v4975_v43 = vsel %vm1479_vm12, %v4905_v8, 0.0  ;;  %v5039_v30 = vmul.f32 %v4905_v8, %v4905_v8  ;;  %v3345_v11 = vsel %vm6336_vm15, %v3343_v0, %v3344_v63  ;;  %v5659_v8 = vrot.slane %v4541_v46, 9 }
 0x28c   : > { %v4436_v38 = vpop.f32.mrf.mxu3  ;;  %v4976_v14 = vadd.f32 %v4975_v43, %v4974_v23  ;;  %v3385_v47 = vunpack.c.l.b16 %v3345_v11  ;;  %v3556_v23 = vadd.f32 %v7154_v54, %v6676_v7  ;;  %v4271_v51 = vor.u32 %v4270_v57, %v7213_v59 }
 0x28d   : > { %v5077_v33 = vsel %vm1479_vm12, %v5039_v30, 0.0  ;;  %v4504_v50 = vadd.f32 %v4436_v38, %v3846_v4  ;;  %v4687_v4 = vrot.slane %v4685_v19, 4  ;;  %v4261_v38 = vor.u32 %v4260_v34, %v4257_v32 }
 0x28e   : > { %v5078_v17 = vadd.f32 %v5077_v33, %v5076_v16  ;;  %v3402_v37 = vpack.c.b16 %v3385_v47, %v3384_v44  ;;  %v3847_v53 = vadd.f32 %v3780_v55, %v3556_v23  ;;  %v4350_v2 = vpack.c.b16 %v4332_v3, %v4331_v40  ;;  %v5817_v44 = vld [vmem:[#allocation2 + $0xc4] sm:$0xf]  ;;  %v3192_v40 = vld [vmem:[#allocation2 + $0xc0] sm:$0xe] }
 0x28f   : > { %5621 = vmatmul.msk.bf16.gmra.mxu2 %vm1479_vm12, %v5739_v41  ;;  %v4686_v5 = vsel %vm6336_vm15, %v5659_v8, %v4685_v19  ;;  %v4689_v55 = vsel %vm6336_vm15, %v4687_v4, %v4688_v56  ;;  %v4262_v28 = vrot.slane %v4261_v38, 4  ;;  %v4272_v43 = vrot.slane %v4271_v51, 4  ;;  %v3915_v19 = vld [vmem:[#allocation2 + $0xcc] sm:$0xf]  ;;  %v5818_v8 = vld [vmem:[#allocation2 + $0xc8] sm:$0x1] }
 0x290   : > { %v4838_v24 = vpop.f32.mrf.mxu0  ;;  %v4276_v30 = vrot.slane %v4274_v15, 5  ;;  %v3557_v11 = vadd.f32 %v7179_v60, %v6685_v58  ;;  %v4734_v46 = vunpack.c.l.b16 %v4689_v55  ;;  %v3348_v47 = vrot.slane %v5817_v44, 5 }
 0x291   : > { %v4906_v16 = vadd.f32 %v4838_v24, %v4504_v50  ;;  %v4733_v50 = vunpack.c.l.b16 %v4686_v5  ;;  %v4267_v58 = vsel %vm6009_vm11, %v4262_v28, %v7213_v59  ;;  %v3351_v4 = vrot.slane %v5818_v8, 5 }
 0x292   : > { %v3783_v41 = vpop.f32.mrf.mxu2  ;;  %v4277_v60 = vsel %vm6009_vm11, %v4272_v43, %v4276_v30  ;;  %v3350_v24 = vrot.slane %v3348_v47, 4  ;;  %v4279_v56 = vshrl.u32 %v3915_v19, 16  ;;  %v4542_v30 = vld [vmem:[#allocation2 + $0xc0] sm:$0xe] }
 0x293   : > { %v7224_v26 = vpop.f32.mrf.mxu1  ;;  %5680 = vmatmul.msk.bf16.gmra.mxu0 %vm1479_vm12, %v4751_v62  ;;  %4938 = vst.msk [vmem:[%s7040_s14 + $0x40] sm:$0xff] %vm1479_vm12, %v4906_v16  ;;  %v4977_v7 = vsel %vm1479_vm12, %v4906_v16, 0.0  ;;  %v5040_v54 = vmul.f32 %v4906_v16, %v4906_v16  ;;  %v7244_v62 = vld [vmem:[#allocation2 + $0xd0] sm:$0xf]  ;;  %v4752_v28 = vpack.c.b16 %v4734_v46, %v4733_v50  ;;  %v4334_v43 = vunpack.c.l.b16 %v4277_v60  ;;  %v7267_v46 = vld [vmem:[#allocation2 + $0xd4] sm:$0x1] }
 0x294   : > { %v4438_v0 = vpop.f32.mrf.mxu3  ;;  %v4978_v21 = vadd.f32 %v4977_v7, %v4976_v14  ;;  %v5740_v14 = vld [vmem:[#allocation2 + $0xc0] sm:$0xff]  ;;  %v4288_v59 = vshll.u32 %v7244_v62, 16  ;;  %v3352_v15 = vsel %vm6336_vm15, %v3350_v24, %v3351_v4  ;;  %v4281_v44 = vrot.slane %v4279_v56, 4 }
 0x295   : > { %v5079_v63 = vsel %vm1479_vm12, %v5040_v54, 0.0  ;;  %v4505_v32 = vadd.f32 %v4438_v0, %v3847_v53  ;;  %v4292_v0 = vshrl.u32 %v7244_v62, 16  ;;  %v3387_v5 = vunpack.c.l.b16 %v3352_v15 }
 0x296   : > { %5536 = vmatmul.msk.bf16.gmra.mxu1 %vm1479_vm12, %v3402_v37  ;;  %v5080_v34 = vadd.f32 %v5079_v63, %v5078_v17  ;;  %v3848_v17 = vadd.f32 %v3783_v41, %v3557_v11  ;;  %v5515_v37 = vrot.slane %v3192_v40, 9  ;;  %v4282_v41 = vshll.u32 %v3915_v19, 16 }
 0x297   : > { %v3558_v63 = vadd.f32 %v7199_v27, %v6697_v45  ;;  %v4692_v11 = vrot.slane %v7193_v18, 5  ;;  %v5660_v27 = vrot.slane %v4542_v30, 9  ;;  %v4298_v8 = vshll.u32 %v7267_v46, 16 }
 0x298   : > { %v4840_v33 = vpop.f32.mrf.mxu0  ;;  %v3349_v51 = vsel %vm6336_vm15, %v5515_v37, %v3348_v47  ;;  %v4284_v47 = vrot.slane %v4282_v41, 5 }
 0x299   : > { %5643 = vmatmul.msk.bf16.gmra.mxu3 %vm1479_vm12, %v4350_v2  ;;  %v4907_v23 = vadd.f32 %v4840_v33, %v4505_v32  ;;  %v3386_v2 = vunpack.c.l.b16 %v3349_v51  ;;  %v4693_v41 = vsel %vm6336_vm15, %v5660_v27, %v4692_v11  ;;  %v4699_v27 = vrot.slane %v7244_v62, 5 }
 0x29a   : > { %v3785_v6 = vpop.f32.mrf.mxu2  ;;  %v4285_v24 = vor.u32 %v4284_v47, %v4281_v44 }
 0x29b   : > { %v7242_v57 = vpop.f32.mrf.mxu1  ;;  %4939 = vst.msk [vmem:[%s7040_s14 + $0x48] sm:$0xff] %vm1479_vm12, %v4907_v23  ;;  %v4979_v38 = vsel %vm1479_vm12, %v4907_v23, 0.0  ;;  %v5041_v16 = vmul.f32 %v4907_v23, %v4907_v23  ;;  %v3403_v19 = vpack.c.b16 %v3387_v5, %v3386_v2  ;;  %v4290_v23 = vrot.slane %v4288_v59, 5  ;;  %v5741_v59 = vld [vmem:[#allocation2 + $0xcc] sm:$0xff] }
 0x29c   : > { %v4441_v3 = vpop.f32.mrf.mxu3  ;;  %v4980_v53 = vadd.f32 %v4979_v38, %v4978_v21  ;;  %v4333_v21 = vunpack.c.l.b16 %v4267_v58  ;;  %v3849_v50 = vadd.f32 %v3785_v6, %v3558_v63  ;;  %v4695_v58 = vrot.slane %v7220_v12, 5 }
 0x29d   : > { %v5081_v7 = vsel %vm1479_vm12, %v5041_v16, 0.0  ;;  %v4506_v54 = vadd.f32 %v4441_v3, %v3848_v17  ;;  %v4294_v17 = vrot.slane %v4292_v0, 4  ;;  %v4694_v3 = vrot.slane %v4692_v11, 4 }
 0x29e   : > { %v5082_v55 = vadd.f32 %v5081_v7, %v5080_v34  ;;  %v4351_v40 = vpack.c.b16 %v4334_v43, %v4333_v21  ;;  %v3559_v16 = vadd.f32 %v7224_v26, %v6709_v10  ;;  %v4286_v0 = vrot.slane %v4285_v24, 4 }
 0x29f   : > { %5622 = vmatmul.msk.bf16.gmra.mxu2 %vm1479_vm12, %v5740_v14  ;;  %v4295_v6 = vor.u32 %v4294_v17, %v4290_v23  ;;  %v4696_v15 = vsel %vm6336_vm15, %v4694_v3, %v4695_v58  ;;  %v3560_v47 = vadd.f32 %v7242_v57, %v6724_v35  ;;  %v5661_v35 = vrot.slane %v4543_v1, 9 }
 0x2a0   : > { %v4843_v33 = vpop.f32.mrf.mxu0  ;;  %v4736_v63 = vunpack.c.l.b16 %v4696_v15  ;;  %v4291_v43 = vsel %vm6009_vm11, %v4286_v0, %v4290_v23  ;;  %v4701_v57 = vrot.slane %v4699_v27, 4  ;;  %v4702_v24 = vrot.slane %v7267_v46, 5 }
 0x2a1   : > { %v4908_v34 = vadd.f32 %v4843_v33, %v4506_v54  ;;  %v4296_v7 = vrot.slane %v4295_v6, 4  ;;  %v4300_v54 = vrot.slane %v4298_v8, 5  ;;  %v4335_v17 = vunpack.c.l.b16 %v4291_v43 }
 0x2a2   : > { %v3788_v32 = vpop.f32.mrf.mxu2 }
 0x2a3   : > { %v7265_v14 = vpop.f32.mrf.mxu1  ;;  %5681 = vmatmul.msk.bf16.gmra.mxu0 %vm1479_vm12, %v4752_v28  ;;  %4940 = vst.msk [vmem:[%s7040_s14 + $0x50] sm:$0xff] %vm1479_vm12, %v4908_v34  ;;  %v4981_v18 = vsel %vm1479_vm12, %v4908_v34, 0.0  ;;  %v5042_v60 = vmul.f32 %v4908_v34, %v4908_v34  ;;  %v3850_v5 = vadd.f32 %v3788_v32, %v3559_v16  ;;  %v4735_v28 = vunpack.c.l.b16 %v4693_v41 }
 0x2a4   : > { %v4443_v45 = vpop.f32.mrf.mxu3  ;;  %v4982_v37 = vadd.f32 %v4981_v18, %v4980_v53  ;;  %v4301_v30 = vsel %vm6009_vm11, %v4296_v7, %v4300_v54  ;;  %v4700_v16 = vsel %vm6336_vm15, %v5661_v35, %v4699_v27  ;;  %v4703_v41 = vsel %vm6336_vm15, %v4701_v57, %v4702_v24 }
 0x2a5   : > { %v5083_v4 = vsel %vm1479_vm12, %v5042_v60, 0.0  ;;  %v4507_v56 = vadd.f32 %v4443_v45, %v3849_v50  ;;  %v4753_v44 = vpack.c.b16 %v4736_v63, %v4735_v28  ;;  %v4336_v34 = vunpack.c.l.b16 %v4301_v30 }
 0x2a6   : > { %5537 = vmatmul.msk.bf16.gmra.mxu1 %vm1479_vm12, %v3403_v19  ;;  %v5084_v12 = vadd.f32 %v5083_v4, %v5082_v55 }
 0x2a7   : > { %v4352_v3 = vpack.c.b16 %v4336_v34, %v4335_v17 }
 0x2a8   : > { %v4845_v51 = vpop.f32.mrf.mxu0 }
 0x2a9   : > { %5644 = vmatmul.msk.bf16.gmra.mxu3 %vm1479_vm12, %v4351_v40  ;;  %v4909_v2 = vadd.f32 %v4845_v51, %v4507_v56  ;;  %v3561_v56 = vadd.f32 %v7265_v14, %v6739_v42  ;;  %v4737_v42 = vunpack.c.l.b16 %v4700_v16  ;;  %v4738_v14 = vunpack.c.l.b16 %v4703_v41 }
 0x2aa   : > { %v3790_v38 = vpop.f32.mrf.mxu2 }
 0x2ab   : > { %v7282_v53 = vpop.f32.mrf.mxu1  ;;  %4941 = vst.msk [vmem:[%s7040_s14 + $0x58] sm:$0xff] %vm1479_vm12, %v4909_v2  ;;  %v4983_v10 = vsel %vm1479_vm12, %v4909_v2, 0.0  ;;  %v5043_v26 = vmul.f32 %v4909_v2, %v4909_v2  ;;  %v3851_v58 = vadd.f32 %v3790_v38, %v3560_v47 }
 0x2ac   : > { %v4446_v55 = vpop.f32.mrf.mxu3  ;;  %v4984_v21 = vadd.f32 %v4983_v10, %v4982_v37  ;;  %v4754_v10 = vpack.c.b16 %v4738_v14, %v4737_v42  ;;  %v3562_v49 = vadd.f32 %v7282_v53, %v6753_v25 }
 0x2ad   : > { %v5085_v11 = vsel %vm1479_vm12, %v5043_v26, 0.0  ;;  %v4508_v32 = vadd.f32 %v4446_v55, %v3850_v5 }
 0x2ae   : > { %v5086_v19 = vadd.f32 %v5085_v11, %v5084_v12 }
 0x2af   : > { %5623 = vmatmul.msk.bf16.gmra.mxu2 %vm1479_vm12, %v5741_v59 }
 0x2b0   : > { %v4848_v45 = vpop.f32.mrf.mxu0 }
 0x2b1   : > { %v4910_v23 = vadd.f32 %v4848_v45, %v4508_v32 }
 0x2b2   : > { %v3793_v33 = vpop.f32.mrf.mxu2 }
 0x2b3   : > { %v3507_v50 = vpop.f32.mrf.mxu1  ;;  %5682 = vmatmul.msk.bf16.gmra.mxu0 %vm1479_vm12, %v4753_v44  ;;  %4942 = vst.msk [vmem:[%s7040_s14 + $0x60] sm:$0xff] %vm1479_vm12, %v4910_v23  ;;  %v4985_v60 = vsel %vm1479_vm12, %v4910_v23, 0.0  ;;  %v5044_v40 = vmul.f32 %v4910_v23, %v4910_v23  ;;  %v3852_v46 = vadd.f32 %v3793_v33, %v3561_v56 }
 0x2b4   : > { %v4448_v18 = vpop.f32.mrf.mxu3  ;;  %v4986_v37 = vadd.f32 %v4985_v60, %v4984_v21  ;;  %v3563_v25 = vadd.f32 %v3507_v50, %v6771_v13 }
 0x2b5   : > { %v5087_v62 = vsel %vm1479_vm12, %v5044_v40, 0.0  ;;  %v4509_v6 = vadd.f32 %v4448_v18, %v3851_v58 }
 0x2b6   : > { %v5088_v8 = vadd.f32 %v5087_v62, %v5086_v19 }
 0x2b8   : > { %v4850_v38 = vpop.f32.mrf.mxu0 }
 0x2b9   : > { %5645 = vmatmul.msk.bf16.gmra.mxu3 %vm1479_vm12, %v4352_v3  ;;  %v4911_v59 = vadd.f32 %v4850_v38, %v4509_v6 }
 0x2ba   : > { %v3795_v4 = vpop.f32.mrf.mxu2 }
 0x2bb   : > { %v3509_v12 = vpop.f32.mrf.mxu1  ;;  %4943 = vst.msk [vmem:[%s7040_s14 + $0x68] sm:$0xff] %vm1479_vm12, %v4911_v59  ;;  %v4987_v15 = vsel %vm1479_vm12, %v4911_v59, 0.0  ;;  %v5045_v0 = vmul.f32 %v4911_v59, %v4911_v59  ;;  %v3853_v21 = vadd.f32 %v3795_v4, %v3562_v49 }
 0x2bc   : > { %v4451_v51 = vpop.f32.mrf.mxu3  ;;  %v4988_v7 = vadd.f32 %v4987_v15, %v4986_v37  ;;  %v3564_v37 = vadd.f32 %v3509_v12, %v6786_v48 }
 0x2bd   : > { %v5089_v54 = vsel %vm1479_vm12, %v5045_v0, 0.0  ;;  %v4510_v2 = vadd.f32 %v4451_v51, %v3852_v46 }
 0x2be   : > { %v5090_v5 = vadd.f32 %v5089_v54, %v5088_v8 }
 0x2c0   : > { %v4853_v28 = vpop.f32.mrf.mxu0 }
 0x2c1   : > { %v4912_v63 = vadd.f32 %v4853_v28, %v4510_v2 }
 0x2c2   : > { %v3798_v55 = vpop.f32.mrf.mxu2 }
 0x2c3   : > { %v3512_v26 = vpop.f32.mrf.mxu1  ;;  %5683 = vmatmul.msk.bf16.gmra.mxu0 %vm1479_vm12, %v4754_v10  ;;  %4944 = vst.msk [vmem:[%s7040_s14 + $0x70] sm:$0xff] %vm1479_vm12, %v4912_v63  ;;  %v4989_v30 = vsel %vm1479_vm12, %v4912_v63, 0.0  ;;  %v5046_v11 = vmul.f32 %v4912_v63, %v4912_v63  ;;  %v3854_v45 = vadd.f32 %v3798_v55, %v3563_v25 }
 0x2c4   : > { %v4453_v43 = vpop.f32.mrf.mxu3  ;;  %v4990_v32 = vadd.f32 %v4989_v30, %v4988_v7  ;;  %v3565_v41 = vadd.f32 %v3512_v26, %v6801_v39 }
 0x2c5   : > { %v5091_v19 = vsel %vm1479_vm12, %v5046_v11, 0.0  ;;  %v4511_v33 = vadd.f32 %v4453_v43, %v3853_v21 }
 0x2c6   : > { %v5092_v44 = vadd.f32 %v5091_v19, %v5090_v5 }
 0x2c8   : > { %v4855_v17 = vpop.f32.mrf.mxu0 }
 0x2c9   : > { %v4913_v34 = vadd.f32 %v4855_v17, %v4511_v33 }
 0x2ca   : > { %v3800_v47 = vpop.f32.mrf.mxu2 }
 0x2cb   : > { %v3514_v53 = vpop.f32.mrf.mxu1  ;;  %4945 = vst.msk [vmem:[%s7040_s14 + $0x78] sm:$0xff] %vm1479_vm12, %v4913_v34  ;;  %v4991_v23 = vsel %vm1479_vm12, %v4913_v34, 0.0  ;;  %v5047_v58 = vmul.f32 %v4913_v34, %v4913_v34  ;;  %v3855_v57 = vadd.f32 %v3800_v47, %v3564_v37 }
 0x2cc   : > { %v4456_v27 = vpop.f32.mrf.mxu3  ;;  %v4992_v1 = vadd.f32 %v4991_v23, %v4990_v32  ;;  %v3566_v5 = vadd.f32 %v3514_v53, %v6815_v31 }
 0x2cd   : > { %v5093_v18 = vsel %vm1479_vm12, %v5047_v58, 0.0  ;;  %v4512_v60 = vadd.f32 %v4456_v27, %v3854_v45 }
 0x2ce   : > { %v5094_v40 = vadd.f32 %v5093_v18, %v5092_v44 }
 0x2d0   : > { %v4858_v50 = vpop.f32.mrf.mxu0 }
 0x2d1   : > { %v4914_v35 = vadd.f32 %v4858_v50, %v4512_v60 }
 0x2d2   : > { %v3803_v3 = vpop.f32.mrf.mxu2 }
 0x2d3   : > { %v3517_v13 = vpop.f32.mrf.mxu1  ;;  %4946 = vst.msk [vmem:[%s7040_s14 + $0x80] sm:$0xff] %vm1479_vm12, %v4914_v35  ;;  %v4993_v62 = vsel %vm1479_vm12, %v4914_v35, 0.0  ;;  %v5048_v6 = vmul.f32 %v4914_v35, %v4914_v35  ;;  %v3856_v46 = vadd.f32 %v3803_v3, %v3565_v41 }
 0x2d4   : > { %v4458_v24 = vpop.f32.mrf.mxu3  ;;  %v4994_v8 = vadd.f32 %v4993_v62, %v4992_v1  ;;  %v3567_v19 = vadd.f32 %v3517_v13, %v6833_v22 }
 0x2d5   : > { %v5095_v4 = vsel %vm1479_vm12, %v5048_v6, 0.0  ;;  %v4513_v56 = vadd.f32 %v4458_v24, %v3855_v57 }
 0x2d6   : > { %v5096_v38 = vadd.f32 %v5095_v4, %v5094_v40 }
 0x2d8   : > { %v4860_v48 = vpop.f32.mrf.mxu0 }
 0x2d9   : > { %v4915_v59 = vadd.f32 %v4860_v48, %v4513_v56 }
 0x2da   : > { %v3805_v16 = vpop.f32.mrf.mxu2 }
 0x2db   : > { %v3519_v12 = vpop.f32.mrf.mxu1  ;;  %4947 = vst.msk [vmem:[%s7040_s14 + $0x88] sm:$0xff] %vm1479_vm12, %v4915_v59  ;;  %v4995_v15 = vsel %vm1479_vm12, %v4915_v59, 0.0  ;;  %v5049_v0 = vmul.f32 %v4915_v59, %v4915_v59  ;;  %v3857_v10 = vadd.f32 %v3805_v16, %v3566_v5 }
 0x2dc   : > { %v4461_v51 = vpop.f32.mrf.mxu3  ;;  %v4996_v42 = vadd.f32 %v4995_v15, %v4994_v8  ;;  %v3568_v1 = vadd.f32 %v3519_v12, %v6848_v52 }
 0x2dd   : > { %v5097_v14 = vsel %vm1479_vm12, %v5049_v0, 0.0  ;;  %v4514_v7 = vadd.f32 %v4461_v51, %v3856_v46 }
 0x2de   : > { %v5098_v54 = vadd.f32 %v5097_v14, %v5096_v38 }
 0x2e0   : > { %v4863_v39 = vpop.f32.mrf.mxu0 }
 0x2e1   : > { %v4916_v55 = vadd.f32 %v4863_v39, %v4514_v7 }
 0x2e2   : > { %v3808_v2 = vpop.f32.mrf.mxu2 }
 0x2e3   : > { %v3522_v26 = vpop.f32.mrf.mxu1  ;;  %4948 = vst.msk [vmem:[%s7040_s14 + $0x90] sm:$0xff] %vm1479_vm12, %v4916_v55  ;;  %v4997_v28 = vsel %vm1479_vm12, %v4916_v55, 0.0  ;;  %v5050_v63 = vmul.f32 %v4916_v55, %v4916_v55  ;;  %v3858_v44 = vadd.f32 %v3808_v2, %v3567_v19 }
 0x2e4   : > { %v4463_v49 = vpop.f32.mrf.mxu3  ;;  %v4998_v21 = vadd.f32 %v4997_v28, %v4996_v42  ;;  %v3569_v6 = vadd.f32 %v3522_v26, %v6863_v61 }
 0x2e5   : > { %v5099_v43 = vsel %vm1479_vm12, %v5050_v63, 0.0  ;;  %v4515_v30 = vadd.f32 %v4463_v49, %v3857_v10 }
 0x2e6   : > { %v5100_v11 = vadd.f32 %v5099_v43, %v5098_v54 }
 0x2e8   : > { %v4865_v31 = vpop.f32.mrf.mxu0 }
 0x2e9   : > { %v4917_v33 = vadd.f32 %v4865_v31, %v4515_v30 }
 0x2ea   : > { %v3810_v32 = vpop.f32.mrf.mxu2 }
 0x2eb   : > { %4949 = vst.msk [vmem:[%s7040_s14 + $0x98] sm:$0xff] %vm1479_vm12, %v4917_v33  ;;  %v4999_v25 = vsel %vm1479_vm12, %v4917_v33, 0.0  ;;  %v5051_v53 = vmul.f32 %v4917_v33, %v4917_v33  ;;  %v3524_v34 = vpop.f32.mrf.mxu1  ;;  %v3859_v60 = vadd.f32 %v3810_v32, %v3568_v1 }
 0x2ec   : > { %v4466_v47 = vpop.f32.mrf.mxu3  ;;  %v5000_v17 = vadd.f32 %v4999_v25, %v4998_v21  ;;  %v3570_v51 = vadd.f32 %v3524_v34, %v6877_v29 }
 0x2ed   : > { %v5101_v45 = vsel %vm1479_vm12, %v5051_v53, 0.0  ;;  %v4516_v27 = vadd.f32 %v4466_v47, %v3858_v44 }
 0x2ee   : > { %v5102_v23 = vadd.f32 %v5101_v45, %v5100_v11 }
 0x2f0   : > { %v4868_v22 = vpop.f32.mrf.mxu0 }
 0x2f1   : > { %v4918_v18 = vadd.f32 %v4868_v22, %v4516_v27 }
 0x2f2   : > { %v3813_v58 = vpop.f32.mrf.mxu2 }
 0x2f3   : > { %4950 = vst.msk [vmem:[%s7040_s14 + $0xa0] sm:$0xff] %vm1479_vm12, %v4918_v18  ;;  %v5001_v3 = vsel %vm1479_vm12, %v4918_v18, 0.0  ;;  %v5052_v37 = vmul.f32 %v4918_v18, %v4918_v18  ;;  %v3527_v62 = vpop.f32.mrf.mxu1  ;;  %v3860_v4 = vadd.f32 %v3813_v58, %v3569_v6  ;;  %v7453_v6 = vld [vmem:[#allocation3_spill] sm:$0xff] }
 0x2f4   : > { %v4468_v40 = vpop.f32.mrf.mxu3  ;;  %v5002_v13 = vadd.f32 %v5001_v3, %v5000_v17  ;;  %v3571_v49 = vadd.f32 %v3527_v62, %v6895_v9 }
 0x2f5   : > { %v5103_v50 = vsel %vm1479_vm12, %v5052_v37, 0.0  ;;  %v4517_v35 = vadd.f32 %v4468_v40, %v3859_v60 }
 0x2f6   : > { %v5104_v57 = vadd.f32 %v5103_v50, %v5102_v23 }
 0x2f8   : > { %v4870_v52 = vpop.f32.mrf.mxu0 }
 0x2f9   : > { %v4919_v8 = vadd.f32 %v4870_v52, %v4517_v35 }
 0x2fa   : > { %v3815_v24 = vpop.f32.mrf.mxu2 }
 0x2fb   : > { %4951 = vst.msk [vmem:[%s7040_s14 + $0xa8] sm:$0xff] %vm1479_vm12, %v4919_v8  ;;  %v5003_v38 = vsel %vm1479_vm12, %v4919_v8, 0.0  ;;  %v5053_v16 = vmul.f32 %v4919_v8, %v4919_v8  ;;  %v3529_v61 = vpop.f32.mrf.mxu1  ;;  %v3861_v42 = vadd.f32 %v3815_v24, %v3570_v51  ;;  %v7454_v51 = vld [vmem:[#allocation4_spill] sm:$0xff] }
 0x2fc   : > { %v4471_v56 = vpop.f32.mrf.mxu3  ;;  %v5004_v41 = vadd.f32 %v5003_v38, %v5002_v13  ;;  %v3572_v44 = vadd.f32 %v3529_v61, %v6910_v20 }
 0x2fd   : > { %v5105_v48 = vsel %vm1479_vm12, %v5053_v16, 0.0  ;;  %v4518_v12 = vadd.f32 %v4471_v56, %v3860_v4 }
 0x2fe   : > { %v5106_v59 = vadd.f32 %v5105_v48, %v5104_v57 }
 0x300   : > { %v4873_v15 = vpop.f32.mrf.mxu0 }
 0x301   : > { %v4920_v0 = vadd.f32 %v4873_v15, %v4518_v12 }
 0x302   : > { %v3818_v46 = vpop.f32.mrf.mxu2 }
 0x303   : > { %4952 = vst.msk [vmem:[%s7040_s14 + $0xb0] sm:$0xff] %vm1479_vm12, %v4920_v0  ;;  %v5005_v7 = vsel %vm1479_vm12, %v4920_v0, 0.0  ;;  %v5054_v54 = vmul.f32 %v4920_v0, %v4920_v0  ;;  %v3862_v28 = vadd.f32 %v3818_v46, %v3571_v49  ;;  %v3532_v21 = vpop.f32.mrf.mxu1 }
 0x304   : > { %v4473_v14 = vpop.f32.mrf.mxu3  ;;  %v5006_v2 = vadd.f32 %v5005_v7, %v5004_v41  ;;  %v3573_v18 = vadd.f32 %v3532_v21, %v6925_v36 }
 0x305   : > { %v5107_v5 = vsel %vm1479_vm12, %v5054_v54, 0.0  ;;  %v4519_v39 = vadd.f32 %v4473_v14, %v3861_v42 }
 0x306   : > { %v5108_v55 = vadd.f32 %v5107_v5, %v5106_v59 }
 0x308   : > { %v4875_v29 = vpop.f32.mrf.mxu0 }
 0x309   : > { %v4921_v26 = vadd.f32 %v4875_v29, %v4519_v39  ;;  %v7455_v29 = vld [vmem:[#allocation5_spill] sm:$0xff] }
 0x30a   : > { %v3820_v10 = vpop.f32.mrf.mxu2 }
 0x30b   : > { %4953 = vst.msk [vmem:[%s7040_s14 + $0xb8] sm:$0xff] %vm1479_vm12, %v4921_v26  ;;  %v5007_v43 = vsel %vm1479_vm12, %v4921_v26, 0.0  ;;  %v5055_v30 = vmul.f32 %v4921_v26, %v4921_v26  ;;  %v3863_v25 = vadd.f32 %v3820_v10, %v3572_v44  ;;  %v3534_v27 = vpop.f32.mrf.mxu1 }
 0x30c   : > { %v4476_v63 = vpop.f32.mrf.mxu3  ;;  %v5008_v11 = vadd.f32 %v5007_v43, %v5006_v2  ;;  %v3574_v52 = vadd.f32 %v3534_v27, %v7453_v6 }
 0x30d   : > { %v5109_v32 = vsel %vm1479_vm12, %v5055_v30, 0.0  ;;  %v4520_v19 = vadd.f32 %v4476_v63, %v3862_v28 }
 0x30e   : > { %v5110_v31 = vadd.f32 %v5109_v32, %v5108_v55 }
 0x310   : > { %v4878_v9 = vpop.f32.mrf.mxu0 }
 0x311   : > { %v4922_v47 = vadd.f32 %v4878_v9, %v4520_v19 }
 0x312   : > { %v3823_v33 = vpop.f32.mrf.mxu2 }
 0x313   : > { %4954 = vst.msk [vmem:[%s7040_s14 + $0xc0] sm:$0xff] %vm1479_vm12, %v4922_v47  ;;  %v5009_v17 = vsel %vm1479_vm12, %v4922_v47, 0.0  ;;  %v5056_v34 = vmul.f32 %v4922_v47, %v4922_v47  ;;  %v3864_v40 = vadd.f32 %v3823_v33, %v3573_v18  ;;  %v3537_v62 = vpop.f32.mrf.mxu1  ;;  %v7456_v47 = vld [vmem:[#allocation7_spill] sm:$0xff] }
 0x314   : > { %v4478_v53 = vpop.f32.mrf.mxu3  ;;  %v5010_v45 = vadd.f32 %v5009_v17, %v5008_v11  ;;  %v3575_v15 = vadd.f32 %v3537_v62, %v7454_v51 }
 0x315   : > { %v5111_v23 = vsel %vm1479_vm12, %v5056_v34, 0.0  ;;  %v4521_v58 = vadd.f32 %v4478_v53, %v3863_v25 }
 0x316   : > { %v5112_v1 = vadd.f32 %v5111_v23, %v5110_v31 }
 0x318   : > { %v4880_v20 = vpop.f32.mrf.mxu0 }
 0x319   : > { %v4923_v60 = vadd.f32 %v4880_v20, %v4521_v58 }
 0x31a   : > { %v3825_v22 = vpop.f32.mrf.mxu2 }
 0x31b   : > { %4955 = vst.msk [vmem:[%s7040_s14 + $0xc8] sm:$0xff] %vm1479_vm12, %v4923_v60  ;;  %v5011_v37 = vsel %vm1479_vm12, %v4923_v60, 0.0  ;;  %v5057_v13 = vmul.f32 %v4923_v60, %v4923_v60  ;;  %v3865_v56 = vadd.f32 %v3825_v22, %v3574_v52  ;;  %v3539_v0 = vpop.f32.mrf.mxu1 }
 0x31c   : > { %v4481_v3 = vpop.f32.mrf.mxu3  ;;  %v5012_v50 = vadd.f32 %v5011_v37, %v5010_v45  ;;  %v3576_v26 = vadd.f32 %v3539_v0, %v7455_v29 }
 0x31d   : > { %v5113_v35 = vsel %vm1479_vm12, %v5057_v13, 0.0  ;;  %v4522_v57 = vadd.f32 %v4481_v3, %v3864_v40  ;;  %v7457_v40 = vld [vmem:[#allocation8_spill] sm:$0xff] }
 0x31e   : > { %v5114_v24 = vadd.f32 %v5113_v35, %v5112_v1 }
 0x320   : > { %v4883_v8 = vpop.f32.mrf.mxu0 }
 0x321   : > { %v4924_v4 = vadd.f32 %v4883_v8, %v4522_v57 }
 0x322   : > { %v3828_v36 = vpop.f32.mrf.mxu2 }
 0x323   : > { %4956 = vst.msk [vmem:[%s7040_s14 + $0xd0] sm:$0xff] %vm1479_vm12, %v4924_v4  ;;  %v5013_v16 = vsel %vm1479_vm12, %v4924_v4, 0.0  ;;  %v5058_v41 = vmul.f32 %v4924_v4, %v4924_v4  ;;  %v3866_v14 = vadd.f32 %v3828_v36, %v3575_v15  ;;  %v3542_v30 = vpop.f32.mrf.mxu1 }
 0x324   : > { %v4483_v38 = vpop.f32.mrf.mxu3  ;;  %v5014_v48 = vadd.f32 %v5013_v16, %v5012_v50  ;;  %v3577_v25 = vadd.f32 %v3542_v30, %v7456_v47 }
 0x325   : > { %v5115_v12 = vsel %vm1479_vm12, %v5058_v41, 0.0  ;;  %v4523_v59 = vadd.f32 %v4483_v38, %v3865_v56 }
 0x326   : > { %v5116_v46 = vadd.f32 %v5115_v12, %v5114_v24 }
 0x328   : > { %v4885_v61 = vpop.f32.mrf.mxu0 }
 0x329   : > { %v4925_v42 = vadd.f32 %v4885_v61, %v4523_v59 }
 0x32a   : > { %v3830_v54 = vpop.f32.mrf.mxu2 }
 0x32b   : > { %4957 = vst.msk [vmem:[%s7040_s14 + $0xd8] sm:$0xff] %vm1479_vm12, %v4925_v42  ;;  %v5015_v2 = vsel %vm1479_vm12, %v4925_v42, 0.0  ;;  %v5059_v5 = vmul.f32 %v4925_v42, %v4925_v42  ;;  %v3867_v21 = vadd.f32 %v3830_v54, %v3576_v26  ;;  %v3544_v1 = vpop.f32.mrf.mxu1 }
 0x32c   : > { %v4486_v7 = vpop.f32.mrf.mxu3  ;;  %v5016_v39 = vadd.f32 %v5015_v2, %v5014_v48  ;;  %v3578_v3 = vadd.f32 %v3544_v1, %v7457_v40 }
 0x32d   : > { %v5117_v55 = vsel %vm1479_vm12, %v5059_v5, 0.0  ;;  %v4524_v10 = vadd.f32 %v4486_v7, %v3866_v14 }
 0x32e   : > { %v5118_v49 = vadd.f32 %v5117_v55, %v5116_v46 }
 0x330   : > { %v4888_v28 = vpop.f32.mrf.mxu0 }
 0x331   : > { %v4926_v63 = vadd.f32 %v4888_v28, %v4524_v10 }
 0x332   : > { %v3833_v31 = vpop.f32.mrf.mxu2 }
 0x333   : > { %4958 = vst.msk [vmem:[%s7040_s14 + $0xe0] sm:$0xff] %vm1479_vm12, %v4926_v63  ;;  %v5017_v11 = vsel %vm1479_vm12, %v4926_v63, 0.0  ;;  %v5060_v32 = vmul.f32 %v4926_v63, %v4926_v63  ;;  %v3868_v34 = vadd.f32 %v3833_v31, %v3577_v25 }
 0x334   : > { %v4488_v43 = vpop.f32.mrf.mxu3  ;;  %v5018_v19 = vadd.f32 %v5017_v11, %v5016_v39 }
 0x335   : > { %v5119_v33 = vsel %vm1479_vm12, %v5060_v32, 0.0  ;;  %v4525_v44 = vadd.f32 %v4488_v43, %v3867_v21 }
 0x336   : > { %v5120_v9 = vadd.f32 %v5119_v33, %v5118_v49 }
 0x338   : > { %v4890_v53 = vpop.f32.mrf.mxu0 }
 0x339   : > { %v4927_v17 = vadd.f32 %v4890_v53, %v4525_v44 }
 0x33a   : > { %v3835_v60 = vpop.f32.mrf.mxu2 }
 0x33b   : > { %4959 = vst.msk [vmem:[%s7040_s14 + $0xe8] sm:$0xff] %vm1479_vm12, %v4927_v17  ;;  %v5019_v27 = vsel %vm1479_vm12, %v4927_v17, 0.0  ;;  %v5061_v23 = vmul.f32 %v4927_v17, %v4927_v17  ;;  %v3869_v50 = vadd.f32 %v3835_v60, %v3578_v3 }
 0x33c   : > { %v4491_v45 = vpop.f32.mrf.mxu3  ;;  %v5020_v58 = vadd.f32 %v5019_v27, %v5018_v19 }
 0x33d   : > { %v5121_v22 = vsel %vm1479_vm12, %v5061_v23, 0.0  ;;  %v4526_v18 = vadd.f32 %v4491_v45, %v3868_v34 }
 0x33e   : > { %v5122_v20 = vadd.f32 %v5121_v22, %v5120_v9 }
 0x340   : > { %v4893_v37 = vpop.f32.mrf.mxu0 }
 0x341   : > { %v4928_v13 = vadd.f32 %v4893_v37, %v4526_v18 }
 0x343   : > { %4960 = vst.msk [vmem:[%s7040_s14 + $0xf0] sm:$0xff] %vm1479_vm12, %v4928_v13  ;;  %v5021_v35 = vsel %vm1479_vm12, %v4928_v13, 0.0  ;;  %v5062_v57 = vmul.f32 %v4928_v13, %v4928_v13 }
 0x344   : > { %v5022_v24 = vadd.f32 %v5021_v35, %v5020_v58  ;;  %v4493_v62 = vpop.f32.mrf.mxu3 }
 0x345   : > { %v5123_v6 = vsel %vm1479_vm12, %v5062_v57, 0.0  ;;  %v4527_v52 = vadd.f32 %v4493_v62, %v3869_v50 }
 0x346   : > { %v5124_v8 = vadd.f32 %v5123_v6, %v5122_v20 }
 0x348   : > { %v4895_v36 = vpop.f32.mrf.mxu0 }
 0x349   : > { %v4929_v4 = vadd.f32 %v4895_v36, %v4527_v52 }
 0x34b   : > { %4961 = vst.msk [vmem:[%s7040_s14 + $0xf8] sm:$0xff] %vm1479_vm12, %v4929_v4  ;;  %v5023_v56 = vsel %vm1479_vm12, %v4929_v4, 0.0  ;;  %v5063_v38 = vmul.f32 %v4929_v4, %v4929_v4 }
 0x34c   : > { %v5024_v16 = vadd.f32 %v5023_v56, %v5022_v24 }
 0x34d   : > { %v5125_v41 = vsel %vm1479_vm12, %v5063_v38, 0.0 }
 0x34e   : > { %v5025_v48 = vrot.slane %v5024_v16, 4  ;;  %v5126_v12 = vadd.f32 %v5125_v41, %v5124_v8 }
 0x350   : > { %v5026_v59 = vadd.f32 %v5025_v48, %v5024_v16  ;;  %v5127_v46 = vrot.slane %v5126_v12, 4 }
 0x352   : > { %v5027_v51 = vrot.slane %v5026_v59, 2  ;;  %v5128_v15 = vadd.f32 %v5127_v46, %v5126_v12 }
 0x354   : > { %v5028_v61 = vadd.f32 %v5027_v51, %v5026_v59  ;;  %v5129_v0 = vrot.slane %v5128_v15, 2 }
 0x356   : > { %v5029_v42 = vrot.slane %v5028_v61, 1  ;;  %v5130_v14 = vadd.f32 %v5129_v0, %v5128_v15 }
 0x358   : > { %v5030_v7 = vadd.f32 %v5029_v42, %v5028_v61  ;;  %v5131_v54 = vrot.slane %v5130_v14, 1 }
 0x35a   : > { %5031 = vst.msk [vmem:[%s265_s16] sm:$0x1] %vm409_vm0, %v5030_v7  ;;  %v5132_v2 = vadd.f32 %v5131_v54, %v5130_v14 }
 0x35c   : > { %5133 = vst.msk [vmem:[%s268_s19] sm:$0x1] %vm409_vm0, %v5132_v2 }
 0x35d PF: > { %s17_s21 = sadd.s32 1, %s5825_s21  }
 0x35e   : > { %p14_p4 = scmp.ge.s32.totalorder %s17_s21, 4  }
 0x360   :  { %16 = sbr.rel (!%p14_p4) target bundleno = 1 (0x1), region = 101 }

// kernel: double_conv.3
= control target key start
LH: loop header
LB: loop body
LE: loop exit
PB: predicated region body
PF: predicated region fallthrough
CT: control target
= control target key end

     0   :  { %s5689_s15 = smov 0   ;;  %s7221_s0 = inlined_call_operand.vmem [shape: f32[2,16,16,16], index: 0, kind: input, shape index: {}]   ;;  %s7222_s1 = inlined_call_operand.vmem [shape: bf16[9,16,16], index: 1, kind: input, shape index: {}]   ;;  %s7223_s2 = inlined_call_operand.vmem [shape: f32[2,16,16,16], index: 2, kind: output, shape index: {0}]   ;;  %s7224_s3 = inlined_call_operand.vmem [shape: f32[2,1,16], index: 3, kind: output, shape index: {1}]   ;;  %s7225_s4 = inlined_call_operand.vmem [shape: f32[2,1,16], index: 4, kind: output, shape index: {2}]  }
   0x1 LB: > { %s5081_s16 = sadd.s32 4294967295, %s5661_s15   ;;  %p5085_p0 = scmp.ge.s32.totalorder %s5661_s15, 1  ;;  %s5661_s15 = sphi %s5689_s15, %s15_s15  }
   0x2   : > { %p167_p1 = scmp.lt.s32.totalorder %s5661_s15, 3 }
   0x4   : > { %p168_p2 = pnand %p5085_p0, %p167_p1 }
   0x6   : > { %171 = sbr.rel (%p168_p2) target bundleno = 840 (0x348), region = 28 }
   0xb   : > { %v5547_v0 = vld [vmem:[%s7222_s1 + $0x8] sm:$0xff]  ;;  %p199_p3 = scmp.lt.s32.totalorder %s5081_s16, 1  ;;  %vm251_vm0 = vcmask 122880   ;;  %vm259_vm1 = vsmask.f32 256  ;;  %vm248_vm5 = vcmask 125952  }
   0xc   : > { %vm5702_vm2 = vmand %vm251_vm0, %vm259_vm1  ;;  %v270_v2 = vld [vmem:[#allocation2 + $0x30] sm:$0x1]  ;;  %vm309_vm3 = vsmask.f32 7938  ;;  %v320_v3 = vld [vmem:[#allocation2 + $0x38] sm:$0x1]  ;;  %5587 = vmatpush.bf16.msra.mxu1 %v5547_v0  ;;  %5588 = vmatpush.bf16.msra.mxu2 %v5547_v0 }
   0xd   : > { %s7255_s16 = smov (!%p199_p3, %s5081_s16), 1  ;;  %v271_v4 = vsel %vm5702_vm2, 0, %v270_v2  ;;  %vm5712_vm4 = vmand %vm251_vm0, %vm309_vm3  ;;  %5589 = vmatpush.bf16.msra.mxu3 %v5547_v0  ;;  %1377 = vmatpush.bf16.msra.mxu0 %v5547_v0  ;;  %v282_v7 = vld [vmem:[#allocation2 + $0x60] sm:$0x1]  ;;  %v332_v9 = vld [vmem:[#allocation2 + $0x68] sm:$0x1] }
   0xe   : > { %272 = vst [vmem:[#allocation2 + $0x30] sm:$0x1] %v271_v4  ;;  %v321_v6 = vsel %vm5712_vm4, 0, %v320_v3  ;;  %s5528_s19 = sshll.u32 %s7255_s16, 8  ;;  %v283_v8 = vsel %vm5702_vm2, 0, %v282_v7  ;;  %v333_v14 = vsel %vm5712_vm4, 0, %v332_v9  ;;  %vm5752_vm8 = vmand %vm248_vm5, %vm309_vm3  ;;  %s211_s20 = scalar_lea.vmem %s7224_s3, %s7255_s16 }
   0xf   : > { %322 = vst [vmem:[#allocation2 + $0x38] sm:$0x1] %v321_v6  ;;  %s5724_s22 = scalar_lea.vmem %s7221_s0, %s5528_s19  ;;  %v294_v10 = vld [vmem:[#allocation2 + $0x90] sm:$0x1]  ;;  %vm391_vm6 = vsmask.f32 4368  ;;  %s6846_s17 = scalar_lea.vmem %s7223_s2, %s5528_s19 }
  0x10   : > { %v222_v11 = vld [vmem:[%s5724_s22 + $0x30] sm:$0xff]  ;;  %v223_v12 = vld [vmem:[%s5724_s22 + $0x38] sm:$0xff]  ;;  %284 = vst [vmem:[#allocation2 + $0x60] sm:$0x1] %v283_v8  ;;  %v295_v21 = vsel %vm5702_vm2, 0, %v294_v10  ;;  %v5663_v30 = vmov 0   ;;  %vm5744_vm7 = vmor %vm259_vm1, %vm391_vm6  ;;  %s214_s23 = scalar_lea.vmem %s7225_s4, %s7255_s16 }
  0x11   : > { %v230_v13 = vld [vmem:[%s5724_s22 + $0x70] sm:$0xff]  ;;  %v365_v15 = vpack.c.bf16 %v222_v11, %v222_v11  ;;  %v366_v16 = vpack.c.bf16 %v223_v12, %v223_v12  ;;  %v231_v17 = vld [vmem:[%s5724_s22 + $0x78] sm:$0xff]  ;;  %334 = vst [vmem:[#allocation2 + $0x68] sm:$0x1] %v333_v14  ;;  %v224_v62 = vld [vmem:[%s5724_s22 + $0x40] sm:$0xff]  ;;  %vm1321_vm11 = vcmask 130048  }
  0x12   : > { %v373_v18 = vpack.c.bf16 %v230_v13, %v230_v13  ;;  %v238_v19 = vld [vmem:[%s5724_s22 + $0xb0] sm:$0xff]  ;;  %v239_v20 = vld [vmem:[%s5724_s22 + $0xb8] sm:$0xff]  ;;  %v374_v22 = vpack.c.bf16 %v231_v17, %v231_v17  ;;  %296 = vst [vmem:[#allocation2 + $0x90] sm:$0x1] %v295_v21  ;;  %v5546_v14 = vld [vmem:[%s7222_s1] sm:$0xff]  ;;  %v5793_v21 = vpack.c.bf16 %v224_v62, %v224_v62  ;;  %vm1730_vm13 = vcmask 1042432  }
  0x13   : > { %v344_v23 = vld [vmem:[#allocation2 + $0x98] sm:$0x1]  ;;  %v381_v24 = vpack.c.bf16 %v238_v19, %v238_v19  ;;  %v5738_v25 = vpack.c.bf16 %v239_v20, %v239_v20  ;;  %v445_v26 = vshrl.u32 %v365_v15, 16  ;;  %v448_v27 = vshll.u32 %v365_v15, 16  ;;  %249 = vst.msk [vmem:[#allocation2] sm:$0xf] %vm248_vm5, %v5663_v30  ;;  %1600 = vmatpush.bf16.msrb.mxu1 %v5546_v14 }
  0x14   : > { %v453_v28 = vshrl.u32 %v366_v16, 16  ;;  %v456_v29 = vshll.u32 %v366_v16, 16  ;;  %v513_v32 = vshrl.u32 %v373_v18, 16  ;;  %v516_v33 = vshll.u32 %v373_v18, 16  ;;  %250 = vst.msk [vmem:[#allocation2 + $0x4] sm:$0xf] %vm248_vm5, %v5663_v30 }
  0x15   : > { %v736_v31 = vld [vmem:[#allocation2 + $0x30] sm:$0xf]  ;;  %v521_v34 = vshrl.u32 %v374_v22, 16  ;;  %v524_v35 = vshll.u32 %v374_v22, 16  ;;  %v447_v37 = vrot.slane %v445_v26, 7  ;;  %v345_v40 = vsel %vm5712_vm4, 0, %v344_v23 }
  0x16   : > { %v455_v38 = vrot.slane %v453_v28, 7  ;;  %v740_v39 = vld [vmem:[#allocation2 + $0x38] sm:$0x1]  ;;  %v581_v41 = vshrl.u32 %v381_v24, 16  ;;  %v515_v43 = vrot.slane %v513_v32, 7  ;;  %v584_v45 = vshll.u32 %v381_v24, 16 }
  0x17   : > { %v523_v44 = vrot.slane %v521_v34, 7  ;;  %346 = vst [vmem:[#allocation2 + $0x98] sm:$0x1] %v345_v40  ;;  %v589_v46 = vshrl.u32 %v5738_v25, 16  ;;  %v450_v47 = vor.u32 %v448_v27, %v447_v37  ;;  %v451_v48 = vrot.slane %v447_v37, 4  ;;  %v5548_v3 = vld [vmem:[%s7222_s1 + $0x10] sm:$0xff] }
  0x18   : > { %v458_v49 = vor.u32 %v456_v29, %v455_v38  ;;  %v460_v50 = vrot.slane %v455_v38, 4  ;;  %v764_v51 = vld [vmem:[#allocation2 + $0x60] sm:$0xf]  ;;  %v518_v52 = vor.u32 %v516_v33, %v515_v43  ;;  %v519_v53 = vrot.slane %v515_v43, 4  ;;  %v768_v56 = vld [vmem:[#allocation2 + $0x68] sm:$0x1]  ;;  %1957 = vmatpush.bf16.msrb.mxu2 %v5548_v3 }
  0x19   : > { %v526_v54 = vor.u32 %v524_v35, %v523_v44  ;;  %v528_v55 = vrot.slane %v523_v44, 4  ;;  %252 = vst.msk [vmem:[#allocation2 + $0x8] sm:$0x1] %vm251_vm0, %v5663_v30  ;;  %v737_v58 = vsel %vm5752_vm8, %v450_v47, %v736_v31  ;;  %v583_v60 = vrot.slane %v581_v41, 7  ;;  %v792_v61 = vld [vmem:[#allocation2 + $0x90] sm:$0xf] }
  0x1a   : > { %v459_v57 = vsel %vm5744_vm7, %v451_v48, %v458_v49  ;;  %v741_v59 = vsel %vm5702_vm2, %v460_v50, %v740_v39  ;;  %254 = vst.msk [vmem:[#allocation2 + $0xcc] sm:$0xf] %vm248_vm5, %v5663_v30  ;;  %v765_v0 = vsel %vm5752_vm8, %v518_v52, %v764_v51  ;;  %v591_v2 = vrot.slane %v589_v46, 7  ;;  %v827_v4 = vld [vmem:[#allocation2] sm:$0xf]  ;;  %v5565_v10 = vld [vmem:[%s7222_s1 + $0x18] sm:$0xff] }
  0x1b   : > { %738 = vst [vmem:[#allocation2 + $0x30] sm:$0xf] %v737_v58  ;;  %v527_v63 = vsel %vm5744_vm7, %v519_v53, %v526_v54  ;;  %v586_v6 = vor.u32 %v584_v45, %v583_v60  ;;  %v587_v7 = vrot.slane %v583_v60, 4  ;;  %v592_v8 = vshll.u32 %v5738_v25, 16  ;;  %v5566_v15 = vld [vmem:[%s7222_s1 + $0x20] sm:$0xff]  ;;  %v225_v16 = vld [vmem:[%s5724_s22 + $0x48] sm:$0xff]  ;;  %2247 = vmatpush.bf16.msrb.mxu3 %v5565_v10 }
  0x1c   : > { %739 = vst.msk [vmem:[#allocation2 + $0x34] sm:$0xf] %vm248_vm5, %v459_v57  ;;  %v881_v9 = vshrl.u32 %v827_v4, 16  ;;  %v769_v11 = vsel %vm5702_vm2, %v528_v55, %v768_v56  ;;  %v596_v12 = vrot.slane %v591_v2, 4  ;;  %v884_v13 = vshll.u32 %v827_v4, 16  ;;  %v232_v22 = vld [vmem:[%s5724_s22 + $0x80] sm:$0xff]  ;;  %2905 = vmatpush.bf16.msrb.mxu0 %v5566_v15 }
  0x1d   : > { %742 = vst [vmem:[#allocation2 + $0x38] sm:$0x1] %v741_v59  ;;  %v594_v17 = vor.u32 %v592_v8, %v591_v2  ;;  %v793_v18 = vsel %vm5752_vm8, %v586_v6, %v792_v61  ;;  %v828_v23 = vld [vmem:[#allocation2 + $0x4] sm:$0xf]  ;;  %v233_v25 = vld [vmem:[%s5724_s22 + $0x88] sm:$0xff]  ;;  %v5806_v35 = vpack.c.bf16 %v225_v16, %v225_v16  ;;  %v462_v37 = vshrl.u32 %v5793_v21, 16 }
  0x1e   : > { %766 = vst [vmem:[#allocation2 + $0x60] sm:$0xf] %v765_v0  ;;  %v796_v19 = vld [vmem:[#allocation2 + $0x98] sm:$0x1]  ;;  %v883_v20 = vrot.slane %v881_v9, 4  ;;  %v886_v24 = vrot.slane %v884_v13, 5  ;;  %v5809_v41 = vpack.c.bf16 %v232_v22, %v232_v22  ;;  %v5811_v43 = vpack.c.bf16 %v233_v25, %v233_v25 }
  0x1f   : > { %767 = vst.msk [vmem:[#allocation2 + $0x64] sm:$0xf] %vm248_vm5, %v527_v63  ;;  %v595_v26 = vsel %vm5744_vm7, %v587_v7, %v594_v17  ;;  %v797_v27 = vsel %vm5702_vm2, %v596_v12, %v796_v19  ;;  %v890_v29 = vshll.u32 %v828_v23, 16  ;;  %v894_v31 = vshrl.u32 %v828_v23, 16 }
  0x20   : > { %770 = vst [vmem:[#allocation2 + $0x68] sm:$0x1] %v769_v11  ;;  %v5802_v28 = vld [vmem:[#allocation2 + $0x8] sm:$0x1]  ;;  %vm877_vm9 = vsmask.f32 3328  ;;  %v887_v32 = vor.u32 %v886_v24, %v883_v20 }
  0x21   : > { %vm878_vm10 = vsmask.f32 7440  ;;  %794 = vst [vmem:[#allocation2 + $0x90] sm:$0xf] %v793_v18  ;;  %v900_v34 = vshll.u32 %v5802_v28, 16  ;;  %v5813_v47 = vrot.slane %v890_v29, 5 }
  0x22   : > { %v835_v33 = vld [vmem:[#allocation2 + $0x30] sm:$0xf]  ;;  %795 = vst.msk [vmem:[#allocation2 + $0x94] sm:$0xf] %vm248_vm5, %v595_v26  ;;  %v5815_v48 = vrot.slane %v894_v31, 4  ;;  %v888_v53 = vrot.slane %v887_v32, 4  ;;  %vm5819_vm12 = vmor %vm877_vm9, %vm878_vm10 }
  0x23   : > { %v836_v38 = vld [vmem:[#allocation2 + $0x34] sm:$0xf]  ;;  %v977_v39 = vshrl.u32 %v835_v33, 16  ;;  %v980_v40 = vshll.u32 %v835_v33, 16  ;;  %798 = vst [vmem:[#allocation2 + $0x98] sm:$0x1] %v797_v27 }
  0x24   : > { %v865_v44 = vld [vmem:[#allocation2 + $0x38] sm:$0x1]  ;;  %v986_v45 = vshll.u32 %v836_v38, 16  ;;  %v990_v46 = vshrl.u32 %v836_v38, 16  ;;  %v897_v12 = vor.u32 %v5815_v48, %v5813_v47  ;;  %255 = vst.msk [vmem:[#allocation2 + $0xd0] sm:$0xf] %vm248_vm5, %v5663_v30 }
  0x25   : > { %v979_v49 = vrot.slane %v977_v39, 4  ;;  %v982_v50 = vrot.slane %v980_v40, 5  ;;  %v996_v51 = vshll.u32 %v865_v44, 16  ;;  %v843_v52 = vld [vmem:[#allocation2 + $0x60] sm:$0xf]  ;;  %v902_v31 = vrot.slane %v900_v34, 5 }
  0x26   : > { %v988_v54 = vrot.slane %v986_v45, 5  ;;  %v992_v55 = vrot.slane %v990_v46, 4  ;;  %v844_v56 = vld [vmem:[#allocation2 + $0x64] sm:$0xf]  ;;  %v1073_v57 = vshrl.u32 %v843_v52, 16  ;;  %v1076_v58 = vshll.u32 %v843_v52, 16 }
  0x27   : > { %v983_v59 = vor.u32 %v982_v50, %v979_v49  ;;  %v998_v60 = vrot.slane %v996_v51, 5  ;;  %v869_v61 = vld [vmem:[#allocation2 + $0x68] sm:$0x1]  ;;  %v1082_v62 = vshll.u32 %v844_v56, 16  ;;  %v1086_v63 = vshrl.u32 %v844_v56, 16 }
  0x28   : > { %v993_v2 = vor.u32 %v992_v55, %v988_v54  ;;  %v1075_v3 = vrot.slane %v1073_v57, 4  ;;  %v1078_v4 = vrot.slane %v1076_v58, 5  ;;  %v1092_v6 = vshll.u32 %v869_v61, 16  ;;  %v851_v7 = vld [vmem:[#allocation2 + $0x90] sm:$0xf] }
  0x29   : > { %v984_v8 = vrot.slane %v983_v59, 4  ;;  %v1084_v9 = vrot.slane %v1082_v62, 5  ;;  %v1088_v10 = vrot.slane %v1086_v63, 4  ;;  %v852_v11 = vld [vmem:[#allocation2 + $0x94] sm:$0xf]  ;;  %v1169_v16 = vshrl.u32 %v851_v7, 16 }
  0x2a   : > { %v994_v13 = vrot.slane %v993_v2, 4  ;;  %v1079_v14 = vor.u32 %v1078_v4, %v1075_v3  ;;  %v1094_v15 = vrot.slane %v1092_v6, 5  ;;  %v873_v19 = vld [vmem:[#allocation2 + $0x98] sm:$0x1]  ;;  %v1172_v20 = vshll.u32 %v851_v7, 16 }
  0x2b   : > { %v989_v17 = vsel %vm5819_vm12, %v984_v8, %v988_v54  ;;  %v1089_v18 = vor.u32 %v1088_v10, %v1084_v9  ;;  %v1178_v22 = vshll.u32 %v852_v11, 16  ;;  %v1171_v26 = vrot.slane %v1169_v16, 4  ;;  %256 = vst.msk [vmem:[#allocation2 + $0xd4] sm:$0x1] %vm251_vm0, %v5663_v30  ;;  %v273_v40 = vld [vmem:[#allocation2 + $0x3c] sm:$0x1] }
  0x2c   : > { %v999_v23 = vsel %vm5819_vm12, %v994_v13, %v998_v60  ;;  %v1275_v24 = vunpack.c.l.b16 %v989_v17  ;;  %v1080_v25 = vrot.slane %v1079_v14, 4  ;;  %v1174_v29 = vrot.slane %v1172_v20, 5  ;;  %v323_v49 = vld [vmem:[#allocation2 + $0x44] sm:$0x1]  ;;  %v285_v61 = vld [vmem:[#allocation2 + $0x6c] sm:$0x1] }
  0x2d   : > { %v1276_v27 = vunpack.c.l.b16 %v999_v23  ;;  %v1090_v28 = vrot.slane %v1089_v18, 4  ;;  %v1180_v33 = vrot.slane %v1178_v22, 5  ;;  %v1182_v38 = vshrl.u32 %v852_v11, 16  ;;  %v335_v2 = vld [vmem:[#allocation2 + $0x74] sm:$0x1]  ;;  %v240_v11 = vld [vmem:[%s5724_s22 + $0xc0] sm:$0xff] }
  0x2e   : > { %v1085_v32 = vsel %vm5819_vm12, %v1080_v25, %v1084_v9  ;;  %v1188_v39 = vshll.u32 %v873_v19, 16  ;;  %v1175_v48 = vor.u32 %v1174_v29, %v1171_v26  ;;  %v893_v34 = vsel %vm5819_vm12, %v888_v53, %v5813_v47  ;;  %v241_v16 = vld [vmem:[%s5724_s22 + $0xc8] sm:$0xff]  ;;  %v347_v17 = vld [vmem:[#allocation2 + $0xa4] sm:$0x1] }
  0x2f   : > { %v1303_v44 = vpack.c.b16 %v1276_v27, %v1275_v24  ;;  %v1095_v45 = vsel %vm5819_vm12, %v1090_v28, %v1094_v15  ;;  %v1283_v46 = vunpack.c.l.b16 %v1085_v32  ;;  %v1184_v30 = vrot.slane %v1182_v38, 4  ;;  %v261_v22 = vld [vmem:[#allocation2 + $0xc] sm:$0x1]  ;;  %v216_v27 = vld [vmem:[%s5724_s22] sm:$0xff]  ;;  %v5871_v28 = vld [vmem:[#allocation2 + $0x14] sm:$0x1] }
  0x30   : > { %v1284_v50 = vunpack.c.l.b16 %v1095_v45  ;;  %v1190_v51 = vrot.slane %v1188_v39, 5  ;;  %v1176_v52 = vrot.slane %v1175_v48, 4  ;;  %v898_v54 = vrot.slane %v897_v12, 4  ;;  %v297_v12 = vld [vmem:[#allocation2 + $0x9c] sm:$0x1]  ;;  %v217_v38 = vld [vmem:[%s5724_s22 + $0x8] sm:$0xff] }
  0x31   : > { %5100 = vmatmul.msk.bf16.vlgmr.msra.gmra.mxu1 %vm1321_vm11, %v1303_v44  ;;  %v1267_v55 = vunpack.c.l.b16 %v893_v34  ;;  %v274_v56 = vsel %vm5702_vm2, 0, %v273_v40  ;;  %v1185_v58 = vor.u32 %v1184_v30, %v1180_v33  ;;  %v324_v59 = vsel %vm5712_vm4, 0, %v323_v49  ;;  %v5884_v30 = vld [vmem:[#allocation2 + $0x48] sm:$0x1] }
  0x32   : > { %v1307_v57 = vpack.c.b16 %v1284_v50, %v1283_v46  ;;  %275 = vst [vmem:[#allocation2 + $0x3c] sm:$0x1] %v274_v56  ;;  %v464_v60 = vrot.slane %v462_v37, 7  ;;  %v1181_v47 = vsel %vm5819_vm12, %v1176_v52, %v1180_v33  ;;  %v903_v53 = vsel %vm5819_vm12, %v898_v54, %v902_v31 }
  0x33   : > { %325 = vst [vmem:[#allocation2 + $0x44] sm:$0x1] %v324_v59  ;;  %v465_v62 = vshll.u32 %v5793_v21, 16  ;;  %v470_v63 = vshrl.u32 %v5806_v35, 16  ;;  %v1186_v3 = vrot.slane %v1185_v58, 4  ;;  %v1291_v4 = vunpack.c.l.b16 %v1181_v47 }
  0x34   : > { %5104 = vmatmul.msk.bf16.vlgmr.msra.gmra.mxu2 %vm1321_vm11, %v1307_v57  ;;  %v1268_v37 = vunpack.c.l.b16 %v903_v53  ;;  %v468_v6 = vrot.slane %v464_v60, 4  ;;  %v473_v9 = vshll.u32 %v5806_v35, 16  ;;  %v286_v10 = vsel %vm5702_vm2, 0, %v285_v61 }
  0x35   : > { %v467_v7 = vor.u32 %v465_v62, %v464_v60  ;;  %v472_v8 = vrot.slane %v470_v63, 7  ;;  %v1191_v21 = vsel %vm5819_vm12, %v1186_v3, %v1190_v51  ;;  %287 = vst [vmem:[#allocation2 + $0x6c] sm:$0x1] %v286_v10  ;;  %v336_v14 = vsel %vm5712_vm4, 0, %v335_v2 }
  0x36   : > { %v1299_v13 = vpack.c.b16 %v1268_v37, %v1267_v55  ;;  %v530_v15 = vshrl.u32 %v5809_v41, 16  ;;  %v1292_v18 = vunpack.c.l.b16 %v1191_v21  ;;  %337 = vst [vmem:[#allocation2 + $0x74] sm:$0x1] %v336_v14  ;;  %v533_v20 = vshll.u32 %v5809_v41, 16  ;;  %v226_v37 = vld [vmem:[%s5724_s22 + $0x50] sm:$0xff] }
  0x37   : > { %v475_v35 = vor.u32 %v473_v9, %v472_v8  ;;  %v477_v19 = vrot.slane %v472_v8, 4  ;;  %v538_v24 = vshrl.u32 %v5811_v43, 16  ;;  %v541_v25 = vshll.u32 %v5811_v43, 16  ;;  %v234_v14 = vld [vmem:[%s5724_s22 + $0x90] sm:$0xff] }
  0x38   : > { %5096 = vmatmul.msk.bf16.vlgmr.msra.gmra.mxu0 %vm1321_vm11, %v1299_v13  ;;  %v532_v23 = vrot.slane %v530_v15, 7  ;;  %v298_v26 = vsel %vm5702_vm2, 0, %v297_v12  ;;  %v1311_v29 = vpack.c.b16 %v1292_v18, %v1291_v4  ;;  %v348_v41 = vsel %vm5712_vm4, 0, %v347_v17 }
  0x39   : > { %v476_v31 = vsel %vm5744_vm7, %v468_v6, %v475_v35  ;;  %v743_v32 = vld [vmem:[#allocation2 + $0x3c] sm:$0xf]  ;;  %299 = vst [vmem:[#allocation2 + $0x9c] sm:$0x1] %v298_v26  ;;  %v383_v33 = vpack.c.bf16 %v240_v11, %v240_v11  ;;  %v540_v45 = vrot.slane %v538_v24, 7  ;;  %v384_v48 = vpack.c.bf16 %v241_v16, %v241_v16 }
  0x3a   : > { %v744_v43 = vsel %vm5752_vm8, %v467_v7, %v743_v32  ;;  %746 = vst.msk [vmem:[#allocation2 + $0x40] sm:$0xf] %vm248_vm5, %v476_v31  ;;  %v747_v39 = vld [vmem:[#allocation2 + $0x44] sm:$0x1]  ;;  %v535_v40 = vor.u32 %v533_v20, %v532_v23  ;;  %v536_v44 = vrot.slane %v532_v23, 4  ;;  %5108 = vmatmul.msk.bf16.vlgmr.msra.gmra.mxu3 %vm1321_vm11, %v1311_v29  ;;  %v262_v52 = vsel %vm5702_vm2, 0, %v261_v22 }
  0x3b   : > { %745 = vst [vmem:[#allocation2 + $0x3c] sm:$0xf] %v744_v43  ;;  %v748_v46 = vsel %vm5702_vm2, %v477_v19, %v747_v39  ;;  %v598_v49 = vshrl.u32 %v383_v33, 16  ;;  %v601_v50 = vshll.u32 %v383_v33, 16  ;;  %v543_v51 = vor.u32 %v541_v25, %v540_v45  ;;  %v227_v6 = vld [vmem:[%s5724_s22 + $0x58] sm:$0xff] }
  0x3c   : > { %749 = vst [vmem:[#allocation2 + $0x44] sm:$0x1] %v748_v46  ;;  %v545_v34 = vrot.slane %v540_v45, 4  ;;  %v312_v54 = vsel %vm5712_vm4, 0, %v5871_v28  ;;  %v771_v55 = vld [vmem:[#allocation2 + $0x6c] sm:$0xf]  ;;  %v5891_v58 = vpack.c.bf16 %v216_v27, %v216_v27  ;;  %v360_v59 = vpack.c.bf16 %v217_v38, %v217_v38 }
  0x3d   : > { %349 = vst [vmem:[#allocation2 + $0xa4] sm:$0x1] %v348_v41  ;;  %v600_v56 = vrot.slane %v598_v49, 7  ;;  %v606_v57 = vshrl.u32 %v384_v48, 16  ;;  %v544_v60 = vsel %vm5744_vm7, %v536_v44, %v543_v51  ;;  %v772_v61 = vsel %vm5752_vm8, %v535_v40, %v771_v55  ;;  %v775_v47 = vld [vmem:[#allocation2 + $0x74] sm:$0x1] }
  0x3e   : > { %v609_v53 = vshll.u32 %v384_v48, 16  ;;  %263 = vst [vmem:[#allocation2 + $0xc] sm:$0x1] %v262_v52  ;;  %v277_v62 = vsel %vm5702_vm2, 0, %v5884_v30  ;;  %v776_v63 = vsel %vm5702_vm2, %v545_v34, %v775_v47  ;;  %v394_v8 = vshrl.u32 %v5891_v58, 16 }
  0x3f   : > { %773 = vst [vmem:[#allocation2 + $0x6c] sm:$0xf] %v772_v61  ;;  %v603_v2 = vor.u32 %v601_v50, %v600_v56  ;;  %v604_v3 = vrot.slane %v600_v56, 4  ;;  %v608_v4 = vrot.slane %v606_v57, 7  ;;  %v397_v9 = vshll.u32 %v5891_v58, 16 }
  0x40   : > { %774 = vst.msk [vmem:[#allocation2 + $0x70] sm:$0xf] %vm248_vm5, %v544_v60  ;;  %v799_v7 = vld [vmem:[#allocation2 + $0x9c] sm:$0xf]  ;;  %v402_v13 = vshrl.u32 %v360_v59, 16  ;;  %v5910_v18 = vpack.c.bf16 %v226_v37, %v226_v37  ;;  %v5914_v23 = vpack.c.bf16 %v227_v6, %v227_v6  ;;  %v396_v27 = vrot.slane %v394_v8, 7 }
  0x41   : > { %v838_v10 = vld [vmem:[#allocation2 + $0x40] sm:$0xf]  ;;  %777 = vst [vmem:[#allocation2 + $0x74] sm:$0x1] %v776_v63  ;;  %v611_v11 = vor.u32 %v609_v53, %v608_v4  ;;  %v613_v12 = vrot.slane %v608_v4, 4  ;;  %v800_v21 = vsel %vm5752_vm8, %v603_v2, %v799_v7  ;;  %v405_v41 = vshll.u32 %v360_v59, 16 }
  0x42   : > { %v837_v15 = vld [vmem:[#allocation2 + $0x3c] sm:$0xf]  ;;  %v1010_v16 = vshll.u32 %v838_v10, 16  ;;  %v1014_v17 = vshrl.u32 %v838_v10, 16  ;;  %801 = vst [vmem:[#allocation2 + $0x9c] sm:$0xf] %v800_v21  ;;  %v5921_v40 = vpack.c.bf16 %v234_v14, %v234_v14  ;;  %v399_v53 = vor.u32 %v397_v9, %v396_v27 }
  0x43   : > { %v866_v35 = vld [vmem:[#allocation2 + $0x44] sm:$0x1]  ;;  %v1001_v19 = vshrl.u32 %v837_v15, 16  ;;  %v1004_v20 = vshll.u32 %v837_v15, 16  ;;  %v612_v22 = vsel %vm5744_vm7, %v604_v3, %v611_v11  ;;  %313 = vst [vmem:[#allocation2 + $0x14] sm:$0x1] %v312_v54 }
  0x44   : > { %v1012_v24 = vrot.slane %v1010_v16, 5  ;;  %v1016_v25 = vrot.slane %v1014_v17, 4  ;;  %v1020_v26 = vshll.u32 %v866_v35, 16  ;;  %802 = vst.msk [vmem:[#allocation2 + $0xa0] sm:$0xf] %vm248_vm5, %v612_v22  ;;  %v5917_v32 = vrot.slane %v402_v13, 7 }
  0x45   : > { %v1003_v28 = vrot.slane %v1001_v19, 4  ;;  %v1006_v29 = vrot.slane %v1004_v20, 5  ;;  %v803_v31 = vld [vmem:[#allocation2 + $0xa4] sm:$0x1]  ;;  %v400_v54 = vrot.slane %v396_v27, 4  ;;  %v235_v15 = vld [vmem:[%s5724_s22 + $0x98] sm:$0xff] }
  0x46   : > { %v1017_v33 = vor.u32 %v1016_v25, %v1012_v24  ;;  %v1022_v38 = vrot.slane %v1020_v26, 5  ;;  %v845_v43 = vld [vmem:[#allocation2 + $0x6c] sm:$0xf]  ;;  %v804_v39 = vsel %vm5702_vm2, %v613_v12, %v803_v31  ;;  %v407_v49 = vor.u32 %v405_v41, %v5917_v32  ;;  %278 = vst [vmem:[#allocation2 + $0x48] sm:$0x1] %v277_v62 }
  0x47   : > { %v1007_v44 = vor.u32 %v1006_v29, %v1003_v28  ;;  %v846_v45 = vld [vmem:[#allocation2 + $0x70] sm:$0xf]  ;;  %v1097_v46 = vshrl.u32 %v845_v43, 16  ;;  %v1100_v48 = vshll.u32 %v845_v43, 16  ;;  %805 = vst [vmem:[#allocation2 + $0xa4] sm:$0x1] %v804_v39  ;;  %v5941_v29 = vpack.c.bf16 %v235_v15, %v235_v15 }
  0x48   : > { %v1018_v50 = vrot.slane %v1017_v33, 4  ;;  %v870_v51 = vld [vmem:[#allocation2 + $0x74] sm:$0x1]  ;;  %v1106_v34 = vshll.u32 %v846_v45, 16  ;;  %v1110_v52 = vshrl.u32 %v846_v45, 16  ;;  %v408_v21 = vsel %vm5744_vm7, %v400_v54, %v407_v49 }
  0x49   : > { %v1008_v55 = vrot.slane %v1007_v44, 4  ;;  %v1099_v56 = vrot.slane %v1097_v46, 4  ;;  %v1102_v57 = vrot.slane %v1100_v48, 5  ;;  %v1116_v58 = vshll.u32 %v870_v51, 16  ;;  %v853_v59 = vld [vmem:[#allocation2 + $0x9c] sm:$0xf] }
  0x4a   : > { %v1023_v60 = vsel %vm5819_vm12, %v1018_v50, %v1022_v38  ;;  %v1108_v61 = vrot.slane %v1106_v34, 5  ;;  %v1112_v47 = vrot.slane %v1110_v52, 4  ;;  %v1193_v8 = vshrl.u32 %v853_v59, 16  ;;  %v715_v13 = vld [vmem:[#allocation2 + $0xc] sm:$0xf] }
  0x4b   : > { %v1013_v63 = vsel %vm5819_vm12, %v1008_v55, %v1012_v24  ;;  %v1278_v2 = vunpack.c.l.b16 %v1023_v60  ;;  %v1103_v3 = vor.u32 %v1102_v57, %v1099_v56  ;;  %v1118_v4 = vrot.slane %v1116_v58, 5  ;;  %v854_v37 = vld [vmem:[#allocation2 + $0xa0] sm:$0xf]  ;;  %v326_v14 = vld [vmem:[#allocation2 + $0x50] sm:$0x1] }
  0x4c   : > { %v1277_v6 = vunpack.c.l.b16 %v1013_v63  ;;  %v1113_v7 = vor.u32 %v1112_v47, %v1108_v61  ;;  %v1196_v10 = vshll.u32 %v853_v59, 16  ;;  %v1202_v12 = vshll.u32 %v854_v37, 16  ;;  %718 = vst.msk [vmem:[#allocation2 + $0x10] sm:$0xf] %vm248_vm5, %v408_v21  ;;  %v719_v28 = vld [vmem:[#allocation2 + $0x14] sm:$0x1] }
  0x4d   : > { %v1104_v11 = vrot.slane %v1103_v3, 4  ;;  %v1206_v9 = vshrl.u32 %v854_v37, 16  ;;  %v1195_v19 = vrot.slane %v1193_v8, 4  ;;  %v409_v38 = vrot.slane %v5917_v32, 4  ;;  %v288_v43 = vld [vmem:[#allocation2 + $0x78] sm:$0x1] }
  0x4e   : > { %v1304_v16 = vpack.c.b16 %v1278_v2, %v1277_v6  ;;  %v1114_v17 = vrot.slane %v1113_v7, 4  ;;  %v874_v35 = vld [vmem:[#allocation2 + $0xa4] sm:$0x1]  ;;  %v1198_v20 = vrot.slane %v1196_v10, 5  ;;  %v1204_v62 = vrot.slane %v1202_v12, 5  ;;  %v242_v60 = vld [vmem:[%s5724_s22 + $0xd0] sm:$0xff] }
  0x4f   : > { %v1109_v30 = vsel %vm5819_vm12, %v1104_v11, %v1108_v61  ;;  %v1208_v22 = vrot.slane %v1206_v9, 4  ;;  %v1212_v24 = vshll.u32 %v874_v35, 16  ;;  %v716_v44 = vsel %vm5752_vm8, %v399_v53, %v715_v13  ;;  %v338_v48 = vld [vmem:[#allocation2 + $0x80] sm:$0x1]  ;;  %v750_v58 = vld [vmem:[#allocation2 + $0x48] sm:$0xf] }
  0x50   : > { %5101 = vmatmul.msk.bf16.gmra.mxu1 %vm1321_vm11, %v1304_v16  ;;  %v1119_v25 = vsel %vm5819_vm12, %v1114_v17, %v1118_v4  ;;  %v1285_v26 = vunpack.c.l.b16 %v1109_v30  ;;  %v1199_v27 = vor.u32 %v1198_v20, %v1195_v19  ;;  %v327_v45 = vsel %vm5712_vm4, 0, %v326_v14  ;;  %717 = vst [vmem:[#allocation2 + $0xc] sm:$0xf] %v716_v44  ;;  %v300_v61 = vld [vmem:[#allocation2 + $0xa8] sm:$0x1]  ;;  %v243_v12 = vld [vmem:[%s5724_s22 + $0xd8] sm:$0xff] }
  0x51   : > { %v1286_v31 = vunpack.c.l.b16 %v1119_v25  ;;  %v1209_v41 = vor.u32 %v1208_v22, %v1204_v62  ;;  %v1214_v33 = vrot.slane %v1212_v24, 5  ;;  %v479_v46 = vshrl.u32 %v5910_v18, 16  ;;  %328 = vst [vmem:[#allocation2 + $0x50] sm:$0x1] %v327_v45  ;;  %v350_v35 = vld [vmem:[#allocation2 + $0xb0] sm:$0x1] }
  0x52   : > { %v1200_v39 = vrot.slane %v1199_v27, 4  ;;  %v720_v51 = vsel %vm5702_vm2, %v409_v38, %v719_v28  ;;  %v482_v32 = vshll.u32 %v5910_v18, 16  ;;  %v487_v54 = vshrl.u32 %v5914_v23, 16 }
  0x53   : > { %v1308_v49 = vpack.c.b16 %v1286_v31, %v1285_v26  ;;  %v1210_v50 = vrot.slane %v1209_v41, 4  ;;  %721 = vst [vmem:[#allocation2 + $0x14] sm:$0x1] %v720_v51  ;;  %v481_v52 = vrot.slane %v479_v46, 7  ;;  %v490_v55 = vshll.u32 %v5914_v23, 16 }
  0x54   : > { %v1205_v34 = vsel %vm5819_vm12, %v1200_v39, %v1204_v62  ;;  %v289_v18 = vsel %vm5702_vm2, 0, %v288_v43  ;;  %v339_v59 = vsel %vm5712_vm4, 0, %v338_v48  ;;  %v5964_v53 = vld [vmem:[#allocation2 + $0x10] sm:$0xf]  ;;  %v489_v2 = vrot.slane %v487_v54, 7 }
  0x55   : > { %5105 = vmatmul.msk.bf16.gmra.mxu2 %vm1321_vm11, %v1308_v49  ;;  %v1215_v56 = vsel %vm5819_vm12, %v1210_v50, %v1214_v33  ;;  %v1293_v57 = vunpack.c.l.b16 %v1205_v34  ;;  %v484_v23 = vor.u32 %v482_v32, %v481_v52  ;;  %v485_v63 = vrot.slane %v481_v52, 4  ;;  %290 = vst [vmem:[#allocation2 + $0x78] sm:$0x1] %v289_v18  ;;  %v218_v34 = vld [vmem:[%s5724_s22 + $0x10] sm:$0xff] }
  0x56   : > { %v1294_v47 = vunpack.c.l.b16 %v1215_v56  ;;  %v914_v3 = vshll.u32 %v5964_v53, 16  ;;  %v918_v4 = vshrl.u32 %v5964_v53, 16  ;;  %340 = vst [vmem:[#allocation2 + $0x80] sm:$0x1] %v339_v59  ;;  %v547_v37 = vshrl.u32 %v5921_v40, 16 }
  0x57   : > { %v550_v6 = vshll.u32 %v5921_v40, 16  ;;  %v492_v8 = vor.u32 %v490_v55, %v489_v2  ;;  %v494_v10 = vrot.slane %v489_v2, 4  ;;  %v751_v11 = vsel %vm5752_vm8, %v484_v23, %v750_v58  ;;  %v829_v15 = vld [vmem:[#allocation2 + $0xc] sm:$0xf] }
  0x58   : > { %v1312_v7 = vpack.c.b16 %v1294_v47, %v1293_v57  ;;  %v5973_v9 = vrot.slane %v914_v3, 5  ;;  %v920_v21 = vrot.slane %v918_v4, 4  ;;  %752 = vst [vmem:[#allocation2 + $0x48] sm:$0xf] %v751_v11  ;;  %v549_v13 = vrot.slane %v547_v37, 7 }
  0x59   : > { %v555_v14 = vshrl.u32 %v5941_v29, 16  ;;  %v493_v40 = vsel %vm5744_vm7, %v485_v63, %v492_v8  ;;  %v558_v16 = vshll.u32 %v5941_v29, 16  ;;  %v301_v17 = vsel %vm5702_vm2, 0, %v300_v61  ;;  %v754_v26 = vld [vmem:[#allocation2 + $0x50] sm:$0x1] }
  0x5a   : > { %5109 = vmatmul.msk.bf16.gmra.mxu3 %vm1321_vm11, %v1312_v7  ;;  %v385_v19 = vpack.c.bf16 %v242_v60, %v242_v60  ;;  %v5982_v20 = vld [vmem:[#allocation2 + $0x14] sm:$0x1]  ;;  %v905_v30 = vshrl.u32 %v829_v15, 16  ;;  %v908_v62 = vshll.u32 %v829_v15, 16  ;;  %v921_v22 = vor.u32 %v920_v21, %v5973_v9  ;;  %753 = vst.msk [vmem:[#allocation2 + $0x4c] sm:$0xf] %vm248_vm5, %v493_v40 }
  0x5b   : > { %v552_v24 = vor.u32 %v550_v6, %v549_v13  ;;  %v924_v25 = vshll.u32 %v5982_v20, 16  ;;  %v553_v27 = vrot.slane %v549_v13, 4  ;;  %v557_v28 = vrot.slane %v555_v14, 7  ;;  %302 = vst [vmem:[#allocation2 + $0xa8] sm:$0x1] %v301_v17 }
  0x5c   : > { %v386_v29 = vpack.c.bf16 %v243_v12, %v243_v12  ;;  %v907_v31 = vrot.slane %v905_v30, 4  ;;  %v910_v41 = vrot.slane %v908_v62, 5  ;;  %v922_v33 = vrot.slane %v921_v22, 4  ;;  %v778_v43 = vld [vmem:[#allocation2 + $0x78] sm:$0xf] }
  0x5d   : > { %v755_v38 = vsel %vm5702_vm2, %v494_v10, %v754_v26  ;;  %v926_v39 = vrot.slane %v924_v25, 5  ;;  %v560_v44 = vor.u32 %v558_v16, %v557_v28  ;;  %v562_v45 = vrot.slane %v557_v28, 4  ;;  %v782_v48 = vld [vmem:[#allocation2 + $0x80] sm:$0x1]  ;;  %v264_v61 = vld [vmem:[#allocation2 + $0x18] sm:$0x1] }
  0x5e   : > { %756 = vst [vmem:[#allocation2 + $0x50] sm:$0x1] %v755_v38  ;;  %v779_v46 = vsel %vm5752_vm8, %v552_v24, %v778_v43  ;;  %v911_v49 = vor.u32 %v910_v41, %v907_v31  ;;  %v351_v50 = vsel %vm5712_vm4, 0, %v350_v35  ;;  %v615_v51 = vshrl.u32 %v385_v19, 16  ;;  %v314_v16 = vld [vmem:[#allocation2 + $0x20] sm:$0x1] }
  0x5f   : > { %780 = vst [vmem:[#allocation2 + $0x78] sm:$0xf] %v779_v46  ;;  %v623_v32 = vshrl.u32 %v386_v29, 16  ;;  %v927_v52 = vsel %vm5819_vm12, %v922_v33, %v926_v39  ;;  %v839_v54 = vld [vmem:[#allocation2 + $0x48] sm:$0xf]  ;;  %v561_v55 = vsel %vm5744_vm7, %v553_v27, %v560_v44  ;;  %v783_v56 = vsel %vm5702_vm2, %v562_v45, %v782_v48  ;;  %v219_v30 = vld [vmem:[%s5724_s22 + $0x18] sm:$0xff] }
  0x60   : > { %v618_v57 = vshll.u32 %v385_v19, 16  ;;  %v912_v58 = vrot.slane %v911_v49, 4  ;;  %v1025_v18 = vshrl.u32 %v839_v54, 16  ;;  %v1028_v59 = vshll.u32 %v839_v54, 16  ;;  %781 = vst.msk [vmem:[#allocation2 + $0x7c] sm:$0xf] %vm248_vm5, %v561_v55 }
  0x61   : > { %v626_v60 = vshll.u32 %v386_v29, 16  ;;  %v1270_v47 = vunpack.c.l.b16 %v927_v52  ;;  %v840_v23 = vld [vmem:[#allocation2 + $0x4c] sm:$0xf]  ;;  %784 = vst [vmem:[#allocation2 + $0x80] sm:$0x1] %v783_v56  ;;  %v617_v63 = vrot.slane %v615_v51, 7  ;;  %v6001_v3 = vpack.c.bf16 %v218_v34, %v218_v34 }
  0x62   : > { %v625_v2 = vrot.slane %v623_v32, 7  ;;  %v917_v4 = vsel %vm5819_vm12, %v912_v58, %v5973_v9  ;;  %v1027_v37 = vrot.slane %v1025_v18, 4  ;;  %v1030_v6 = vrot.slane %v1028_v59, 5  ;;  %352 = vst [vmem:[#allocation2 + $0xb0] sm:$0x1] %v351_v50  ;;  %v228_v28 = vld [vmem:[%s5724_s22 + $0x60] sm:$0xff] }
  0x63   : > { %v1034_v7 = vshll.u32 %v840_v23, 16  ;;  %v1269_v8 = vunpack.c.l.b16 %v917_v4  ;;  %v1038_v10 = vshrl.u32 %v840_v23, 16  ;;  %v620_v11 = vor.u32 %v618_v57, %v617_v63  ;;  %v806_v27 = vld [vmem:[#allocation2 + $0xa8] sm:$0xf]  ;;  %v279_v48 = vld [vmem:[#allocation2 + $0x54] sm:$0x1] }
  0x64   : > { %v621_v12 = vrot.slane %v617_v63, 4  ;;  %v1031_v13 = vor.u32 %v1030_v6, %v1027_v37  ;;  %v628_v15 = vor.u32 %v626_v60, %v625_v2  ;;  %v630_v40 = vrot.slane %v625_v2, 4  ;;  %v329_v60 = vld [vmem:[#allocation2 + $0x5c] sm:$0x1]  ;;  %v229_v6 = vld [vmem:[%s5724_s22 + $0x68] sm:$0xff] }
  0x65   : > { %v867_v21 = vld [vmem:[#allocation2 + $0x50] sm:$0x1]  ;;  %v1036_v14 = vrot.slane %v1034_v7, 5  ;;  %v1300_v17 = vpack.c.b16 %v1270_v47, %v1269_v8  ;;  %v1040_v35 = vrot.slane %v1038_v10, 4  ;;  %v265_v62 = vsel %vm5702_vm2, 0, %v264_v61 }
  0x66   : > { %v1044_v19 = vshll.u32 %v867_v21, 16  ;;  %v847_v9 = vld [vmem:[#allocation2 + $0x78] sm:$0xf]  ;;  %v1032_v22 = vrot.slane %v1031_v13, 4  ;;  %v629_v26 = vsel %vm5744_vm7, %v621_v12, %v628_v15  ;;  %v807_v33 = vsel %vm5752_vm8, %v620_v11, %v806_v27  ;;  %266 = vst [vmem:[#allocation2 + $0x18] sm:$0x1] %v265_v62 }
  0x67   : > { %v1121_v24 = vshrl.u32 %v847_v9, 16  ;;  %v1124_v25 = vshll.u32 %v847_v9, 16  ;;  %5097 = vmatmul.msk.bf16.gmra.mxu0 %vm1321_vm11, %v1300_v17  ;;  %v1041_v29 = vor.u32 %v1040_v35, %v1036_v14  ;;  %v848_v41 = vld [vmem:[#allocation2 + $0x7c] sm:$0xf]  ;;  %809 = vst.msk [vmem:[#allocation2 + $0xac] sm:$0xf] %vm248_vm5, %v629_v26  ;;  %v362_v32 = vpack.c.bf16 %v219_v30, %v219_v30 }
  0x68   : > { %v1046_v31 = vrot.slane %v1044_v19, 5  ;;  %v315_v38 = vsel %vm5712_vm4, 0, %v314_v16  ;;  %v1037_v43 = vsel %vm5819_vm12, %v1032_v22, %v1036_v14  ;;  %v871_v39 = vld [vmem:[#allocation2 + $0x80] sm:$0x1]  ;;  %v1130_v46 = vshll.u32 %v848_v41, 16 }
  0x69   : > { %v1123_v44 = vrot.slane %v1121_v24, 4  ;;  %v1126_v45 = vrot.slane %v1124_v25, 5  ;;  %v1042_v49 = vrot.slane %v1041_v29, 4  ;;  %v1134_v50 = vshrl.u32 %v848_v41, 16  ;;  %808 = vst [vmem:[#allocation2 + $0xa8] sm:$0xf] %v807_v33 }
  0x6a   : > { %v1140_v51 = vshll.u32 %v871_v39, 16  ;;  %v1279_v34 = vunpack.c.l.b16 %v1037_v43  ;;  %v1132_v54 = vrot.slane %v1130_v46, 5  ;;  %v810_v55 = vld [vmem:[#allocation2 + $0xb0] sm:$0x1]  ;;  %v6020_v56 = vpack.c.bf16 %v228_v28, %v228_v28  ;;  %316 = vst [vmem:[#allocation2 + $0x20] sm:$0x1] %v315_v38 }
  0x6b   : > { %v1127_v52 = vor.u32 %v1126_v45, %v1123_v44  ;;  %v1047_v57 = vsel %vm5819_vm12, %v1042_v49, %v1046_v31  ;;  %v1136_v58 = vrot.slane %v1134_v50, 4  ;;  %v811_v59 = vsel %vm5702_vm2, %v630_v40, %v810_v55  ;;  %v236_v46 = vld [vmem:[%s5724_s22 + $0xa0] sm:$0xff] }
  0x6c   : > { %v1142_v18 = vrot.slane %v1140_v51, 5  ;;  %v1280_v61 = vunpack.c.l.b16 %v1047_v57  ;;  %812 = vst [vmem:[#allocation2 + $0xb0] sm:$0x1] %v811_v59  ;;  %v411_v23 = vshrl.u32 %v6001_v3, 16  ;;  %v414_v63 = vshll.u32 %v6001_v3, 16 }
  0x6d   : > { %v1128_v47 = vrot.slane %v1127_v52, 4  ;;  %v1137_v2 = vor.u32 %v1136_v58, %v1132_v54  ;;  %v419_v4 = vshrl.u32 %v362_v32, 16  ;;  %v422_v37 = vshll.u32 %v362_v32, 16  ;;  %v722_v24 = vld [vmem:[#allocation2 + $0x18] sm:$0xf]  ;;  %v237_v52 = vld [vmem:[%s5724_s22 + $0xa8] sm:$0xff] }
  0x6e   : > { %v280_v7 = vsel %vm5702_vm2, 0, %v279_v48  ;;  %v1305_v8 = vpack.c.b16 %v1280_v61, %v1279_v34  ;;  %v856_v11 = vld [vmem:[#allocation2 + $0xac] sm:$0xf]  ;;  %v413_v12 = vrot.slane %v411_v23, 7  ;;  %v330_v21 = vsel %vm5712_vm4, 0, %v329_v60 }
  0x6f   : > { %v1133_v10 = vsel %vm5819_vm12, %v1128_v47, %v1132_v54  ;;  %281 = vst [vmem:[#allocation2 + $0x54] sm:$0x1] %v280_v7  ;;  %v1138_v13 = vrot.slane %v1137_v2, 4  ;;  %v1226_v3 = vshll.u32 %v856_v11, 16  ;;  %v1230_v15 = vshrl.u32 %v856_v11, 16 }
  0x70   : > { %v1287_v14 = vunpack.c.l.b16 %v1133_v10  ;;  %331 = vst [vmem:[#allocation2 + $0x5c] sm:$0x1] %v330_v21  ;;  %5102 = vmatmul.msk.bf16.gmra.mxu1 %vm1321_vm11, %v1305_v8  ;;  %v855_v40 = vld [vmem:[#allocation2 + $0xa8] sm:$0xf]  ;;  %v416_v16 = vor.u32 %v414_v63, %v413_v12  ;;  %v417_v17 = vrot.slane %v413_v12, 4  ;;  %v421_v35 = vrot.slane %v419_v4, 7 }
  0x71   : > { %v372_v19 = vpack.c.bf16 %v229_v6, %v229_v6  ;;  %v1143_v9 = vsel %vm5819_vm12, %v1138_v13, %v1142_v18  ;;  %v1217_v30 = vshrl.u32 %v855_v40, 16  ;;  %v1220_v62 = vshll.u32 %v855_v40, 16  ;;  %v726_v29 = vld [vmem:[#allocation2 + $0x20] sm:$0x1]  ;;  %v291_v48 = vld [vmem:[#allocation2 + $0x84] sm:$0x1] }
  0x72   : > { %v1228_v22 = vrot.slane %v1226_v3, 5  ;;  %v1288_v25 = vunpack.c.l.b16 %v1143_v9  ;;  %v1232_v26 = vrot.slane %v1230_v15, 4  ;;  %v424_v27 = vor.u32 %v422_v37, %v421_v35  ;;  %v341_v54 = vld [vmem:[#allocation2 + $0x8c] sm:$0x1]  ;;  %v244_v37 = vld [vmem:[%s5724_s22 + $0xe0] sm:$0xff] }
  0x73   : > { %v426_v28 = vrot.slane %v421_v35, 4  ;;  %v875_v31 = vld [vmem:[#allocation2 + $0xb0] sm:$0x1]  ;;  %v1219_v41 = vrot.slane %v1217_v30, 4  ;;  %v1222_v33 = vrot.slane %v1220_v62, 5  ;;  %v723_v38 = vsel %vm5752_vm8, %v416_v16, %v722_v24 }
  0x74   : > { %v496_v43 = vshrl.u32 %v6020_v56, 16  ;;  %v1309_v39 = vpack.c.b16 %v1288_v25, %v1287_v14  ;;  %v1233_v44 = vor.u32 %v1232_v26, %v1228_v22  ;;  %v1236_v45 = vshll.u32 %v875_v31, 16  ;;  %724 = vst [vmem:[#allocation2 + $0x18] sm:$0xf] %v723_v38  ;;  %v245_v14 = vld [vmem:[%s5724_s22 + $0xe8] sm:$0xff] }
  0x75   : > { %v1223_v49 = vor.u32 %v1222_v33, %v1219_v41  ;;  %v425_v50 = vsel %vm5744_vm7, %v417_v17, %v424_v27  ;;  %v727_v51 = vsel %vm5702_vm2, %v426_v28, %v726_v29  ;;  %v499_v58 = vshll.u32 %v6020_v56, 16  ;;  %v303_v30 = vld [vmem:[#allocation2 + $0xb4] sm:$0x1]  ;;  %v353_v26 = vld [vmem:[#allocation2 + $0xbc] sm:$0x1] }
  0x76   : > { %v498_v32 = vrot.slane %v496_v43, 7  ;;  %v757_v34 = vld [vmem:[#allocation2 + $0x54] sm:$0xf]  ;;  %5106 = vmatmul.msk.bf16.gmra.mxu2 %vm1321_vm11, %v1309_v39  ;;  %v1234_v55 = vrot.slane %v1233_v44, 4  ;;  %v1238_v57 = vrot.slane %v1236_v45, 5  ;;  %v504_v18 = vshrl.u32 %v372_v19, 16 }
  0x77   : > { %725 = vst.msk [vmem:[#allocation2 + $0x1c] sm:$0xf] %vm248_vm5, %v425_v50  ;;  %v1224_v59 = vrot.slane %v1223_v49, 4  ;;  %v507_v61 = vshll.u32 %v372_v19, 16  ;;  %v292_v47 = vsel %vm5702_vm2, 0, %v291_v48  ;;  %v342_v4 = vsel %vm5712_vm4, 0, %v341_v54 }
  0x78   : > { %728 = vst [vmem:[#allocation2 + $0x20] sm:$0x1] %v727_v51  ;;  %v502_v60 = vrot.slane %v498_v32, 4  ;;  %v1239_v23 = vsel %vm5819_vm12, %v1234_v55, %v1238_v57  ;;  %v501_v63 = vor.u32 %v499_v58, %v498_v32  ;;  %v506_v2 = vrot.slane %v504_v18, 7  ;;  %v761_v13 = vld [vmem:[#allocation2 + $0x5c] sm:$0x1] }
  0x79   : > { %293 = vst [vmem:[#allocation2 + $0x84] sm:$0x1] %v292_v47  ;;  %v1229_v56 = vsel %vm5819_vm12, %v1224_v59, %v1228_v22  ;;  %v1296_v6 = vunpack.c.l.b16 %v1239_v23  ;;  %v379_v7 = vpack.c.bf16 %v236_v46, %v236_v46  ;;  %v380_v8 = vpack.c.bf16 %v237_v52, %v237_v52 }
  0x7a   : > { %343 = vst [vmem:[#allocation2 + $0x8c] sm:$0x1] %v342_v4  ;;  %v1295_v10 = vunpack.c.l.b16 %v1229_v56  ;;  %v509_v11 = vor.u32 %v507_v61, %v506_v2  ;;  %v511_v12 = vrot.slane %v506_v2, 4  ;;  %v758_v21 = vsel %vm5752_vm8, %v501_v63, %v757_v34  ;;  %v220_v63 = vld [vmem:[%s5724_s22 + $0x20] sm:$0xff] }
  0x7b   : > { %v831_v3 = vld [vmem:[#allocation2 + $0x18] sm:$0xf]  ;;  %759 = vst [vmem:[#allocation2 + $0x54] sm:$0xf] %v758_v21  ;;  %v564_v15 = vshrl.u32 %v379_v7, 16  ;;  %v567_v40 = vshll.u32 %v379_v7, 16  ;;  %v6062_v16 = vpack.c.bf16 %v244_v37, %v244_v37  ;;  %v6071_v27 = vpack.c.bf16 %v245_v14, %v245_v14 }
  0x7c   : > { %v1313_v17 = vpack.c.b16 %v1296_v6, %v1295_v10  ;;  %v929_v35 = vshrl.u32 %v831_v3, 16  ;;  %v932_v19 = vshll.u32 %v831_v3, 16  ;;  %v510_v9 = vsel %vm5744_vm7, %v502_v60, %v509_v11 }
  0x7d   : > { %760 = vst.msk [vmem:[#allocation2 + $0x58] sm:$0xf] %vm248_vm5, %v510_v9  ;;  %v762_v22 = vsel %vm5702_vm2, %v511_v12, %v761_v13  ;;  %v566_v24 = vrot.slane %v564_v15, 7  ;;  %v572_v25 = vshrl.u32 %v380_v8, 16  ;;  %v575_v49 = vshll.u32 %v380_v8, 16  ;;  %v221_v12 = vld [vmem:[%s5724_s22 + $0x28] sm:$0xff] }
  0x7e   : > { %v6066_v62 = vld [vmem:[#allocation2 + $0x1c] sm:$0xf]  ;;  %5110 = vmatmul.msk.bf16.gmra.mxu3 %vm1321_vm11, %v1313_v17  ;;  %v931_v29 = vrot.slane %v929_v35, 4  ;;  %v934_v31 = vrot.slane %v932_v19, 5  ;;  %763 = vst [vmem:[#allocation2 + $0x5c] sm:$0x1] %v762_v22  ;;  %v6104_v15 = vpack.c.bf16 %v220_v63, %v220_v63 }
  0x7f   : > { %v6074_v28 = vld [vmem:[#allocation2 + $0x20] sm:$0x1]  ;;  %v938_v41 = vshll.u32 %v6066_v62, 16  ;;  %v942_v33 = vshrl.u32 %v6066_v62, 16  ;;  %v569_v43 = vor.u32 %v567_v40, %v566_v24  ;;  %v570_v39 = vrot.slane %v566_v24, 4 }
  0x80   : > { %v948_v38 = vshll.u32 %v6074_v28, 16  ;;  %v574_v44 = vrot.slane %v572_v25, 7  ;;  %v935_v45 = vor.u32 %v934_v31, %v931_v29  ;;  %v785_v50 = vld [vmem:[#allocation2 + $0x84] sm:$0xf]  ;;  %v304_v54 = vsel %vm5702_vm2, 0, %v303_v30 }
  0x81   : > { %v940_v46 = vrot.slane %v938_v41, 5  ;;  %v944_v48 = vrot.slane %v942_v33, 4  ;;  %v786_v34 = vsel %vm5752_vm8, %v569_v43, %v785_v50  ;;  %v789_v52 = vld [vmem:[#allocation2 + $0x8c] sm:$0x1]  ;;  %v354_v59 = vsel %vm5712_vm4, 0, %v353_v26 }
  0x82   : > { %v950_v51 = vrot.slane %v948_v38, 5  ;;  %v579_v32 = vrot.slane %v574_v44, 4  ;;  %v936_v55 = vrot.slane %v935_v45, 4  ;;  %v841_v58 = vld [vmem:[#allocation2 + $0x54] sm:$0xf]  ;;  %v577_v18 = vor.u32 %v575_v49, %v574_v44 }
  0x83   : > { %v945_v57 = vor.u32 %v944_v48, %v940_v46  ;;  %787 = vst [vmem:[#allocation2 + $0x84] sm:$0xf] %v786_v34  ;;  %v1049_v60 = vshrl.u32 %v841_v58, 16  ;;  %v1052_v61 = vshll.u32 %v841_v58, 16  ;;  %v632_v23 = vshrl.u32 %v6062_v16, 16 }
  0x84   : > { %v790_v47 = vsel %vm5702_vm2, %v579_v32, %v789_v52  ;;  %305 = vst [vmem:[#allocation2 + $0xb4] sm:$0x1] %v304_v54  ;;  %v941_v2 = vsel %vm5819_vm12, %v936_v55, %v940_v46  ;;  %v6091_v37 = vld [vmem:[#allocation2 + $0x58] sm:$0xf]  ;;  %v578_v56 = vsel %vm5744_vm7, %v570_v39, %v577_v18  ;;  %v635_v6 = vshll.u32 %v6062_v16, 16 }
  0x85   : > { %v946_v4 = vrot.slane %v945_v57, 4  ;;  %791 = vst [vmem:[#allocation2 + $0x8c] sm:$0x1] %v790_v47  ;;  %v1271_v7 = vunpack.c.l.b16 %v941_v2  ;;  %v1051_v8 = vrot.slane %v1049_v60, 4  ;;  %v1054_v10 = vrot.slane %v1052_v61, 5 }
  0x86   : > { %v1058_v11 = vshll.u32 %v6091_v37, 16  ;;  %788 = vst.msk [vmem:[#allocation2 + $0x88] sm:$0xf] %vm248_vm5, %v578_v56  ;;  %v6101_v13 = vld [vmem:[#allocation2 + $0x5c] sm:$0x1]  ;;  %v1062_v14 = vshrl.u32 %v6091_v37, 16  ;;  %v6108_v25 = vpack.c.bf16 %v221_v12, %v221_v12 }
  0x87   : > { %v951_v21 = vsel %vm5819_vm12, %v946_v4, %v950_v51  ;;  %355 = vst [vmem:[#allocation2 + $0xbc] sm:$0x1] %v354_v59  ;;  %v634_v3 = vrot.slane %v632_v23, 7  ;;  %v1055_v16 = vor.u32 %v1054_v10, %v1051_v8  ;;  %v1068_v35 = vshll.u32 %v6101_v13, 16  ;;  %v267_v22 = vld [vmem:[#allocation2 + $0x24] sm:$0x1] }
  0x88   : > { %v1272_v40 = vunpack.c.l.b16 %v951_v21  ;;  %v1060_v17 = vrot.slane %v1058_v11, 5  ;;  %v1064_v19 = vrot.slane %v1062_v14, 4  ;;  %v640_v30 = vshrl.u32 %v6071_v27, 16  ;;  %v317_v24 = vld [vmem:[#allocation2 + $0x2c] sm:$0x1] }
  0x89   : > { %v637_v9 = vor.u32 %v635_v6, %v634_v3  ;;  %v1056_v29 = vrot.slane %v1055_v16, 4  ;;  %v1070_v31 = vrot.slane %v1068_v35, 5  ;;  %v643_v33 = vshll.u32 %v6071_v27, 16 }
  0x8a   : > { %v1301_v26 = vpack.c.b16 %v1272_v40, %v1271_v7  ;;  %v849_v41 = vld [vmem:[#allocation2 + $0x84] sm:$0xf]  ;;  %v1065_v38 = vor.u32 %v1064_v19, %v1060_v17  ;;  %v642_v44 = vrot.slane %v640_v30, 7  ;;  %v638_v49 = vrot.slane %v634_v3, 4 }
  0x8b   : > { %v1145_v43 = vshrl.u32 %v849_v41, 16  ;;  %v1148_v39 = vshll.u32 %v849_v41, 16  ;;  %v813_v45 = vld [vmem:[#allocation2 + $0xb4] sm:$0xf]  ;;  %v1061_v46 = vsel %vm5819_vm12, %v1056_v29, %v1060_v17  ;;  %v268_v51 = vsel %vm5702_vm2, 0, %v267_v22 }
  0x8c   : > { %5098 = vmatmul.msk.bf16.gmra.mxu0 %vm1321_vm11, %v1301_v26  ;;  %v872_v48 = vld [vmem:[#allocation2 + $0x8c] sm:$0x1]  ;;  %v814_v50 = vsel %vm5752_vm8, %v637_v9, %v813_v45  ;;  %v1066_v32 = vrot.slane %v1065_v38, 4  ;;  %v318_v54 = vsel %vm5712_vm4, 0, %v317_v24  ;;  %v1281_v55 = vunpack.c.l.b16 %v1061_v46  ;;  %269 = vst [vmem:[#allocation2 + $0x24] sm:$0x1] %v268_v51 }
  0x8d   : > { %v850_v27 = vld [vmem:[#allocation2 + $0x88] sm:$0xf]  ;;  %v1147_v34 = vrot.slane %v1145_v43, 4  ;;  %v1150_v52 = vrot.slane %v1148_v39, 5  ;;  %v1164_v18 = vshll.u32 %v872_v48, 16  ;;  %v645_v61 = vor.u32 %v643_v33, %v642_v44  ;;  %v5584_v45 = vld [vmem:[%s7222_s1 + $0x30] sm:$0xff] }
  0x8e   : > { %v1154_v57 = vshll.u32 %v850_v27, 16  ;;  %v1158_v58 = vshrl.u32 %v850_v27, 16  ;;  %815 = vst [vmem:[#allocation2 + $0xb4] sm:$0xf] %v814_v50  ;;  %v1071_v59 = vsel %vm5819_vm12, %v1066_v32, %v1070_v31  ;;  %v647_v47 = vrot.slane %v642_v44, 4  ;;  %3598 = vmatpush.bf16.msra.mxu2 %v5584_v45 }
  0x8f   : > { %v1151_v60 = vor.u32 %v1150_v52, %v1147_v34  ;;  %v817_v23 = vld [vmem:[#allocation2 + $0xbc] sm:$0x1]  ;;  %v1282_v63 = vunpack.c.l.b16 %v1071_v59  ;;  %v1166_v56 = vrot.slane %v1164_v18, 5  ;;  %319 = vst [vmem:[#allocation2 + $0x2c] sm:$0x1] %v318_v54  ;;  %v646_v7 = vsel %vm5744_vm7, %v638_v49, %v645_v61 }
  0x90   : > { %v1156_v2 = vrot.slane %v1154_v57, 5  ;;  %v1160_v4 = vrot.slane %v1158_v58, 4  ;;  %v818_v8 = vsel %vm5702_vm2, %v647_v47, %v817_v23  ;;  %v428_v10 = vshrl.u32 %v6104_v15, 16  ;;  %816 = vst.msk [vmem:[#allocation2 + $0xb8] sm:$0xf] %vm248_vm5, %v646_v7 }
  0x91   : > { %v1152_v6 = vrot.slane %v1151_v60, 4  ;;  %v1306_v11 = vpack.c.b16 %v1282_v63, %v1281_v55  ;;  %v431_v21 = vshll.u32 %v6104_v15, 16  ;;  %v436_v14 = vshrl.u32 %v6108_v25, 16  ;;  %819 = vst [vmem:[#allocation2 + $0xbc] sm:$0x1] %v818_v8  ;;  %v5585_v8 = vld [vmem:[%s7222_s1 + $0x38] sm:$0xff] }
  0x92   : > { %v1161_v12 = vor.u32 %v1160_v4, %v1156_v2  ;;  %v430_v40 = vrot.slane %v428_v10, 7  ;;  %v439_v16 = vshll.u32 %v6108_v25, 16  ;;  %v1682_v24 = vld [vmem:[#allocation2] sm:$0xe]  ;;  %vm1731_vm14 = vcmask 1046532   ;;  %v5567_v10 = vld [vmem:[%s7222_s1 + $0x28] sm:$0xff]  ;;  %4256 = vmatpush.bf16.msra.mxu3 %v5585_v8 }
  0x93   : > { %v1157_v3 = vsel %vm5819_vm12, %v1152_v6, %v1156_v2  ;;  %5103 = vmatmul.msk.bf16.gmra.mxu1 %vm1321_vm11, %v1306_v11  ;;  %v438_v35 = vrot.slane %v436_v14, 7  ;;  %v729_v41 = vld [vmem:[#allocation2 + $0x24] sm:$0xf]  ;;  %v5196_v50 = vrot.slane %v1682_v24, 9  ;;  %vm6148_vm15 = vmor %vm1730_vm13, %vm1731_vm14  ;;  %v5600_v58 = vld [vmem:[#allocation2 + $0x8] sm:$0x1] }
  0x94   : > { %v1162_v17 = vrot.slane %v1161_v12, 4  ;;  %v1289_v19 = vunpack.c.l.b16 %v1157_v3  ;;  %v433_v30 = vor.u32 %v431_v21, %v430_v40  ;;  %v434_v22 = vrot.slane %v430_v40, 4  ;;  %v5599_v39 = vld [vmem:[#allocation2 + $0x4] sm:$0xf]  ;;  %v2361_v2 = vld [vmem:[#allocation2 + $0xc] sm:$0xf]  ;;  %3307 = vmatpush.bf16.msra.mxu1 %v5567_v10 }
  0x95   : > { %v857_v9 = vld [vmem:[#allocation2 + $0xb4] sm:$0xf]  ;;  %v441_v31 = vor.u32 %v439_v16, %v438_v35  ;;  %v443_v25 = vrot.slane %v438_v35, 4  ;;  %v1735_v44 = vrot.slane %v5599_v39, 5  ;;  %v1738_v18 = vrot.slane %v5600_v58, 5  ;;  %v5586_v11 = vld [vmem:[%s7222_s1 + $0x40] sm:$0xff] }
  0x96   : > { %v1167_v15 = vsel %vm5819_vm12, %v1162_v17, %v1166_v56  ;;  %v1241_v26 = vshrl.u32 %v857_v9, 16  ;;  %v1244_v29 = vshll.u32 %v857_v9, 16  ;;  %v730_v38 = vsel %vm5752_vm8, %v433_v30, %v729_v41  ;;  %v733_v43 = vld [vmem:[#allocation2 + $0x2c] sm:$0x1]  ;;  %v2362_v4 = vld [vmem:[#allocation2 + $0x10] sm:$0xf]  ;;  %4658 = vmatpush.bf16.msra.mxu0 %v5586_v11 }
  0x97   : > { %v1290_v33 = vunpack.c.l.b16 %v1167_v15  ;;  %v442_v49 = vsel %vm5744_vm7, %v434_v22, %v441_v31  ;;  %731 = vst [vmem:[#allocation2 + $0x24] sm:$0xf] %v730_v38  ;;  %v858_v32 = vld [vmem:[#allocation2 + $0xb8] sm:$0xf]  ;;  %v734_v27 = vsel %vm5702_vm2, %v443_v25, %v733_v43  ;;  %v1737_v60 = vrot.slane %v1735_v44, 4  ;;  %v5530_v21 = vld [vmem:[#allocation2] sm:$0xff] }
  0x98   : > { %v1243_v46 = vrot.slane %v1241_v26, 4  ;;  %v1246_v48 = vrot.slane %v1244_v29, 5  ;;  %732 = vst.msk [vmem:[#allocation2 + $0x28] sm:$0xf] %vm248_vm5, %v442_v49  ;;  %v876_v52 = vld [vmem:[#allocation2 + $0xbc] sm:$0x1]  ;;  %v1736_v63 = vsel %vm6148_vm15, %v5196_v50, %v1735_v44 }
  0x99   : > { %v1310_v51 = vpack.c.b16 %v1290_v33, %v1289_v19  ;;  %v1250_v55 = vshll.u32 %v858_v32, 16  ;;  %v1254_v57 = vshrl.u32 %v858_v32, 16  ;;  %735 = vst [vmem:[#allocation2 + $0x2c] sm:$0x1] %v734_v27  ;;  %v1260_v59 = vshll.u32 %v876_v52, 16 }
  0x9a   : > { %v1247_v54 = vor.u32 %v1246_v48, %v1243_v46  ;;  %v1739_v14 = vsel %vm6148_vm15, %v1737_v60, %v1738_v18  ;;  %v1848_v3 = vunpack.c.l.b16 %v1736_v63  ;;  %v2410_v40 = vshrl.u32 %v2361_v2, 16  ;;  %v2363_v27 = vld [vmem:[#allocation2 + $0x14] sm:$0x1]  ;;  %v1683_v63 = vld [vmem:[#allocation2 + $0xc] sm:$0xe] }
  0x9b   : > { %5107 = vmatmul.msk.bf16.gmra.mxu2 %vm1321_vm11, %v1310_v51  ;;  %v1252_v47 = vrot.slane %v1250_v55, 5  ;;  %v1256_v23 = vrot.slane %v1254_v57, 4  ;;  %v1262_v7 = vrot.slane %v1260_v59, 5  ;;  %v2413_v16 = vshll.u32 %v2361_v2, 16 }
  0x9c   : > { %v1248_v61 = vrot.slane %v1247_v54, 4  ;;  %v2419_v30 = vshll.u32 %v2362_v4, 16  ;;  %v2423_v29 = vshrl.u32 %v2362_v4, 16  ;;  %v1849_v44 = vunpack.c.l.b16 %v1739_v14 }
  0x9d   : > { %v1257_v6 = vor.u32 %v1256_v23, %v1252_v47  ;;  %v2412_v46 = vrot.slane %v2410_v40, 4  ;;  %v2415_v48 = vrot.slane %v2413_v16, 5  ;;  %v2429_v18 = vshll.u32 %v2363_v27, 16  ;;  %v5531_v16 = vld [vmem:[#allocation2 + $0xc] sm:$0xff] }
  0x9e   : > { %v1253_v56 = vsel %vm5819_vm12, %v1248_v61, %v1252_v47  ;;  %v833_v12 = vld [vmem:[#allocation2 + $0x24] sm:$0xf]  ;;  %v2421_v49 = vrot.slane %v2419_v30, 5  ;;  %v2425_v52 = vrot.slane %v2423_v29, 4  ;;  %v1880_v57 = vpack.c.b16 %v1849_v44, %v1848_v3  ;;  %v2365_v3 = vld [vmem:[#allocation2 + $0x1c] sm:$0xf] }
  0x9f   : > { %v1258_v17 = vrot.slane %v1257_v6, 4  ;;  %v6168_v35 = vld [vmem:[#allocation2 + $0x28] sm:$0xf]  ;;  %v953_v19 = vshrl.u32 %v833_v12, 16  ;;  %v956_v9 = vshll.u32 %v833_v12, 16  ;;  %v1297_v22 = vunpack.c.l.b16 %v1253_v56 }
  0xa0   : > { %v6170_v24 = vld [vmem:[#allocation2 + $0x2c] sm:$0x1]  ;;  %v962_v15 = vshll.u32 %v6168_v35, 16  ;;  %v966_v26 = vshrl.u32 %v6168_v35, 16  ;;  %v1742_v59 = vrot.slane %v5964_v53, 5  ;;  %v2416_v47 = vor.u32 %v2415_v48, %v2412_v46 }
  0xa1   : > { %v1263_v31 = vsel %vm5819_vm12, %v1258_v17, %v1262_v7  ;;  %v955_v41 = vrot.slane %v953_v19, 4  ;;  %v958_v33 = vrot.slane %v956_v9, 5  ;;  %v972_v25 = vshll.u32 %v6170_v24, 16  ;;  %v2364_v53 = vld [vmem:[#allocation2 + $0x18] sm:$0xf] }
  0xa2   : > { %v1298_v38 = vunpack.c.l.b16 %v1263_v31  ;;  %v964_v43 = vrot.slane %v962_v15, 5  ;;  %v968_v39 = vrot.slane %v966_v26, 4  ;;  %v2426_v23 = vor.u32 %v2425_v52, %v2421_v49  ;;  %v1684_v12 = vld [vmem:[#allocation2 + $0x18] sm:$0xe]  ;;  %v5549_v31 = vld [vmem:[#allocation2 + $0xc] sm:$0xff] }
  0xa3   : > { %v959_v45 = vor.u32 %v958_v33, %v955_v41  ;;  %5180 = vmatmul.msk.bf16.vlgmr.msrb.gmra.mxu1 %vm1321_vm11, %v5530_v21  ;;  %v974_v32 = vrot.slane %v972_v25, 5  ;;  %v5197_v56 = vrot.slane %v1683_v63, 9  ;;  %v1744_v6 = vrot.slane %v1742_v59, 4 }
  0xa4   : > { %v1314_v50 = vpack.c.b16 %v1298_v38, %v1297_v22  ;;  %v969_v51 = vor.u32 %v968_v39, %v964_v43  ;;  %v1745_v7 = vrot.slane %v5982_v20, 5  ;;  %v2417_v8 = vrot.slane %v2416_v47, 4 }
  0xa5   : > { %v960_v54 = vrot.slane %v959_v45, 4  ;;  %v2427_v10 = vrot.slane %v2426_v23, 4  ;;  %v2431_v11 = vrot.slane %v2429_v18, 5  ;;  %v1749_v21 = vrot.slane %v6066_v62, 5 }
  0xa6   : > { %5111 = vmatmul.msk.bf16.gmra.mxu3 %vm1321_vm11, %v1314_v50  ;;  %v970_v55 = vrot.slane %v969_v51, 4  ;;  %v1752_v14 = vrot.slane %v6074_v28, 5  ;;  %v5198_v40 = vrot.slane %v1684_v12, 9  ;;  %v1743_v17 = vsel %vm6148_vm15, %v5197_v56, %v1742_v59  ;;  %v2366_v51 = vld [vmem:[#allocation2 + $0x20] sm:$0x1] }
  0xa7   : > { %v965_v58 = vsel %vm5819_vm12, %v960_v54, %v964_v43  ;;  %v1746_v20 = vsel %vm6148_vm15, %v1744_v6, %v1745_v7  ;;  %v1751_v19 = vrot.slane %v1749_v21, 4  ;;  %v2422_v9 = vsel %vm5819_vm12, %v2417_v8, %v2421_v49  ;;  %v2368_v59 = vld [vmem:[#allocation2 + $0x28] sm:$0xf]  ;;  %v2369_v12 = vld [vmem:[#allocation2 + $0x2c] sm:$0x1] }
  0xa8   : > { %v975_v60 = vsel %vm5819_vm12, %v970_v55, %v974_v32  ;;  %v1273_v61 = vunpack.c.l.b16 %v965_v58  ;;  %v2432_v30 = vsel %vm5819_vm12, %v2427_v10, %v2431_v11  ;;  %v2434_v22 = vshrl.u32 %v2364_v53, 16 }
  0xa9   : > { %v1274_v2 = vunpack.c.l.b16 %v975_v60  ;;  %v1750_v62 = vsel %vm6148_vm15, %v5198_v40, %v1749_v21  ;;  %v2437_v28 = vshll.u32 %v2364_v53, 16  ;;  %v2443_v15 = vshll.u32 %v2365_v3, 16  ;;  %v5532_v60 = vld [vmem:[#allocation2 + $0x18] sm:$0xff] }
  0xaa   : > { %v1753_v26 = vsel %vm6148_vm15, %v1751_v19, %v1752_v14  ;;  %v1852_v29 = vunpack.c.l.b16 %v1750_v62  ;;  %v1850_v41 = vunpack.c.l.b16 %v1743_v17  ;;  %v1851_v33 = vunpack.c.l.b16 %v1746_v20  ;;  %v1685_v14 = vld [vmem:[#allocation2 + $0x24] sm:$0xe] }
  0xab   : > { %5218 = vmatmul.msk.bf16.vlgmr.msrb.gmra.mxu2 %vm1321_vm11, %v1880_v57  ;;  %v1302_v4 = vpack.c.b16 %v1274_v2, %v1273_v61  ;;  %v2447_v25 = vshrl.u32 %v2365_v3, 16  ;;  %v1853_v38 = vunpack.c.l.b16 %v1753_v26  ;;  %v2796_v39 = vunpack.c.l.b16 %v2422_v9  ;;  %v2367_v57 = vld [vmem:[#allocation2 + $0x24] sm:$0xf] }
  0xac   : > { %v2797_v44 = vunpack.c.l.b16 %v2432_v30  ;;  %v2436_v45 = vrot.slane %v2434_v22, 4  ;;  %v2439_v46 = vrot.slane %v2437_v28, 5  ;;  %v1881_v48 = vpack.c.b16 %v1851_v33, %v1850_v41  ;;  %v2370_v28 = vld [vmem:[#allocation2 + $0x30] sm:$0xf] }
  0xad   : > { %5099 = vmatmul.msk.bf16.gmra.mxu0 %vm1321_vm11, %v1302_v4  ;;  %v1882_v43 = vpack.c.b16 %v1853_v38, %v1852_v29  ;;  %v2445_v49 = vrot.slane %v2443_v15, 5  ;;  %v2449_v50 = vrot.slane %v2447_v25, 4  ;;  %v2453_v54 = vshll.u32 %v2366_v51, 16  ;;  %v5550_v4 = vld [vmem:[#allocation2 + $0x18] sm:$0xff]  ;;  %v5533_v15 = vld [vmem:[#allocation2 + $0x24] sm:$0xff] }
  0xae   : > { %v2828_v32 = vpack.c.b16 %v2797_v44, %v2796_v39  ;;  %v2440_v27 = vor.u32 %v2439_v46, %v2436_v45  ;;  %v2458_v61 = vshrl.u32 %v2367_v57, 16  ;;  %v2461_v23 = vshll.u32 %v2367_v57, 16  ;;  %v2371_v29 = vld [vmem:[#allocation2 + $0x34] sm:$0xf]  ;;  %v5551_v25 = vld [vmem:[#allocation2 + $0x24] sm:$0xff]  ;;  %v6224_v45 = vpop.f32.mrf.mxu1 }
  0xaf   : > { %v2450_v52 = vor.u32 %v2449_v50, %v2445_v49  ;;  %v2455_v18 = vrot.slane %v2453_v54, 5  ;;  %v2467_v63 = vshll.u32 %v2368_v59, 16  ;;  %v2471_v2 = vshrl.u32 %v2368_v59, 16  ;;  %v5601_v54 = vld [vmem:[#allocation2 + $0x34] sm:$0xf] }
  0xb0   : > { %v2441_v55 = vrot.slane %v2440_v27, 4  ;;  %v2460_v7 = vrot.slane %v2458_v61, 4  ;;  %v2463_v10 = vrot.slane %v2461_v23, 5  ;;  %v1756_v21 = vrot.slane %v6168_v35, 5  ;;  %v1686_v57 = vld [vmem:[#allocation2 + $0x30] sm:$0xe] }
  0xb1   : > { %v2451_v58 = vrot.slane %v2450_v52, 4  ;;  %v2469_v11 = vrot.slane %v2467_v63, 5  ;;  %v2473_v53 = vrot.slane %v2471_v2, 4  ;;  %v2477_v17 = vshll.u32 %v2369_v12, 16  ;;  %v2372_v52 = vld [vmem:[#allocation2 + $0x38] sm:$0x1] }
  0xb2   : > { %v2446_v47 = vsel %vm5819_vm12, %v2441_v55, %v2445_v49  ;;  %v2464_v40 = vor.u32 %v2463_v10, %v2460_v7  ;;  %v5199_v20 = vrot.slane %v1685_v14, 9  ;;  %v1758_v19 = vrot.slane %v1756_v21, 4  ;;  %v5602_v23 = vld [vmem:[#allocation2 + $0x38] sm:$0x1]  ;;  %v2373_v2 = vld [vmem:[#allocation2 + $0x3c] sm:$0xf] }
  0xb3   : > { %5181 = vmatmul.msk.bf16.gmra.mxu1 %vm1321_vm11, %v5531_v16  ;;  %v2456_v56 = vsel %vm5819_vm12, %v2451_v58, %v2455_v18  ;;  %v2798_v6 = vunpack.c.l.b16 %v2446_v47  ;;  %v2474_v16 = vor.u32 %v2473_v53, %v2469_v11  ;;  %v1759_v9 = vrot.slane %v6170_v24, 5  ;;  %v5534_v10 = vld [vmem:[#allocation2 + $0x30] sm:$0xff] }
  0xb4   : > { %v2799_v8 = vunpack.c.l.b16 %v2456_v56  ;;  %v2465_v30 = vrot.slane %v2464_v40, 4  ;;  %v2479_v62 = vrot.slane %v2477_v17, 5  ;;  %v1757_v35 = vsel %vm6148_vm15, %v5199_v20, %v1756_v21 }
  0xb5   : > { %v2475_v22 = vrot.slane %v2474_v16, 4  ;;  %v1760_v26 = vsel %vm6148_vm15, %v1758_v19, %v1759_v9  ;;  %v2482_v41 = vshrl.u32 %v2370_v28, 16  ;;  %v2485_v33 = vshll.u32 %v2370_v28, 16  ;;  %v5552_v16 = vld [vmem:[#allocation2 + $0x30] sm:$0xff] }
  0xb6   : > { %5304 = vmatmul.msk.bf16.vlgmr.msrb.gmra.mxu3 %vm1321_vm11, %v5549_v31  ;;  %v2829_v3 = vpack.c.b16 %v2799_v8, %v2798_v6  ;;  %v2470_v31 = vsel %vm5819_vm12, %v2465_v30, %v2469_v11  ;;  %v1854_v38 = vunpack.c.l.b16 %v1757_v35  ;;  %v2491_v39 = vshll.u32 %v2371_v29, 16  ;;  %v6229_v8 = vpop.f32.mrf.mxu1 }
  0xb7   : > { %v2480_v24 = vsel %vm5819_vm12, %v2475_v22, %v2479_v62  ;;  %v2495_v44 = vshrl.u32 %v2371_v29, 16  ;;  %v2800_v46 = vunpack.c.l.b16 %v2470_v31  ;;  %v2484_v49 = vrot.slane %v2482_v41, 4  ;;  %v6235_v40 = vpop.f32.mrf.mxu2  ;;  %v5603_v31 = vld [vmem:[#allocation2 + $0x40] sm:$0xf] }
  0xb8   : > { %v2487_v51 = vrot.slane %v2485_v33, 5  ;;  %v1763_v55 = vrot.slane %v5601_v54, 5  ;;  %v5200_v61 = vrot.slane %v1686_v57, 9  ;;  %v1766_v63 = vrot.slane %v5602_v23, 5  ;;  %v6251_v54 = vpop.f32.mrf.mxu0  ;;  %v2377_v57 = vld [vmem:[#allocation2 + $0x4c] sm:$0xf] }
  0xb9   : > { %v2497_v27 = vrot.slane %v2495_v44, 4  ;;  %v2506_v12 = vshrl.u32 %v2373_v2, 16  ;;  %v2509_v21 = vshll.u32 %v2373_v2, 16  ;;  %v2543_v2 = vshrl.u32 %v2377_v57, 16 }
  0xba   : > { %v2488_v18 = vor.u32 %v2487_v51, %v2484_v49  ;;  %v1765_v47 = vrot.slane %v1763_v55, 4  ;;  %v1764_v11 = vsel %vm6148_vm15, %v5200_v61, %v1763_v55  ;;  %v5604_v49 = vld [vmem:[#allocation2 + $0x44] sm:$0x1]  ;;  %v2376_v55 = vld [vmem:[#allocation2 + $0x48] sm:$0xf] }
  0xbb   : > { %5219 = vmatmul.msk.bf16.gmra.mxu2 %vm1321_vm11, %v1881_v48  ;;  %v2801_v48 = vunpack.c.l.b16 %v2480_v24  ;;  %v1856_v19 = vunpack.c.l.b16 %v1764_v11  ;;  %v2508_v30 = vrot.slane %v2506_v12, 4  ;;  %v2511_v22 = vrot.slane %v2509_v21, 5 }
  0xbc   : > { %v2489_v56 = vrot.slane %v2488_v18, 4  ;;  %v1767_v53 = vsel %vm6148_vm15, %v1765_v47, %v1766_v63  ;;  %v1770_v24 = vrot.slane %v5603_v31, 5  ;;  %v2530_v47 = vshrl.u32 %v2376_v55, 16  ;;  %v5606_v31 = vld [vmem:[#allocation2 + $0x50] sm:$0x1] }
  0xbd   : > { %5326 = vmatmul.msk.bf16.vlgmr.msrb.gmra.mxu0 %vm1321_vm11, %v2828_v32  ;;  %v2493_v32 = vrot.slane %v2491_v39, 5  ;;  %v2830_v58 = vpack.c.b16 %v2801_v48, %v2800_v46  ;;  %v1857_v9 = vunpack.c.l.b16 %v1767_v53  ;;  %v2512_v41 = vor.u32 %v2511_v22, %v2508_v30  ;;  %v1688_v22 = vld [vmem:[#allocation2 + $0x48] sm:$0xe] }
  0xbe   : > { %v1772_v48 = vrot.slane %v1770_v24, 4  ;;  %v2533_v23 = vshll.u32 %v2376_v55, 16  ;;  %v2539_v63 = vshll.u32 %v2377_v57, 16  ;;  %v2532_v53 = vrot.slane %v2530_v47, 4 }
  0xbf   : > { %v2498_v59 = vor.u32 %v2497_v27, %v2493_v32  ;;  %v2494_v17 = vsel %vm5819_vm12, %v2489_v56, %v2493_v32  ;;  %v1884_v29 = vpack.c.b16 %v1857_v9, %v1856_v19  ;;  %v6246_v44 = vpop.f32.mrf.mxu2  ;;  %v2513_v51 = vrot.slane %v2512_v41, 4  ;;  %v5605_v19 = vld [vmem:[#allocation2 + $0x4c] sm:$0xf] }
  0xc0   : > { %v2535_v12 = vrot.slane %v2533_v23, 5  ;;  %v2541_v21 = vrot.slane %v2539_v63, 5  ;;  %v1777_v9 = vrot.slane %v5605_v19, 5  ;;  %v6269_v30 = vpop.f32.mrf.mxu0 }
  0xc1   : > { %v2499_v6 = vrot.slane %v2498_v59, 4 }
  0xc3   : > { %5182 = vmatmul.msk.bf16.gmra.mxu1 %vm1321_vm11, %v5532_v60  ;;  %v2501_v60 = vshll.u32 %v2372_v52, 16  ;;  %v6249_v52 = vpop.f32.mrf.mxu3 }
  0xc5   : > { %v2503_v7 = vrot.slane %v2501_v60, 5 }
  0xc6   : > { %5305 = vmatmul.msk.bf16.gmra.mxu3 %vm1321_vm11, %v5550_v4  ;;  %v2374_v4 = vld [vmem:[#allocation2 + $0x40] sm:$0xf] }
  0xc7   : > { %v2515_v14 = vshll.u32 %v2374_v4, 16  ;;  %v2504_v20 = vsel %vm5819_vm12, %v2499_v6, %v2503_v7 }
  0xc8   : > { %v2803_v35 = vunpack.c.l.b16 %v2504_v20 }
  0xc9   : > { %v2517_v62 = vrot.slane %v2515_v14, 5  ;;  %v2545_v14 = vrot.slane %v2543_v2, 4 }
  0xcb   : > { %5220 = vmatmul.msk.bf16.gmra.mxu2 %vm1321_vm11, %v1882_v43  ;;  %v1855_v43 = vunpack.c.l.b16 %v1760_v26  ;;  %v2375_v26 = vld [vmem:[#allocation2 + $0x44] sm:$0x1]  ;;  %v2518_v60 = vsel %vm5819_vm12, %v2513_v51, %v2517_v62  ;;  %v6267_v20 = vpop.f32.mrf.mxu3  ;;  %v2380_v51 = vld [vmem:[#allocation2 + $0x58] sm:$0xf] }
  0xcc   : > { %v2563_v47 = vshll.u32 %v2380_v51, 16  ;;  %v2567_v23 = vshrl.u32 %v2380_v51, 16 }
  0xcd   : > { %5327 = vmatmul.msk.bf16.gmra.mxu0 %vm1321_vm11, %v2829_v3  ;;  %v1883_v50 = vpack.c.b16 %v1855_v43, %v1854_v38  ;;  %v2519_v3 = vshrl.u32 %v2374_v4, 16  ;;  %v6243_v38 = vpop.f32.mrf.mxu1  ;;  %v1687_v43 = vld [vmem:[#allocation2 + $0x3c] sm:$0xe] }
  0xce   : > { %v5201_v46 = vrot.slane %v1687_v43, 9  ;;  %v5553_v4 = vld [vmem:[#allocation2 + $0x3c] sm:$0xff] }
  0xcf   : > { %v2521_v28 = vrot.slane %v2519_v3, 4 }
  0xd0   : > { %v1771_v18 = vsel %vm6148_vm15, %v5201_v46, %v1770_v24  ;;  %v1780_v24 = vrot.slane %v5606_v31, 5 }
  0xd1   : > { %v2522_v33 = vor.u32 %v2521_v28, %v2517_v62  ;;  %v1858_v56 = vunpack.c.l.b16 %v1771_v18  ;;  %v2536_v28 = vor.u32 %v2535_v12, %v2532_v53  ;;  %v2381_v12 = vld [vmem:[#allocation2 + $0x5c] sm:$0x1] }
  0xd3   : > { %5183 = vmatmul.msk.bf16.gmra.mxu1 %vm1321_vm11, %v5533_v15  ;;  %v2802_v15 = vunpack.c.l.b16 %v2494_v17  ;;  %v2523_v32 = vrot.slane %v2522_v33, 4  ;;  %v2378_v17 = vld [vmem:[#allocation2 + $0x50] sm:$0x1]  ;;  %v2537_v33 = vrot.slane %v2536_v28, 4 }
  0xd5   : > { %v2831_v39 = vpack.c.b16 %v2803_v35, %v2802_v15  ;;  %v6261_v7 = vpop.f32.mrf.mxu1  ;;  %v2546_v15 = vor.u32 %v2545_v14, %v2541_v21  ;;  %v2549_v35 = vshll.u32 %v2378_v17, 16  ;;  %v1689_v14 = vld [vmem:[#allocation2 + $0x54] sm:$0xe] }
  0xd6   : > { %5306 = vmatmul.msk.bf16.gmra.mxu3 %vm1321_vm11, %v5551_v25  ;;  %v2525_v25 = vshll.u32 %v2375_v26, 16  ;;  %v5202_v26 = vrot.slane %v1688_v22, 9  ;;  %v2573_v22 = vshll.u32 %v2381_v12, 16  ;;  %v5203_v28 = vrot.slane %v1689_v14, 9  ;;  %v5607_v12 = vld [vmem:[#allocation2 + $0x64] sm:$0xf] }
  0xd7   : > { %v2551_v43 = vrot.slane %v2549_v35, 5  ;;  %v1787_v35 = vrot.slane %v6101_v13, 5 }
  0xd8   : > { %v2527_v27 = vrot.slane %v2525_v25, 5  ;;  %v6264_v3 = vpop.f32.mrf.mxu2  ;;  %v2547_v25 = vrot.slane %v2546_v15, 4 }
  0xda   : > { %v2528_v61 = vsel %vm5819_vm12, %v2523_v32, %v2527_v27  ;;  %v2542_v32 = vsel %vm5819_vm12, %v2537_v33, %v2541_v21  ;;  %v2552_v27 = vsel %vm5819_vm12, %v2547_v25, %v2551_v43  ;;  %v1784_v21 = vrot.slane %v6091_v37, 5  ;;  %v2382_v37 = vld [vmem:[#allocation2 + $0x60] sm:$0xf]  ;;  %v5537_v25 = vld [vmem:[#allocation2 + $0x54] sm:$0xff] }
  0xdb   : > { %5221 = vmatmul.msk.bf16.gmra.mxu2 %vm1321_vm11, %v1883_v50  ;;  %v1773_v50 = vrot.slane %v5604_v49, 5  ;;  %v2805_v11 = vunpack.c.l.b16 %v2528_v61  ;;  %v1778_v49 = vsel %vm6148_vm15, %v5202_v26, %v1777_v9  ;;  %v2806_v63 = vunpack.c.l.b16 %v2542_v32  ;;  %v5555_v32 = vld [vmem:[#allocation2 + $0x54] sm:$0xff] }
  0xdc   : > { %v2807_v2 = vunpack.c.l.b16 %v2552_v27  ;;  %v1786_v15 = vrot.slane %v1784_v21, 4  ;;  %v2575_v33 = vrot.slane %v2573_v22, 5  ;;  %v1785_v43 = vsel %vm6148_vm15, %v5203_v28, %v1784_v21  ;;  %v1690_v22 = vld [vmem:[#allocation2 + $0x60] sm:$0xe] }
  0xdd   : > { %5328 = vmatmul.msk.bf16.gmra.mxu0 %vm1321_vm11, %v2830_v58  ;;  %v5535_v58 = vld [vmem:[#allocation2 + $0x3c] sm:$0xff]  ;;  %v1774_v59 = vsel %vm6148_vm15, %v1772_v48, %v1773_v50  ;;  %v5536_v48 = vld [vmem:[#allocation2 + $0x48] sm:$0xff]  ;;  %v6285_v55 = vpop.f32.mrf.mxu3  ;;  %v2581_v13 = vshll.u32 %v2382_v37, 16  ;;  %v1791_v21 = vrot.slane %v5607_v12, 5 }
  0xde   : > { %v1859_v6 = vunpack.c.l.b16 %v1774_v59  ;;  %v5554_v59 = vld [vmem:[#allocation2 + $0x48] sm:$0xff] }
  0xe0   : > { %v6275_v46 = vpop.f32.mrf.mxu2 }
  0xe3   : > { %5184 = vmatmul.msk.bf16.gmra.mxu1 %vm1321_vm11, %v5534_v10  ;;  %v2804_v10 = vunpack.c.l.b16 %v2518_v60  ;;  %v1860_v60 = vunpack.c.l.b16 %v1778_v49  ;;  %v2578_v49 = vshrl.u32 %v2382_v37, 16  ;;  %v5204_v37 = vrot.slane %v1690_v22, 9 }
  0xe4   : > { %v6287_v18 = vpop.f32.mrf.mxu0 }
  0xe5   : > { %v2832_v62 = vpack.c.b16 %v2805_v11, %v2804_v10  ;;  %v2565_v10 = vrot.slane %v2563_v47, 5  ;;  %v2569_v11 = vrot.slane %v2567_v23, 4  ;;  %v2583_v47 = vrot.slane %v2581_v13, 5  ;;  %v5538_v13 = vld [vmem:[#allocation2 + $0x60] sm:$0xff] }
  0xe6   : > { %5307 = vmatmul.msk.bf16.gmra.mxu3 %vm1321_vm11, %v5552_v16  ;;  %v1885_v16 = vpack.c.b16 %v1859_v6, %v1858_v56 }
  0xeb   : > { %5222 = vmatmul.msk.bf16.gmra.mxu2 %vm1321_vm11, %v1884_v29  ;;  %v1779_v29 = vrot.slane %v1777_v9, 4  ;;  %v2570_v9 = vor.u32 %v2569_v11, %v2565_v10 }
  0xec   : > { %v6300_v26 = vpop.f32.mrf.mxu0 }
  0xed   : > { %5329 = vmatmul.msk.bf16.gmra.mxu0 %vm1321_vm11, %v2831_v39  ;;  %v6272_v41 = vpop.f32.mrf.mxu1  ;;  %v2379_v39 = vld [vmem:[#allocation2 + $0x54] sm:$0xf]  ;;  %v1781_v50 = vsel %vm6148_vm15, %v1779_v29, %v1780_v24  ;;  %v2383_v29 = vld [vmem:[#allocation2 + $0x64] sm:$0xf]  ;;  %v2571_v24 = vrot.slane %v2570_v9, 4 }
  0xee   : > { %v2554_v57 = vshrl.u32 %v2379_v39, 16  ;;  %v1861_v61 = vunpack.c.l.b16 %v1781_v50  ;;  %v2587_v50 = vshll.u32 %v2383_v29, 16  ;;  %v2591_v51 = vshrl.u32 %v2383_v29, 16 }
  0xef   : > { %v1793_v29 = vrot.slane %v1791_v21, 4 }
  0xf0   : > { %v1886_v56 = vpack.c.b16 %v1861_v61, %v1860_v60  ;;  %v2580_v61 = vrot.slane %v2578_v49, 4  ;;  %v2589_v23 = vrot.slane %v2587_v50, 5  ;;  %v1792_v50 = vsel %vm6148_vm15, %v5204_v37, %v1791_v21 }
  0xf2   : > { %v2584_v14 = vor.u32 %v2583_v47, %v2580_v61 }
  0xf3   : > { %5185 = vmatmul.msk.bf16.gmra.mxu1 %vm1321_vm11, %v5535_v58  ;;  %v2557_v58 = vshll.u32 %v2379_v39, 16  ;;  %v1788_v39 = vsel %vm6148_vm15, %v1786_v15, %v1787_v35  ;;  %v5608_v15 = vld [vmem:[#allocation2 + $0x68] sm:$0x1] }
  0xf4   : > { %v1794_v35 = vrot.slane %v5608_v15, 5  ;;  %v5609_v15 = vld [vmem:[#allocation2 + $0x70] sm:$0xf] }
  0xf5   : > { %v2559_v6 = vrot.slane %v2557_v58, 5  ;;  %v6291_v53 = vpop.f32.mrf.mxu1  ;;  %v1862_v58 = vunpack.c.l.b16 %v1785_v43  ;;  %v2385_v43 = vld [vmem:[#allocation2 + $0x6c] sm:$0xf] }
  0xf6   : > { %5308 = vmatmul.msk.bf16.gmra.mxu3 %vm1321_vm11, %v5553_v4  ;;  %v2556_v4 = vrot.slane %v2554_v57, 4  ;;  %v2576_v57 = vsel %vm5819_vm12, %v2571_v24, %v2575_v33  ;;  %v2605_v61 = vshll.u32 %v2385_v43, 16 }
  0xf8   : > { %v2560_v19 = vor.u32 %v2559_v6, %v2556_v4  ;;  %v2809_v4 = vunpack.c.l.b16 %v2576_v57  ;;  %v2384_v6 = vld [vmem:[#allocation2 + $0x68] sm:$0x1] }
  0xf9   : > { %v6294_v17 = vpop.f32.mrf.mxu2 }
  0xfa   : > { %v2561_v31 = vrot.slane %v2560_v19, 4  ;;  %v2597_v19 = vshll.u32 %v2384_v6, 16 }
  0xfb   : > { %5223 = vmatmul.msk.bf16.gmra.mxu2 %vm1321_vm11, %v1885_v16  ;;  %v2833_v16 = vpack.c.b16 %v2807_v2, %v2806_v63  ;;  %v2593_v63 = vrot.slane %v2591_v51, 4  ;;  %v1795_v51 = vsel %vm6148_vm15, %v1793_v29, %v1794_v35  ;;  %v1798_v35 = vrot.slane %v5609_v15, 5  ;;  %v1691_v29 = vld [vmem:[#allocation2 + $0x6c] sm:$0xe] }
  0xfc   : > { %v2566_v27 = vsel %vm5819_vm12, %v2561_v31, %v2565_v10  ;;  %v2585_v31 = vrot.slane %v2584_v14, 4  ;;  %v2599_v33 = vrot.slane %v2597_v19, 5  ;;  %v1865_v6 = vunpack.c.l.b16 %v1795_v51 }
  0xfd   : > { %5330 = vmatmul.msk.bf16.gmra.mxu0 %vm1321_vm11, %v2832_v62  ;;  %v6297_v62 = vpop.f32.mrf.mxu3  ;;  %v2808_v2 = vunpack.c.l.b16 %v2566_v27 }
  0xfe   : > { %v2590_v27 = vsel %vm5819_vm12, %v2585_v31, %v2589_v23 }
  0xff   : > { %v2834_v28 = vpack.c.b16 %v2809_v4, %v2808_v2  ;;  %v5556_v2 = vld [vmem:[#allocation2 + $0x60] sm:$0xff]  ;;  %v1864_v4 = vunpack.c.l.b16 %v1792_v50  ;;  %v5610_v50 = vld [vmem:[#allocation2 + $0x74] sm:$0x1] }
 0x100   : > { %v1801_v51 = vrot.slane %v5610_v50, 5 }
 0x101   : > { %v6313_v60 = vpop.f32.mrf.mxu2  ;;  %v1888_v22 = vpack.c.b16 %v1865_v6, %v1864_v4  ;;  %v2388_v6 = vld [vmem:[#allocation2 + $0x78] sm:$0xf] }
 0x102   : > { %v2629_v15 = vshll.u32 %v2388_v6, 16 }
 0x103   : > { %5186 = vmatmul.msk.bf16.gmra.mxu1 %vm1321_vm11, %v5536_v48 }
 0x106   : > { %5309 = vmatmul.msk.bf16.gmra.mxu3 %vm1321_vm11, %v5554_v59  ;;  %v1863_v59 = vunpack.c.l.b16 %v1788_v39  ;;  %v2386_v39 = vld [vmem:[#allocation2 + $0x70] sm:$0xf] }
 0x107   : > { %v2611_v47 = vshll.u32 %v2386_v39, 16 }
 0x108   : > { %v1887_v10 = vpack.c.b16 %v1863_v59, %v1862_v58  ;;  %v2602_v59 = vshrl.u32 %v2385_v43, 16 }
 0x109   : > { %v6318_v11 = vpop.f32.mrf.mxu0 }
 0x10a   : > { %v2604_v14 = vrot.slane %v2602_v59, 4 }
 0x10b   : > { %5224 = vmatmul.msk.bf16.gmra.mxu2 %vm1321_vm11, %v1886_v56  ;;  %v6316_v56 = vpop.f32.mrf.mxu3 }
 0x10d   : > { %5331 = vmatmul.msk.bf16.gmra.mxu0 %vm1321_vm11, %v2833_v16  ;;  %v2594_v16 = vor.u32 %v2593_v63, %v2589_v23  ;;  %v2615_v63 = vshrl.u32 %v2386_v39, 16  ;;  %v2613_v23 = vrot.slane %v2611_v47, 5 }
 0x10f   : > { %v2595_v24 = vrot.slane %v2594_v16, 4  ;;  %v2607_v16 = vrot.slane %v2605_v61, 5  ;;  %v2617_v19 = vrot.slane %v2615_v63, 4 }
 0x110   : > { %v6307_v48 = vpop.f32.mrf.mxu1 }
 0x111   : > { %v2600_v57 = vsel %vm5819_vm12, %v2595_v24, %v2599_v33  ;;  %v2608_v33 = vor.u32 %v2607_v16, %v2604_v14  ;;  %v2618_v43 = vor.u32 %v2617_v19, %v2613_v23  ;;  %v2389_v16 = vld [vmem:[#allocation2 + $0x7c] sm:$0xf] }
 0x112   : > { %v2811_v12 = vunpack.c.l.b16 %v2600_v57  ;;  %v1800_v57 = vrot.slane %v1798_v35, 4 }
 0x113   : > { %5187 = vmatmul.msk.bf16.gmra.mxu1 %vm1321_vm11, %v5537_v25  ;;  %v6327_v49 = vpop.f32.mrf.mxu3  ;;  %v2609_v61 = vrot.slane %v2608_v33, 4  ;;  %v2619_v47 = vrot.slane %v2618_v43, 4  ;;  %v2635_v43 = vshll.u32 %v2389_v16, 16 }
 0x114   : > { %7238 = vst [vmem:[#allocation3_spill] sm:$0xff] %v6327_v49  ;;  %v1802_v14 = vsel %vm6148_vm15, %v1800_v57, %v1801_v51 }
 0x116   : > { %5310 = vmatmul.msk.bf16.gmra.mxu3 %vm1321_vm11, %v5555_v32  ;;  %v6333_v32 = vpop.f32.mrf.mxu0 }
 0x118   : > { %v6321_v9 = vpop.f32.mrf.mxu1 }
 0x11b   : > { %5225 = vmatmul.msk.bf16.gmra.mxu2 %vm1321_vm11, %v1887_v10  ;;  %v2810_v10 = vunpack.c.l.b16 %v2590_v27  ;;  %v5205_v27 = vrot.slane %v1691_v29, 9 }
 0x11d   : > { %5332 = vmatmul.msk.bf16.gmra.mxu0 %vm1321_vm11, %v2834_v28  ;;  %v2387_v28 = vld [vmem:[#allocation2 + $0x74] sm:$0x1]  ;;  %v2835_v31 = vpack.c.b16 %v2811_v12, %v2810_v10  ;;  %v5539_v10 = vld [vmem:[#allocation2 + $0x6c] sm:$0xff]  ;;  %v1799_v12 = vsel %vm6148_vm15, %v5205_v27, %v1798_v35  ;;  %v1867_v35 = vunpack.c.l.b16 %v1802_v14 }
 0x11e   : > { %v6325_v25 = vpop.f32.mrf.mxu2  ;;  %v2621_v39 = vshll.u32 %v2387_v28, 16  ;;  %v2626_v28 = vshrl.u32 %v2388_v6, 16  ;;  %v1866_v33 = vunpack.c.l.b16 %v1799_v12  ;;  %v2390_v6 = vld [vmem:[#allocation2 + $0x80] sm:$0x1]  ;;  %v5611_v12 = vld [vmem:[#allocation2 + $0x7c] sm:$0xf] }
 0x11f   : > { %v1805_v14 = vrot.slane %v5611_v12, 5 }
 0x120   : > { %v1602_v58 = vpop.f32.mrf.mxu1  ;;  %v2623_v63 = vrot.slane %v2621_v39, 5  ;;  %v2639_v39 = vshrl.u32 %v2389_v16, 16  ;;  %v1692_v16 = vld [vmem:[#allocation2 + $0x78] sm:$0xe] }
 0x121   : > { %v1603_v59 = vadd.f32 %v1602_v58, %v6251_v54  ;;  %v2614_v54 = vsel %vm5819_vm12, %v2609_v61, %v2613_v23  ;;  %v2628_v23 = vrot.slane %v2626_v28, 4  ;;  %v5612_v28 = vld [vmem:[#allocation2 + $0x80] sm:$0x1] }
 0x122   : > { %v2624_v58 = vsel %vm5819_vm12, %v2619_v47, %v2623_v63  ;;  %v2812_v51 = vunpack.c.l.b16 %v2614_v54  ;;  %v1889_v47 = vpack.c.b16 %v1867_v35, %v1866_v33  ;;  %v2637_v63 = vrot.slane %v2635_v43, 5  ;;  %v2391_v43 = vld [vmem:[#allocation2 + $0x84] sm:$0xf] }
 0x123   : > { %5188 = vmatmul.msk.bf16.gmra.mxu1 %vm1321_vm11, %v5538_v13  ;;  %v2813_v27 = vunpack.c.l.b16 %v2624_v58  ;;  %v2645_v58 = vshll.u32 %v2390_v6, 16  ;;  %v1807_v33 = vrot.slane %v1805_v14, 4  ;;  %v2650_v6 = vshrl.u32 %v2391_v43, 16 }
 0x126   : > { %v6340_v21 = vpop.f32.mrf.mxu2  ;;  %5311 = vmatmul.msk.bf16.gmra.mxu3 %vm1321_vm11, %v5556_v2 }
 0x128   : > { %v1604_v37 = vpop.f32.mrf.mxu1 }
 0x129   : > { %v6343_v24 = vpop.f32.mrf.mxu3  ;;  %v1605_v50 = vadd.f32 %v1604_v37, %v6269_v30 }
 0x12a   : > { %7239 = vst [vmem:[#allocation4_spill] sm:$0xff] %v6343_v24  ;;  %v6345_v13 = vpop.f32.mrf.mxu0  ;;  %v2836_v24 = vpack.c.b16 %v2813_v27, %v2812_v51  ;;  %v2392_v27 = vld [vmem:[#allocation2 + $0x88] sm:$0xf] }
 0x12b   : > { %5226 = vmatmul.msk.bf16.gmra.mxu2 %vm1321_vm11, %v1888_v22  ;;  %v2659_v12 = vshll.u32 %v2392_v27, 16 }
 0x12d   : > { %5333 = vmatmul.msk.bf16.gmra.mxu0 %vm1321_vm11, %v2835_v31  ;;  %v5557_v31 = vld [vmem:[#allocation2 + $0x6c] sm:$0xff] }
 0x12e   : > { %v1959_v2 = vpop.f32.mrf.mxu2 }
 0x12f   : > { %v2039_v4 = vadd.f32 %v1959_v2, %v1603_v59  ;;  %v2631_v59 = vrot.slane %v2629_v15, 5  ;;  %v2641_v2 = vrot.slane %v2639_v39, 4  ;;  %v1808_v15 = vrot.slane %v5612_v28, 5 }
 0x130   : > { %v1607_v19 = vpop.f32.mrf.mxu1 }
 0x131   : > { %v6354_v22 = vpop.f32.mrf.mxu3  ;;  %v2632_v49 = vor.u32 %v2631_v59, %v2628_v23  ;;  %v2642_v54 = vor.u32 %v2641_v2, %v2637_v63  ;;  %v1608_v35 = vadd.f32 %v1607_v19, %v6287_v18  ;;  %v5540_v59 = vld [vmem:[#allocation2 + $0x78] sm:$0xff]  ;;  %v1809_v2 = vsel %vm6148_vm15, %v1807_v33, %v1808_v15 }
 0x132   : > { %7240 = vst [vmem:[#allocation5_spill] sm:$0xff] %v6354_v22  ;;  %v6360_v29 = vpop.f32.mrf.mxu0  ;;  %v2653_v19 = vshll.u32 %v2391_v43, 16  ;;  %v1869_v28 = vunpack.c.l.b16 %v1809_v2  ;;  %v2652_v15 = vrot.slane %v2650_v6, 4 }
 0x133   : > { %5189 = vmatmul.msk.bf16.gmra.mxu1 %vm1321_vm11, %v5539_v10 }
 0x134   : > { %v2655_v33 = vrot.slane %v2653_v19, 5 }
 0x136   : > { %v1961_v57 = vpop.f32.mrf.mxu2  ;;  %5312 = vmatmul.msk.bf16.gmra.mxu3 %vm1321_vm11, %v5557_v31  ;;  %v5206_v31 = vrot.slane %v1692_v16, 9  ;;  %v2663_v16 = vshrl.u32 %v2392_v27, 16  ;;  %v2656_v2 = vor.u32 %v2655_v33, %v2652_v15 }
 0x137   : > { %v2040_v61 = vadd.f32 %v1961_v57, %v1605_v50  ;;  %v2633_v50 = vrot.slane %v2632_v49, 4  ;;  %v2643_v57 = vrot.slane %v2642_v54, 4  ;;  %v5558_v54 = vld [vmem:[#allocation2 + $0x78] sm:$0xff] }
 0x138   : > { %v1609_v22 = vpop.f32.mrf.mxu1  ;;  %v2665_v43 = vrot.slane %v2663_v16, 4 }
 0x139   : > { %v2249_v10 = vpop.f32.mrf.mxu3  ;;  %v2638_v49 = vsel %vm5819_vm12, %v2633_v50, %v2637_v63 }
 0x13a   : > { %v2907_v30 = vpop.f32.mrf.mxu0  ;;  %v2329_v37 = vadd.f32 %v2249_v10, %v2039_v4  ;;  %v2647_v4 = vrot.slane %v2645_v58, 5 }
 0x13b   : > { %5227 = vmatmul.msk.bf16.gmra.mxu2 %vm1321_vm11, %v1889_v47  ;;  %v1806_v47 = vsel %vm6148_vm15, %v5206_v31, %v1805_v14  ;;  %v1610_v31 = vadd.f32 %v1609_v22, %v6300_v26  ;;  %v1693_v26 = vld [vmem:[#allocation2 + $0x84] sm:$0xe] }
 0x13c   : > { %v6367_v39 = vadd.f32 %v2907_v30, %v2329_v37  ;;  %v2648_v14 = vsel %vm5819_vm12, %v2643_v57, %v2647_v4  ;;  %v1868_v58 = vunpack.c.l.b16 %v1806_v47  ;;  %v5613_v4 = vld [vmem:[#allocation2 + $0x88] sm:$0xf] }
 0x13d   : > { %5334 = vmatmul.msk.bf16.gmra.mxu0 %vm1321_vm11, %v2836_v24  ;;  %v2815_v63 = vunpack.c.l.b16 %v2648_v14  ;;  %v1812_v47 = vrot.slane %v5613_v4, 5  ;;  %v2657_v14 = vrot.slane %v2656_v2, 4 }
 0x13e   : > { %v1964_v51 = vpop.f32.mrf.mxu2  ;;  %v1890_v57 = vpack.c.b16 %v1869_v28, %v1868_v58 }
 0x13f   : > { %v2041_v23 = vadd.f32 %v1964_v51, %v1608_v35  ;;  %v2661_v35 = vrot.slane %v2659_v12, 5  ;;  %v2814_v51 = vunpack.c.l.b16 %v2638_v49  ;;  %v5614_v49 = vld [vmem:[#allocation2 + $0x8c] sm:$0x1] }
 0x140   : > { %v1612_v18 = vpop.f32.mrf.mxu1 }
 0x141   : > { %v2251_v10 = vpop.f32.mrf.mxu3  ;;  %v1613_v24 = vadd.f32 %v1612_v18, %v6318_v11  ;;  %v2393_v11 = vld [vmem:[#allocation2 + $0x8c] sm:$0x1]  ;;  %v2837_v22 = vpack.c.b16 %v2815_v63, %v2814_v51  ;;  %v2395_v51 = vld [vmem:[#allocation2 + $0x94] sm:$0xf] }
 0x142   : > { %v2909_v30 = vpop.f32.mrf.mxu0  ;;  %v2330_v37 = vadd.f32 %v2251_v10, %v2040_v61  ;;  %v2669_v6 = vshll.u32 %v2393_v11, 16 }
 0x143   : > { %5190 = vmatmul.msk.bf16.gmra.mxu1 %vm1321_vm11, %v5540_v59  ;;  %v2666_v59 = vor.u32 %v2665_v43, %v2661_v35  ;;  %v2394_v43 = vld [vmem:[#allocation2 + $0x90] sm:$0xf] }
 0x144   : > { %v6381_v27 = vadd.f32 %v2909_v30, %v2330_v37  ;;  %v1815_v30 = vrot.slane %v5614_v49, 5  ;;  %v5207_v37 = vrot.slane %v1693_v26, 9  ;;  %v2671_v28 = vrot.slane %v2669_v6, 5 }
 0x145   : > { %v2667_v58 = vrot.slane %v2666_v59, 4  ;;  %v2677_v59 = vshll.u32 %v2394_v43, 16  ;;  %v2683_v6 = vshll.u32 %v2395_v51, 16 }
 0x146   : > { %v1966_v50 = vpop.f32.mrf.mxu2  ;;  %5313 = vmatmul.msk.bf16.gmra.mxu3 %vm1321_vm11, %v5558_v54  ;;  %v1814_v54 = vrot.slane %v1812_v47, 4 }
 0x147   : > { %v2042_v61 = vadd.f32 %v1966_v50, %v1610_v31  ;;  %v2662_v50 = vsel %vm5819_vm12, %v2657_v14, %v2661_v35  ;;  %v2672_v11 = vsel %vm5819_vm12, %v2667_v58, %v2671_v28  ;;  %v2685_v58 = vrot.slane %v2683_v6, 5 }
 0x148   : > { %v1614_v18 = vpop.f32.mrf.mxu1  ;;  %v1816_v63 = vsel %vm6148_vm15, %v1814_v54, %v1815_v30  ;;  %v2817_v35 = vunpack.c.l.b16 %v2672_v11 }
 0x149   : > { %v2254_v19 = vpop.f32.mrf.mxu3  ;;  %v1615_v12 = vadd.f32 %v1614_v18, %v6333_v32  ;;  %v5541_v32 = vld [vmem:[#allocation2 + $0x84] sm:$0xff] }
 0x14a   : > { %v2912_v16 = vpop.f32.mrf.mxu0  ;;  %v2331_v10 = vadd.f32 %v2254_v19, %v2041_v23  ;;  %v1813_v23 = vsel %vm6148_vm15, %v5207_v37, %v1812_v47  ;;  %v1871_v19 = vunpack.c.l.b16 %v1816_v63  ;;  %v2679_v37 = vrot.slane %v2677_v59, 5 }
 0x14b   : > { %5228 = vmatmul.msk.bf16.gmra.mxu2 %vm1321_vm11, %v1890_v57  ;;  %v1870_v47 = vunpack.c.l.b16 %v1813_v23 }
 0x14c   : > { %v6386_v15 = vadd.f32 %v2912_v16, %v2331_v10  ;;  %v2687_v16 = vshrl.u32 %v2395_v51, 16  ;;  %v2816_v10 = vunpack.c.l.b16 %v2662_v50  ;;  %v1694_v51 = vld [vmem:[#allocation2 + $0x90] sm:$0xe] }
 0x14d   : > { %5335 = vmatmul.msk.bf16.gmra.mxu0 %vm1321_vm11, %v2837_v22  ;;  %v5559_v22 = vld [vmem:[#allocation2 + $0x84] sm:$0xff]  ;;  %v1891_v14 = vpack.c.b16 %v1871_v19, %v1870_v47  ;;  %v5208_v6 = vrot.slane %v1694_v51, 9 }
 0x14e   : > { %v1969_v31 = vpop.f32.mrf.mxu2  ;;  %v2689_v28 = vrot.slane %v2687_v16, 4  ;;  %v2838_v63 = vpack.c.b16 %v2817_v35, %v2816_v10  ;;  %v2397_v16 = vld [vmem:[#allocation2 + $0x9c] sm:$0xf] }
 0x14f   : > { %v2043_v33 = vadd.f32 %v1969_v31, %v1613_v24  ;;  %v2674_v24 = vshrl.u32 %v2394_v43, 16  ;;  %v5615_v31 = vld [vmem:[#allocation2 + $0x94] sm:$0xf] }
 0x150   : > { %v1617_v57 = vpop.f32.mrf.mxu1  ;;  %v1819_v43 = vrot.slane %v5615_v31, 5 }
 0x151   : > { %v2256_v4 = vpop.f32.mrf.mxu3  ;;  %v1618_v2 = vadd.f32 %v1617_v57, %v6345_v13  ;;  %v2676_v30 = vrot.slane %v2674_v24, 4  ;;  %v2690_v24 = vor.u32 %v2689_v28, %v2685_v58  ;;  %v2698_v28 = vshrl.u32 %v2397_v16, 16 }
 0x152   : > { %v2914_v18 = vpop.f32.mrf.mxu0  ;;  %v2332_v26 = vadd.f32 %v2256_v4, %v2042_v61  ;;  %v2396_v61 = vld [vmem:[#allocation2 + $0x98] sm:$0x1] }
 0x153   : > { %5191 = vmatmul.msk.bf16.gmra.mxu1 %vm1321_vm11, %v5541_v32  ;;  %v2680_v50 = vor.u32 %v2679_v37, %v2676_v30  ;;  %v2693_v59 = vshll.u32 %v2396_v61, 16  ;;  %v2691_v10 = vrot.slane %v2690_v24, 4  ;;  %v1820_v30 = vsel %vm6148_vm15, %v5208_v6, %v1819_v43 }
 0x154   : > { %v6399_v54 = vadd.f32 %v2914_v18, %v2332_v26  ;;  %v1821_v26 = vrot.slane %v1819_v43, 4  ;;  %v2701_v61 = vshll.u32 %v2397_v16, 16  ;;  %v2399_v16 = vld [vmem:[#allocation2 + $0xa4] sm:$0x1] }
 0x155   : > { %v2681_v47 = vrot.slane %v2680_v50, 4  ;;  %v2695_v35 = vrot.slane %v2693_v59, 5  ;;  %v2700_v59 = vrot.slane %v2698_v28, 4 }
 0x156   : > { %v1971_v49 = vpop.f32.mrf.mxu2  ;;  %7241 = vst [vmem:[#allocation6_spill] sm:$0xff] %v6399_v54  ;;  %5314 = vmatmul.msk.bf16.gmra.mxu3 %vm1321_vm11, %v5559_v22  ;;  %v356_v54 = vld [vmem:[#allocation2 + $0xc8] sm:$0x1] }
 0x157   : > { %v2044_v13 = vadd.f32 %v1971_v49, %v1615_v12  ;;  %v5616_v12 = vld [vmem:[#allocation2 + $0x98] sm:$0x1]  ;;  %v2398_v49 = vld [vmem:[#allocation2 + $0xa0] sm:$0xf] }
 0x158   : > { %v1619_v23 = vpop.f32.mrf.mxu1  ;;  %v1822_v18 = vrot.slane %v5616_v12, 5  ;;  %v2707_v51 = vshll.u32 %v2398_v49, 16  ;;  %v2703_v12 = vrot.slane %v2701_v61, 5  ;;  %v2717_v61 = vshll.u32 %v2399_v16, 16 }
 0x159   : > { %v2259_v32 = vpop.f32.mrf.mxu3  ;;  %v1620_v11 = vadd.f32 %v1619_v23, %v6360_v29  ;;  %v2686_v23 = vsel %vm5819_vm12, %v2681_v47, %v2685_v58 }
 0x15a   : > { %v2917_v57 = vpop.f32.mrf.mxu0  ;;  %v2333_v4 = vadd.f32 %v2259_v32, %v2043_v33  ;;  %v5542_v33 = vld [vmem:[#allocation2 + $0x90] sm:$0xff]  ;;  %v1823_v37 = vsel %vm6148_vm15, %v1821_v26, %v1822_v18  ;;  %v2818_v24 = vunpack.c.l.b16 %v2686_v23  ;;  %v2709_v26 = vrot.slane %v2707_v51, 5  ;;  %v5618_v51 = vld [vmem:[#allocation2 + $0xa4] sm:$0x1] }
 0x15b   : > { %5229 = vmatmul.msk.bf16.gmra.mxu2 %vm1321_vm11, %v1891_v14  ;;  %v1873_v43 = vunpack.c.l.b16 %v1823_v37  ;;  %v1695_v37 = vld [vmem:[#allocation2 + $0x9c] sm:$0xe] }
 0x15c   : > { %v6404_v22 = vadd.f32 %v2917_v57, %v2333_v4  ;;  %v2696_v57 = vsel %vm5819_vm12, %v2691_v10, %v2695_v35  ;;  %v1872_v4 = vunpack.c.l.b16 %v1820_v30  ;;  %v2704_v35 = vor.u32 %v2703_v12, %v2700_v59  ;;  %v2400_v12 = vld [vmem:[#allocation2 + $0xa8] sm:$0xf] }
 0x15d   : > { %5336 = vmatmul.msk.bf16.gmra.mxu0 %vm1321_vm11, %v2838_v63  ;;  %v2711_v63 = vshrl.u32 %v2398_v49, 16  ;;  %v2819_v18 = vunpack.c.l.b16 %v2696_v57  ;;  %v5617_v49 = vld [vmem:[#allocation2 + $0xa0] sm:$0xf] }
 0x15e   : > { %7242 = vst [vmem:[#allocation7_spill] sm:$0xff] %v6404_v22  ;;  %v1974_v19 = vpop.f32.mrf.mxu2  ;;  %v1892_v47 = vpack.c.b16 %v1873_v43, %v1872_v4  ;;  %v1826_v10 = vrot.slane %v5617_v49, 5  ;;  %v5543_v49 = vld [vmem:[#allocation2 + $0x9c] sm:$0xff] }
 0x15f   : > { %v2045_v29 = vadd.f32 %v1974_v19, %v1618_v2  ;;  %v5560_v2 = vld [vmem:[#allocation2 + $0x90] sm:$0xff]  ;;  %v2713_v19 = vrot.slane %v2711_v63, 4  ;;  %v1829_v63 = vrot.slane %v5618_v51, 5 }
 0x160   : > { %v1622_v14 = vpop.f32.mrf.mxu1 }
 0x161   : > { %v2261_v31 = vpop.f32.mrf.mxu3  ;;  %v2714_v28 = vor.u32 %v2713_v19, %v2709_v26  ;;  %v246_v19 = vld [vmem:[%s5724_s22 + $0xf0] sm:$0xff] }
 0x162   : > { %v2919_v32 = vpop.f32.mrf.mxu0  ;;  %v2334_v50 = vadd.f32 %v2261_v31, %v2044_v13 }
 0x163   : > { %5192 = vmatmul.msk.bf16.gmra.mxu1 %vm1321_vm11, %v5542_v33  ;;  %v2839_v33 = vpack.c.b16 %v2819_v18, %v2818_v24  ;;  %v2715_v43 = vrot.slane %v2714_v28, 4  ;;  %v2719_v24 = vrot.slane %v2717_v61, 5  ;;  %v2722_v28 = vshrl.u32 %v2400_v12, 16 }
 0x164   : > { %v6416_v58 = vadd.f32 %v2919_v32, %v2334_v50  ;;  %v1828_v32 = vrot.slane %v1826_v10, 4  ;;  %v1623_v50 = vadd.f32 %v1622_v14, %v6224_v45  ;;  %v2725_v61 = vshll.u32 %v2400_v12, 16 }
 0x165   : > { %v2724_v12 = vrot.slane %v2722_v28, 4 }
 0x166   : > { %v1976_v6 = vpop.f32.mrf.mxu2  ;;  %7243 = vst [vmem:[#allocation8_spill] sm:$0xff] %v6416_v58  ;;  %5315 = vmatmul.msk.bf16.gmra.mxu3 %vm1321_vm11, %v5560_v2  ;;  %v2705_v2 = vrot.slane %v2704_v35, 4  ;;  %v1830_v14 = vsel %vm6148_vm15, %v1828_v32, %v1829_v63  ;;  %v389_v35 = vpack.c.bf16 %v246_v19, %v246_v19 }
 0x167   : > { %v2046_v13 = vadd.f32 %v1976_v6, %v1620_v11  ;;  %v5209_v11 = vrot.slane %v1695_v37, 9  ;;  %v2401_v6 = vld [vmem:[#allocation2 + $0xac] sm:$0xf]  ;;  %v1875_v32 = vunpack.c.l.b16 %v1830_v14  ;;  %v2402_v14 = vld [vmem:[#allocation2 + $0xb0] sm:$0x1] }
 0x168   : > { %v1624_v30 = vpop.f32.mrf.mxu1  ;;  %v2731_v51 = vshll.u32 %v2401_v6, 16 }
 0x169   : > { %v2264_v31 = vpop.f32.mrf.mxu3  ;;  %v1827_v45 = vsel %vm6148_vm15, %v5209_v11, %v1826_v10 }
 0x16a   : > { %v2922_v23 = vpop.f32.mrf.mxu0  ;;  %v2335_v57 = vadd.f32 %v2264_v31, %v2045_v29  ;;  %v306_v29 = vld [vmem:[#allocation2 + $0xc0] sm:$0x1]  ;;  %v1874_v63 = vunpack.c.l.b16 %v1827_v45  ;;  %v6438_v58 = vrot.slane %v2731_v51, 5 }
 0x16b   : > { %5230 = vmatmul.msk.bf16.gmra.mxu2 %vm1321_vm11, %v1892_v47  ;;  %v247_v47 = vld [vmem:[%s5724_s22 + $0xf8] sm:$0xff]  ;;  %v307_v16 = vsel %vm5702_vm2, 0, %v306_v29 }
 0x16c   : > { %v6421_v4 = vadd.f32 %v2922_v23, %v2335_v57  ;;  %308 = vst [vmem:[#allocation2 + $0xc0] sm:$0x1] %v307_v16  ;;  %v390_v37 = vpack.c.bf16 %v247_v47, %v247_v47  ;;  %v2720_v57 = vsel %vm5819_vm12, %v2715_v43, %v2719_v24  ;;  %v5561_v29 = vld [vmem:[#allocation2 + $0x9c] sm:$0xff]  ;;  %v2727_v16 = vrot.slane %v2725_v61, 5 }
 0x16d   : > { %5337 = vmatmul.msk.bf16.gmra.mxu0 %vm1321_vm11, %v2839_v33  ;;  %v2710_v33 = vsel %vm5819_vm12, %v2705_v2, %v2709_v26  ;;  %v2821_v26 = vunpack.c.l.b16 %v2720_v57  ;;  %v1625_v2 = vadd.f32 %v1624_v30, %v6229_v8  ;;  %v1893_v45 = vpack.c.b16 %v1875_v32, %v1874_v63 }
 0x16e   : > { %7244 = vst [vmem:[#allocation9_spill] sm:$0xff] %v6421_v4  ;;  %v1979_v59 = vpop.f32.mrf.mxu2  ;;  %v657_v19 = vshrl.u32 %v390_v37, 16  ;;  %v2820_v47 = vunpack.c.l.b16 %v2710_v33  ;;  %v1696_v33 = vld [vmem:[#allocation2 + $0xa8] sm:$0xe]  ;;  %v2728_v22 = vor.u32 %v2727_v16, %v2724_v12  ;;  %v660_v61 = vshll.u32 %v390_v37, 16 }
 0x16f   : > { %v2047_v18 = vadd.f32 %v1979_v59, %v1623_v50  ;;  %v2735_v50 = vshrl.u32 %v2401_v6, 16  ;;  %v649_v59 = vshrl.u32 %v389_v35, 16  ;;  %v652_v6 = vshll.u32 %v389_v35, 16 }
 0x170   : > { %v1627_v31 = vpop.f32.mrf.mxu1 }
 0x171   : > { %v2266_v23 = vpop.f32.mrf.mxu3  ;;  %v2737_v43 = vrot.slane %v2735_v50, 4  ;;  %v651_v24 = vrot.slane %v649_v59, 7  ;;  %v2840_v50 = vpack.c.b16 %v2821_v26, %v2820_v47  ;;  %v357_v47 = vsel %vm5712_vm4, 0, %v356_v54  ;;  %v5544_v54 = vld [vmem:[#allocation2 + $0xa8] sm:$0xff] }
 0x172   : > { %v2924_v10 = vpop.f32.mrf.mxu0  ;;  %v2336_v11 = vadd.f32 %v2266_v23, %v2046_v13  ;;  %v6441_v23 = vrot.slane %v657_v19, 7  ;;  %358 = vst [vmem:[#allocation2 + $0xc8] sm:$0x1] %v357_v47  ;;  %v2405_v47 = vld [vmem:[#allocation2 + $0xbc] sm:$0x1] }
 0x173   : > { %5193 = vmatmul.msk.bf16.gmra.mxu1 %vm1321_vm11, %v5543_v49  ;;  %v5619_v49 = vld [vmem:[#allocation2 + $0xac] sm:$0xf]  ;;  %v654_v30 = vor.u32 %v652_v6, %v651_v24  ;;  %v655_v28 = vrot.slane %v651_v24, 4  ;;  %v820_v51 = vld [vmem:[#allocation2 + $0xc0] sm:$0xf]  ;;  %v2738_v35 = vor.u32 %v2737_v43, %v6438_v58  ;;  %v1628_v43 = vadd.f32 %v1627_v31, %v6243_v38 }
 0x174   : > { %v1833_v57 = vrot.slane %v5619_v49, 5  ;;  %v662_v12 = vor.u32 %v660_v61, %v6441_v23  ;;  %v6450_v26 = vadd.f32 %v2924_v10, %v2336_v11  ;;  %v2729_v24 = vrot.slane %v2728_v22, 4  ;;  %v2403_v6 = vld [vmem:[#allocation2 + $0xb4] sm:$0xf]  ;;  %v2404_v49 = vld [vmem:[#allocation2 + $0xb8] sm:$0xf] }
 0x175   : > { %v821_v37 = vsel %vm5752_vm8, %v654_v30, %v820_v51  ;;  %v2746_v22 = vshrl.u32 %v2403_v6, 16  ;;  %v2749_v31 = vshll.u32 %v2403_v6, 16  ;;  %v2755_v11 = vshll.u32 %v2404_v49, 16 }
 0x176   : > { %v1981_v4 = vpop.f32.mrf.mxu2  ;;  %5316 = vmatmul.msk.bf16.gmra.mxu3 %vm1321_vm11, %v5561_v29  ;;  %v2741_v29 = vshll.u32 %v2402_v14, 16  ;;  %v1835_v16 = vrot.slane %v1833_v57, 4  ;;  %822 = vst [vmem:[#allocation2 + $0xc0] sm:$0xf] %v821_v37  ;;  %v2739_v14 = vrot.slane %v2738_v35, 4  ;;  %v2759_v30 = vshrl.u32 %v2404_v49, 16 }
 0x177   : > { %v2048_v13 = vadd.f32 %v1981_v4, %v1625_v2  ;;  %v5620_v4 = vld [vmem:[#allocation2 + $0xb0] sm:$0x1]  ;;  %v5210_v2 = vrot.slane %v1696_v33, 9  ;;  %v2734_v61 = vsel %vm5819_vm12, %v2729_v24, %v6438_v58  ;;  %v5562_v35 = vld [vmem:[#allocation2 + $0xa8] sm:$0xff]  ;;  %v1697_v49 = vld [vmem:[#allocation2 + $0xb4] sm:$0xe] }
 0x178   : > { %v1629_v8 = vpop.f32.mrf.mxu1  ;;  %v1836_v63 = vrot.slane %v5620_v4, 5  ;;  %v2743_v42 = vrot.slane %v2741_v29, 5  ;;  %v664_v4 = vrot.slane %v6441_v23, 4 }
 0x179   : > { %v2269_v59 = vpop.f32.mrf.mxu3  ;;  %v1834_v38 = vsel %vm6148_vm15, %v5210_v2, %v1833_v57  ;;  %v2757_v2 = vrot.slane %v2755_v11, 5 }
 0x17a   : > { %v2927_v32 = vpop.f32.mrf.mxu0  ;;  %v2337_v19 = vadd.f32 %v2269_v59, %v2047_v18  ;;  %v663_v18 = vsel %vm5744_vm7, %v655_v28, %v662_v12  ;;  %v1837_v36 = vsel %vm6148_vm15, %v1835_v16, %v1836_v63  ;;  %v2744_v51 = vsel %vm5819_vm12, %v2739_v14, %v2743_v42  ;;  %v5621_v14 = vld [vmem:[#allocation2 + $0xb8] sm:$0xf] }
 0x17b   : > { %5231 = vmatmul.msk.bf16.gmra.mxu2 %vm1321_vm11, %v1893_v45  ;;  %823 = vst.msk [vmem:[#allocation2 + $0xc4] sm:$0xf] %vm248_vm5, %v663_v18  ;;  %v1876_v57 = vunpack.c.l.b16 %v1834_v38  ;;  %v1877_v29 = vunpack.c.l.b16 %v1837_v36  ;;  %v2748_v63 = vrot.slane %v2746_v22, 4  ;;  %v2761_v12 = vrot.slane %v2759_v30, 4 }
 0x17c   : > { %v6455_v45 = vadd.f32 %v2927_v32, %v2337_v19  ;;  %v2751_v32 = vrot.slane %v2749_v31, 5  ;;  %v1630_v19 = vadd.f32 %v1629_v8, %v6261_v7  ;;  %v2822_v16 = vunpack.c.l.b16 %v2734_v61  ;;  %v5622_v31 = vld [vmem:[#allocation2 + $0xbc] sm:$0x1] }
 0x17d   : > { %5338 = vmatmul.msk.bf16.gmra.mxu0 %vm1321_vm11, %v2840_v50  ;;  %v2823_v58 = vunpack.c.l.b16 %v2744_v51  ;;  %v1894_v6 = vpack.c.b16 %v1877_v29, %v1876_v57  ;;  %v1840_v42 = vrot.slane %v5621_v14, 5  ;;  %v2762_v7 = vor.u32 %v2761_v12, %v2757_v2 }
 0x17e   : > { %v1984_v33 = vpop.f32.mrf.mxu2  ;;  %v2752_v18 = vor.u32 %v2751_v32, %v2748_v63  ;;  %v2765_v8 = vshll.u32 %v2405_v47, 16  ;;  %v1843_v11 = vrot.slane %v5622_v31, 5  ;;  %v5545_v32 = vld [vmem:[#allocation2 + $0xb4] sm:$0xff] }
 0x17f   : > { %v2049_v5 = vadd.f32 %v1984_v33, %v1628_v43  ;;  %v824_v43 = vld [vmem:[#allocation2 + $0xc8] sm:$0x1]  ;;  %v1842_v1 = vrot.slane %v1840_v42, 4  ;;  %v2763_v51 = vrot.slane %v2762_v7, 4 }
 0x180   : > { %v1632_v10 = vpop.f32.mrf.mxu1  ;;  %v825_v23 = vsel %vm5702_vm2, %v664_v4, %v824_v43  ;;  %v2753_v30 = vrot.slane %v2752_v18, 4  ;;  %v2406_v4 = vld [vmem:[#allocation2 + $0xc0] sm:$0xf]  ;;  %v5624_v18 = vld [vmem:[#allocation2 + $0x14] sm:$0x1] }
 0x181   : > { %v2271_v28 = vpop.f32.mrf.mxu3  ;;  %826 = vst [vmem:[#allocation2 + $0xc8] sm:$0x1] %v825_v23  ;;  %v1633_v61 = vadd.f32 %v1632_v10, %v6272_v41  ;;  %v1844_v12 = vsel %vm6148_vm15, %v1842_v1, %v1843_v11  ;;  %v3088_v14 = vrot.slane %v5624_v18, 5 }
 0x182   : > { %v2929_v50 = vpop.f32.mrf.mxu0  ;;  %v2338_v59 = vadd.f32 %v2271_v28, %v2048_v13  ;;  %v5211_v28 = vrot.slane %v1697_v49, 9  ;;  %v2407_v63 = vld [vmem:[#allocation2 + $0xc4] sm:$0xf]  ;;  %v2758_v41 = vsel %vm5819_vm12, %v2753_v30, %v2757_v2  ;;  %v3019_v2 = vld [vmem:[#allocation2 + $0xc] sm:$0xe] }
 0x183   : > { %5194 = vmatmul.msk.bf16.gmra.mxu1 %vm1321_vm11, %v5544_v54  ;;  %v2841_v54 = vpack.c.b16 %v2823_v58, %v2822_v16  ;;  %v2770_v58 = vshrl.u32 %v2406_v4, 16  ;;  %v2783_v23 = vshrl.u32 %v2407_v63, 16  ;;  %v5342_v30 = vrot.slane %v3019_v2, 9 }
 0x184   : > { %v6471_v24 = vadd.f32 %v2929_v50, %v2338_v59  ;;  %v2767_v50 = vrot.slane %v2765_v8, 5  ;;  %v5563_v8 = vld [vmem:[#allocation2 + $0xb4] sm:$0xff] }
 0x185   : > { %v2772_v31 = vrot.slane %v2770_v58, 4 }
 0x186   : > { %v1986_v37 = vpop.f32.mrf.mxu2  ;;  %5317 = vmatmul.msk.bf16.gmra.mxu3 %vm1321_vm11, %v5562_v35  ;;  %v5623_v35 = vld [vmem:[#allocation2 + $0x10] sm:$0xf]  ;;  %v2768_v10 = vsel %vm5819_vm12, %v2763_v51, %v2767_v50 }
 0x187   : > { %v2050_v13 = vadd.f32 %v1986_v37, %v1630_v19  ;;  %v3085_v57 = vrot.slane %v5623_v35, 5  ;;  %v1841_v19 = vsel %vm6148_vm15, %v5211_v28, %v1840_v42  ;;  %v2773_v37 = vshll.u32 %v2406_v4, 16  ;;  %v3712_v4 = vld [vmem:[#allocation2 + $0x18] sm:$0xf] }
 0x188   : > { %v1634_v33 = vpop.f32.mrf.mxu1  ;;  %v1878_v49 = vunpack.c.l.b16 %v1841_v19 }
 0x189   : > { %v2274_v38 = vpop.f32.mrf.mxu3  ;;  %v3087_v47 = vrot.slane %v3085_v57, 4  ;;  %v2775_v11 = vrot.slane %v2773_v37, 5  ;;  %v3086_v35 = vsel %vm6148_vm15, %v5342_v30, %v3085_v57 }
 0x18a   : > { %v2932_v36 = vpop.f32.mrf.mxu0  ;;  %v2339_v22 = vadd.f32 %v2274_v38, %v2049_v5  ;;  %v2824_v38 = vunpack.c.l.b16 %v2758_v41 }
 0x18b   : > { %5232 = vmatmul.msk.bf16.gmra.mxu2 %vm1321_vm11, %v1894_v6  ;;  %v2779_v6 = vshll.u32 %v2407_v63, 16 }
 0x18c   : > { %v6478_v59 = vadd.f32 %v2932_v36, %v2339_v22  ;;  %v2825_v36 = vunpack.c.l.b16 %v2768_v10  ;;  %v1635_v22 = vadd.f32 %v1634_v33, %v6291_v53  ;;  %v2408_v53 = vld [vmem:[#allocation2 + $0xc8] sm:$0x1]  ;;  %v3198_v33 = vunpack.c.l.b16 %v3086_v35 }
 0x18d   : > { %5339 = vmatmul.msk.bf16.gmra.mxu0 %vm1321_vm11, %v2841_v54  ;;  %v1879_v54 = vunpack.c.l.b16 %v1844_v12  ;;  %v2781_v1 = vrot.slane %v2779_v6, 5  ;;  %v2776_v12 = vor.u32 %v2775_v11, %v2772_v31  ;;  %v3764_v6 = vshll.u32 %v3712_v4, 16 }
 0x18e   : > { %v1989_v29 = vpop.f32.mrf.mxu2  ;;  %v2842_v19 = vpack.c.b16 %v2825_v36, %v2824_v38  ;;  %v2789_v57 = vshll.u32 %v2408_v53, 16 }
 0x18f   : > { %v2051_v5 = vadd.f32 %v1989_v29, %v1633_v61  ;;  %v2785_v61 = vrot.slane %v2783_v23, 4  ;;  %v1895_v50 = vpack.c.b16 %v1879_v54, %v1878_v49  ;;  %v3089_v29 = vsel %vm6148_vm15, %v3087_v47, %v3088_v14 }
 0x190   : > { %v1637_v16 = vpop.f32.mrf.mxu1  ;;  %v3199_v63 = vunpack.c.l.b16 %v3089_v29  ;;  %v3766_v36 = vrot.slane %v3764_v6, 5  ;;  %v2791_v2 = vrot.slane %v2789_v57, 5  ;;  %v5564_v29 = vld [vmem:[#allocation2 + $0xc0] sm:$0xff] }
 0x191   : > { %v2276_v43 = vpop.f32.mrf.mxu3  ;;  %v2786_v58 = vor.u32 %v2785_v61, %v2781_v1 }
 0x192   : > { %v2934_v7 = vpop.f32.mrf.mxu0  ;;  %v2340_v42 = vadd.f32 %v2276_v43, %v2050_v13  ;;  %v3230_v37 = vpack.c.b16 %v3199_v63, %v3198_v33  ;;  %v3761_v43 = vshrl.u32 %v3712_v4, 16  ;;  %v5625_v33 = vld [vmem:[#allocation2 + $0x1c] sm:$0xf] }
 0x193   : > { %5195 = vmatmul.msk.bf16.gmra.mxu1 %vm1321_vm11, %v5545_v32  ;;  %v6498_v32 = vld [vmem:[#allocation2 + $0x1c] sm:$0xf]  ;;  %v2787_v49 = vrot.slane %v2786_v58, 4  ;;  %v3092_v63 = vrot.slane %v5625_v33, 5 }
 0x194   : > { %v6491_v51 = vadd.f32 %v2934_v7, %v2340_v42  ;;  %v3770_v47 = vshll.u32 %v6498_v32, 16  ;;  %v3774_v14 = vshrl.u32 %v6498_v32, 16  ;;  %v1638_v7 = vadd.f32 %v1637_v16, %v6307_v48 }
 0x195   : > { %v3763_v38 = vrot.slane %v3761_v43, 4  ;;  %v2792_v4 = vsel %vm5819_vm12, %v2787_v49, %v2791_v2  ;;  %v3094_v43 = vrot.slane %v3092_v63, 4  ;;  %v6519_v49 = vld [vmem:[#allocation2 + $0x28] sm:$0xf] }
 0x196   : > { %v1991_v28 = vpop.f32.mrf.mxu2  ;;  %5318 = vmatmul.msk.bf16.gmra.mxu3 %vm1321_vm11, %v5563_v8  ;;  %v2777_v8 = vrot.slane %v2776_v12, 4  ;;  %v3772_v31 = vrot.slane %v3770_v47, 5  ;;  %v3776_v11 = vrot.slane %v3774_v14, 4  ;;  %v5626_v12 = vld [vmem:[#allocation2 + $0x20] sm:$0x1]  ;;  %v5568_v14 = vld [vmem:[#allocation2 + $0x18] sm:$0xff] }
 0x197   : > { %v2052_v13 = vadd.f32 %v1991_v28, %v1635_v22  ;;  %v6507_v22 = vld [vmem:[#allocation2 + $0x20] sm:$0x1]  ;;  %v3767_v16 = vor.u32 %v3766_v36, %v3763_v38 }
 0x198   : > { %v1639_v41 = vpop.f32.mrf.mxu1  ;;  %v2782_v48 = vsel %vm5819_vm12, %v2777_v8, %v2781_v1  ;;  %v3780_v61 = vshll.u32 %v6507_v22, 16  ;;  %v3777_v53 = vor.u32 %v3776_v11, %v3772_v31  ;;  %v4439_v33 = vrot.slane %v6507_v22, 5 }
 0x199   : > { %v2279_v10 = vpop.f32.mrf.mxu3  ;;  %v1640_v58 = vadd.f32 %v1639_v41, %v6321_v9  ;;  %v2826_v6 = vunpack.c.l.b16 %v2782_v48  ;;  %v4436_v9 = vrot.slane %v6498_v32, 5 }
 0x19a   : > { %v2937_v23 = vpop.f32.mrf.mxu0  ;;  %v2341_v18 = vadd.f32 %v2279_v10, %v2051_v5  ;;  %v3095_v10 = vrot.slane %v5626_v12, 5  ;;  %v3778_v8 = vrot.slane %v3777_v53, 4 }
 0x19b   : > { %5233 = vmatmul.msk.bf16.gmra.mxu2 %vm1321_vm11, %v1895_v50  ;;  %v4438_v53 = vrot.slane %v4436_v9, 4 }
 0x19c   : > { %v6504_v42 = vadd.f32 %v2937_v23, %v2341_v18  ;;  %v2827_v23 = vunpack.c.l.b16 %v2792_v4  ;;  %v3096_v36 = vsel %vm6148_vm15, %v3094_v43, %v3095_v10 }
 0x19d   : > { %5340 = vmatmul.msk.bf16.gmra.mxu0 %vm1321_vm11, %v2842_v19  ;;  %v3020_v19 = vld [vmem:[#allocation2 + $0x18] sm:$0xe] }
 0x19e   : > { %v1994_v54 = vpop.f32.mrf.mxu2  ;;  %v5343_v1 = vrot.slane %v3020_v19, 9  ;;  %v3201_v19 = vunpack.c.l.b16 %v3096_v36 }
 0x19f   : > { %v2053_v5 = vadd.f32 %v1994_v54, %v1638_v7  ;;  %v3768_v7 = vrot.slane %v3767_v16, 4  ;;  %v4370_v54 = vld [vmem:[#allocation2 + $0x18] sm:$0xe]  ;;  %v3794_v16 = vshll.u32 %v6519_v49, 16 }
 0x1a0   : > { %v1642_v30 = vpop.f32.mrf.mxu1  ;;  %v3093_v38 = vsel %vm6148_vm15, %v5343_v1, %v3092_v63  ;;  %v5488_v4 = vrot.slane %v4370_v54, 9 }
 0x1a1   : > { %v2281_v28 = vpop.f32.mrf.mxu3  ;;  %v3773_v32 = vsel %vm5819_vm12, %v3768_v7, %v3772_v31  ;;  %v3200_v63 = vunpack.c.l.b16 %v3093_v38  ;;  %v1643_v12 = vadd.f32 %v1642_v30, %v6235_v40  ;;  %v3796_v43 = vrot.slane %v3794_v16, 5 }
 0x1a2   : > { %v2939_v50 = vpop.f32.mrf.mxu0  ;;  %v2342_v35 = vadd.f32 %v2281_v28, %v2052_v13  ;;  %v3715_v13 = vld [vmem:[#allocation2 + $0x24] sm:$0xf]  ;;  %v2843_v28 = vpack.c.b16 %v2827_v23, %v2826_v6  ;;  %v4147_v6 = vunpack.c.l.b16 %v3773_v32  ;;  %v4437_v22 = vsel %vm6148_vm15, %v5488_v4, %v4436_v9 }
 0x1a3   : > { %5364 = vmatmul.msk.bf16.vlgmr.msra.gmra.mxu1 %vm1321_vm11, %v3230_v37  ;;  %v3782_v37 = vrot.slane %v3780_v61, 5  ;;  %v3785_v2 = vshrl.u32 %v3715_v13, 16  ;;  %v3788_v11 = vshll.u32 %v3715_v13, 16  ;;  %v3798_v61 = vshrl.u32 %v6519_v49, 16  ;;  %v6538_v13 = vld [vmem:[#allocation2 + $0x2c] sm:$0x1] }
 0x1a4   : > { %v6516_v57 = vadd.f32 %v2939_v50, %v2342_v35  ;;  %v4440_v40 = vsel %vm6148_vm15, %v4438_v53, %v4439_v33  ;;  %v3804_v54 = vshll.u32 %v6538_v13, 16  ;;  %v3021_v9 = vld [vmem:[#allocation2 + $0x24] sm:$0xe] }
 0x1a5   : > { %v3787_v10 = vrot.slane %v3785_v2, 4  ;;  %v3800_v31 = vrot.slane %v3798_v61, 4  ;;  %v4549_v61 = vunpack.c.l.b16 %v4437_v22  ;;  %v4371_v22 = vld [vmem:[#allocation2 + $0x24] sm:$0xe] }
 0x1a6   : > { %v1996_v18 = vpop.f32.mrf.mxu2  ;;  %5319 = vmatmul.msk.bf16.gmra.mxu3 %vm1321_vm11, %v5564_v29  ;;  %v3783_v29 = vsel %vm5819_vm12, %v3778_v8, %v3782_v37 }
 0x1a7   : > { %v2054_v47 = vadd.f32 %v1996_v18, %v1640_v58  ;;  %v3790_v58 = vrot.slane %v3788_v11, 5  ;;  %v4148_v23 = vunpack.c.l.b16 %v3783_v29  ;;  %v3801_v37 = vor.u32 %v3800_v31, %v3796_v43  ;;  %v5627_v11 = vld [vmem:[#allocation2 + $0x28] sm:$0xf] }
 0x1a8   : > { %v1644_v41 = vpop.f32.mrf.mxu1  ;;  %v5344_v29 = vrot.slane %v3021_v9, 9 }
 0x1a9   : > { %v2284_v48 = vpop.f32.mrf.mxu3  ;;  %v3791_v7 = vor.u32 %v3790_v58, %v3787_v10  ;;  %v4179_v2 = vpack.c.b16 %v4148_v23, %v4147_v6  ;;  %v3802_v33 = vrot.slane %v3801_v37, 4  ;;  %v3718_v10 = vld [vmem:[#allocation2 + $0x30] sm:$0xf]  ;;  %v6550_v58 = vld [vmem:[#allocation2 + $0x34] sm:$0xf] }
 0x1aa   : > { %v2942_v50 = vpop.f32.mrf.mxu0  ;;  %v2343_v35 = vadd.f32 %v2284_v48, %v2053_v5  ;;  %v5628_v48 = vld [vmem:[#allocation2 + $0x2c] sm:$0x1] }
 0x1ab   : > { %5450 = vmatmul.msk.bf16.vlgmr.msra.gmra.mxu2 %vm1321_vm11, %v5568_v14  ;;  %v3231_v14 = vpack.c.b16 %v3201_v19, %v3200_v63  ;;  %v3102_v16 = vrot.slane %v5628_v48, 5  ;;  %v3792_v32 = vrot.slane %v3791_v7, 4  ;;  %v3806_v63 = vrot.slane %v3804_v54, 5 }
 0x1ac   : > { %v6535_v1 = vadd.f32 %v2942_v50, %v2343_v35  ;;  %v4550_v50 = vunpack.c.l.b16 %v4440_v40  ;;  %v1645_v35 = vadd.f32 %v1644_v41, %v6246_v44  ;;  %v4443_v40 = vrot.slane %v6519_v49, 5 }
 0x1ad   : > { %5341 = vmatmul.msk.bf16.gmra.mxu0 %vm1321_vm11, %v2843_v28  ;;  %v3099_v28 = vrot.slane %v5627_v11, 5  ;;  %v3797_v31 = vsel %vm5819_vm12, %v3792_v32, %v3796_v43  ;;  %v3809_v7 = vshrl.u32 %v3718_v10, 16  ;;  %v3818_v43 = vshll.u32 %v6550_v58, 16 }
 0x1ae   : > { %v1999_v5 = vpop.f32.mrf.mxu2  ;;  %v4445_v49 = vrot.slane %v4443_v40, 4 }
 0x1af   : > { %v2055_v18 = vadd.f32 %v1999_v5, %v1643_v12  ;;  %v3101_v4 = vrot.slane %v3099_v28, 4  ;;  %v5569_v12 = vld [vmem:[#allocation2 + $0x24] sm:$0xff]  ;;  %v4581_v5 = vpack.c.b16 %v4550_v50, %v4549_v61  ;;  %v3100_v41 = vsel %vm6148_vm15, %v5344_v29, %v3099_v28 }
 0x1b0   : > { %v1647_v30 = vpop.f32.mrf.mxu1  ;;  %v3811_v9 = vrot.slane %v3809_v7, 4  ;;  %v6569_v29 = vrot.slane %v3818_v43, 5  ;;  %v5630_v7 = vld [vmem:[#allocation2 + $0x38] sm:$0x1] }
 0x1b1   : > { %v2286_v8 = vpop.f32.mrf.mxu3  ;;  %v3103_v6 = vsel %vm6148_vm15, %v3101_v4, %v3102_v16  ;;  %v1648_v28 = vadd.f32 %v1647_v30, %v6264_v3  ;;  %v5489_v16 = vrot.slane %v4371_v22, 9  ;;  %v3022_v22 = vld [vmem:[#allocation2 + $0x30] sm:$0xe] }
 0x1b2   : > { %v2944_v38 = vpop.f32.mrf.mxu0  ;;  %v2344_v36 = vadd.f32 %v2286_v8, %v2054_v47  ;;  %v3812_v8 = vshll.u32 %v3718_v10, 16  ;;  %v3203_v11 = vunpack.c.l.b16 %v3103_v6 }
 0x1b3   : > { %5365 = vmatmul.msk.bf16.gmra.mxu1 %vm1321_vm11, %v3231_v14  ;;  %v3807_v14 = vsel %vm5819_vm12, %v3802_v33, %v3806_v63  ;;  %v6571_v33 = vld [vmem:[#allocation2 + $0x38] sm:$0x1] }
 0x1b4   : > { %v6547_v19 = vadd.f32 %v2944_v38, %v2344_v36  ;;  %v3822_v38 = vshrl.u32 %v6550_v58, 16  ;;  %v4149_v36 = vunpack.c.l.b16 %v3797_v31  ;;  %v4150_v48 = vunpack.c.l.b16 %v3807_v14 }
 0x1b5   : > { %v3828_v6 = vshll.u32 %v6571_v33, 16 }
 0x1b6   : > { %v2001_v53 = vpop.f32.mrf.mxu2  ;;  %5472 = vmatmul.msk.bf16.vlgmr.msra.gmra.mxu3 %vm1321_vm11, %v4179_v2  ;;  %v3202_v2 = vunpack.c.l.b16 %v3100_v41  ;;  %v3824_v4 = vrot.slane %v3822_v38, 4  ;;  %v4180_v63 = vpack.c.b16 %v4150_v48, %v4149_v36 }
 0x1b7   : > { %v2056_v47 = vadd.f32 %v2001_v53, %v1645_v35  ;;  %v3814_v35 = vrot.slane %v3812_v8, 5  ;;  %v3109_v8 = vrot.slane %v5630_v7, 5 }
 0x1b8   : > { %v1649_v44 = vpop.f32.mrf.mxu1  ;;  %v3232_v53 = vpack.c.b16 %v3203_v11, %v3202_v2  ;;  %v3825_v41 = vor.u32 %v3824_v4, %v6569_v29  ;;  %v3721_v2 = vld [vmem:[#allocation2 + $0x3c] sm:$0xf] }
 0x1b9   : > { %v2289_v23 = vpop.f32.mrf.mxu3  ;;  %v3833_v4 = vshrl.u32 %v3721_v2, 16 }
 0x1ba   : > { %v2947_v37 = vpop.f32.mrf.mxu0  ;;  %v2345_v54 = vadd.f32 %v2289_v23, %v2055_v18  ;;  %v4446_v18 = vrot.slane %v6538_v13, 5  ;;  %v3815_v13 = vor.u32 %v3814_v35, %v3811_v9  ;;  %v5629_v23 = vld [vmem:[#allocation2 + $0x34] sm:$0xf] }
 0x1bb   : > { %5451 = vmatmul.msk.bf16.gmra.mxu2 %vm1321_vm11, %v5569_v12  ;;  %v4444_v12 = vsel %vm6148_vm15, %v5489_v16, %v4443_v40  ;;  %v3106_v14 = vrot.slane %v5629_v23, 5  ;;  %v5345_v40 = vrot.slane %v3022_v22, 9  ;;  %v3826_v16 = vrot.slane %v3825_v41, 4 }
 0x1bc   : > { %v6565_v61 = vadd.f32 %v2947_v37, %v2345_v54  ;;  %v4447_v10 = vsel %vm6148_vm15, %v4445_v49, %v4446_v18  ;;  %v1650_v37 = vadd.f32 %v1649_v44, %v6275_v46  ;;  %v4551_v43 = vunpack.c.l.b16 %v4444_v12  ;;  %v6584_v18 = vld [vmem:[#allocation2 + $0x40] sm:$0xf] }
 0x1bd   : > { %5510 = vmatmul.msk.bf16.vlgmr.msra.gmra.mxu0 %vm1321_vm11, %v4581_v5  ;;  %v3108_v54 = vrot.slane %v3106_v14, 4  ;;  %v4552_v38 = vunpack.c.l.b16 %v4447_v10  ;;  %v3816_v48 = vrot.slane %v3815_v13, 4  ;;  %v3830_v49 = vrot.slane %v3828_v6, 5 }
 0x1be   : > { %v2004_v50 = vpop.f32.mrf.mxu2  ;;  %v4450_v46 = vrot.slane %v6550_v58, 5  ;;  %v3107_v9 = vsel %vm6148_vm15, %v5345_v40, %v3106_v14  ;;  %v3842_v12 = vshll.u32 %v6584_v18, 16  ;;  %v3846_v10 = vshrl.u32 %v6584_v18, 16 }
 0x1bf   : > { %v2057_v32 = vadd.f32 %v2004_v50, %v1648_v28  ;;  %v5570_v28 = vld [vmem:[#allocation2 + $0x30] sm:$0xff]  ;;  %v3110_v35 = vsel %vm6148_vm15, %v3108_v54, %v3109_v8  ;;  %v3821_v58 = vsel %vm5819_vm12, %v3816_v48, %v6569_v29  ;;  %v4453_v23 = vrot.slane %v6571_v33, 5 }
 0x1c0   : > { %v1652_v3 = vpop.f32.mrf.mxu1  ;;  %v4372_v50 = vld [vmem:[#allocation2 + $0x30] sm:$0xe]  ;;  %v4452_v6 = vrot.slane %v4450_v46, 4  ;;  %v3204_v14 = vunpack.c.l.b16 %v3107_v9  ;;  %v3205_v22 = vunpack.c.l.b16 %v3110_v35  ;;  %v3835_v8 = vrot.slane %v3833_v4, 4 }
 0x1c1   : > { %v2291_v30 = vpop.f32.mrf.mxu3  ;;  %v5490_v41 = vrot.slane %v4372_v50, 9  ;;  %v1653_v7 = vadd.f32 %v1652_v3, %v6294_v17  ;;  %v3844_v54 = vrot.slane %v3842_v12, 5  ;;  %v3848_v29 = vrot.slane %v3846_v10, 4 }
 0x1c2   : > { %v2949_v5 = vpop.f32.mrf.mxu0  ;;  %v2346_v31 = vadd.f32 %v2291_v30, %v2056_v47  ;;  %v4582_v30 = vpack.c.b16 %v4552_v38, %v4551_v43  ;;  %v4151_v43 = vunpack.c.l.b16 %v3821_v58  ;;  %v4454_v17 = vsel %vm6148_vm15, %v4452_v6, %v4453_v23 }
 0x1c3   : > { %5366 = vmatmul.msk.bf16.gmra.mxu1 %vm1321_vm11, %v3232_v53  ;;  %v3836_v53 = vshll.u32 %v3721_v2, 16  ;;  %v6604_v2 = vld [vmem:[#allocation2 + $0x44] sm:$0x1]  ;;  %v4451_v33 = vsel %vm6148_vm15, %v5490_v41, %v4450_v46  ;;  %v3023_v46 = vld [vmem:[#allocation2 + $0x3c] sm:$0xe] }
 0x1c4   : > { %v6581_v47 = vadd.f32 %v2949_v5, %v2346_v31  ;;  %v3831_v31 = vsel %vm5819_vm12, %v3826_v16, %v3830_v49  ;;  %v3849_v49 = vor.u32 %v3848_v29, %v3844_v54  ;;  %v3852_v50 = vshll.u32 %v6604_v2, 16 }
 0x1c5   : > { %v4152_v38 = vunpack.c.l.b16 %v3831_v31  ;;  %v4553_v10 = vunpack.c.l.b16 %v4451_v33  ;;  %v5346_v31 = vrot.slane %v3023_v46, 9  ;;  %v4373_v33 = vld [vmem:[#allocation2 + $0x3c] sm:$0xe] }
 0x1c6   : > { %v2006_v36 = vpop.f32.mrf.mxu2  ;;  %5473 = vmatmul.msk.bf16.gmra.mxu3 %vm1321_vm11, %v4180_v63  ;;  %v3850_v23 = vrot.slane %v3849_v49, 4 }
 0x1c7   : > { %v2058_v11 = vadd.f32 %v2006_v36, %v1650_v37  ;;  %v3838_v37 = vrot.slane %v3836_v53, 5  ;;  %v4181_v4 = vpack.c.b16 %v4152_v38, %v4151_v43  ;;  %v5631_v53 = vld [vmem:[#allocation2 + $0x40] sm:$0xf] }
 0x1c8   : > { %v1654_v44 = vpop.f32.mrf.mxu1 }
 0x1c9   : > { %v2294_v63 = vpop.f32.mrf.mxu3  ;;  %v3839_v48 = vor.u32 %v3838_v37, %v3835_v8  ;;  %v3724_v8 = vld [vmem:[#allocation2 + $0x48] sm:$0xf]  ;;  %v6616_v37 = vld [vmem:[#allocation2 + $0x4c] sm:$0xf] }
 0x1ca   : > { %v2952_v13 = vpop.f32.mrf.mxu0  ;;  %v2347_v5 = vadd.f32 %v2294_v63, %v2057_v32  ;;  %v5632_v63 = vld [vmem:[#allocation2 + $0x44] sm:$0x1] }
 0x1cb   : > { %5452 = vmatmul.msk.bf16.gmra.mxu2 %vm1321_vm11, %v5570_v28  ;;  %v3233_v28 = vpack.c.b16 %v3205_v22, %v3204_v14  ;;  %v3116_v12 = vrot.slane %v5632_v63, 5  ;;  %v3840_v58 = vrot.slane %v3839_v48, 4  ;;  %v3854_v14 = vrot.slane %v3852_v50, 5 }
 0x1cc   : > { %v6601_v32 = vadd.f32 %v2952_v13, %v2347_v5  ;;  %v4554_v13 = vunpack.c.l.b16 %v4454_v17  ;;  %v1655_v5 = vadd.f32 %v1654_v44, %v6313_v60  ;;  %v4457_v17 = vrot.slane %v6584_v18, 5 }
 0x1cd   : > { %5511 = vmatmul.msk.bf16.gmra.mxu0 %vm1321_vm11, %v4582_v30  ;;  %v3113_v30 = vrot.slane %v5631_v53, 5  ;;  %v3845_v29 = vsel %vm5819_vm12, %v3840_v58, %v3844_v54  ;;  %v3857_v48 = vshrl.u32 %v3724_v8, 16  ;;  %v3866_v54 = vshll.u32 %v6616_v37, 16 }
 0x1ce   : > { %v2009_v40 = vpop.f32.mrf.mxu2  ;;  %v4459_v18 = vrot.slane %v4457_v17, 4 }
 0x1cf   : > { %v2059_v36 = vadd.f32 %v2009_v40, %v1653_v7  ;;  %v3115_v41 = vrot.slane %v3113_v30, 4  ;;  %v5571_v7 = vld [vmem:[#allocation2 + $0x3c] sm:$0xff]  ;;  %v4583_v40 = vpack.c.b16 %v4554_v13, %v4553_v10  ;;  %v3114_v44 = vsel %vm6148_vm15, %v5346_v31, %v3113_v30 }
 0x1d0   : > { %v1657_v3 = vpop.f32.mrf.mxu1  ;;  %v3859_v46 = vrot.slane %v3857_v48, 4  ;;  %v6635_v31 = vrot.slane %v3866_v54, 5  ;;  %v5634_v48 = vld [vmem:[#allocation2 + $0x50] sm:$0x1] }
 0x1d1   : > { %v2296_v16 = vpop.f32.mrf.mxu3  ;;  %v3117_v43 = vsel %vm6148_vm15, %v3115_v41, %v3116_v12  ;;  %v1658_v30 = vadd.f32 %v1657_v3, %v6325_v25  ;;  %v5491_v12 = vrot.slane %v4373_v33, 9  ;;  %v3024_v33 = vld [vmem:[#allocation2 + $0x48] sm:$0xe] }
 0x1d2   : > { %v2954_v9 = vpop.f32.mrf.mxu0  ;;  %v2348_v35 = vadd.f32 %v2296_v16, %v2058_v11  ;;  %v3860_v16 = vshll.u32 %v3724_v8, 16  ;;  %v3207_v53 = vunpack.c.l.b16 %v3117_v43 }
 0x1d3   : > { %5367 = vmatmul.msk.bf16.gmra.mxu1 %vm1321_vm11, %v3233_v28  ;;  %v3855_v28 = vsel %vm5819_vm12, %v3850_v23, %v3854_v14  ;;  %v6637_v23 = vld [vmem:[#allocation2 + $0x50] sm:$0x1] }
 0x1d4   : > { %v6613_v22 = vadd.f32 %v2954_v9, %v2348_v35  ;;  %v3870_v9 = vshrl.u32 %v6616_v37, 16  ;;  %v4153_v35 = vunpack.c.l.b16 %v3845_v29  ;;  %v4154_v63 = vunpack.c.l.b16 %v3855_v28 }
 0x1d5   : > { %v3876_v43 = vshll.u32 %v6637_v23, 16 }
 0x1d6   : > { %v2011_v6 = vpop.f32.mrf.mxu2  ;;  %5474 = vmatmul.msk.bf16.gmra.mxu3 %vm1321_vm11, %v4181_v4  ;;  %v3206_v4 = vunpack.c.l.b16 %v3114_v44  ;;  %v3872_v41 = vrot.slane %v3870_v9, 4  ;;  %v4182_v14 = vpack.c.b16 %v4154_v63, %v4153_v35 }
 0x1d7   : > { %v2060_v11 = vadd.f32 %v2011_v6, %v1655_v5  ;;  %v3862_v5 = vrot.slane %v3860_v16, 5  ;;  %v3123_v16 = vrot.slane %v5634_v48, 5 }
 0x1d8   : > { %v1659_v60 = vpop.f32.mrf.mxu1  ;;  %v3234_v6 = vpack.c.b16 %v3207_v53, %v3206_v4  ;;  %v3873_v44 = vor.u32 %v3872_v41, %v6635_v31  ;;  %v3727_v4 = vld [vmem:[#allocation2 + $0x54] sm:$0xf] }
 0x1d9   : > { %v2299_v38 = vpop.f32.mrf.mxu3  ;;  %v3881_v41 = vshrl.u32 %v3727_v4, 16 }
 0x1da   : > { %v2957_v49 = vpop.f32.mrf.mxu0  ;;  %v2349_v50 = vadd.f32 %v2299_v38, %v2059_v36  ;;  %v4460_v36 = vrot.slane %v6604_v2, 5  ;;  %v3863_v2 = vor.u32 %v3862_v5, %v3859_v46  ;;  %v5633_v38 = vld [vmem:[#allocation2 + $0x4c] sm:$0xf] }
 0x1db   : > { %5453 = vmatmul.msk.bf16.gmra.mxu2 %vm1321_vm11, %v5571_v7  ;;  %v4458_v7 = vsel %vm6148_vm15, %v5491_v12, %v4457_v17  ;;  %v3120_v28 = vrot.slane %v5633_v38, 5  ;;  %v5347_v17 = vrot.slane %v3024_v33, 9  ;;  %v3874_v12 = vrot.slane %v3873_v44, 4 }
 0x1dc   : > { %v6631_v10 = vadd.f32 %v2957_v49, %v2349_v50  ;;  %v4461_v8 = vsel %vm6148_vm15, %v4459_v18, %v4460_v36  ;;  %v1660_v49 = vadd.f32 %v1659_v60, %v6340_v21  ;;  %v4555_v54 = vunpack.c.l.b16 %v4458_v7  ;;  %v6650_v36 = vld [vmem:[#allocation2 + $0x58] sm:$0xf] }
 0x1dd   : > { %5512 = vmatmul.msk.bf16.gmra.mxu0 %vm1321_vm11, %v4583_v40  ;;  %v3122_v50 = vrot.slane %v3120_v28, 4  ;;  %v4556_v9 = vunpack.c.l.b16 %v4461_v8  ;;  %v3864_v63 = vrot.slane %v3863_v2, 4  ;;  %v3878_v18 = vrot.slane %v3876_v43, 5 }
 0x1de   : > { %v2014_v13 = vpop.f32.mrf.mxu2  ;;  %v4464_v21 = vrot.slane %v6616_v37, 5  ;;  %v3121_v46 = vsel %vm6148_vm15, %v5347_v17, %v3120_v28  ;;  %v3890_v7 = vshll.u32 %v6650_v36, 16  ;;  %v3894_v8 = vshrl.u32 %v6650_v36, 16 }
 0x1df   : > { %v2061_v58 = vadd.f32 %v2014_v13, %v1658_v30  ;;  %v5572_v30 = vld [vmem:[#allocation2 + $0x48] sm:$0xff]  ;;  %v3124_v5 = vsel %vm6148_vm15, %v3122_v50, %v3123_v16  ;;  %v3869_v37 = vsel %vm5819_vm12, %v3864_v63, %v6635_v31  ;;  %v4467_v38 = vrot.slane %v6637_v23, 5 }
 0x1e0   : > { %v1662_v25 = vpop.f32.mrf.mxu1  ;;  %v4374_v13 = vld [vmem:[#allocation2 + $0x48] sm:$0xe]  ;;  %v4466_v43 = vrot.slane %v4464_v21, 4  ;;  %v3208_v28 = vunpack.c.l.b16 %v3121_v46  ;;  %v3209_v33 = vunpack.c.l.b16 %v3124_v5  ;;  %v3883_v16 = vrot.slane %v3881_v41, 4 }
 0x1e1   : > { %v2301_v3 = vpop.f32.mrf.mxu3  ;;  %v5492_v44 = vrot.slane %v4374_v13, 9  ;;  %v1663_v48 = vadd.f32 %v1662_v25, %v6249_v52  ;;  %v3892_v50 = vrot.slane %v3890_v7, 5  ;;  %v3896_v31 = vrot.slane %v3894_v8, 4 }
 0x1e2   : > { %v2959_v40 = vpop.f32.mrf.mxu0  ;;  %v2350_v29 = vadd.f32 %v2301_v3, %v2060_v11  ;;  %v4584_v3 = vpack.c.b16 %v4556_v9, %v4555_v54  ;;  %v4155_v54 = vunpack.c.l.b16 %v3869_v37  ;;  %v4468_v52 = vsel %vm6148_vm15, %v4466_v43, %v4467_v38 }
 0x1e3   : > { %5368 = vmatmul.msk.bf16.gmra.mxu1 %vm1321_vm11, %v3234_v6  ;;  %v3884_v6 = vshll.u32 %v3727_v4, 16  ;;  %v6670_v4 = vld [vmem:[#allocation2 + $0x5c] sm:$0x1]  ;;  %v4465_v23 = vsel %vm6148_vm15, %v5492_v44, %v4464_v21  ;;  %v3025_v21 = vld [vmem:[#allocation2 + $0x54] sm:$0xe] }
 0x1e4   : > { %v6647_v11 = vadd.f32 %v2959_v40, %v2350_v29  ;;  %v3879_v29 = vsel %vm5819_vm12, %v3874_v12, %v3878_v18  ;;  %v3897_v18 = vor.u32 %v3896_v31, %v3892_v50  ;;  %v3900_v13 = vshll.u32 %v6670_v4, 16 }
 0x1e5   : > { %v4156_v9 = vunpack.c.l.b16 %v3879_v29  ;;  %v4557_v8 = vunpack.c.l.b16 %v4465_v23  ;;  %v5348_v29 = vrot.slane %v3025_v21, 9  ;;  %v4375_v23 = vld [vmem:[#allocation2 + $0x54] sm:$0xe] }
 0x1e6   : > { %v2016_v35 = vpop.f32.mrf.mxu2  ;;  %5475 = vmatmul.msk.bf16.gmra.mxu3 %vm1321_vm11, %v4182_v14  ;;  %v3898_v38 = vrot.slane %v3897_v18, 4 }
 0x1e7   : > { %v2062_v53 = vadd.f32 %v2016_v35, %v1660_v49  ;;  %v3886_v49 = vrot.slane %v3884_v6, 5  ;;  %v4183_v41 = vpack.c.b16 %v4156_v9, %v4155_v54  ;;  %v5635_v6 = vld [vmem:[#allocation2 + $0x58] sm:$0xf] }
 0x1e8   : > { %v1664_v60 = vpop.f32.mrf.mxu1 }
 0x1e9   : > { %v2304_v14 = vpop.f32.mrf.mxu3  ;;  %v3887_v63 = vor.u32 %v3886_v49, %v3883_v16  ;;  %v3730_v16 = vld [vmem:[#allocation2 + $0x60] sm:$0xf]  ;;  %v6682_v49 = vld [vmem:[#allocation2 + $0x64] sm:$0xf] }
 0x1ea   : > { %v2962_v2 = vpop.f32.mrf.mxu0  ;;  %v2351_v40 = vadd.f32 %v2304_v14, %v2061_v58  ;;  %v5636_v14 = vld [vmem:[#allocation2 + $0x5c] sm:$0x1] }
 0x1eb   : > { %5454 = vmatmul.msk.bf16.gmra.mxu2 %vm1321_vm11, %v5572_v30  ;;  %v3235_v30 = vpack.c.b16 %v3209_v33, %v3208_v28  ;;  %v3130_v7 = vrot.slane %v5636_v14, 5  ;;  %v3888_v37 = vrot.slane %v3887_v63, 4  ;;  %v3902_v28 = vrot.slane %v3900_v13, 5 }
 0x1ec   : > { %v6667_v58 = vadd.f32 %v2962_v2, %v2351_v40  ;;  %v4558_v2 = vunpack.c.l.b16 %v4468_v52  ;;  %v1665_v40 = vadd.f32 %v1664_v60, %v6267_v20  ;;  %v4471_v52 = vrot.slane %v6650_v36, 5 }
 0x1ed   : > { %5513 = vmatmul.msk.bf16.gmra.mxu0 %vm1321_vm11, %v4584_v3  ;;  %v3127_v3 = vrot.slane %v5635_v6, 5  ;;  %v3893_v31 = vsel %vm5819_vm12, %v3888_v37, %v3892_v50  ;;  %v3905_v63 = vshrl.u32 %v3730_v16, 16  ;;  %v3914_v50 = vshll.u32 %v6682_v49, 16 }
 0x1ee   : > { %v2019_v17 = vpop.f32.mrf.mxu2  ;;  %v4473_v36 = vrot.slane %v4471_v52, 4 }
 0x1ef   : > { %v2063_v35 = vadd.f32 %v2019_v17, %v1663_v48  ;;  %v3129_v44 = vrot.slane %v3127_v3, 4  ;;  %v5573_v48 = vld [vmem:[#allocation2 + $0x54] sm:$0xff]  ;;  %v4585_v17 = vpack.c.b16 %v4558_v2, %v4557_v8  ;;  %v3128_v60 = vsel %vm6148_vm15, %v5348_v29, %v3127_v3 }
 0x1f0   : > { %v1667_v25 = vpop.f32.mrf.mxu1  ;;  %v3907_v21 = vrot.slane %v3905_v63, 4  ;;  %v6701_v29 = vrot.slane %v3914_v50, 5  ;;  %v5638_v63 = vld [vmem:[#allocation2 + $0x68] sm:$0x1]  ;;  %v3733_v50 = vld [vmem:[#allocation2 + $0x6c] sm:$0xf] }
 0x1f1   : > { %v2306_v12 = vpop.f32.mrf.mxu3  ;;  %v3131_v54 = vsel %vm6148_vm15, %v3129_v44, %v3130_v7  ;;  %v1668_v3 = vadd.f32 %v1667_v25, %v6285_v55  ;;  %v5493_v7 = vrot.slane %v4375_v23, 9  ;;  %v3026_v23 = vld [vmem:[#allocation2 + $0x60] sm:$0xe] }
 0x1f2   : > { %v2964_v46 = vpop.f32.mrf.mxu0  ;;  %v2352_v5 = vadd.f32 %v2306_v12, %v2062_v53  ;;  %v3908_v12 = vshll.u32 %v3730_v16, 16  ;;  %v3211_v6 = vunpack.c.l.b16 %v3131_v54 }
 0x1f3   : > { %5369 = vmatmul.msk.bf16.gmra.mxu1 %vm1321_vm11, %v3235_v30  ;;  %v3903_v30 = vsel %vm5819_vm12, %v3898_v38, %v3902_v28  ;;  %v6703_v38 = vld [vmem:[#allocation2 + $0x68] sm:$0x1] }
 0x1f4   : > { %v6679_v33 = vadd.f32 %v2964_v46, %v2352_v5  ;;  %v3918_v46 = vshrl.u32 %v6682_v49, 16  ;;  %v4157_v5 = vunpack.c.l.b16 %v3893_v31  ;;  %v4158_v14 = vunpack.c.l.b16 %v3903_v30 }
 0x1f5   : > { %v3924_v54 = vshll.u32 %v6703_v38, 16 }
 0x1f6   : > { %v2021_v43 = vpop.f32.mrf.mxu2  ;;  %5476 = vmatmul.msk.bf16.gmra.mxu3 %vm1321_vm11, %v4183_v41  ;;  %v3210_v41 = vunpack.c.l.b16 %v3128_v60  ;;  %v3920_v44 = vrot.slane %v3918_v46, 4  ;;  %v4184_v28 = vpack.c.b16 %v4158_v14, %v4157_v5 }
 0x1f7   : > { %v2064_v53 = vadd.f32 %v2021_v43, %v1665_v40  ;;  %v3910_v40 = vrot.slane %v3908_v12, 5  ;;  %v3137_v12 = vrot.slane %v5638_v63, 5 }
 0x1f8   : > { %v1669_v20 = vpop.f32.mrf.mxu1  ;;  %v3236_v43 = vpack.c.b16 %v3211_v6, %v3210_v41  ;;  %v3921_v60 = vor.u32 %v3920_v44, %v6701_v29 }
 0x1f9   : > { %v2309_v9 = vpop.f32.mrf.mxu3 }
 0x1fa   : > { %v2967_v18 = vpop.f32.mrf.mxu0  ;;  %v2353_v13 = vadd.f32 %v2309_v9, %v2063_v35  ;;  %v4474_v35 = vrot.slane %v6670_v4, 5  ;;  %v3911_v4 = vor.u32 %v3910_v40, %v3907_v21  ;;  %v5637_v9 = vld [vmem:[#allocation2 + $0x64] sm:$0xf]  ;;  %v3929_v21 = vshrl.u32 %v3733_v50, 16 }
 0x1fb   : > { %5455 = vmatmul.msk.bf16.gmra.mxu2 %vm1321_vm11, %v5573_v48  ;;  %v4472_v48 = vsel %vm6148_vm15, %v5493_v7, %v4471_v52  ;;  %v3134_v30 = vrot.slane %v5637_v9, 5  ;;  %v5349_v52 = vrot.slane %v3026_v23, 9  ;;  %v3922_v7 = vrot.slane %v3921_v60, 4 }
 0x1fc   : > { %v6697_v8 = vadd.f32 %v2967_v18, %v2353_v13  ;;  %v4475_v16 = vsel %vm6148_vm15, %v4473_v36, %v4474_v35  ;;  %v1670_v18 = vadd.f32 %v1669_v20, %v6297_v62  ;;  %v4559_v46 = vunpack.c.l.b16 %v4472_v48  ;;  %v6716_v35 = vld [vmem:[#allocation2 + $0x70] sm:$0xf] }
 0x1fd   : > { %5514 = vmatmul.msk.bf16.gmra.mxu0 %vm1321_vm11, %v4585_v17  ;;  %v3136_v13 = vrot.slane %v3134_v30, 4  ;;  %v4560_v5 = vunpack.c.l.b16 %v4475_v16  ;;  %v3912_v14 = vrot.slane %v3911_v4, 4  ;;  %v3926_v36 = vrot.slane %v3924_v54, 5 }
 0x1fe   : > { %v2024_v2 = vpop.f32.mrf.mxu2  ;;  %v3932_v62 = vshll.u32 %v3733_v50, 16  ;;  %v4478_v20 = vrot.slane %v6682_v49, 5  ;;  %v3135_v44 = vsel %vm6148_vm15, %v5349_v52, %v3134_v30  ;;  %v3938_v48 = vshll.u32 %v6716_v35, 16 }
 0x1ff   : > { %v2065_v37 = vadd.f32 %v2024_v2, %v1668_v3  ;;  %v5574_v3 = vld [vmem:[#allocation2 + $0x60] sm:$0xff]  ;;  %v3942_v16 = vshrl.u32 %v6716_v35, 16  ;;  %v3917_v49 = vsel %vm5819_vm12, %v3912_v14, %v6701_v29  ;;  %v3212_v54 = vunpack.c.l.b16 %v3135_v44 }
 0x200   : > { %v1672_v55 = vpop.f32.mrf.mxu1  ;;  %v4376_v2 = vld [vmem:[#allocation2 + $0x60] sm:$0xe]  ;;  %v3931_v30 = vrot.slane %v3929_v21, 4  ;;  %v3934_v23 = vrot.slane %v3932_v62, 5  ;;  %v4159_v50 = vunpack.c.l.b16 %v3917_v49 }
 0x201   : > { %v2311_v25 = vpop.f32.mrf.mxu3  ;;  %v5494_v60 = vrot.slane %v4376_v2, 9  ;;  %v1673_v63 = vadd.f32 %v1672_v55, %v6316_v56  ;;  %v3944_v29 = vrot.slane %v3942_v16, 4 }
 0x202   : > { %v2969_v17 = vpop.f32.mrf.mxu0  ;;  %v2354_v31 = vadd.f32 %v2311_v25, %v2064_v53  ;;  %v4586_v25 = vpack.c.b16 %v4560_v5, %v4559_v46  ;;  %v3935_v14 = vor.u32 %v3934_v23, %v3931_v30 }
 0x203   : > { %5370 = vmatmul.msk.bf16.gmra.mxu1 %vm1321_vm11, %v3236_v43  ;;  %v3138_v43 = vsel %vm6148_vm15, %v3136_v13, %v3137_v12  ;;  %v4480_v12 = vrot.slane %v4478_v20, 4  ;;  %v3940_v13 = vrot.slane %v3938_v48, 5  ;;  %v4479_v56 = vsel %vm6148_vm15, %v5494_v60, %v4478_v20  ;;  %v7245_v20 = vld [vmem:[#allocation3_spill] sm:$0xff]  ;;  %v5640_v60 = vld [vmem:[#allocation2 + $0x74] sm:$0x1] }
 0x204   : > { %v6713_v53 = vadd.f32 %v2969_v17, %v2354_v31  ;;  %v3927_v31 = vsel %vm5819_vm12, %v3922_v7, %v3926_v36  ;;  %v3213_v9 = vunpack.c.l.b16 %v3138_v43  ;;  %v5639_v43 = vld [vmem:[#allocation2 + $0x70] sm:$0xf]  ;;  %v3936_v16 = vrot.slane %v3935_v14, 4 }
 0x205   : > { %v4160_v46 = vunpack.c.l.b16 %v3927_v31  ;;  %v3945_v36 = vor.u32 %v3944_v29, %v3940_v13 }
 0x206   : > { %v2026_v41 = vpop.f32.mrf.mxu2  ;;  %5477 = vmatmul.msk.bf16.gmra.mxu3 %vm1321_vm11, %v4184_v28 }
 0x207   : > { %v2066_v6 = vadd.f32 %v2026_v41, %v1670_v18  ;;  %v4481_v18 = vrot.slane %v6703_v38, 5  ;;  %v6736_v41 = vld [vmem:[#allocation2 + $0x74] sm:$0x1]  ;;  %v4185_v44 = vpack.c.b16 %v4160_v46, %v4159_v50  ;;  %v3946_v30 = vrot.slane %v3945_v36, 4 }
 0x208   : > { %v1674_v40 = vpop.f32.mrf.mxu1  ;;  %v3948_v2 = vshll.u32 %v6736_v41, 16 }
 0x209   : > { %v2314_v28 = vpop.f32.mrf.mxu3  ;;  %v4482_v38 = vsel %vm6148_vm15, %v4480_v12, %v4481_v18  ;;  %v5575_v12 = vld [vmem:[#allocation2 + $0x6c] sm:$0xff]  ;;  %v3736_v18 = vld [vmem:[#allocation2 + $0x78] sm:$0xf] }
 0x20a   : > { %v2972_v4 = vpop.f32.mrf.mxu0  ;;  %v2355_v17 = vadd.f32 %v2314_v28, %v2065_v37  ;;  %v4561_v28 = vunpack.c.l.b16 %v4479_v56  ;;  %v4562_v48 = vunpack.c.l.b16 %v4482_v38  ;;  %v3950_v23 = vrot.slane %v3948_v2, 5  ;;  %v4377_v38 = vld [vmem:[#allocation2 + $0x6c] sm:$0xe] }
 0x20b   : > { %5456 = vmatmul.msk.bf16.gmra.mxu2 %vm1321_vm11, %v5574_v3  ;;  %v3237_v3 = vpack.c.b16 %v3213_v9, %v3212_v54  ;;  %v3144_v54 = vrot.slane %v5640_v60, 5  ;;  %v3953_v36 = vshrl.u32 %v3736_v18, 16  ;;  %v3956_v2 = vshll.u32 %v3736_v18, 16 }
 0x20c   : > { %v6733_v37 = vadd.f32 %v2972_v4, %v2355_v17  ;;  %v3027_v4 = vld [vmem:[#allocation2 + $0x6c] sm:$0xe]  ;;  %v1675_v17 = vadd.f32 %v1674_v40, %v7245_v20  ;;  %v4587_v29 = vpack.c.b16 %v4562_v48, %v4561_v28  ;;  %v3941_v40 = vsel %vm5819_vm12, %v3936_v16, %v3940_v13  ;;  %v7246_v48 = vld [vmem:[#allocation4_spill] sm:$0xff] }
 0x20d   : > { %5515 = vmatmul.msk.bf16.gmra.mxu0 %vm1321_vm11, %v4586_v25  ;;  %v3141_v25 = vrot.slane %v5639_v43, 5  ;;  %v5350_v49 = vrot.slane %v3027_v4, 9  ;;  %v3951_v56 = vsel %vm5819_vm12, %v3946_v30, %v3950_v23  ;;  %v4161_v43 = vunpack.c.l.b16 %v3941_v40 }
 0x20e   : > { %v2029_v52 = vpop.f32.mrf.mxu2  ;;  %v4162_v4 = vunpack.c.l.b16 %v3951_v56  ;;  %v5495_v20 = vrot.slane %v4377_v38, 9  ;;  %v3958_v60 = vrot.slane %v3956_v2, 5 }
 0x20f   : > { %v2067_v5 = vadd.f32 %v2029_v52, %v1673_v63  ;;  %v3143_v31 = vrot.slane %v3141_v25, 4  ;;  %v6748_v52 = vld [vmem:[#allocation2 + $0x7c] sm:$0xf]  ;;  %v3142_v46 = vsel %vm6148_vm15, %v5350_v49, %v3141_v25 }
 0x210   : > { %v1677_v55 = vpop.f32.mrf.mxu1  ;;  %v3962_v13 = vshll.u32 %v6748_v52, 16  ;;  %v3214_v25 = vunpack.c.l.b16 %v3142_v46  ;;  %v4186_v40 = vpack.c.b16 %v4162_v4, %v4161_v43 }
 0x211   : > { %v2316_v7 = vpop.f32.mrf.mxu3  ;;  %v1678_v16 = vadd.f32 %v1677_v55, %v7246_v48 }
 0x212   : > { %v2974_v21 = vpop.f32.mrf.mxu0  ;;  %v2356_v62 = vadd.f32 %v2316_v7, %v2066_v6  ;;  %v4485_v7 = vrot.slane %v6716_v35, 5 }
 0x213   : > { %5371 = vmatmul.msk.bf16.gmra.mxu1 %vm1321_vm11, %v3237_v3  ;;  %v3145_v3 = vsel %vm6148_vm15, %v3143_v31, %v3144_v54  ;;  %v3955_v31 = vrot.slane %v3953_v36, 4  ;;  %v5641_v36 = vld [vmem:[#allocation2 + $0x7c] sm:$0xf] }
 0x214   : > { %v6745_v63 = vadd.f32 %v2974_v21, %v2356_v62  ;;  %v3215_v28 = vunpack.c.l.b16 %v3145_v3  ;;  %v4487_v35 = vrot.slane %v4485_v7, 4  ;;  %v3148_v2 = vrot.slane %v5641_v36, 5 }
 0x215   : > { %v3959_v46 = vor.u32 %v3958_v60, %v3955_v31 }
 0x216   : > { %v2031_v9 = vpop.f32.mrf.mxu2  ;;  %5478 = vmatmul.msk.bf16.gmra.mxu3 %vm1321_vm11, %v4185_v44  ;;  %v3966_v44 = vshrl.u32 %v6748_v52, 16  ;;  %v3238_v23 = vpack.c.b16 %v3215_v28, %v3214_v25  ;;  %v3150_v43 = vrot.slane %v3148_v2, 4  ;;  %v3739_v28 = vld [vmem:[#allocation2 + $0x84] sm:$0xf] }
 0x217   : > { %v2068_v6 = vadd.f32 %v2031_v9, %v1675_v17  ;;  %v6767_v9 = vrot.slane %v3962_v13, 5 }
 0x218   : > { %v1679_v50 = vpop.f32.mrf.mxu1  ;;  %v3968_v30 = vrot.slane %v3966_v44, 4 }
 0x219   : > { %v2319_v14 = vpop.f32.mrf.mxu3 }
 0x21a   : > { %v2977_v21 = vpop.f32.mrf.mxu0  ;;  %v2357_v62 = vadd.f32 %v2319_v14, %v2067_v5  ;;  %v4488_v5 = vrot.slane %v6736_v41, 5  ;;  %v3969_v56 = vor.u32 %v3968_v30, %v6767_v9  ;;  %v4378_v30 = vld [vmem:[#allocation2 + $0x78] sm:$0xe] }
 0x21b   : > { %5457 = vmatmul.msk.bf16.gmra.mxu2 %vm1321_vm11, %v5575_v12  ;;  %v6769_v12 = vld [vmem:[#allocation2 + $0x80] sm:$0x1] }
 0x21c   : > { %v6763_v17 = vadd.f32 %v2977_v21, %v2357_v62  ;;  %v4489_v41 = vsel %vm6148_vm15, %v4487_v35, %v4488_v5  ;;  %v3972_v38 = vshll.u32 %v6769_v12, 16  ;;  %v3028_v21 = vld [vmem:[#allocation2 + $0x78] sm:$0xe]  ;;  %v7247_v62 = vld [vmem:[#allocation5_spill] sm:$0xff]  ;;  %v3970_v31 = vrot.slane %v3969_v56, 4 }
 0x21d   : > { %5516 = vmatmul.msk.bf16.gmra.mxu0 %vm1321_vm11, %v4587_v29  ;;  %v4486_v29 = vsel %vm6148_vm15, %v5495_v20, %v4485_v7  ;;  %v1680_v13 = vadd.f32 %v1679_v50, %v7247_v62  ;;  %v5351_v44 = vrot.slane %v3028_v21, 9  ;;  %v5642_v7 = vld [vmem:[#allocation2 + $0x80] sm:$0x1]  ;;  %v6781_v20 = vld [vmem:[#allocation2 + $0x88] sm:$0xf]  ;;  %v4492_v50 = vrot.slane %v6748_v52, 5 }
 0x21e   : > { %v2034_v49 = vpop.f32.mrf.mxu2  ;;  %v3151_v25 = vrot.slane %v5642_v7, 5  ;;  %v4563_v48 = vunpack.c.l.b16 %v4486_v29  ;;  %v3974_v60 = vrot.slane %v3972_v38, 5  ;;  %v5496_v21 = vrot.slane %v4378_v30, 9 }
 0x21f   : > { %v2069_v54 = vadd.f32 %v2034_v49, %v1678_v16  ;;  %v4564_v16 = vunpack.c.l.b16 %v4489_v41  ;;  %v5576_v49 = vld [vmem:[#allocation2 + $0x78] sm:$0xff]  ;;  %v3149_v29 = vsel %vm6148_vm15, %v5351_v44, %v3148_v2  ;;  %v4494_v62 = vrot.slane %v4492_v50, 4 }
 0x220   : > { %v6771_v55 = vpop.f32.mrf.mxu1  ;;  %v3152_v41 = vsel %vm6148_vm15, %v3150_v43, %v3151_v25  ;;  %v3975_v2 = vsel %vm5819_vm12, %v3970_v31, %v3974_v60  ;;  %v4495_v25 = vrot.slane %v6769_v12, 5  ;;  %v4493_v60 = vsel %vm6148_vm15, %v5496_v21, %v4492_v50 }
 0x221   : > { %v2321_v18 = vpop.f32.mrf.mxu3  ;;  %v3217_v44 = vunpack.c.l.b16 %v3152_v41  ;;  %v4499_v41 = vrot.slane %v6781_v20, 5  ;;  %v3389_v50 = vadd.f32 %v6771_v55, %v6367_v39  ;;  %v5577_v55 = vld [vmem:[#allocation2 + $0x84] sm:$0xff] }
 0x222   : > { %v2979_v3 = vpop.f32.mrf.mxu0  ;;  %v2358_v14 = vadd.f32 %v2321_v18, %v2068_v6  ;;  %v3960_v6 = vrot.slane %v3959_v46, 4  ;;  %v3980_v18 = vshll.u32 %v3739_v28, 16  ;;  %v3986_v46 = vshll.u32 %v6781_v20, 16 }
 0x223   : > { %5372 = vmatmul.msk.bf16.gmra.mxu1 %vm1321_vm11, %v3238_v23  ;;  %v3977_v23 = vshrl.u32 %v3739_v28, 16  ;;  %v4496_v30 = vsel %vm6148_vm15, %v4494_v62, %v4495_v25  ;;  %v3029_v62 = vld [vmem:[#allocation2 + $0x84] sm:$0xe] }
 0x224   : > { %v6783_v35 = vadd.f32 %v2979_v3, %v2358_v14  ;;  %v4588_v3 = vpack.c.b16 %v4564_v16, %v4563_v48  ;;  %v3965_v52 = vsel %vm5819_vm12, %v3960_v6, %v6767_v9  ;;  %v3982_v7 = vrot.slane %v3980_v18, 5  ;;  %v3741_v6 = vld [vmem:[#allocation2 + $0x8c] sm:$0x1] }
 0x225   : > { %v3979_v43 = vrot.slane %v3977_v23, 4  ;;  %v6802_v28 = vrot.slane %v3986_v46, 5  ;;  %v4163_v9 = vunpack.c.l.b16 %v3965_v52  ;;  %v5643_v52 = vld [vmem:[#allocation2 + $0x88] sm:$0xf] }
 0x226   : > { %v2036_v4 = vpop.f32.mrf.mxu2  ;;  %5479 = vmatmul.msk.bf16.gmra.mxu3 %vm1321_vm11, %v4186_v40  ;;  %v3990_v40 = vshrl.u32 %v6781_v20, 16  ;;  %v5644_v20 = vld [vmem:[#allocation2 + $0x8c] sm:$0x1] }
 0x227   : > { %v2070_v5 = vadd.f32 %v2036_v4, %v1680_v13  ;;  %v3216_v13 = vunpack.c.l.b16 %v3149_v29  ;;  %v4164_v4 = vunpack.c.l.b16 %v3975_v2  ;;  %v3983_v31 = vor.u32 %v3982_v7, %v3979_v43 }
 0x228   : > { %v6787_v36 = vpop.f32.mrf.mxu1  ;;  %v3992_v48 = vrot.slane %v3990_v40, 4  ;;  %v3996_v29 = vshll.u32 %v3741_v6, 16  ;;  %v4566_v2 = vunpack.c.l.b16 %v4496_v30  ;;  %v5352_v43 = vrot.slane %v3029_v62, 9 }
 0x229   : > { %v2324_v14 = vpop.f32.mrf.mxu3  ;;  %v3984_v21 = vrot.slane %v3983_v31, 4  ;;  %v3158_v25 = vrot.slane %v5644_v20, 5 }
 0x22a   : > { %v2982_v56 = vpop.f32.mrf.mxu0  ;;  %v2359_v38 = vadd.f32 %v2324_v14, %v2069_v54  ;;  %v3993_v23 = vor.u32 %v3992_v48, %v6802_v28  ;;  %v4379_v14 = vld [vmem:[#allocation2 + $0x84] sm:$0xe] }
 0x22b   : > { %5458 = vmatmul.msk.bf16.gmra.mxu2 %vm1321_vm11, %v5576_v49  ;;  %v3239_v49 = vpack.c.b16 %v3217_v44, %v3216_v13  ;;  %v3742_v13 = vld [vmem:[#allocation2 + $0x90] sm:$0xf] }
 0x22c   : > { %v6804_v16 = vadd.f32 %v2982_v56, %v2359_v38  ;;  %v3155_v56 = vrot.slane %v5643_v52, 5  ;;  %v4565_v38 = vunpack.c.l.b16 %v4493_v60  ;;  %v3994_v44 = vrot.slane %v3993_v23, 4 }
 0x22d   : > { %5517 = vmatmul.msk.bf16.gmra.mxu0 %vm1321_vm11, %v4588_v3  ;;  %v4187_v3 = vpack.c.b16 %v4164_v4, %v4163_v9  ;;  %v3998_v9 = vrot.slane %v3996_v29, 5  ;;  %v5497_v4 = vrot.slane %v4379_v14, 9  ;;  %v4001_v31 = vshrl.u32 %v3742_v13, 16 }
 0x22e   : > { %v3600_v54 = vpop.f32.mrf.mxu2  ;;  %v3157_v7 = vrot.slane %v3155_v56, 4  ;;  %v4004_v60 = vshll.u32 %v3742_v13, 16  ;;  %v3156_v29 = vsel %vm6148_vm15, %v5352_v43, %v3155_v56 }
 0x22f   : > { %v3680_v39 = vadd.f32 %v3600_v54, %v3389_v50  ;;  %v3989_v54 = vsel %vm5819_vm12, %v3984_v21, %v6802_v28  ;;  %v4500_v14 = vsel %vm6148_vm15, %v5497_v4, %v4499_v41  ;;  %v4003_v43 = vrot.slane %v4001_v31, 4 }
 0x230   : > { %v6811_v12 = vpop.f32.mrf.mxu1  ;;  %v3218_v28 = vunpack.c.l.b16 %v3156_v29  ;;  %v4165_v20 = vunpack.c.l.b16 %v3989_v54 }
 0x231   : > { %v2326_v18 = vpop.f32.mrf.mxu3 }
 0x232   : > { %v2984_v46 = vpop.f32.mrf.mxu0  ;;  %v2360_v40 = vadd.f32 %v2326_v18, %v2070_v5  ;;  %v6818_v5 = vld [vmem:[#allocation2 + $0x94] sm:$0xf]  ;;  %v4501_v18 = vrot.slane %v4499_v41, 4 }
 0x233   : > { %5373 = vmatmul.msk.bf16.gmra.mxu1 %vm1321_vm11, %v3239_v49  ;;  %v4502_v49 = vrot.slane %v3741_v6, 5  ;;  %v4010_v30 = vshll.u32 %v6818_v5, 16  ;;  %v4014_v23 = vshrl.u32 %v6818_v5, 16  ;;  %v3999_v6 = vsel %vm5819_vm12, %v3994_v44, %v3998_v9 }
 0x234   : > { %v6820_v52 = vadd.f32 %v2984_v46, %v2360_v40  ;;  %v3159_v46 = vsel %vm6148_vm15, %v3157_v7, %v3158_v25  ;;  %v4589_v40 = vpack.c.b16 %v4566_v2, %v4565_v38  ;;  %v4006_v38 = vrot.slane %v4004_v60, 5 }
 0x235   : > { %v4503_v56 = vsel %vm6148_vm15, %v4501_v18, %v4502_v49  ;;  %v3219_v2 = vunpack.c.l.b16 %v3159_v46  ;;  %v6848_v21 = vrot.slane %v4010_v30, 5  ;;  %v4016_v41 = vrot.slane %v4014_v23, 4 }
 0x236   : > { %v3602_v48 = vpop.f32.mrf.mxu2  ;;  %7248 = vst [vmem:[#allocation3_spill] sm:$0xff] %v6820_v52  ;;  %5480 = vmatmul.msk.bf16.gmra.mxu3 %vm1321_vm11, %v4187_v3  ;;  %v3390_v7 = vadd.f32 %v6787_v36, %v6381_v27  ;;  %v4166_v4 = vunpack.c.l.b16 %v3999_v6  ;;  %v4567_v18 = vunpack.c.l.b16 %v4500_v14  ;;  %v4007_v31 = vor.u32 %v4006_v38, %v4003_v43  ;;  %v6889_v52 = vld [vmem:[#allocation2 + $0xa4] sm:$0x1] }
 0x237   : > { %v3240_v49 = vpack.c.b16 %v3219_v2, %v3218_v28  ;;  %v4017_v60 = vor.u32 %v4016_v41, %v6848_v21  ;;  %v3391_v6 = vadd.f32 %v6811_v12, %v6386_v15  ;;  %v5646_v2 = vld [vmem:[#allocation2 + $0x98] sm:$0x1]  ;;  %v4380_v15 = vld [vmem:[#allocation2 + $0x90] sm:$0xe]  ;;  %v4506_v12 = vrot.slane %v6818_v5, 5 }
 0x238   : > { %v6825_v62 = vpop.f32.mrf.mxu1  ;;  %v3681_v9 = vadd.f32 %v3602_v48, %v3390_v7  ;;  %v4188_v46 = vpack.c.b16 %v4166_v4, %v4165_v20  ;;  %v4008_v14 = vrot.slane %v4007_v31, 4  ;;  %v3165_v41 = vrot.slane %v5646_v2, 5  ;;  %v6864_v7 = vld [vmem:[#allocation2 + $0xa0] sm:$0xf]  ;;  %v5578_v31 = vld [vmem:[#allocation2 + $0x90] sm:$0xff] }
 0x239   : > { %v4258_v3 = vpop.f32.mrf.mxu3 }
 0x23a   : > { %v4660_v50 = vpop.f32.mrf.mxu0  ;;  %v4338_v13 = vadd.f32 %v4258_v3, %v3680_v39  ;;  %v4568_v39 = vunpack.c.l.b16 %v4503_v56  ;;  %v5645_v3 = vld [vmem:[#allocation2 + $0x94] sm:$0xf]  ;;  %v3745_v56 = vld [vmem:[#allocation2 + $0x9c] sm:$0xf] }
 0x23b   : > { %5459 = vmatmul.msk.bf16.gmra.mxu2 %vm1321_vm11, %v5577_v55  ;;  %v6855_v55 = vld [vmem:[#allocation2 + $0x98] sm:$0x1]  ;;  %v3162_v48 = vrot.slane %v5645_v3, 5 }
 0x23c   : > { %v4740_v44 = vadd.f32 %v4660_v50, %v4338_v13  ;;  %v4020_v27 = vshll.u32 %v6855_v55, 16  ;;  %v4018_v50 = vrot.slane %v4017_v60, 4  ;;  %v3030_v13 = vld [vmem:[#allocation2 + $0x90] sm:$0xe]  ;;  %v4025_v60 = vshrl.u32 %v3745_v56, 16 }
 0x23d   : > { %5518 = vmatmul.msk.bf16.gmra.mxu0 %vm1321_vm11, %v4589_v40  ;;  %v4590_v40 = vpack.c.b16 %v4568_v39, %v4567_v18  ;;  %v5353_v38 = vrot.slane %v3030_v13, 9  ;;  %v3164_v28 = vrot.slane %v3162_v48, 4 }
 0x23e   : > { %v3605_v25 = vpop.f32.mrf.mxu2  ;;  %4772 = vst.msk [vmem:[%s6846_s17] sm:$0xff] %vm1321_vm11, %v4740_v44  ;;  %v4874_v54 = vmul.f32 %v4740_v44, %v4740_v44  ;;  %v4804_v20 = vsel %vm1321_vm11, %v4740_v44, 0.0  ;;  %v4022_v18 = vrot.slane %v4020_v27, 5  ;;  %v4013_v44 = vsel %vm5819_vm12, %v4008_v14, %v6848_v21 }
 0x23f   : > { %v4038_v27 = vshrl.u32 %v6864_v7, 16  ;;  %v4508_v21 = vrot.slane %v4506_v12, 4  ;;  %v4509_v14 = vrot.slane %v6855_v55, 5 }
 0x240   : > { %v6858_v30 = vpop.f32.mrf.mxu1  ;;  %v4906_v5 = vsel %vm1321_vm11, %v4874_v54, 0.0  ;;  %v4023_v54 = vsel %vm5819_vm12, %v4018_v50, %v4022_v18 }
 0x241   : > { %v4260_v23 = vpop.f32.mrf.mxu3  ;;  %v4510_v18 = vsel %vm6148_vm15, %v4508_v21, %v4509_v14 }
 0x242   : > { %v4662_v36 = vpop.f32.mrf.mxu0  ;;  %v4339_v29 = vadd.f32 %v4260_v23, %v3681_v9  ;;  %v3682_v9 = vadd.f32 %v3605_v25, %v3391_v6  ;;  %v4028_v23 = vshll.u32 %v3745_v56, 16  ;;  %v4034_v25 = vshll.u32 %v6864_v7, 16 }
 0x243   : > { %5374 = vmatmul.msk.bf16.gmra.mxu1 %vm1321_vm11, %v3240_v49  ;;  %v3166_v6 = vsel %vm6148_vm15, %v3164_v28, %v3165_v41  ;;  %v4040_v41 = vrot.slane %v4038_v27, 4 }
 0x244   : > { %v4741_v43 = vadd.f32 %v4662_v36, %v4339_v29  ;;  %v6891_v28 = vrot.slane %v4034_v25, 5 }
 0x246   : > { %v3607_v4 = vpop.f32.mrf.mxu2  ;;  %4773 = vst.msk [vmem:[%s6846_s17 + $0x8] sm:$0xff] %vm1321_vm11, %v4741_v43  ;;  %v4805_v39 = vsel %vm1321_vm11, %v4741_v43, 0.0  ;;  %v4875_v49 = vmul.f32 %v4741_v43, %v4741_v43  ;;  %5481 = vmatmul.msk.bf16.gmra.mxu3 %vm1321_vm11, %v4188_v46  ;;  %v3163_v46 = vsel %vm6148_vm15, %v5353_v38, %v3162_v48  ;;  %v5498_v43 = vrot.slane %v4380_v15, 9 }
 0x247   : > { %v4806_v36 = vadd.f32 %v4805_v39, %v4804_v20  ;;  %v4027_v39 = vrot.slane %v4025_v60, 4  ;;  %v3220_v48 = vunpack.c.l.b16 %v3163_v46  ;;  %v3221_v38 = vunpack.c.l.b16 %v3166_v6 }
 0x248   : > { %v4907_v29 = vsel %vm1321_vm11, %v4875_v49, 0.0  ;;  %v6879_v3 = vpop.f32.mrf.mxu1  ;;  %v4030_v49 = vrot.slane %v4028_v23, 5  ;;  %v4507_v50 = vsel %vm6148_vm15, %v5498_v43, %v4506_v12 }
 0x249   : > { %v4908_v13 = vadd.f32 %v4907_v29, %v4906_v5  ;;  %v4263_v56 = vpop.f32.mrf.mxu3  ;;  %v7249_v5 = vld [vmem:[#allocation6_spill] sm:$0xff]  ;;  %v4044_v29 = vshll.u32 %v6889_v52, 16  ;;  %v3241_v46 = vpack.c.b16 %v3221_v38, %v3220_v48  ;;  %v3031_v38 = vld [vmem:[#allocation2 + $0x9c] sm:$0xe] }
 0x24a   : > { %v4665_v2 = vpop.f32.mrf.mxu0  ;;  %v4340_v20 = vadd.f32 %v4263_v56, %v3682_v9  ;;  %v3392_v55 = vadd.f32 %v6825_v62, %v7249_v5  ;;  %v4167_v9 = vunpack.c.l.b16 %v4013_v44  ;;  %v4041_v44 = vor.u32 %v4040_v41, %v6891_v28  ;;  %v7250_v5 = vld [vmem:[#allocation7_spill] sm:$0xff] }
 0x24b   : > { %5460 = vmatmul.msk.bf16.gmra.mxu2 %vm1321_vm11, %v5578_v31  ;;  %v4168_v31 = vunpack.c.l.b16 %v4023_v54  ;;  %v4570_v54 = vunpack.c.l.b16 %v4510_v18  ;;  %v4046_v48 = vrot.slane %v4044_v29, 5 }
 0x24c   : > { %v4742_v15 = vadd.f32 %v4665_v2, %v4340_v20  ;;  %v3683_v27 = vadd.f32 %v3607_v4, %v3392_v55  ;;  %v4569_v20 = vunpack.c.l.b16 %v4507_v50  ;;  %v5647_v4 = vld [vmem:[#allocation2 + $0xa0] sm:$0xf] }
 0x24d   : > { %5519 = vmatmul.msk.bf16.gmra.mxu0 %vm1321_vm11, %v4590_v40  ;;  %v4031_v40 = vor.u32 %v4030_v49, %v4027_v39  ;;  %v4189_v21 = vpack.c.b16 %v4168_v31, %v4167_v9  ;;  %v4042_v49 = vrot.slane %v4041_v44, 4  ;;  %v5648_v9 = vld [vmem:[#allocation2 + $0xa4] sm:$0x1]  ;;  %v5579_v50 = vld [vmem:[#allocation2 + $0x9c] sm:$0xff] }
 0x24e   : > { %v3610_v60 = vpop.f32.mrf.mxu2  ;;  %4774 = vst.msk [vmem:[%s6846_s17 + $0x10] sm:$0xff] %vm1321_vm11, %v4742_v15  ;;  %v4807_v23 = vsel %vm1321_vm11, %v4742_v15, 0.0  ;;  %v4876_v25 = vmul.f32 %v4742_v15, %v4742_v15  ;;  %v3169_v15 = vrot.slane %v5647_v4, 5  ;;  %v3172_v31 = vrot.slane %v5648_v9, 5 }
 0x24f   : > { %v4808_v62 = vadd.f32 %v4807_v23, %v4806_v36  ;;  %v3393_v36 = vadd.f32 %v6858_v30, %v7250_v5  ;;  %v4032_v39 = vrot.slane %v4031_v40, 4  ;;  %v4591_v40 = vpack.c.b16 %v4570_v54, %v4569_v20  ;;  %v4381_v54 = vld [vmem:[#allocation2 + $0x9c] sm:$0xe] }
 0x250   : > { %v4909_v6 = vsel %vm1321_vm11, %v4876_v25, 0.0  ;;  %v6906_v12 = vpop.f32.mrf.mxu1  ;;  %v3171_v55 = vrot.slane %v3169_v15, 4 }
 0x251   : > { %v4910_v56 = vadd.f32 %v4909_v6, %v4908_v13  ;;  %v4265_v43 = vpop.f32.mrf.mxu3  ;;  %v5354_v13 = vrot.slane %v3031_v38, 9  ;;  %v3684_v30 = vadd.f32 %v3610_v60, %v3393_v36  ;;  %v4037_v44 = vsel %vm5819_vm12, %v4032_v39, %v6891_v28 }
 0x252   : > { %v4667_v14 = vpop.f32.mrf.mxu0  ;;  %v4341_v2 = vadd.f32 %v4265_v43, %v3683_v27  ;;  %v3748_v27 = vld [vmem:[#allocation2 + $0xa8] sm:$0xf]  ;;  %v4513_v6 = vrot.slane %v6864_v7, 5 }
 0x253   : > { %5375 = vmatmul.msk.bf16.gmra.mxu1 %vm1321_vm11, %v3241_v46  ;;  %v6915_v46 = vld [vmem:[#allocation2 + $0xac] sm:$0xf]  ;;  %v3170_v60 = vsel %vm6148_vm15, %v5354_v13, %v3169_v15  ;;  %v4049_v4 = vshrl.u32 %v3748_v27, 16  ;;  %v4052_v28 = vshll.u32 %v3748_v27, 16 }
 0x254   : > { %v4743_v41 = vadd.f32 %v4667_v14, %v4341_v2  ;;  %v4047_v14 = vsel %vm5819_vm12, %v4042_v49, %v4046_v48  ;;  %v4058_v7 = vshll.u32 %v6915_v46, 16  ;;  %v4062_v39 = vshrl.u32 %v6915_v46, 16  ;;  %v7251_v49 = vld [vmem:[#allocation8_spill] sm:$0xff] }
 0x255   : > { %v3394_v15 = vadd.f32 %v6879_v3, %v7251_v49  ;;  %v4169_v48 = vunpack.c.l.b16 %v4037_v44  ;;  %v3222_v38 = vunpack.c.l.b16 %v3170_v60  ;;  %v4170_v13 = vunpack.c.l.b16 %v4047_v14  ;;  %v5649_v49 = vld [vmem:[#allocation2 + $0xac] sm:$0xf] }
 0x256   : > { %v3612_v23 = vpop.f32.mrf.mxu2  ;;  %4775 = vst.msk [vmem:[%s6846_s17 + $0x18] sm:$0xff] %vm1321_vm11, %v4743_v41  ;;  %v4809_v18 = vsel %vm1321_vm11, %v4743_v41, 0.0  ;;  %v4877_v25 = vmul.f32 %v4743_v41, %v4743_v41  ;;  %5482 = vmatmul.msk.bf16.gmra.mxu3 %vm1321_vm11, %v4189_v21  ;;  %v4515_v9 = vrot.slane %v4513_v6, 4  ;;  %v4064_v14 = vrot.slane %v4062_v39, 4 }
 0x257   : > { %v4810_v29 = vadd.f32 %v4809_v18, %v4808_v62  ;;  %v3173_v62 = vsel %vm6148_vm15, %v3171_v55, %v3172_v31  ;;  %v5499_v55 = vrot.slane %v4381_v54, 9  ;;  %v4516_v31 = vrot.slane %v6889_v52, 5 }
 0x258   : > { %v4911_v43 = vsel %vm1321_vm11, %v4877_v25, 0.0  ;;  %v6924_v2 = vpop.f32.mrf.mxu1  ;;  %v3223_v41 = vunpack.c.l.b16 %v3173_v62  ;;  %v4051_v25 = vrot.slane %v4049_v4, 4  ;;  %v3685_v44 = vadd.f32 %v3612_v23, %v3394_v15 }
 0x259   : > { %v4912_v21 = vadd.f32 %v4911_v43, %v4910_v56  ;;  %v4268_v20 = vpop.f32.mrf.mxu3  ;;  %v6942_v43 = vld [vmem:[#allocation2 + $0xb0] sm:$0x1]  ;;  %v4517_v39 = vsel %vm6148_vm15, %v4515_v9, %v4516_v31  ;;  %v3176_v15 = vrot.slane %v5649_v49, 5 }
 0x25a   : > { %v4670_v5 = vpop.f32.mrf.mxu0  ;;  %v4342_v36 = vadd.f32 %v4268_v20, %v3684_v30  ;;  %v6937_v30 = vrot.slane %v4058_v7, 5  ;;  %v3242_v62 = vpack.c.b16 %v3223_v41, %v3222_v38  ;;  %v4190_v20 = vpack.c.b16 %v4170_v13, %v4169_v48  ;;  %v7252_v48 = vld [vmem:[#allocation9_spill] sm:$0xff]  ;;  %v5650_v13 = vld [vmem:[#allocation2 + $0xb0] sm:$0x1] }
 0x25b   : > { %5461 = vmatmul.msk.bf16.gmra.mxu2 %vm1321_vm11, %v5579_v50  ;;  %v4054_v50 = vrot.slane %v4052_v28, 5  ;;  %v4514_v28 = vsel %vm6148_vm15, %v5499_v55, %v4513_v6  ;;  %v3032_v38 = vld [vmem:[#allocation2 + $0xa8] sm:$0xe]  ;;  %v3179_v55 = vrot.slane %v5650_v13, 5 }
 0x25c   : > { %v4744_v56 = vadd.f32 %v4670_v5, %v4342_v36  ;;  %v4068_v5 = vshll.u32 %v6942_v43, 16  ;;  %v5355_v41 = vrot.slane %v3032_v38, 9 }
 0x25d   : > { %5520 = vmatmul.msk.bf16.gmra.mxu0 %vm1321_vm11, %v4591_v40  ;;  %v4055_v7 = vor.u32 %v4054_v50, %v4051_v25  ;;  %v3751_v25 = vld [vmem:[#allocation2 + $0xb4] sm:$0xf]  ;;  %v4571_v50 = vunpack.c.l.b16 %v4514_v28 }
 0x25e   : > { %v3615_v18 = vpop.f32.mrf.mxu2  ;;  %4776 = vst.msk [vmem:[%s6846_s17 + $0x20] sm:$0xff] %vm1321_vm11, %v4744_v56  ;;  %v4811_v3 = vsel %vm1321_vm11, %v4744_v56, 0.0  ;;  %v4878_v27 = vmul.f32 %v4744_v56, %v4744_v56  ;;  %v3178_v56 = vrot.slane %v3176_v15, 4  ;;  %v4076_v49 = vshll.u32 %v3751_v25, 16 }
 0x25f   : > { %v4812_v60 = vadd.f32 %v4811_v3, %v4810_v29  ;;  %v4065_v29 = vor.u32 %v4064_v14, %v6937_v30  ;;  %v4572_v3 = vunpack.c.l.b16 %v4517_v39  ;;  %v4056_v31 = vrot.slane %v4055_v7, 4 }
 0x260   : > { %v4913_v40 = vsel %vm1321_vm11, %v4878_v27, 0.0  ;;  %v6945_v52 = vpop.f32.mrf.mxu1  ;;  %v4070_v27 = vrot.slane %v4068_v5, 5  ;;  %v4520_v7 = vrot.slane %v6915_v46, 5  ;;  %v3177_v39 = vsel %vm6148_vm15, %v5355_v41, %v3176_v15 }
 0x261   : > { %v4914_v54 = vadd.f32 %v4913_v40, %v4912_v21  ;;  %v4270_v4 = vpop.f32.mrf.mxu3  ;;  %v3395_v21 = vadd.f32 %v6906_v12, %v7252_v48  ;;  %v4066_v40 = vrot.slane %v4065_v29, 4  ;;  %v4592_v48 = vpack.c.b16 %v4572_v3, %v4571_v50 }
 0x262   : > { %v4672_v36 = vpop.f32.mrf.mxu0  ;;  %v4343_v23 = vadd.f32 %v4270_v4, %v3685_v44  ;;  %v6960_v4 = vld [vmem:[#allocation2 + $0xb8] sm:$0xf]  ;;  %v3396_v46 = vadd.f32 %v6924_v2, %v6450_v26  ;;  %v4061_v15 = vsel %vm5819_vm12, %v4056_v31, %v6937_v30  ;;  %v3224_v41 = vunpack.c.l.b16 %v3177_v39 }
 0x263   : > { %5376 = vmatmul.msk.bf16.gmra.mxu1 %vm1321_vm11, %v3242_v62  ;;  %v3686_v12 = vadd.f32 %v3615_v18, %v3395_v21  ;;  %v5580_v62 = vld [vmem:[#allocation2 + $0xa8] sm:$0xff]  ;;  %v4086_v38 = vshrl.u32 %v6960_v4, 16  ;;  %v4171_v26 = vunpack.c.l.b16 %v4061_v15 }
 0x264   : > { %v4745_v6 = vadd.f32 %v4672_v36, %v4343_v23  ;;  %v4073_v23 = vshrl.u32 %v3751_v25, 16  ;;  %v4382_v21 = vld [vmem:[#allocation2 + $0xa8] sm:$0xe]  ;;  %v4078_v25 = vrot.slane %v4076_v49, 5 }
 0x265   : > { %v5500_v3 = vrot.slane %v4382_v21, 9 }
 0x266   : > { %v3617_v9 = vpop.f32.mrf.mxu2  ;;  %4777 = vst.msk [vmem:[%s6846_s17 + $0x28] sm:$0xff] %vm1321_vm11, %v4745_v6  ;;  %v4813_v44 = vsel %vm1321_vm11, %v4745_v6, 0.0  ;;  %v4879_v14 = vmul.f32 %v4745_v6, %v4745_v6  ;;  %5483 = vmatmul.msk.bf16.gmra.mxu3 %vm1321_vm11, %v4190_v20  ;;  %v3180_v20 = vsel %vm6148_vm15, %v3178_v56, %v3179_v55  ;;  %v4075_v55 = vrot.slane %v4073_v23, 4  ;;  %v6987_v23 = vld [vmem:[#allocation2 + $0xbc] sm:$0x1] }
 0x267   : > { %v4814_v36 = vadd.f32 %v4813_v44, %v4812_v60  ;;  %v4082_v60 = vshll.u32 %v6960_v4, 16  ;;  %v3225_v56 = vunpack.c.l.b16 %v3180_v20  ;;  %v4522_v44 = vrot.slane %v4520_v7, 4 }
 0x268   : > { %v4915_v28 = vsel %vm1321_vm11, %v4879_v14, 0.0  ;;  %v6964_v5 = vpop.f32.mrf.mxu1  ;;  %v4523_v14 = vrot.slane %v6942_v43, 5  ;;  %v4079_v39 = vor.u32 %v4078_v25, %v4075_v55  ;;  %v4521_v20 = vsel %vm6148_vm15, %v5500_v3, %v4520_v7  ;;  %v5652_v3 = vld [vmem:[#allocation2 + $0xbc] sm:$0x1] }
 0x269   : > { %v4916_v18 = vadd.f32 %v4915_v28, %v4914_v54  ;;  %v4273_v29 = vpop.f32.mrf.mxu3  ;;  %v4071_v54 = vsel %vm5819_vm12, %v4066_v40, %v4070_v27  ;;  %v3687_v27 = vadd.f32 %v3617_v9, %v3396_v46  ;;  %v3243_v28 = vpack.c.b16 %v3225_v56, %v3224_v41  ;;  %v5651_v46 = vld [vmem:[#allocation2 + $0xb8] sm:$0xf] }
 0x26a   : > { %v4675_v6 = vpop.f32.mrf.mxu0  ;;  %v4344_v13 = vadd.f32 %v4273_v29, %v3686_v12  ;;  %v6982_v12 = vrot.slane %v4082_v60, 5  ;;  %v4172_v40 = vunpack.c.l.b16 %v4071_v54  ;;  %v3183_v15 = vrot.slane %v5651_v46, 5 }
 0x26b   : > { %5462 = vmatmul.msk.bf16.gmra.mxu2 %vm1321_vm11, %v5580_v62  ;;  %v4088_v62 = vrot.slane %v4086_v38, 4  ;;  %v4092_v38 = vshll.u32 %v6987_v23, 16  ;;  %v3397_v7 = vadd.f32 %v6945_v52, %v6455_v45  ;;  %v4573_v54 = vunpack.c.l.b16 %v4521_v20 }
 0x26c   : > { %v4746_v50 = vadd.f32 %v4675_v6, %v4344_v13  ;;  %v4191_v13 = vpack.c.b16 %v4172_v40, %v4171_v26  ;;  %v4080_v56 = vrot.slane %v4079_v39, 4  ;;  %v7005_v40 = vld [vmem:[#allocation2 + $0xc4] sm:$0xf] }
 0x26d   : > { %5521 = vmatmul.msk.bf16.gmra.mxu0 %vm1321_vm11, %v4592_v48  ;;  %v4524_v48 = vsel %vm6148_vm15, %v4522_v44, %v4523_v14  ;;  %v4089_v9 = vor.u32 %v4088_v62, %v6982_v12  ;;  %v3186_v44 = vrot.slane %v5652_v3, 5  ;;  %v5581_v62 = vld [vmem:[#allocation2 + $0xb4] sm:$0xff] }
 0x26e   : > { %v3620_v2 = vpop.f32.mrf.mxu2  ;;  %4778 = vst.msk [vmem:[%s6846_s17 + $0x30] sm:$0xff] %vm1321_vm11, %v4746_v50  ;;  %v4815_v30 = vsel %vm1321_vm11, %v4746_v50, 0.0  ;;  %v4880_v31 = vmul.f32 %v4746_v50, %v4746_v50  ;;  %v4574_v41 = vunpack.c.l.b16 %v4524_v48  ;;  %v3185_v50 = vrot.slane %v3183_v15, 4 }
 0x26f   : > { %v4816_v49 = vadd.f32 %v4815_v30, %v4814_v36  ;;  %v4090_v26 = vrot.slane %v4089_v9, 4  ;;  %v4094_v30 = vrot.slane %v4092_v38, 5  ;;  %v3688_v52 = vadd.f32 %v3620_v2, %v3397_v7 }
 0x270   : > { %v4917_v43 = vsel %vm1321_vm11, %v4880_v31, 0.0  ;;  %v6994_v29 = vpop.f32.mrf.mxu1  ;;  %v4593_v39 = vpack.c.b16 %v4574_v41, %v4573_v54  ;;  %v4085_v48 = vsel %vm5819_vm12, %v4080_v56, %v6982_v12  ;;  %v3187_v2 = vsel %vm6148_vm15, %v3185_v50, %v3186_v44 }
 0x271   : > { %v4918_v21 = vadd.f32 %v4917_v43, %v4916_v18  ;;  %v4275_v60 = vpop.f32.mrf.mxu3  ;;  %v3033_v18 = vld [vmem:[#allocation2 + $0xb4] sm:$0xe]  ;;  %v4527_v43 = vrot.slane %v6960_v4, 5  ;;  %v4106_v4 = vshll.u32 %v7005_v40, 16  ;;  %v4095_v12 = vsel %vm5819_vm12, %v4090_v26, %v4094_v30 }
 0x272   : > { %v4677_v6 = vpop.f32.mrf.mxu0  ;;  %v4345_v36 = vadd.f32 %v4275_v60, %v3687_v27  ;;  %v5356_v25 = vrot.slane %v3033_v18, 9  ;;  %v3754_v27 = vld [vmem:[#allocation2 + $0xc0] sm:$0xf]  ;;  %v3398_v54 = vadd.f32 %v6964_v5, %v6471_v24  ;;  %v3227_v56 = vunpack.c.l.b16 %v3187_v2 }
 0x273   : > { %5377 = vmatmul.msk.bf16.gmra.mxu1 %vm1321_vm11, %v3243_v28  ;;  %v4530_v50 = vrot.slane %v6987_v23, 5  ;;  %v4174_v3 = vunpack.c.l.b16 %v4095_v12  ;;  %v7027_v30 = vrot.slane %v4106_v4, 5 }
 0x274   : > { %v4747_v55 = vadd.f32 %v4677_v6, %v4345_v36  ;;  %v3184_v9 = vsel %vm6148_vm15, %v5356_v25, %v3183_v15  ;;  %v4097_v36 = vshrl.u32 %v3754_v27, 16  ;;  %v4110_v15 = vshrl.u32 %v7005_v40, 16 }
 0x275   : > { %v3226_v41 = vunpack.c.l.b16 %v3184_v9  ;;  %v4529_v25 = vrot.slane %v4527_v43, 4 }
 0x276   : > { %v3622_v14 = vpop.f32.mrf.mxu2  ;;  %4779 = vst.msk [vmem:[%s6846_s17 + $0x38] sm:$0xff] %vm1321_vm11, %v4747_v55  ;;  %v4817_v31 = vsel %vm1321_vm11, %v4747_v55, 0.0  ;;  %v4881_v45 = vmul.f32 %v4747_v55, %v4747_v55  ;;  %5484 = vmatmul.msk.bf16.gmra.mxu3 %vm1321_vm11, %v4191_v13  ;;  %v4100_v13 = vshll.u32 %v3754_v27, 16 }
 0x277   : > { %v4818_v28 = vadd.f32 %v4817_v31, %v4816_v49  ;;  %v4383_v49 = vld [vmem:[#allocation2 + $0xb4] sm:$0xe]  ;;  %v3689_v31 = vadd.f32 %v3622_v14, %v3398_v54 }
 0x278   : > { %v4919_v20 = vsel %vm1321_vm11, %v4881_v45, 0.0  ;;  %v7012_v60 = vpop.f32.mrf.mxu1  ;;  %v5501_v55 = vrot.slane %v4383_v49, 9  ;;  %v4102_v26 = vrot.slane %v4100_v13, 5  ;;  %v7032_v45 = vld [vmem:[#allocation2 + $0xc8] sm:$0x1] }
 0x279   : > { %v4920_v38 = vadd.f32 %v4919_v20, %v4918_v21  ;;  %v4278_v6 = vpop.f32.mrf.mxu3  ;;  %v4173_v21 = vunpack.c.l.b16 %v4085_v48  ;;  %v3244_v20 = vpack.c.b16 %v3227_v56, %v3226_v41  ;;  %v4531_v48 = vsel %vm6148_vm15, %v4529_v25, %v4530_v50 }
 0x27a   : > { %v4680_v46 = vpop.f32.mrf.mxu0  ;;  %v4346_v7 = vadd.f32 %v4278_v6, %v3688_v52  ;;  %v4112_v52 = vrot.slane %v4110_v15, 4  ;;  %v4116_v14 = vshll.u32 %v7032_v45, 16  ;;  %v4576_v15 = vunpack.c.l.b16 %v4531_v48  ;;  %v7057_v48 = vld [vmem:[#allocation2 + $0xd0] sm:$0xf] }
 0x27b   : > { %5463 = vmatmul.msk.bf16.gmra.mxu2 %vm1321_vm11, %v5581_v62  ;;  %v4099_v62 = vrot.slane %v4097_v36, 4  ;;  %v4192_v4 = vpack.c.b16 %v4174_v3, %v4173_v21 }
 0x27c   : > { %v4748_v18 = vadd.f32 %v4680_v46, %v4346_v7  ;;  %v5653_v46 = vld [vmem:[#allocation2 + $0xc4] sm:$0xf]  ;;  %v4118_v50 = vrot.slane %v4116_v14, 5  ;;  %v4534_v14 = vrot.slane %v7005_v40, 5  ;;  %v3400_v40 = vadd.f32 %v7012_v60, %v6491_v51 }
 0x27d   : > { %5522 = vmatmul.msk.bf16.gmra.mxu0 %vm1321_vm11, %v4593_v39  ;;  %v4528_v39 = vsel %vm6148_vm15, %v5501_v55, %v4527_v43  ;;  %v4103_v49 = vor.u32 %v4102_v26, %v4099_v62  ;;  %v3190_v7 = vrot.slane %v5653_v46, 5  ;;  %v3399_v43 = vadd.f32 %v6994_v29, %v6478_v59  ;;  %v5582_v29 = vld [vmem:[#allocation2 + $0xc0] sm:$0xff] }
 0x27e   : > { %v3625_v44 = vpop.f32.mrf.mxu2  ;;  %4780 = vst.msk [vmem:[%s6846_s17 + $0x40] sm:$0xff] %vm1321_vm11, %v4748_v18  ;;  %v4819_v24 = vsel %vm1321_vm11, %v4748_v18, 0.0  ;;  %v4882_v5 = vmul.f32 %v4748_v18, %v4748_v18  ;;  %v4575_v12 = vunpack.c.l.b16 %v4528_v39  ;;  %v5654_v18 = vld [vmem:[#allocation2 + $0xc8] sm:$0x1] }
 0x27f   : > { %v4820_v27 = vadd.f32 %v4819_v24, %v4818_v28  ;;  %v4113_v28 = vor.u32 %v4112_v52, %v7027_v30  ;;  %v3192_v56 = vrot.slane %v3190_v7, 4  ;;  %v3193_v55 = vrot.slane %v5654_v18, 5  ;;  %v3757_v24 = vld [vmem:[#allocation2 + $0xcc] sm:$0xf] }
 0x280   : > { %v4921_v23 = vsel %vm1321_vm11, %v4882_v5, 0.0  ;;  %v7039_v9 = vpop.f32.mrf.mxu1  ;;  %v4104_v21 = vrot.slane %v4103_v49, 4  ;;  %v3690_v59 = vadd.f32 %v3625_v44, %v3399_v43  ;;  %v4594_v52 = vpack.c.b16 %v4576_v15, %v4575_v12 }
 0x281   : > { %v4922_v2 = vadd.f32 %v4921_v23, %v4920_v38  ;;  %v4280_v6 = vpop.f32.mrf.mxu3  ;;  %v3034_v38 = vld [vmem:[#allocation2 + $0xc0] sm:$0xe]  ;;  %v4114_v26 = vrot.slane %v4113_v28, 4  ;;  %v3194_v39 = vsel %vm6148_vm15, %v3192_v56, %v3193_v55  ;;  %v4124_v46 = vshll.u32 %v3757_v24, 16 }
 0x282   : > { %v4682_v36 = vpop.f32.mrf.mxu0  ;;  %v4347_v13 = vadd.f32 %v4280_v6, %v3689_v31  ;;  %v5357_v41 = vrot.slane %v3034_v38, 9  ;;  %v4109_v44 = vsel %vm5819_vm12, %v4104_v21, %v7027_v30  ;;  %v4130_v43 = vshll.u32 %v7057_v48, 16 }
 0x283   : > { %5378 = vmatmul.msk.bf16.gmra.mxu1 %vm1321_vm11, %v3244_v20  ;;  %v4119_v28 = vsel %vm5819_vm12, %v4114_v26, %v4118_v50  ;;  %v4134_v12 = vshrl.u32 %v7057_v48, 16  ;;  %v4175_v15 = vunpack.c.l.b16 %v4109_v44  ;;  %v4537_v56 = vrot.slane %v7032_v45, 5 }
 0x284   : > { %v4749_v54 = vadd.f32 %v4682_v36, %v4347_v13  ;;  %v3191_v23 = vsel %vm6148_vm15, %v5357_v41, %v3190_v7  ;;  %v4121_v36 = vshrl.u32 %v3757_v24, 16  ;;  %v4536_v41 = vrot.slane %v4534_v14, 4 }
 0x285   : > { %v3228_v7 = vunpack.c.l.b16 %v3191_v23  ;;  %v4132_v51 = vrot.slane %v4130_v43, 5  ;;  %v4136_v60 = vrot.slane %v4134_v12, 4  ;;  %v5583_v43 = vld [vmem:[#allocation2 + $0xcc] sm:$0xff] }
 0x286   : > { %v3627_v25 = vpop.f32.mrf.mxu2  ;;  %4781 = vst.msk [vmem:[%s6846_s17 + $0x48] sm:$0xff] %vm1321_vm11, %v4749_v54  ;;  %v4821_v3 = vsel %vm1321_vm11, %v4749_v54, 0.0  ;;  %v4883_v62 = vmul.f32 %v4749_v54, %v4749_v54  ;;  %5485 = vmatmul.msk.bf16.gmra.mxu3 %vm1321_vm11, %v4192_v4  ;;  %v4176_v54 = vunpack.c.l.b16 %v4119_v28  ;;  %v4123_v55 = vrot.slane %v4121_v36, 4 }
 0x287   : > { %v4822_v5 = vadd.f32 %v4821_v3, %v4820_v27  ;;  %v4384_v27 = vld [vmem:[#allocation2 + $0xc0] sm:$0xe]  ;;  %v3691_v3 = vadd.f32 %v3627_v25, %v3400_v40 }
 0x288   : > { %v4923_v31 = vsel %vm1321_vm11, %v4883_v62, 0.0  ;;  %v7051_v20 = vpop.f32.mrf.mxu1  ;;  %v5502_v38 = vrot.slane %v4384_v27, 9  ;;  %v4126_v62 = vrot.slane %v4124_v46, 5  ;;  %v4193_v25 = vpack.c.b16 %v4176_v54, %v4175_v15 }
 0x289   : > { %v4924_v6 = vadd.f32 %v4923_v31, %v4922_v2  ;;  %v4283_v49 = vpop.f32.mrf.mxu3  ;;  %v3229_v2 = vunpack.c.l.b16 %v3194_v39  ;;  %v7078_v31 = vld [vmem:[#allocation2 + $0xd4] sm:$0x1]  ;;  %v4137_v27 = vor.u32 %v4136_v60, %v4132_v51 }
 0x28a   : > { %v4685_v13 = vpop.f32.mrf.mxu0  ;;  %v4348_v4 = vadd.f32 %v4283_v49, %v3690_v59  ;;  %v4535_v23 = vsel %vm6148_vm15, %v5502_v38, %v4534_v14  ;;  %v4127_v44 = vor.u32 %v4126_v62, %v4123_v55  ;;  %v4140_v36 = vshll.u32 %v7078_v31, 16 }
 0x28b   : > { %5464 = vmatmul.msk.bf16.gmra.mxu2 %vm1321_vm11, %v5582_v29  ;;  %v3245_v29 = vpack.c.b16 %v3229_v2, %v3228_v7  ;;  %v4138_v40 = vrot.slane %v4137_v27, 4 }
 0x28c   : > { %v4750_v30 = vadd.f32 %v4685_v13, %v4348_v4  ;;  %v4577_v4 = vunpack.c.l.b16 %v4535_v23  ;;  %v4128_v12 = vrot.slane %v4127_v44, 4  ;;  %v4142_v15 = vrot.slane %v4140_v36, 5 }
 0x28d   : > { %5523 = vmatmul.msk.bf16.gmra.mxu0 %vm1321_vm11, %v4594_v52 }
 0x28e   : > { %v3630_v18 = vpop.f32.mrf.mxu2  ;;  %4782 = vst.msk [vmem:[%s6846_s17 + $0x50] sm:$0xff] %vm1321_vm11, %v4750_v30  ;;  %v4823_v21 = vsel %vm1321_vm11, %v4750_v30, 0.0  ;;  %v4884_v50 = vmul.f32 %v4750_v30, %v4750_v30 }
 0x28f   : > { %v4824_v59 = vadd.f32 %v4823_v21, %v4822_v5  ;;  %v4538_v5 = vsel %vm6148_vm15, %v4536_v41, %v4537_v56  ;;  %v4541_v56 = vrot.slane %v7057_v48, 5 }
 0x290   : > { %v4925_v26 = vsel %vm1321_vm11, %v4884_v50, 0.0  ;;  %v7076_v24 = vpop.f32.mrf.mxu1  ;;  %v4578_v28 = vunpack.c.l.b16 %v4538_v5  ;;  %v4385_v50 = vld [vmem:[#allocation2 + $0xcc] sm:$0xe] }
 0x291   : > { %v4926_v45 = vadd.f32 %v4925_v26, %v4924_v6  ;;  %v4285_v52 = vpop.f32.mrf.mxu3  ;;  %v3401_v6 = vadd.f32 %v7039_v9, %v6504_v42  ;;  %v5503_v60 = vrot.slane %v4385_v50, 9  ;;  %v4543_v48 = vrot.slane %v4541_v56, 4 }
 0x292   : > { %v4687_v39 = vpop.f32.mrf.mxu0  ;;  %v4349_v49 = vadd.f32 %v4285_v52, %v3691_v3  ;;  %v4595_v9 = vpack.c.b16 %v4578_v28, %v4577_v4  ;;  %v4143_v3 = vsel %vm5819_vm12, %v4138_v40, %v4142_v15  ;;  %v4544_v26 = vrot.slane %v7078_v31, 5 }
 0x293   : > { %5379 = vmatmul.msk.bf16.gmra.mxu1 %vm1321_vm11, %v3245_v29  ;;  %v3692_v2 = vadd.f32 %v3630_v18, %v3401_v6  ;;  %v4133_v18 = vsel %vm5819_vm12, %v4128_v12, %v4132_v51  ;;  %v4178_v0 = vunpack.c.l.b16 %v4143_v3  ;;  %v4542_v31 = vsel %vm6148_vm15, %v5503_v60, %v4541_v56 }
 0x294   : > { %v4751_v13 = vadd.f32 %v4687_v39, %v4349_v49  ;;  %v4177_v29 = vunpack.c.l.b16 %v4133_v18  ;;  %v4545_v36 = vsel %vm6148_vm15, %v4543_v48, %v4544_v26  ;;  %v3403_v6 = vadd.f32 %v7076_v24, %v6535_v1 }
 0x295   : > { %v4579_v4 = vunpack.c.l.b16 %v4542_v31  ;;  %v4580_v28 = vunpack.c.l.b16 %v4545_v36 }
 0x296   : > { %v3632_v46 = vpop.f32.mrf.mxu2  ;;  %4783 = vst.msk [vmem:[%s6846_s17 + $0x58] sm:$0xff] %vm1321_vm11, %v4751_v13  ;;  %v4825_v14 = vsel %vm1321_vm11, %v4751_v13, 0.0  ;;  %v4885_v7 = vmul.f32 %v4751_v13, %v4751_v13  ;;  %5486 = vmatmul.msk.bf16.gmra.mxu3 %vm1321_vm11, %v4193_v25  ;;  %v4194_v27 = vpack.c.b16 %v4178_v0, %v4177_v29 }
 0x297   : > { %v4826_v30 = vadd.f32 %v4825_v14, %v4824_v59  ;;  %v3402_v59 = vadd.f32 %v7051_v20, %v6516_v57  ;;  %v4596_v40 = vpack.c.b16 %v4580_v28, %v4579_v4 }
 0x298   : > { %v4927_v38 = vsel %vm1321_vm11, %v4885_v7, 0.0  ;;  %v3346_v54 = vpop.f32.mrf.mxu1 }
 0x299   : > { %v4928_v42 = vadd.f32 %v4927_v38, %v4926_v45  ;;  %v4288_v41 = vpop.f32.mrf.mxu3  ;;  %v3693_v23 = vadd.f32 %v3632_v46, %v3402_v59 }
 0x29a   : > { %v4690_v55 = vpop.f32.mrf.mxu0  ;;  %v4350_v21 = vadd.f32 %v4288_v41, %v3692_v2 }
 0x29b   : > { %5465 = vmatmul.msk.bf16.gmra.mxu2 %vm1321_vm11, %v5583_v43 }
 0x29c   : > { %v4752_v62 = vadd.f32 %v4690_v55, %v4350_v21 }
 0x29d   : > { %5524 = vmatmul.msk.bf16.gmra.mxu0 %vm1321_vm11, %v4595_v9 }
 0x29e   : > { %v3635_v45 = vpop.f32.mrf.mxu2  ;;  %4784 = vst.msk [vmem:[%s6846_s17 + $0x60] sm:$0xff] %vm1321_vm11, %v4752_v62  ;;  %v4827_v51 = vsel %vm1321_vm11, %v4752_v62, 0.0  ;;  %v4886_v52 = vmul.f32 %v4752_v62, %v4752_v62 }
 0x29f   : > { %v4828_v39 = vadd.f32 %v4827_v51, %v4826_v30  ;;  %v3694_v2 = vadd.f32 %v3635_v45, %v3403_v6 }
 0x2a0   : > { %v4929_v49 = vsel %vm1321_vm11, %v4886_v52, 0.0  ;;  %v3349_v57 = vpop.f32.mrf.mxu1 }
 0x2a1   : > { %v4930_v20 = vadd.f32 %v4929_v49, %v4928_v42  ;;  %v4290_v25 = vpop.f32.mrf.mxu3  ;;  %v3404_v42 = vadd.f32 %v3346_v54, %v6547_v19  ;;  %v3405_v19 = vadd.f32 %v3349_v57, %v6565_v61 }
 0x2a2   : > { %v4692_v5 = vpop.f32.mrf.mxu0  ;;  %v4351_v44 = vadd.f32 %v4290_v25, %v3693_v23 }
 0x2a4   : > { %v4753_v13 = vadd.f32 %v4692_v5, %v4351_v44 }
 0x2a6   : > { %v3637_v46 = vpop.f32.mrf.mxu2  ;;  %4785 = vst.msk [vmem:[%s6846_s17 + $0x68] sm:$0xff] %vm1321_vm11, %v4753_v13  ;;  %v4829_v14 = vsel %vm1321_vm11, %v4753_v13, 0.0  ;;  %v4887_v7 = vmul.f32 %v4753_v13, %v4753_v13  ;;  %5487 = vmatmul.msk.bf16.gmra.mxu3 %vm1321_vm11, %v4194_v27 }
 0x2a7   : > { %v4830_v43 = vadd.f32 %v4829_v14, %v4828_v39  ;;  %v3695_v55 = vadd.f32 %v3637_v46, %v3404_v42 }
 0x2a8   : > { %v4931_v34 = vsel %vm1321_vm11, %v4887_v7, 0.0  ;;  %v3351_v12 = vpop.f32.mrf.mxu1 }
 0x2a9   : > { %v4932_v30 = vadd.f32 %v4931_v34, %v4930_v20  ;;  %v4293_v15 = vpop.f32.mrf.mxu3  ;;  %v3406_v5 = vadd.f32 %v3351_v12, %v6581_v47 }
 0x2aa   : > { %v4695_v1 = vpop.f32.mrf.mxu0  ;;  %v4352_v24 = vadd.f32 %v4293_v15, %v3694_v2 }
 0x2ac   : > { %v4754_v38 = vadd.f32 %v4695_v1, %v4352_v24 }
 0x2ad   : > { %5525 = vmatmul.msk.bf16.gmra.mxu0 %vm1321_vm11, %v4596_v40 }
 0x2ae   : > { %v3640_v9 = vpop.f32.mrf.mxu2  ;;  %4786 = vst.msk [vmem:[%s6846_s17 + $0x70] sm:$0xff] %vm1321_vm11, %v4754_v38  ;;  %v4831_v41 = vsel %vm1321_vm11, %v4754_v38, 0.0  ;;  %v4888_v56 = vmul.f32 %v4754_v38, %v4754_v38 }
 0x2af   : > { %v4832_v21 = vadd.f32 %v4831_v41, %v4830_v43  ;;  %v3696_v45 = vadd.f32 %v3640_v9, %v3405_v19 }
 0x2b0   : > { %v4933_v18 = vsel %vm1321_vm11, %v4888_v56, 0.0  ;;  %v3354_v50 = vpop.f32.mrf.mxu1 }
 0x2b1   : > { %v4934_v3 = vadd.f32 %v4933_v18, %v4932_v30  ;;  %v4295_v62 = vpop.f32.mrf.mxu3  ;;  %v3407_v7 = vadd.f32 %v3354_v50, %v6601_v32 }
 0x2b2   : > { %v4697_v59 = vpop.f32.mrf.mxu0  ;;  %v4353_v29 = vadd.f32 %v4295_v62, %v3695_v55 }
 0x2b4   : > { %v4755_v60 = vadd.f32 %v4697_v59, %v4353_v29 }
 0x2b6   : > { %v3642_v54 = vpop.f32.mrf.mxu2  ;;  %4787 = vst.msk [vmem:[%s6846_s17 + $0x78] sm:$0xff] %vm1321_vm11, %v4755_v60  ;;  %v4833_v48 = vsel %vm1321_vm11, %v4755_v60, 0.0  ;;  %v4889_v26 = vmul.f32 %v4755_v60, %v4755_v60 }
 0x2b7   : > { %v4834_v51 = vadd.f32 %v4833_v48, %v4832_v21  ;;  %v3697_v27 = vadd.f32 %v3642_v54, %v3406_v5 }
 0x2b8   : > { %v4935_v52 = vsel %vm1321_vm11, %v4889_v26, 0.0  ;;  %v3356_v23 = vpop.f32.mrf.mxu1 }
 0x2b9   : > { %v4936_v0 = vadd.f32 %v4935_v52, %v4934_v3  ;;  %v4298_v39 = vpop.f32.mrf.mxu3  ;;  %v3408_v9 = vadd.f32 %v3356_v23, %v6613_v22 }
 0x2ba   : > { %v4700_v49 = vpop.f32.mrf.mxu0  ;;  %v4354_v20 = vadd.f32 %v4298_v39, %v3696_v45 }
 0x2bc   : > { %v4756_v25 = vadd.f32 %v4700_v49, %v4354_v20 }
 0x2be   : > { %v3645_v61 = vpop.f32.mrf.mxu2  ;;  %4788 = vst.msk [vmem:[%s6846_s17 + $0x80] sm:$0xff] %vm1321_vm11, %v4756_v25  ;;  %v4835_v57 = vsel %vm1321_vm11, %v4756_v25, 0.0  ;;  %v4890_v44 = vmul.f32 %v4756_v25, %v4756_v25 }
 0x2bf   : > { %v4836_v31 = vadd.f32 %v4835_v57, %v4834_v51  ;;  %v3698_v34 = vadd.f32 %v3645_v61, %v3407_v7 }
 0x2c0   : > { %v4937_v36 = vsel %vm1321_vm11, %v4890_v44, 0.0  ;;  %v3359_v13 = vpop.f32.mrf.mxu1 }
 0x2c1   : > { %v4938_v6 = vadd.f32 %v4937_v36, %v4936_v0  ;;  %v4300_v4 = vpop.f32.mrf.mxu3  ;;  %v3409_v19 = vadd.f32 %v3359_v13, %v6631_v10 }
 0x2c2   : > { %v4702_v28 = vpop.f32.mrf.mxu0  ;;  %v4355_v46 = vadd.f32 %v4300_v4, %v3697_v27 }
 0x2c4   : > { %v4757_v14 = vadd.f32 %v4702_v28, %v4355_v46 }
 0x2c6   : > { %v3647_v47 = vpop.f32.mrf.mxu2  ;;  %4789 = vst.msk [vmem:[%s6846_s17 + $0x88] sm:$0xff] %vm1321_vm11, %v4757_v14  ;;  %v4837_v2 = vsel %vm1321_vm11, %v4757_v14, 0.0  ;;  %v4891_v43 = vmul.f32 %v4757_v14, %v4757_v14 }
 0x2c7   : > { %v4838_v12 = vadd.f32 %v4837_v2, %v4836_v31  ;;  %v3699_v55 = vadd.f32 %v3647_v47, %v3408_v9 }
 0x2c8   : > { %v4939_v30 = vsel %vm1321_vm11, %v4891_v43, 0.0  ;;  %v3361_v40 = vpop.f32.mrf.mxu1 }
 0x2c9   : > { %v4940_v15 = vadd.f32 %v4939_v30, %v4938_v6  ;;  %v4303_v1 = vpop.f32.mrf.mxu3  ;;  %v3410_v25 = vadd.f32 %v3361_v40, %v6647_v11 }
 0x2ca   : > { %v4705_v24 = vpop.f32.mrf.mxu0  ;;  %v4356_v38 = vadd.f32 %v4303_v1, %v3698_v34 }
 0x2cc   : > { %v4758_v42 = vadd.f32 %v4705_v24, %v4356_v38 }
 0x2ce   : > { %v3650_v32 = vpop.f32.mrf.mxu2  ;;  %4790 = vst.msk [vmem:[%s6846_s17 + $0x90] sm:$0xff] %vm1321_vm11, %v4758_v42  ;;  %v4839_v41 = vsel %vm1321_vm11, %v4758_v42, 0.0  ;;  %v4892_v56 = vmul.f32 %v4758_v42, %v4758_v42 }
 0x2cf   : > { %v4840_v21 = vadd.f32 %v4839_v41, %v4838_v12  ;;  %v3700_v26 = vadd.f32 %v3650_v32, %v3409_v19 }
 0x2d0   : > { %v4941_v18 = vsel %vm1321_vm11, %v4892_v56, 0.0  ;;  %v3364_v50 = vpop.f32.mrf.mxu1 }
 0x2d1   : > { %v4942_v3 = vadd.f32 %v4941_v18, %v4940_v15  ;;  %v4305_v62 = vpop.f32.mrf.mxu3  ;;  %v3411_v46 = vadd.f32 %v3364_v50, %v6667_v58 }
 0x2d2   : > { %v4707_v59 = vpop.f32.mrf.mxu0  ;;  %v4357_v29 = vadd.f32 %v4305_v62, %v3699_v55 }
 0x2d4   : > { %v4759_v60 = vadd.f32 %v4707_v59, %v4357_v29 }
 0x2d6   : > { %v3652_v22 = vpop.f32.mrf.mxu2  ;;  %4791 = vst.msk [vmem:[%s6846_s17 + $0x98] sm:$0xff] %vm1321_vm11, %v4759_v60  ;;  %v4841_v54 = vsel %vm1321_vm11, %v4759_v60, 0.0  ;;  %v4893_v48 = vmul.f32 %v4759_v60, %v4759_v60 }
 0x2d7   : > { %v4842_v45 = vadd.f32 %v4841_v54, %v4840_v21  ;;  %v3701_v57 = vadd.f32 %v3652_v22, %v3410_v25 }
 0x2d8   : > { %v4943_v51 = vsel %vm1321_vm11, %v4893_v48, 0.0  ;;  %v3366_v0 = vpop.f32.mrf.mxu1 }
 0x2d9   : > { %v4944_v52 = vadd.f32 %v4943_v51, %v4942_v3  ;;  %v4308_v23 = vpop.f32.mrf.mxu3  ;;  %v3412_v1 = vadd.f32 %v3366_v0, %v6679_v33 }
 0x2da   : > { %v4710_v39 = vpop.f32.mrf.mxu0  ;;  %v4358_v49 = vadd.f32 %v4308_v23, %v3700_v26 }
 0x2dc   : > { %v4760_v20 = vadd.f32 %v4710_v39, %v4358_v49 }
 0x2de   : > { %v3655_v10 = vpop.f32.mrf.mxu2  ;;  %4792 = vst.msk [vmem:[%s6846_s17 + $0xa0] sm:$0xff] %vm1321_vm11, %v4760_v20  ;;  %v4843_v5 = vsel %vm1321_vm11, %v4760_v20, 0.0  ;;  %v4894_v61 = vmul.f32 %v4760_v20, %v4760_v20 }
 0x2df   : > { %v4844_v44 = vadd.f32 %v4843_v5, %v4842_v45  ;;  %v3702_v47 = vadd.f32 %v3655_v10, %v3411_v46 }
 0x2e0   : > { %v4945_v27 = vsel %vm1321_vm11, %v4894_v61, 0.0  ;;  %v3369_v4 = vpop.f32.mrf.mxu1 }
 0x2e1   : > { %v4946_v31 = vadd.f32 %v4945_v27, %v4944_v52  ;;  %v4310_v36 = vpop.f32.mrf.mxu3  ;;  %v3413_v3 = vadd.f32 %v3369_v4, %v6697_v8 }
 0x2e2   : > { %v4712_v13 = vpop.f32.mrf.mxu0  ;;  %v4359_v6 = vadd.f32 %v4310_v36, %v3701_v57 }
 0x2e4   : > { %v4761_v28 = vadd.f32 %v4712_v13, %v4359_v6 }
 0x2e6   : > { %v3657_v11 = vpop.f32.mrf.mxu2  ;;  %4793 = vst.msk [vmem:[%s6846_s17 + $0xa8] sm:$0xff] %vm1321_vm11, %v4761_v28  ;;  %v4845_v14 = vsel %vm1321_vm11, %v4761_v28, 0.0  ;;  %v4895_v7 = vmul.f32 %v4761_v28, %v4761_v28 }
 0x2e7   : > { %v4846_v2 = vadd.f32 %v4845_v14, %v4844_v44  ;;  %v3703_v9 = vadd.f32 %v3657_v11, %v3412_v1 }
 0x2e8   : > { %v4947_v43 = vsel %vm1321_vm11, %v4895_v7, 0.0  ;;  %v3371_v24 = vpop.f32.mrf.mxu1 }
 0x2e9   : > { %v4948_v34 = vadd.f32 %v4947_v43, %v4946_v31  ;;  %v4313_v12 = vpop.f32.mrf.mxu3  ;;  %v3414_v52 = vadd.f32 %v3371_v24, %v6713_v53 }
 0x2ea   : > { %v4715_v30 = vpop.f32.mrf.mxu0  ;;  %v4360_v40 = vadd.f32 %v4313_v12, %v3702_v47 }
 0x2ec   : > { %v4762_v15 = vadd.f32 %v4715_v30, %v4360_v40 }
 0x2ee   : > { %v3660_v58 = vpop.f32.mrf.mxu2  ;;  %4794 = vst.msk [vmem:[%s6846_s17 + $0xb0] sm:$0xff] %vm1321_vm11, %v4762_v15  ;;  %v4847_v38 = vsel %vm1321_vm11, %v4762_v15, 0.0  ;;  %v4896_v42 = vmul.f32 %v4762_v15, %v4762_v15 }
 0x2ef   : > { %v4848_v32 = vadd.f32 %v4847_v38, %v4846_v2  ;;  %v3704_v29 = vadd.f32 %v3660_v58, %v3413_v3 }
 0x2f0   : > { %v4949_v41 = vsel %vm1321_vm11, %v4896_v42, 0.0  ;;  %v3374_v19 = vpop.f32.mrf.mxu1 }
 0x2f1   : > { %v4950_v56 = vadd.f32 %v4949_v41, %v4948_v34  ;;  %v4315_v55 = vpop.f32.mrf.mxu3  ;;  %v3415_v27 = vadd.f32 %v3374_v19, %v6733_v37 }
 0x2f2   : > { %v4717_v21 = vpop.f32.mrf.mxu0  ;;  %v4361_v18 = vadd.f32 %v4315_v55, %v3703_v9 }
 0x2f4   : > { %v4763_v50 = vadd.f32 %v4717_v21, %v4361_v18 }
 0x2f6   : > { %v3662_v33 = vpop.f32.mrf.mxu2  ;;  %4795 = vst.msk [vmem:[%s6846_s17 + $0xb8] sm:$0xff] %vm1321_vm11, %v4763_v50  ;;  %v4849_v62 = vsel %vm1321_vm11, %v4763_v50, 0.0  ;;  %v4897_v59 = vmul.f32 %v4763_v50, %v4763_v50 }
 0x2f7   : > { %v4850_v60 = vadd.f32 %v4849_v62, %v4848_v32  ;;  %v3705_v39 = vadd.f32 %v3662_v33, %v3414_v52 }
 0x2f8   : > { %v4951_v22 = vsel %vm1321_vm11, %v4897_v59, 0.0  ;;  %v3376_v5 = vpop.f32.mrf.mxu1 }
 0x2f9   : > { %v4952_v54 = vadd.f32 %v4951_v22, %v4950_v56  ;;  %v4318_v48 = vpop.f32.mrf.mxu3  ;;  %v3416_v37 = vadd.f32 %v3376_v5, %v6745_v63 }
 0x2fa   : > { %v4720_v26 = vpop.f32.mrf.mxu0  ;;  %v4362_v45 = vadd.f32 %v4318_v48, %v3704_v29 }
 0x2fc   : > { %v4764_v51 = vadd.f32 %v4720_v26, %v4362_v45 }
 0x2fe   : > { %v3665_v8 = vpop.f32.mrf.mxu2  ;;  %4796 = vst.msk [vmem:[%s6846_s17 + $0xc0] sm:$0xff] %vm1321_vm11, %v4764_v51  ;;  %v4851_v23 = vsel %vm1321_vm11, %v4764_v51, 0.0  ;;  %v4898_v0 = vmul.f32 %v4764_v51, %v4764_v51 }
 0x2ff   : > { %v4852_v49 = vadd.f32 %v4851_v23, %v4850_v60  ;;  %v3706_v13 = vadd.f32 %v3665_v8, %v3415_v27 }
 0x300   : > { %v4953_v20 = vsel %vm1321_vm11, %v4898_v0, 0.0  ;;  %v3379_v7 = vpop.f32.mrf.mxu1 }
 0x301   : > { %v4954_v25 = vadd.f32 %v4953_v20, %v4952_v54  ;;  %v4320_v10 = vpop.f32.mrf.mxu3  ;;  %v3417_v42 = vadd.f32 %v3379_v7, %v6763_v17 }
 0x302   : > { %v4722_v61 = vpop.f32.mrf.mxu0  ;;  %v4363_v57 = vadd.f32 %v4320_v10, %v3705_v39 }
 0x304   : > { %v4765_v44 = vadd.f32 %v4722_v61, %v4363_v57 }
 0x306   : > { %v3667_v53 = vpop.f32.mrf.mxu2  ;;  %4797 = vst.msk [vmem:[%s6846_s17 + $0xc8] sm:$0xff] %vm1321_vm11, %v4765_v44  ;;  %v4853_v31 = vsel %vm1321_vm11, %v4765_v44, 0.0  ;;  %v4899_v36 = vmul.f32 %v4765_v44, %v4765_v44 }
 0x307   : > { %v4854_v6 = vadd.f32 %v4853_v31, %v4852_v49  ;;  %v3707_v12 = vadd.f32 %v3667_v53, %v3416_v37  ;;  %v7253_v53 = vld [vmem:[#allocation3_spill] sm:$0xff] }
 0x308   : > { %v4955_v4 = vsel %vm1321_vm11, %v4899_v36, 0.0  ;;  %v3381_v9 = vpop.f32.mrf.mxu1 }
 0x309   : > { %v4956_v28 = vadd.f32 %v4955_v4, %v4954_v25  ;;  %v4323_v46 = vpop.f32.mrf.mxu3  ;;  %v3418_v59 = vadd.f32 %v3381_v9, %v6783_v35 }
 0x30a   : > { %v4725_v11 = vpop.f32.mrf.mxu0  ;;  %v4364_v14 = vadd.f32 %v4323_v46, %v3706_v13 }
 0x30c   : > { %v4766_v47 = vadd.f32 %v4725_v11, %v4364_v14 }
 0x30e   : > { %v3670_v2 = vpop.f32.mrf.mxu2  ;;  %4798 = vst.msk [vmem:[%s6846_s17 + $0xd0] sm:$0xff] %vm1321_vm11, %v4766_v47  ;;  %v4855_v43 = vsel %vm1321_vm11, %v4766_v47, 0.0  ;;  %v4900_v34 = vmul.f32 %v4766_v47, %v4766_v47 }
 0x30f   : > { %v4856_v30 = vadd.f32 %v4855_v43, %v4854_v6  ;;  %v3708_v41 = vadd.f32 %v3670_v2, %v3417_v42 }
 0x310   : > { %v4957_v40 = vsel %vm1321_vm11, %v4900_v34, 0.0  ;;  %v3384_v22 = vpop.f32.mrf.mxu1 }
 0x311   : > { %v4958_v15 = vadd.f32 %v4957_v40, %v4956_v28  ;;  %v4325_v1 = vpop.f32.mrf.mxu3  ;;  %v3419_v23 = vadd.f32 %v3384_v22, %v6804_v16 }
 0x312   : > { %v4727_v58 = vpop.f32.mrf.mxu0  ;;  %v4365_v24 = vadd.f32 %v4325_v1, %v3707_v12 }
 0x314   : > { %v4767_v38 = vadd.f32 %v4727_v58, %v4365_v24 }
 0x316   : > { %4799 = vst.msk [vmem:[%s6846_s17 + $0xd8] sm:$0xff] %vm1321_vm11, %v4767_v38  ;;  %v4857_v63 = vsel %vm1321_vm11, %v4767_v38, 0.0  ;;  %v4901_v32 = vmul.f32 %v4767_v38, %v4767_v38  ;;  %v3672_v55 = vpop.f32.mrf.mxu2 }
 0x317   : > { %v4858_v56 = vadd.f32 %v4857_v63, %v4856_v30  ;;  %v3709_v60 = vadd.f32 %v3672_v55, %v3418_v59 }
 0x318   : > { %v4959_v21 = vsel %vm1321_vm11, %v4901_v32, 0.0  ;;  %v3386_v5 = vpop.f32.mrf.mxu1 }
 0x319   : > { %v4960_v18 = vadd.f32 %v4959_v21, %v4958_v15  ;;  %v4328_v50 = vpop.f32.mrf.mxu3  ;;  %v3420_v31 = vadd.f32 %v3386_v5, %v7253_v53 }
 0x31a   : > { %v4730_v3 = vpop.f32.mrf.mxu0  ;;  %v4366_v33 = vadd.f32 %v4328_v50, %v3708_v41 }
 0x31c   : > { %v4768_v62 = vadd.f32 %v4730_v3, %v4366_v33 }
 0x31e   : > { %4800 = vst.msk [vmem:[%s6846_s17 + $0xe0] sm:$0xff] %vm1321_vm11, %v4768_v62  ;;  %v4859_v17 = vsel %vm1321_vm11, %v4768_v62, 0.0  ;;  %v4902_v29 = vmul.f32 %v4768_v62, %v4768_v62  ;;  %v3675_v45 = vpop.f32.mrf.mxu2 }
 0x31f   : > { %v4860_v19 = vadd.f32 %v4859_v17, %v4858_v56  ;;  %v3710_v39 = vadd.f32 %v3675_v45, %v3419_v23 }
 0x320   : > { %v4961_v54 = vsel %vm1321_vm11, %v4902_v29, 0.0 }
 0x321   : > { %v4962_v48 = vadd.f32 %v4961_v54, %v4960_v18  ;;  %v4330_v26 = vpop.f32.mrf.mxu3 }
 0x322   : > { %v4732_v51 = vpop.f32.mrf.mxu0  ;;  %v4367_v52 = vadd.f32 %v4330_v26, %v3709_v60 }
 0x324   : > { %v4769_v8 = vadd.f32 %v4732_v51, %v4367_v52 }
 0x326   : > { %4801 = vst.msk [vmem:[%s6846_s17 + $0xe8] sm:$0xff] %vm1321_vm11, %v4769_v8  ;;  %v4861_v35 = vsel %vm1321_vm11, %v4769_v8, 0.0  ;;  %v4903_v0 = vmul.f32 %v4769_v8, %v4769_v8  ;;  %v3677_v44 = vpop.f32.mrf.mxu2 }
 0x327   : > { %v4862_v49 = vadd.f32 %v4861_v35, %v4860_v19  ;;  %v3711_v13 = vadd.f32 %v3677_v44, %v3420_v31 }
 0x328   : > { %v4963_v20 = vsel %vm1321_vm11, %v4903_v0, 0.0 }
 0x329   : > { %v4964_v25 = vadd.f32 %v4963_v20, %v4962_v48  ;;  %v4333_v10 = vpop.f32.mrf.mxu3 }
 0x32a   : > { %v4735_v61 = vpop.f32.mrf.mxu0  ;;  %v4368_v57 = vadd.f32 %v4333_v10, %v3710_v39 }
 0x32c   : > { %v4770_v27 = vadd.f32 %v4735_v61, %v4368_v57 }
 0x32e   : > { %4802 = vst.msk [vmem:[%s6846_s17 + $0xf0] sm:$0xff] %vm1321_vm11, %v4770_v27  ;;  %v4863_v16 = vsel %vm1321_vm11, %v4770_v27, 0.0  ;;  %v4904_v36 = vmul.f32 %v4770_v27, %v4770_v27 }
 0x32f   : > { %v4864_v6 = vadd.f32 %v4863_v16, %v4862_v49 }
 0x330   : > { %v4965_v4 = vsel %vm1321_vm11, %v4904_v36, 0.0 }
 0x331   : > { %v4966_v28 = vadd.f32 %v4965_v4, %v4964_v25  ;;  %v4335_v46 = vpop.f32.mrf.mxu3 }
 0x332   : > { %v4369_v11 = vadd.f32 %v4335_v46, %v3711_v13  ;;  %v4737_v14 = vpop.f32.mrf.mxu0 }
 0x334   : > { %v4771_v7 = vadd.f32 %v4737_v14, %v4369_v11 }
 0x336   : > { %4803 = vst.msk [vmem:[%s6846_s17 + $0xf8] sm:$0xff] %vm1321_vm11, %v4771_v7  ;;  %v4865_v47 = vsel %vm1321_vm11, %v4771_v7, 0.0  ;;  %v4905_v37 = vmul.f32 %v4771_v7, %v4771_v7 }
 0x337   : > { %v4866_v2 = vadd.f32 %v4865_v47, %v4864_v6 }
 0x338   : > { %v4967_v43 = vsel %vm1321_vm11, %v4905_v37, 0.0 }
 0x339   : > { %v4867_v34 = vrot.slane %v4866_v2, 4  ;;  %v4968_v12 = vadd.f32 %v4967_v43, %v4966_v28 }
 0x33b   : > { %v4868_v30 = vadd.f32 %v4867_v34, %v4866_v2  ;;  %v4969_v40 = vrot.slane %v4968_v12, 4 }
 0x33d   : > { %v4869_v15 = vrot.slane %v4868_v30, 2  ;;  %v4970_v1 = vadd.f32 %v4969_v40, %v4968_v12 }
 0x33f   : > { %v4870_v58 = vadd.f32 %v4869_v15, %v4868_v30  ;;  %v4971_v24 = vrot.slane %v4970_v1, 2 }
 0x341   : > { %v4871_v38 = vrot.slane %v4870_v58, 1  ;;  %v4972_v42 = vadd.f32 %v4971_v24, %v4970_v1 }
 0x343   : > { %v4872_v9 = vadd.f32 %v4871_v38, %v4870_v58  ;;  %v4973_v63 = vrot.slane %v4972_v42, 1 }
 0x345   : > { %4873 = vst.msk [vmem:[%s211_s20] sm:$0x1] %vm251_vm0, %v4872_v9  ;;  %v4974_v32 = vadd.f32 %v4973_v63, %v4972_v42 }
 0x347   : > { %4975 = vst.msk [vmem:[%s214_s23] sm:$0x1] %vm251_vm0, %v4974_v32 }
 0x348 PF: > { %s15_s15 = sadd.s32 1, %s5661_s15  }
 0x349   : > { %p12_p4 = scmp.ge.s32.totalorder %s15_s15, 4  }
 0x34b   :  { %14 = sbr.rel (!%p12_p4) target bundleno = 1 (0x1), region = 93 }

</bundles_post_ra>
